<compile_context>
chip_gen: v5e
topology: v5e:2x2
jax: 0.10.0
libtpu: 0.0.40
codegen_flags: <defaults>
</compile_context>

<pallas_src>
import functools

import jax
import jax.numpy as jnp
from jax.experimental import pallas as pl
from jax.experimental.pallas import tpu as pltpu

_HALO = 3  # three chained 3x3 depthwise convs -> 3-row halo on each side of an H tile


def _silu(v):
    return v * jax.nn.sigmoid(v)


def _cib_kernel(xm_ref, top_ref, bot_ref,
                dw1_ref, b1_ref,
                pw1_ref, b2_ref,
                dw2_ref, b3_ref,
                pw2_ref, b4_ref,
                dw3_ref, b5_ref,
                o_ref,
                *, add, img_h):
    """One grid step: one batch element x one H tile (TH rows + 3-row halo per side)."""
    th, wd, _ = xm_ref.shape
    hp = th + 2 * _HALO

    # --- hoisted masks, shared by all three depthwise layers ---
    col = jax.lax.broadcasted_iota(jnp.int32, (1, wd, 1), 1)
    mask_l = col > 0          # tap reads w-1: invalid at w == 0
    mask_r = col < wd - 1     # tap reads w+1: invalid at w == wd-1

    # absolute image row of each tile row; rows outside [0, img_h) must be zeroed
    # before the 2nd/3rd depthwise conv so image-border tiles reproduce the
    # reference's per-layer zero padding.
    i = pl.program_id(1)
    rows = jax.lax.broadcasted_iota(jnp.int32, (hp, 1, 1), 0)
    abs_row = i * th - _HALO + rows
    row_ok = jnp.logical_and(abs_row >= 0, abs_row < img_h)

    def dw3x3(v, w9, bias):
        # Depthwise 3x3, stride 1. Zero padding at the tile edges (the halo rows make
        # the central TH rows exact). kw-major accumulation keeps only {vp, acc, one
        # shifted copy} live; W taps via XLU rolls, H taps via cheap row slices.
        h, w_, c = v.shape
        zrow = jnp.zeros((1, w_, c), jnp.float32)
        vp = jnp.concatenate([zrow, v, zrow], axis=0)            # (h+2, w_, c)
        acc = jnp.zeros((h, w_, c), jnp.float32)
        for kh in range(3):                                      # centre column, kw=1
            acc = acc + vp[kh:kh + h] * w9[kh * 3 + 1:kh * 3 + 2, :]
        sh = jnp.where(mask_l, pltpu.roll(vp, shift=1, axis=1), 0.0)        # reads w-1
        for kh in range(3):
            acc = acc + sh[kh:kh + h] * w9[kh * 3 + 0:kh * 3 + 1, :]
        sh = jnp.where(mask_r, pltpu.roll(vp, shift=w_ - 1, axis=1), 0.0)   # reads w+1
        for kh in range(3):
            acc = acc + sh[kh:kh + h] * w9[kh * 3 + 2:kh * 3 + 3, :]
        # TODO(synk): on v6e/v7x try bf16 taps (packed vregs) to halve the VALU-bound
        # depthwise cost; keep f32 on v5e (no bf16 VPU). Re-validate precision.
        return _silu(acc + bias)

    def pw1x1(v, w_bf16, bias):
        # Pointwise 1x1 conv == channel matmul on the MXU: bf16 operands, f32 acc.
        h, w_, cin = v.shape
        cout = w_bf16.shape[1]
        y = jnp.dot(v.reshape(h * w_, cin).astype(jnp.bfloat16), w_bf16,
                    preferred_element_type=jnp.float32)
        return _silu(y.reshape(h, w_, cout) + bias)

    # halo rows + main rows; this concat value dies after the first depthwise layer.
    x = jnp.concatenate([top_ref[...], xm_ref[...], bot_ref[...]],
                        axis=0).astype(jnp.float32)              # (th+6, W, C1)

    y = dw3x3(x, dw1_ref[...], b1_ref[...])
    y = pw1x1(y, pw1_ref[...], b2_ref[...])
    y = jnp.where(row_ok, y, 0.0)
    y = dw3x3(y, dw2_ref[...], b3_ref[...])
    y = pw1x1(y, pw2_ref[...], b4_ref[...])
    y = jnp.where(row_ok, y, 0.0)
    y = dw3x3(y, dw3_ref[...], b5_ref[...])

    y = y[_HALO:_HALO + th]                                      # drop halo rows
    if add:
        # residual re-reads the pipelined input block (already resident in VMEM)
        # instead of keeping a full-tile f32 live range across all five layers.
        y = y + xm_ref[...].astype(jnp.float32)
    o_ref[...] = y.astype(o_ref.dtype)


def _pick_tile_h(H, W, cmax, n_batch, budget_bytes=24 << 20):
    """Largest divisor of H whose ~8 live f32 (TH+6, W, Cmax) tiles fit the budget."""
    best = 1
    for th in range(1, H + 1):
        if H % th:
            continue
        if 8 * (th + 2 * _HALO) * W * cmax * 4 <= budget_bytes:
            best = th
    # keep >= 2 grid steps when possible (v7x second TensorCore / pipeline overlap)
    if n_batch * (H // best) < 2:
        for th in range(best - 1, 0, -1):
            if H % th == 0:
                best = th
                break
    return best


def cib_forward(x, folded_params, *, shortcut=True, tile_h=None):
    """x: (N, H, W, C1) float32 NHWC. folded_params from fold_bn_params()."""
    N, H, W, C1 = x.shape
    (dw1_w, b1, pw1_w, b2,
     dw2_w, b3, pw2_w, b4,
     dw3_w, b5) = folded_params
    Cmid = pw1_w.shape[1]
    C2 = pw2_w.shape[1]
    add = shortcut and (C1 == C2)

    if tile_h is None:
        # TODO(synk): per-generation tuning - taller tiles on v5e/v6e (128 MiB VMEM),
        # TH*W a multiple of 256 (v6e/v7x MXU) or 128 (v5e).
        tile_h = _pick_tile_h(H, W, max(C1, Cmid, C2), N)
    assert H % tile_h == 0, f"tile_h={tile_h} must divide H={H}"
    n_tiles = H // tile_h

    # Overlapping +/-3-row halo windows, gathered once in the wrapper from the real
    # input (zero rows past the image edge) so the kernel's main input stays a plain
    # blocked, auto-pipelined window and interior tile halos are exact.
    xp = jnp.pad(x, ((0, 0), (_HALO, _HALO), (0, 0), (0, 0)))
    starts = jnp.arange(n_tiles) * tile_h
    offs = jnp.arange(_HALO)
    top_idx = (starts[:, None] + offs[None, :]).reshape(-1)   # image rows i*TH-3..i*TH-1
    bot_idx = top_idx + tile_h + _HALO                        # image rows (i+1)*TH..+2
    top = xp[:, top_idx].reshape(N * n_tiles, _HALO, W, C1)
    bot = xp[:, bot_idx].reshape(N * n_tiles, _HALO, W, C1)

    params = (dw1_w, b1, pw1_w, b2, dw2_w, b3, pw2_w, b4, dw3_w, b5)

    def param_spec(a):
        nd = a.ndim
        return pl.BlockSpec(a.shape, lambda n, i, _nd=nd: (0,) * _nd)

    kernel = functools.partial(_cib_kernel, add=add, img_h=H)

    # Advisory cost hint so XLA schedules the custom call sensibly in a larger graph.
    flops = (18 * N * H * W * (C1 + Cmid + C2)                  # 3 depthwise 3x3 layers
             + 2 * N * H * W * (C1 * Cmid + Cmid * C2))         # 2 pointwise matmuls
    transcendentals = N * H * W * (C1 + 2 * Cmid + 2 * C2)      # one sigmoid per SiLU elem
    param_bytes = sum(int(p.size) * p.dtype.itemsize for p in params)
    bytes_accessed = (int(x.size) * x.dtype.itemsize
                      + int(top.size + bot.size) * x.dtype.itemsize
                      + N * H * W * C2 * x.dtype.itemsize + param_bytes)

    # TODO(synk): at channel counts that aren't multiples of 128 (e.g. this C=8 demo)
    # most lanes idle and the output store is masked; repack (W, C) onto the lane axis
    # or deploy with C >= 128 for lane-dense stores / full MXU utilization.
    # TODO(synk): if xprof shows exposed input DMA at real shapes, add
    # pipeline_mode=pl.Buffered(3) to the main-input BlockSpec.
    return pl.pallas_call(
        kernel,
        out_shape=jax.ShapeDtypeStruct((N, H, W, C2), x.dtype),
        grid=(N, n_tiles),
        in_specs=[pl.BlockSpec((None, tile_h, W, C1), lambda n, i: (n, i, 0, 0)),
                  pl.BlockSpec((None, _HALO, W, C1),
                               lambda n, i, _nt=n_tiles: (n * _nt + i, 0, 0, 0)),
                  pl.BlockSpec((None, _HALO, W, C1),
                               lambda n, i, _nt=n_tiles: (n * _nt + i, 0, 0, 0))]
                 + [param_spec(p) for p in params],
        out_specs=pl.BlockSpec((None, tile_h, W, C2), lambda n, i: (n, i, 0, 0)),
        compiler_params=pltpu.CompilerParams(
            dimension_semantics=("parallel", "parallel"),
            vmem_limit_bytes=64 * 1024 * 1024),
        cost_estimate=pl.CostEstimate(
            flops=int(flops),
            transcendentals=int(transcendentals),
            bytes_accessed=int(bytes_accessed)),
    )(x, top, bot, *params)


def make_params(key, c1, c2, e=0.5):
    """Deterministic synthetic weights; BN represented as per-channel scale/bias."""
    c_ = int(c2 * e)
    cm = 2 * c_
    ks = jax.random.split(key, 10)

    def bn_fold(kk, c):
        kg, kb, km, kv = jax.random.split(kk, 4)
        gamma = jax.random.uniform(kg, (1, c), jnp.float32, 0.5, 1.5)
        beta = 0.1 * jax.random.normal(kb, (1, c), jnp.float32)
        mean = 0.1 * jax.random.normal(km, (1, c), jnp.float32)
        var = jax.random.uniform(kv, (1, c), jnp.float32, 0.5, 1.5)
        scale = gamma / jnp.sqrt(var + 1e-5)
        bias = beta - mean * scale
        return scale, bias

    def dw_w(kk, c):                       # (9, c): tap index = kh*3 + kw
        return 0.3 * jax.random.normal(kk, (9, c), jnp.float32)

    def pw_w(kk, cin, cout):               # (cin, cout)
        return jax.random.normal(kk, (cin, cout), jnp.float32) / jnp.sqrt(cin)

    s1, b1 = bn_fold(ks[0], c1)
    s2, b2 = bn_fold(ks[1], cm)
    s3, b3 = bn_fold(ks[2], cm)
    s4, b4 = bn_fold(ks[3], c2)
    s5, b5 = bn_fold(ks[4], c2)
    return (dw_w(ks[5], c1), s1, b1,
            pw_w(ks[6], c1, cm), s2, b2,
            dw_w(ks[7], cm), s3, b3,
            pw_w(ks[8], cm, c2), s4, b4,
            dw_w(ks[9], c2), s5, b5)


def fold_bn_params(params):
    """One-time prep: fold BN scale into conv weights; cast pointwise weights to bf16."""
    (dw1_w, s1, b1, pw1_w, s2, b2,
     dw2_w, s3, b3, pw2_w, s4, b4,
     dw3_w, s5, b5) = params
    return (dw1_w * s1, b1,
            (pw1_w * s2).astype(jnp.bfloat16), b2,
            dw2_w * s3, b3,
            (pw2_w * s4).astype(jnp.bfloat16), b4,
            dw3_w * s5, b5)


def cib_reference(x, params, *, shortcut=True, pw_dtype=jnp.float32):
    """Pure-JAX (XLA) reference. pw_dtype=bf16 mirrors the kernel's MXU precision policy."""
    (dw1_w, s1, b1, pw1_w, s2, b2,
     dw2_w, s3, b3, pw2_w, s4, b4,
     dw3_w, s5, b5) = params

    def dw_conv(v, w9, s, b):
        c = w9.shape[1]
        w = w9.reshape(3, 3, 1, c)
        y = jax.lax.conv_general_dilated(
            v, w, (1, 1), 'SAME',
            dimension_numbers=('NHWC', 'HWIO', 'NHWC'),
            feature_group_count=c)
        return _silu(y * s + b)

    def pw_conv(v, w, s, b):
        wf = (w * s).astype(pw_dtype)     # scale folded, matching the kernel
        y = jnp.einsum('nhwc,cd->nhwd', v.astype(pw_dtype), wf,
                       preferred_element_type=jnp.float32)
        return _silu(y + b)

    y = dw_conv(x, dw1_w, s1, b1)
    y = pw_conv(y, pw1_w, s2, b2)
    y = dw_conv(y, dw2_w, s3, b3)
    y = pw_conv(y, pw2_w, s4, b4)
    y = dw_conv(y, dw3_w, s5, b5)
    if shortcut and x.shape[-1] == y.shape[-1]:
        y = x + y
    return y


if __name__ == "__main__":
    N, H, W, C = 2, 16, 16, 8          # c1 = c2 = 8, e = 0.5 -> 2*c_ = 8
    key = jax.random.PRNGKey(0)
    kx, kp = jax.random.split(key)
    x = jax.random.normal(kx, (N, H, W, C), jnp.float32)   # NHWC (== NCHW [2,8,16,16])
    params = make_params(kp, C, C, e=0.5)
    folded = fold_bn_params(params)

    # Tiled run (2 H-tiles per image -> exercises the halo path), plus an untiled run
    # to verify the H-tiling is result-invariant.
    out = cib_forward(x, folded, shortcut=True, tile_h=8)
    out = jax.block_until_ready(out)
    out_full = jax.block_until_ready(cib_forward(x, folded, shortcut=True, tile_h=H))
    tiling_err = float(jnp.max(jnp.abs(out - out_full)))
    assert tiling_err < 1e-4, f"H-tiling changed the result: {tiling_err}"

    # Precision-matched reference (pointwise matmuls in bf16, like the kernel's MXU path).
    ref_bf16 = cib_reference(x, params, shortcut=True, pw_dtype=jnp.bfloat16)
    err = float(jnp.max(jnp.abs(out - ref_bf16)))
    tol = 5e-2 * (1.0 + float(jnp.max(jnp.abs(ref_bf16))))
    assert err < tol, f"Pallas kernel mismatch vs bf16-matched reference: {err} (tol {tol})"

    # Sanity vs the pure-f32 module semantics (loose bound accounts for the bf16 MXU policy).
    ref_f32 = cib_reference(x, params, shortcut=True, pw_dtype=jnp.float32)
    err32 = float(jnp.max(jnp.abs(out - ref_f32)))
    tol32 = 5e-2 * (1.0 + float(jnp.max(jnp.abs(ref_f32))))
    assert err32 < tol32, f"bf16 policy drift too large: {err32} (tol {tol32})"

    print("KERNEL_OK")
</pallas_src>

<mosaic_0001>
module attributes {stable_mosaic.version = 11 : i64} {
  func.func @_cib_kernel(%arg0: i32, %arg1: i32, %arg2: memref<1x8x16x8xf32, #tpu.memory_space<vmem>>, %arg3: memref<1x3x16x8xf32, #tpu.memory_space<vmem>>, %arg4: memref<1x3x16x8xf32, #tpu.memory_space<vmem>>, %arg5: memref<9x8xf32, #tpu.memory_space<vmem>>, %arg6: memref<1x8xf32, #tpu.memory_space<vmem>>, %arg7: memref<8x8xbf16, #tpu.memory_space<vmem>>, %arg8: memref<1x8xf32, #tpu.memory_space<vmem>>, %arg9: memref<9x8xf32, #tpu.memory_space<vmem>>, %arg10: memref<1x8xf32, #tpu.memory_space<vmem>>, %arg11: memref<8x8xbf16, #tpu.memory_space<vmem>>, %arg12: memref<1x8xf32, #tpu.memory_space<vmem>>, %arg13: memref<9x8xf32, #tpu.memory_space<vmem>>, %arg14: memref<1x8xf32, #tpu.memory_space<vmem>>, %arg15: memref<1x8x16x8xf32, #tpu.memory_space<vmem>>) attributes {dimension_semantics = [#tpu.dimension_semantics<parallel>, #tpu.dimension_semantics<parallel>], iteration_bounds = array<i64: 2, 2>, scalar_prefetch = 0 : i64, scratch_operands = 0 : i64, tpu.core_type = #tpu.core_type<tc>, window_params = [{transform_indices = @transform_0, window_bounds = array<i64: 1, 8, 16, 8>}, {transform_indices = @transform_1, window_bounds = array<i64: 1, 3, 16, 8>}, {transform_indices = @transform_2, window_bounds = array<i64: 1, 3, 16, 8>}, {pipeline_mode = #tpu.pipeline_mode<synchronous>, transform_indices = @transform_3, window_bounds = array<i64: 9, 8>}, {pipeline_mode = #tpu.pipeline_mode<synchronous>, transform_indices = @transform_4, window_bounds = array<i64: 1, 8>}, {pipeline_mode = #tpu.pipeline_mode<synchronous>, transform_indices = @transform_5, window_bounds = array<i64: 8, 8>}, {pipeline_mode = #tpu.pipeline_mode<synchronous>, transform_indices = @transform_6, window_bounds = array<i64: 1, 8>}, {pipeline_mode = #tpu.pipeline_mode<synchronous>, transform_indices = @transform_7, window_bounds = array<i64: 9, 8>}, {pipeline_mode = #tpu.pipeline_mode<synchronous>, transform_indices = @transform_8, window_bounds = array<i64: 1, 8>}, {pipeline_mode = #tpu.pipeline_mode<synchronous>, transform_indices = @transform_9, window_bounds = array<i64: 8, 8>}, {pipeline_mode = #tpu.pipeline_mode<synchronous>, transform_indices = @transform_10, window_bounds = array<i64: 1, 8>}, {pipeline_mode = #tpu.pipeline_mode<synchronous>, transform_indices = @transform_11, window_bounds = array<i64: 9, 8>}, {pipeline_mode = #tpu.pipeline_mode<synchronous>, transform_indices = @transform_12, window_bounds = array<i64: 1, 8>}, {transform_indices = @transform_13, window_bounds = array<i64: 1, 8, 16, 8>}]} {
    %0 = tpu.iota {dimensions = array<i32: 1>} : vector<1x16x1xi32>
    %c0_i32 = arith.constant 0 : i32
    %1 = vector.broadcast %c0_i32 : i32 to vector<1x16x1xi32>
    %2 = arith.cmpi sgt, %0, %1 : vector<1x16x1xi32>
    %c15_i32 = arith.constant 15 : i32
    %3 = vector.broadcast %c15_i32 : i32 to vector<1x16x1xi32>
    %4 = arith.cmpi slt, %0, %3 : vector<1x16x1xi32>
    %5 = tpu.iota {dimensions = array<i32: 0>} : vector<14x1x1xi32>
    %c8_i32 = arith.constant 8 : i32
    %6 = arith.muli %arg1, %c8_i32 : i32
    %c3_i32 = arith.constant 3 : i32
    %7 = arith.subi %6, %c3_i32 : i32
    %8 = vector.broadcast %7 : i32 to vector<14x1x1xi32>
    %9 = arith.addi %8, %5 : vector<14x1x1xi32>
    %c0_i32_0 = arith.constant 0 : i32
    %10 = vector.broadcast %c0_i32_0 : i32 to vector<14x1x1xi32>
    %11 = arith.cmpi sge, %9, %10 : vector<14x1x1xi32>
    %c16_i32 = arith.constant 16 : i32
    %12 = vector.broadcast %c16_i32 : i32 to vector<14x1x1xi32>
    %13 = arith.cmpi slt, %9, %12 : vector<14x1x1xi32>
    %14 = arith.andi %11, %13 : vector<14x1x1xi1>
    %c0 = arith.constant 0 : index
    %c0_1 = arith.constant 0 : index
    %c0_2 = arith.constant 0 : index
    %c0_3 = arith.constant 0 : index
    %15 = vector.load %arg3[%c0, %c0_1, %c0_2, %c0_3] : memref<1x3x16x8xf32, #tpu.memory_space<vmem>>, vector<1x3x16x8xf32>
    %16 = vector.shape_cast %15 : vector<1x3x16x8xf32> to vector<3x16x8xf32>
    %c0_4 = arith.constant 0 : index
    %c0_5 = arith.constant 0 : index
    %c0_6 = arith.constant 0 : index
    %c0_7 = arith.constant 0 : index
    %17 = vector.load %arg2[%c0_4, %c0_5, %c0_6, %c0_7] : memref<1x8x16x8xf32, #tpu.memory_space<vmem>>, vector<1x8x16x8xf32>
    %18 = vector.shape_cast %17 : vector<1x8x16x8xf32> to vector<8x16x8xf32>
    %c0_8 = arith.constant 0 : index
    %c0_9 = arith.constant 0 : index
    %c0_10 = arith.constant 0 : index
    %c0_11 = arith.constant 0 : index
    %19 = vector.load %arg4[%c0_8, %c0_9, %c0_10, %c0_11] : memref<1x3x16x8xf32, #tpu.memory_space<vmem>>, vector<1x3x16x8xf32>
    %20 = vector.shape_cast %19 : vector<1x3x16x8xf32> to vector<3x16x8xf32>
    %21 = tpu.concatenate %16, %18, %20 in 0 : vector<3x16x8xf32>, vector<8x16x8xf32>, vector<3x16x8xf32> -> vector<14x16x8xf32>
    %c0_12 = arith.constant 0 : index
    %c0_13 = arith.constant 0 : index
    %22 = vector.load %arg5[%c0_12, %c0_13] : memref<9x8xf32, #tpu.memory_space<vmem>>, vector<9x8xf32>
    %c0_14 = arith.constant 0 : index
    %c0_15 = arith.constant 0 : index
    %23 = vector.load %arg6[%c0_14, %c0_15] : memref<1x8xf32, #tpu.memory_space<vmem>>, vector<1x8xf32>
    %cst = arith.constant 0.000000e+00 : f32
    %24 = vector.broadcast %cst : f32 to vector<1x16x8xf32>
    %25 = tpu.concatenate %24, %21, %24 in 0 : vector<1x16x8xf32>, vector<14x16x8xf32>, vector<1x16x8xf32> -> vector<16x16x8xf32>
    %cst_16 = arith.constant 0.000000e+00 : f32
    %26 = vector.broadcast %cst_16 : f32 to vector<14x16x8xf32>
    %27 = vector.extract_strided_slice %25 {offsets = [0, 0, 0], sizes = [14, 16, 8], strides = [1, 1, 1]} : vector<16x16x8xf32> to vector<14x16x8xf32>
    %28 = vector.extract_strided_slice %22 {offsets = [1, 0], sizes = [1, 8], strides = [1, 1]} : vector<9x8xf32> to vector<1x8xf32>
    %29 = vector.shape_cast %28 : vector<1x8xf32> to vector<1x1x8xf32>
    %30 = vector.broadcast %29 : vector<1x1x8xf32> to vector<14x16x8xf32>
    %31 = arith.mulf %27, %30 : vector<14x16x8xf32>
    %32 = arith.addf %26, %31 : vector<14x16x8xf32>
    %33 = vector.extract_strided_slice %25 {offsets = [1, 0, 0], sizes = [14, 16, 8], strides = [1, 1, 1]} : vector<16x16x8xf32> to vector<14x16x8xf32>
    %34 = vector.extract_strided_slice %22 {offsets = [4, 0], sizes = [1, 8], strides = [1, 1]} : vector<9x8xf32> to vector<1x8xf32>
    %35 = vector.shape_cast %34 : vector<1x8xf32> to vector<1x1x8xf32>
    %36 = vector.broadcast %35 : vector<1x1x8xf32> to vector<14x16x8xf32>
    %37 = arith.mulf %33, %36 : vector<14x16x8xf32>
    %38 = arith.addf %32, %37 : vector<14x16x8xf32>
    %39 = vector.extract_strided_slice %25 {offsets = [2, 0, 0], sizes = [14, 16, 8], strides = [1, 1, 1]} : vector<16x16x8xf32> to vector<14x16x8xf32>
    %40 = vector.extract_strided_slice %22 {offsets = [7, 0], sizes = [1, 8], strides = [1, 1]} : vector<9x8xf32> to vector<1x8xf32>
    %41 = vector.shape_cast %40 : vector<1x8xf32> to vector<1x1x8xf32>
    %42 = vector.broadcast %41 : vector<1x1x8xf32> to vector<14x16x8xf32>
    %43 = arith.mulf %39, %42 : vector<14x16x8xf32>
    %44 = arith.addf %38, %43 : vector<14x16x8xf32>
    %c1_i32 = arith.constant 1 : i32
    %45 = tpu.dynamic_rotate %25 by %c1_i32 dim 1 : vector<16x16x8xf32>, i32 -> vector<16x16x8xf32>
    %cst_17 = arith.constant 0.000000e+00 : f32
    %46 = vector.shape_cast %2 : vector<1x16x1xi1> to vector<1x16x1xi1>
    %47 = vector.broadcast %46 : vector<1x16x1xi1> to vector<16x16x8xi1>
    %48 = vector.broadcast %cst_17 : f32 to vector<16x16x8xf32>
    %49 = arith.select %47, %45, %48 : vector<16x16x8xi1>, vector<16x16x8xf32>
    %50 = vector.extract_strided_slice %49 {offsets = [0, 0, 0], sizes = [14, 16, 8], strides = [1, 1, 1]} : vector<16x16x8xf32> to vector<14x16x8xf32>
    %51 = vector.extract_strided_slice %22 {offsets = [0, 0], sizes = [1, 8], strides = [1, 1]} : vector<9x8xf32> to vector<1x8xf32>
    %52 = vector.shape_cast %51 : vector<1x8xf32> to vector<1x1x8xf32>
    %53 = vector.broadcast %52 : vector<1x1x8xf32> to vector<14x16x8xf32>
    %54 = arith.mulf %50, %53 : vector<14x16x8xf32>
    %55 = arith.addf %44, %54 : vector<14x16x8xf32>
    %56 = vector.extract_strided_slice %49 {offsets = [1, 0, 0], sizes = [14, 16, 8], strides = [1, 1, 1]} : vector<16x16x8xf32> to vector<14x16x8xf32>
    %57 = vector.extract_strided_slice %22 {offsets = [3, 0], sizes = [1, 8], strides = [1, 1]} : vector<9x8xf32> to vector<1x8xf32>
    %58 = vector.shape_cast %57 : vector<1x8xf32> to vector<1x1x8xf32>
    %59 = vector.broadcast %58 : vector<1x1x8xf32> to vector<14x16x8xf32>
    %60 = arith.mulf %56, %59 : vector<14x16x8xf32>
    %61 = arith.addf %55, %60 : vector<14x16x8xf32>
    %62 = vector.extract_strided_slice %49 {offsets = [2, 0, 0], sizes = [14, 16, 8], strides = [1, 1, 1]} : vector<16x16x8xf32> to vector<14x16x8xf32>
    %63 = vector.extract_strided_slice %22 {offsets = [6, 0], sizes = [1, 8], strides = [1, 1]} : vector<9x8xf32> to vector<1x8xf32>
    %64 = vector.shape_cast %63 : vector<1x8xf32> to vector<1x1x8xf32>
    %65 = vector.broadcast %64 : vector<1x1x8xf32> to vector<14x16x8xf32>
    %66 = arith.mulf %62, %65 : vector<14x16x8xf32>
    %67 = arith.addf %61, %66 : vector<14x16x8xf32>
    %c15_i32_18 = arith.constant 15 : i32
    %68 = tpu.dynamic_rotate %25 by %c15_i32_18 dim 1 : vector<16x16x8xf32>, i32 -> vector<16x16x8xf32>
    %cst_19 = arith.constant 0.000000e+00 : f32
    %69 = vector.shape_cast %4 : vector<1x16x1xi1> to vector<1x16x1xi1>
    %70 = vector.broadcast %69 : vector<1x16x1xi1> to vector<16x16x8xi1>
    %71 = vector.broadcast %cst_19 : f32 to vector<16x16x8xf32>
    %72 = arith.select %70, %68, %71 : vector<16x16x8xi1>, vector<16x16x8xf32>
    %73 = vector.extract_strided_slice %72 {offsets = [0, 0, 0], sizes = [14, 16, 8], strides = [1, 1, 1]} : vector<16x16x8xf32> to vector<14x16x8xf32>
    %74 = vector.extract_strided_slice %22 {offsets = [2, 0], sizes = [1, 8], strides = [1, 1]} : vector<9x8xf32> to vector<1x8xf32>
    %75 = vector.shape_cast %74 : vector<1x8xf32> to vector<1x1x8xf32>
    %76 = vector.broadcast %75 : vector<1x1x8xf32> to vector<14x16x8xf32>
    %77 = arith.mulf %73, %76 : vector<14x16x8xf32>
    %78 = arith.addf %67, %77 : vector<14x16x8xf32>
    %79 = vector.extract_strided_slice %72 {offsets = [1, 0, 0], sizes = [14, 16, 8], strides = [1, 1, 1]} : vector<16x16x8xf32> to vector<14x16x8xf32>
    %80 = vector.extract_strided_slice %22 {offsets = [5, 0], sizes = [1, 8], strides = [1, 1]} : vector<9x8xf32> to vector<1x8xf32>
    %81 = vector.shape_cast %80 : vector<1x8xf32> to vector<1x1x8xf32>
    %82 = vector.broadcast %81 : vector<1x1x8xf32> to vector<14x16x8xf32>
    %83 = arith.mulf %79, %82 : vector<14x16x8xf32>
    %84 = arith.addf %78, %83 : vector<14x16x8xf32>
    %85 = vector.extract_strided_slice %72 {offsets = [2, 0, 0], sizes = [14, 16, 8], strides = [1, 1, 1]} : vector<16x16x8xf32> to vector<14x16x8xf32>
    %86 = vector.extract_strided_slice %22 {offsets = [8, 0], sizes = [1, 8], strides = [1, 1]} : vector<9x8xf32> to vector<1x8xf32>
    %87 = vector.shape_cast %86 : vector<1x8xf32> to vector<1x1x8xf32>
    %88 = vector.broadcast %87 : vector<1x1x8xf32> to vector<14x16x8xf32>
    %89 = arith.mulf %85, %88 : vector<14x16x8xf32>
    %90 = arith.addf %84, %89 : vector<14x16x8xf32>
    %91 = vector.shape_cast %23 : vector<1x8xf32> to vector<1x1x8xf32>
    %92 = vector.broadcast %91 : vector<1x1x8xf32> to vector<14x16x8xf32>
    %93 = arith.addf %90, %92 : vector<14x16x8xf32>
    %94 = arith.negf %93 : vector<14x16x8xf32>
    %95 = math.exp %94 : vector<14x16x8xf32>
    %cst_20 = arith.constant 1.000000e+00 : f32
    %96 = vector.broadcast %cst_20 : f32 to vector<14x16x8xf32>
    %97 = arith.addf %96, %95 : vector<14x16x8xf32>
    %98 = arith.divf %96, %97 : vector<14x16x8xf32>
    %99 = arith.mulf %93, %98 : vector<14x16x8xf32>
    %c0_21 = arith.constant 0 : index
    %c0_22 = arith.constant 0 : index
    %100 = vector.load %arg7[%c0_21, %c0_22] : memref<8x8xbf16, #tpu.memory_space<vmem>>, vector<8x8xbf16>
    %c0_23 = arith.constant 0 : index
    %c0_24 = arith.constant 0 : index
    %101 = vector.load %arg8[%c0_23, %c0_24] : memref<1x8xf32, #tpu.memory_space<vmem>>, vector<1x8xf32>
    %102 = vector.shape_cast %99 : vector<14x16x8xf32> to vector<224x8xf32>
    %103 = arith.truncf %102 : vector<224x8xf32> to vector<224x8xbf16>
    %cst_25 = arith.constant dense<0.000000e+00> : vector<224x8xf32>
    %104 = tpu.matmul %103, %100, %cst_25 {dimension_numbers = #tpu.dot_dimension_numbers<[1], [0], [0], [1], [0, 0, 1, 1], [], []>} : vector<224x8xbf16>, vector<8x8xbf16>, vector<224x8xf32> -> vector<224x8xf32>
    %105 = vector.shape_cast %104 : vector<224x8xf32> to vector<14x16x8xf32>
    %106 = vector.shape_cast %101 : vector<1x8xf32> to vector<1x1x8xf32>
    %107 = vector.broadcast %106 : vector<1x1x8xf32> to vector<14x16x8xf32>
    %108 = arith.addf %105, %107 : vector<14x16x8xf32>
    %109 = arith.negf %108 : vector<14x16x8xf32>
    %110 = math.exp %109 : vector<14x16x8xf32>
    %cst_26 = arith.constant 1.000000e+00 : f32
    %111 = vector.broadcast %cst_26 : f32 to vector<14x16x8xf32>
    %112 = arith.addf %111, %110 : vector<14x16x8xf32>
    %113 = arith.divf %111, %112 : vector<14x16x8xf32>
    %114 = arith.mulf %108, %113 : vector<14x16x8xf32>
    %cst_27 = arith.constant 0.000000e+00 : f32
    %115 = vector.shape_cast %14 : vector<14x1x1xi1> to vector<14x1x1xi1>
    %116 = vector.broadcast %115 : vector<14x1x1xi1> to vector<14x16x8xi1>
    %117 = vector.broadcast %cst_27 : f32 to vector<14x16x8xf32>
    %118 = arith.select %116, %114, %117 : vector<14x16x8xi1>, vector<14x16x8xf32>
    %c0_28 = arith.constant 0 : index
    %c0_29 = arith.constant 0 : index
    %119 = vector.load %arg9[%c0_28, %c0_29] : memref<9x8xf32, #tpu.memory_space<vmem>>, vector<9x8xf32>
    %c0_30 = arith.constant 0 : index
    %c0_31 = arith.constant 0 : index
    %120 = vector.load %arg10[%c0_30, %c0_31] : memref<1x8xf32, #tpu.memory_space<vmem>>, vector<1x8xf32>
    %cst_32 = arith.constant 0.000000e+00 : f32
    %121 = vector.broadcast %cst_32 : f32 to vector<1x16x8xf32>
    %122 = tpu.concatenate %121, %118, %121 in 0 : vector<1x16x8xf32>, vector<14x16x8xf32>, vector<1x16x8xf32> -> vector<16x16x8xf32>
    %cst_33 = arith.constant 0.000000e+00 : f32
    %123 = vector.broadcast %cst_33 : f32 to vector<14x16x8xf32>
    %124 = vector.extract_strided_slice %122 {offsets = [0, 0, 0], sizes = [14, 16, 8], strides = [1, 1, 1]} : vector<16x16x8xf32> to vector<14x16x8xf32>
    %125 = vector.extract_strided_slice %119 {offsets = [1, 0], sizes = [1, 8], strides = [1, 1]} : vector<9x8xf32> to vector<1x8xf32>
    %126 = vector.shape_cast %125 : vector<1x8xf32> to vector<1x1x8xf32>
    %127 = vector.broadcast %126 : vector<1x1x8xf32> to vector<14x16x8xf32>
    %128 = arith.mulf %124, %127 : vector<14x16x8xf32>
    %129 = arith.addf %123, %128 : vector<14x16x8xf32>
    %130 = vector.extract_strided_slice %122 {offsets = [1, 0, 0], sizes = [14, 16, 8], strides = [1, 1, 1]} : vector<16x16x8xf32> to vector<14x16x8xf32>
    %131 = vector.extract_strided_slice %119 {offsets = [4, 0], sizes = [1, 8], strides = [1, 1]} : vector<9x8xf32> to vector<1x8xf32>
    %132 = vector.shape_cast %131 : vector<1x8xf32> to vector<1x1x8xf32>
    %133 = vector.broadcast %132 : vector<1x1x8xf32> to vector<14x16x8xf32>
    %134 = arith.mulf %130, %133 : vector<14x16x8xf32>
    %135 = arith.addf %129, %134 : vector<14x16x8xf32>
    %136 = vector.extract_strided_slice %122 {offsets = [2, 0, 0], sizes = [14, 16, 8], strides = [1, 1, 1]} : vector<16x16x8xf32> to vector<14x16x8xf32>
    %137 = vector.extract_strided_slice %119 {offsets = [7, 0], sizes = [1, 8], strides = [1, 1]} : vector<9x8xf32> to vector<1x8xf32>
    %138 = vector.shape_cast %137 : vector<1x8xf32> to vector<1x1x8xf32>
    %139 = vector.broadcast %138 : vector<1x1x8xf32> to vector<14x16x8xf32>
    %140 = arith.mulf %136, %139 : vector<14x16x8xf32>
    %141 = arith.addf %135, %140 : vector<14x16x8xf32>
    %c1_i32_34 = arith.constant 1 : i32
    %142 = tpu.dynamic_rotate %122 by %c1_i32_34 dim 1 : vector<16x16x8xf32>, i32 -> vector<16x16x8xf32>
    %cst_35 = arith.constant 0.000000e+00 : f32
    %143 = vector.shape_cast %2 : vector<1x16x1xi1> to vector<1x16x1xi1>
    %144 = vector.broadcast %143 : vector<1x16x1xi1> to vector<16x16x8xi1>
    %145 = vector.broadcast %cst_35 : f32 to vector<16x16x8xf32>
    %146 = arith.select %144, %142, %145 : vector<16x16x8xi1>, vector<16x16x8xf32>
    %147 = vector.extract_strided_slice %146 {offsets = [0, 0, 0], sizes = [14, 16, 8], strides = [1, 1, 1]} : vector<16x16x8xf32> to vector<14x16x8xf32>
    %148 = vector.extract_strided_slice %119 {offsets = [0, 0], sizes = [1, 8], strides = [1, 1]} : vector<9x8xf32> to vector<1x8xf32>
    %149 = vector.shape_cast %148 : vector<1x8xf32> to vector<1x1x8xf32>
    %150 = vector.broadcast %149 : vector<1x1x8xf32> to vector<14x16x8xf32>
    %151 = arith.mulf %147, %150 : vector<14x16x8xf32>
    %152 = arith.addf %141, %151 : vector<14x16x8xf32>
    %153 = vector.extract_strided_slice %146 {offsets = [1, 0, 0], sizes = [14, 16, 8], strides = [1, 1, 1]} : vector<16x16x8xf32> to vector<14x16x8xf32>
    %154 = vector.extract_strided_slice %119 {offsets = [3, 0], sizes = [1, 8], strides = [1, 1]} : vector<9x8xf32> to vector<1x8xf32>
    %155 = vector.shape_cast %154 : vector<1x8xf32> to vector<1x1x8xf32>
    %156 = vector.broadcast %155 : vector<1x1x8xf32> to vector<14x16x8xf32>
    %157 = arith.mulf %153, %156 : vector<14x16x8xf32>
    %158 = arith.addf %152, %157 : vector<14x16x8xf32>
    %159 = vector.extract_strided_slice %146 {offsets = [2, 0, 0], sizes = [14, 16, 8], strides = [1, 1, 1]} : vector<16x16x8xf32> to vector<14x16x8xf32>
    %160 = vector.extract_strided_slice %119 {offsets = [6, 0], sizes = [1, 8], strides = [1, 1]} : vector<9x8xf32> to vector<1x8xf32>
    %161 = vector.shape_cast %160 : vector<1x8xf32> to vector<1x1x8xf32>
    %162 = vector.broadcast %161 : vector<1x1x8xf32> to vector<14x16x8xf32>
    %163 = arith.mulf %159, %162 : vector<14x16x8xf32>
    %164 = arith.addf %158, %163 : vector<14x16x8xf32>
    %c15_i32_36 = arith.constant 15 : i32
    %165 = tpu.dynamic_rotate %122 by %c15_i32_36 dim 1 : vector<16x16x8xf32>, i32 -> vector<16x16x8xf32>
    %cst_37 = arith.constant 0.000000e+00 : f32
    %166 = vector.shape_cast %4 : vector<1x16x1xi1> to vector<1x16x1xi1>
    %167 = vector.broadcast %166 : vector<1x16x1xi1> to vector<16x16x8xi1>
    %168 = vector.broadcast %cst_37 : f32 to vector<16x16x8xf32>
    %169 = arith.select %167, %165, %168 : vector<16x16x8xi1>, vector<16x16x8xf32>
    %170 = vector.extract_strided_slice %169 {offsets = [0, 0, 0], sizes = [14, 16, 8], strides = [1, 1, 1]} : vector<16x16x8xf32> to vector<14x16x8xf32>
    %171 = vector.extract_strided_slice %119 {offsets = [2, 0], sizes = [1, 8], strides = [1, 1]} : vector<9x8xf32> to vector<1x8xf32>
    %172 = vector.shape_cast %171 : vector<1x8xf32> to vector<1x1x8xf32>
    %173 = vector.broadcast %172 : vector<1x1x8xf32> to vector<14x16x8xf32>
    %174 = arith.mulf %170, %173 : vector<14x16x8xf32>
    %175 = arith.addf %164, %174 : vector<14x16x8xf32>
    %176 = vector.extract_strided_slice %169 {offsets = [1, 0, 0], sizes = [14, 16, 8], strides = [1, 1, 1]} : vector<16x16x8xf32> to vector<14x16x8xf32>
    %177 = vector.extract_strided_slice %119 {offsets = [5, 0], sizes = [1, 8], strides = [1, 1]} : vector<9x8xf32> to vector<1x8xf32>
    %178 = vector.shape_cast %177 : vector<1x8xf32> to vector<1x1x8xf32>
    %179 = vector.broadcast %178 : vector<1x1x8xf32> to vector<14x16x8xf32>
    %180 = arith.mulf %176, %179 : vector<14x16x8xf32>
    %181 = arith.addf %175, %180 : vector<14x16x8xf32>
    %182 = vector.extract_strided_slice %169 {offsets = [2, 0, 0], sizes = [14, 16, 8], strides = [1, 1, 1]} : vector<16x16x8xf32> to vector<14x16x8xf32>
    %183 = vector.extract_strided_slice %119 {offsets = [8, 0], sizes = [1, 8], strides = [1, 1]} : vector<9x8xf32> to vector<1x8xf32>
    %184 = vector.shape_cast %183 : vector<1x8xf32> to vector<1x1x8xf32>
    %185 = vector.broadcast %184 : vector<1x1x8xf32> to vector<14x16x8xf32>
    %186 = arith.mulf %182, %185 : vector<14x16x8xf32>
    %187 = arith.addf %181, %186 : vector<14x16x8xf32>
    %188 = vector.shape_cast %120 : vector<1x8xf32> to vector<1x1x8xf32>
    %189 = vector.broadcast %188 : vector<1x1x8xf32> to vector<14x16x8xf32>
    %190 = arith.addf %187, %189 : vector<14x16x8xf32>
    %191 = arith.negf %190 : vector<14x16x8xf32>
    %192 = math.exp %191 : vector<14x16x8xf32>
    %cst_38 = arith.constant 1.000000e+00 : f32
    %193 = vector.broadcast %cst_38 : f32 to vector<14x16x8xf32>
    %194 = arith.addf %193, %192 : vector<14x16x8xf32>
    %195 = arith.divf %193, %194 : vector<14x16x8xf32>
    %196 = arith.mulf %190, %195 : vector<14x16x8xf32>
    %c0_39 = arith.constant 0 : index
    %c0_40 = arith.constant 0 : index
    %197 = vector.load %arg11[%c0_39, %c0_40] : memref<8x8xbf16, #tpu.memory_space<vmem>>, vector<8x8xbf16>
    %c0_41 = arith.constant 0 : index
    %c0_42 = arith.constant 0 : index
    %198 = vector.load %arg12[%c0_41, %c0_42] : memref<1x8xf32, #tpu.memory_space<vmem>>, vector<1x8xf32>
    %199 = vector.shape_cast %196 : vector<14x16x8xf32> to vector<224x8xf32>
    %200 = arith.truncf %199 : vector<224x8xf32> to vector<224x8xbf16>
    %cst_43 = arith.constant dense<0.000000e+00> : vector<224x8xf32>
    %201 = tpu.matmul %200, %197, %cst_43 {dimension_numbers = #tpu.dot_dimension_numbers<[1], [0], [0], [1], [0, 0, 1, 1], [], []>} : vector<224x8xbf16>, vector<8x8xbf16>, vector<224x8xf32> -> vector<224x8xf32>
    %202 = vector.shape_cast %201 : vector<224x8xf32> to vector<14x16x8xf32>
    %203 = vector.shape_cast %198 : vector<1x8xf32> to vector<1x1x8xf32>
    %204 = vector.broadcast %203 : vector<1x1x8xf32> to vector<14x16x8xf32>
    %205 = arith.addf %202, %204 : vector<14x16x8xf32>
    %206 = arith.negf %205 : vector<14x16x8xf32>
    %207 = math.exp %206 : vector<14x16x8xf32>
    %cst_44 = arith.constant 1.000000e+00 : f32
    %208 = vector.broadcast %cst_44 : f32 to vector<14x16x8xf32>
    %209 = arith.addf %208, %207 : vector<14x16x8xf32>
    %210 = arith.divf %208, %209 : vector<14x16x8xf32>
    %211 = arith.mulf %205, %210 : vector<14x16x8xf32>
    %cst_45 = arith.constant 0.000000e+00 : f32
    %212 = vector.shape_cast %14 : vector<14x1x1xi1> to vector<14x1x1xi1>
    %213 = vector.broadcast %212 : vector<14x1x1xi1> to vector<14x16x8xi1>
    %214 = vector.broadcast %cst_45 : f32 to vector<14x16x8xf32>
    %215 = arith.select %213, %211, %214 : vector<14x16x8xi1>, vector<14x16x8xf32>
    %c0_46 = arith.constant 0 : index
    %c0_47 = arith.constant 0 : index
    %216 = vector.load %arg13[%c0_46, %c0_47] : memref<9x8xf32, #tpu.memory_space<vmem>>, vector<9x8xf32>
    %c0_48 = arith.constant 0 : index
    %c0_49 = arith.constant 0 : index
    %217 = vector.load %arg14[%c0_48, %c0_49] : memref<1x8xf32, #tpu.memory_space<vmem>>, vector<1x8xf32>
    %cst_50 = arith.constant 0.000000e+00 : f32
    %218 = vector.broadcast %cst_50 : f32 to vector<1x16x8xf32>
    %219 = tpu.concatenate %218, %215, %218 in 0 : vector<1x16x8xf32>, vector<14x16x8xf32>, vector<1x16x8xf32> -> vector<16x16x8xf32>
    %cst_51 = arith.constant 0.000000e+00 : f32
    %220 = vector.broadcast %cst_51 : f32 to vector<14x16x8xf32>
    %221 = vector.extract_strided_slice %219 {offsets = [0, 0, 0], sizes = [14, 16, 8], strides = [1, 1, 1]} : vector<16x16x8xf32> to vector<14x16x8xf32>
    %222 = vector.extract_strided_slice %216 {offsets = [1, 0], sizes = [1, 8], strides = [1, 1]} : vector<9x8xf32> to vector<1x8xf32>
    %223 = vector.shape_cast %222 : vector<1x8xf32> to vector<1x1x8xf32>
    %224 = vector.broadcast %223 : vector<1x1x8xf32> to vector<14x16x8xf32>
    %225 = arith.mulf %221, %224 : vector<14x16x8xf32>
    %226 = arith.addf %220, %225 : vector<14x16x8xf32>
    %227 = vector.extract_strided_slice %219 {offsets = [1, 0, 0], sizes = [14, 16, 8], strides = [1, 1, 1]} : vector<16x16x8xf32> to vector<14x16x8xf32>
    %228 = vector.extract_strided_slice %216 {offsets = [4, 0], sizes = [1, 8], strides = [1, 1]} : vector<9x8xf32> to vector<1x8xf32>
    %229 = vector.shape_cast %228 : vector<1x8xf32> to vector<1x1x8xf32>
    %230 = vector.broadcast %229 : vector<1x1x8xf32> to vector<14x16x8xf32>
    %231 = arith.mulf %227, %230 : vector<14x16x8xf32>
    %232 = arith.addf %226, %231 : vector<14x16x8xf32>
    %233 = vector.extract_strided_slice %219 {offsets = [2, 0, 0], sizes = [14, 16, 8], strides = [1, 1, 1]} : vector<16x16x8xf32> to vector<14x16x8xf32>
    %234 = vector.extract_strided_slice %216 {offsets = [7, 0], sizes = [1, 8], strides = [1, 1]} : vector<9x8xf32> to vector<1x8xf32>
    %235 = vector.shape_cast %234 : vector<1x8xf32> to vector<1x1x8xf32>
    %236 = vector.broadcast %235 : vector<1x1x8xf32> to vector<14x16x8xf32>
    %237 = arith.mulf %233, %236 : vector<14x16x8xf32>
    %238 = arith.addf %232, %237 : vector<14x16x8xf32>
    %c1_i32_52 = arith.constant 1 : i32
    %239 = tpu.dynamic_rotate %219 by %c1_i32_52 dim 1 : vector<16x16x8xf32>, i32 -> vector<16x16x8xf32>
    %cst_53 = arith.constant 0.000000e+00 : f32
    %240 = vector.shape_cast %2 : vector<1x16x1xi1> to vector<1x16x1xi1>
    %241 = vector.broadcast %240 : vector<1x16x1xi1> to vector<16x16x8xi1>
    %242 = vector.broadcast %cst_53 : f32 to vector<16x16x8xf32>
    %243 = arith.select %241, %239, %242 : vector<16x16x8xi1>, vector<16x16x8xf32>
    %244 = vector.extract_strided_slice %243 {offsets = [0, 0, 0], sizes = [14, 16, 8], strides = [1, 1, 1]} : vector<16x16x8xf32> to vector<14x16x8xf32>
    %245 = vector.extract_strided_slice %216 {offsets = [0, 0], sizes = [1, 8], strides = [1, 1]} : vector<9x8xf32> to vector<1x8xf32>
    %246 = vector.shape_cast %245 : vector<1x8xf32> to vector<1x1x8xf32>
    %247 = vector.broadcast %246 : vector<1x1x8xf32> to vector<14x16x8xf32>
    %248 = arith.mulf %244, %247 : vector<14x16x8xf32>
    %249 = arith.addf %238, %248 : vector<14x16x8xf32>
    %250 = vector.extract_strided_slice %243 {offsets = [1, 0, 0], sizes = [14, 16, 8], strides = [1, 1, 1]} : vector<16x16x8xf32> to vector<14x16x8xf32>
    %251 = vector.extract_strided_slice %216 {offsets = [3, 0], sizes = [1, 8], strides = [1, 1]} : vector<9x8xf32> to vector<1x8xf32>
    %252 = vector.shape_cast %251 : vector<1x8xf32> to vector<1x1x8xf32>
    %253 = vector.broadcast %252 : vector<1x1x8xf32> to vector<14x16x8xf32>
    %254 = arith.mulf %250, %253 : vector<14x16x8xf32>
    %255 = arith.addf %249, %254 : vector<14x16x8xf32>
    %256 = vector.extract_strided_slice %243 {offsets = [2, 0, 0], sizes = [14, 16, 8], strides = [1, 1, 1]} : vector<16x16x8xf32> to vector<14x16x8xf32>
    %257 = vector.extract_strided_slice %216 {offsets = [6, 0], sizes = [1, 8], strides = [1, 1]} : vector<9x8xf32> to vector<1x8xf32>
    %258 = vector.shape_cast %257 : vector<1x8xf32> to vector<1x1x8xf32>
    %259 = vector.broadcast %258 : vector<1x1x8xf32> to vector<14x16x8xf32>
    %260 = arith.mulf %256, %259 : vector<14x16x8xf32>
    %261 = arith.addf %255, %260 : vector<14x16x8xf32>
    %c15_i32_54 = arith.constant 15 : i32
    %262 = tpu.dynamic_rotate %219 by %c15_i32_54 dim 1 : vector<16x16x8xf32>, i32 -> vector<16x16x8xf32>
    %cst_55 = arith.constant 0.000000e+00 : f32
    %263 = vector.shape_cast %4 : vector<1x16x1xi1> to vector<1x16x1xi1>
    %264 = vector.broadcast %263 : vector<1x16x1xi1> to vector<16x16x8xi1>
    %265 = vector.broadcast %cst_55 : f32 to vector<16x16x8xf32>
    %266 = arith.select %264, %262, %265 : vector<16x16x8xi1>, vector<16x16x8xf32>
    %267 = vector.extract_strided_slice %266 {offsets = [0, 0, 0], sizes = [14, 16, 8], strides = [1, 1, 1]} : vector<16x16x8xf32> to vector<14x16x8xf32>
    %268 = vector.extract_strided_slice %216 {offsets = [2, 0], sizes = [1, 8], strides = [1, 1]} : vector<9x8xf32> to vector<1x8xf32>
    %269 = vector.shape_cast %268 : vector<1x8xf32> to vector<1x1x8xf32>
    %270 = vector.broadcast %269 : vector<1x1x8xf32> to vector<14x16x8xf32>
    %271 = arith.mulf %267, %270 : vector<14x16x8xf32>
    %272 = arith.addf %261, %271 : vector<14x16x8xf32>
    %273 = vector.extract_strided_slice %266 {offsets = [1, 0, 0], sizes = [14, 16, 8], strides = [1, 1, 1]} : vector<16x16x8xf32> to vector<14x16x8xf32>
    %274 = vector.extract_strided_slice %216 {offsets = [5, 0], sizes = [1, 8], strides = [1, 1]} : vector<9x8xf32> to vector<1x8xf32>
    %275 = vector.shape_cast %274 : vector<1x8xf32> to vector<1x1x8xf32>
    %276 = vector.broadcast %275 : vector<1x1x8xf32> to vector<14x16x8xf32>
    %277 = arith.mulf %273, %276 : vector<14x16x8xf32>
    %278 = arith.addf %272, %277 : vector<14x16x8xf32>
    %279 = vector.extract_strided_slice %266 {offsets = [2, 0, 0], sizes = [14, 16, 8], strides = [1, 1, 1]} : vector<16x16x8xf32> to vector<14x16x8xf32>
    %280 = vector.extract_strided_slice %216 {offsets = [8, 0], sizes = [1, 8], strides = [1, 1]} : vector<9x8xf32> to vector<1x8xf32>
    %281 = vector.shape_cast %280 : vector<1x8xf32> to vector<1x1x8xf32>
    %282 = vector.broadcast %281 : vector<1x1x8xf32> to vector<14x16x8xf32>
    %283 = arith.mulf %279, %282 : vector<14x16x8xf32>
    %284 = arith.addf %278, %283 : vector<14x16x8xf32>
    %285 = vector.shape_cast %217 : vector<1x8xf32> to vector<1x1x8xf32>
    %286 = vector.broadcast %285 : vector<1x1x8xf32> to vector<14x16x8xf32>
    %287 = arith.addf %284, %286 : vector<14x16x8xf32>
    %288 = arith.negf %287 : vector<14x16x8xf32>
    %289 = math.exp %288 : vector<14x16x8xf32>
    %cst_56 = arith.constant 1.000000e+00 : f32
    %290 = vector.broadcast %cst_56 : f32 to vector<14x16x8xf32>
    %291 = arith.addf %290, %289 : vector<14x16x8xf32>
    %292 = arith.divf %290, %291 : vector<14x16x8xf32>
    %293 = arith.mulf %287, %292 : vector<14x16x8xf32>
    %294 = vector.extract_strided_slice %293 {offsets = [3, 0, 0], sizes = [8, 16, 8], strides = [1, 1, 1]} : vector<14x16x8xf32> to vector<8x16x8xf32>
    %c0_57 = arith.constant 0 : index
    %c0_58 = arith.constant 0 : index
    %c0_59 = arith.constant 0 : index
    %c0_60 = arith.constant 0 : index
    %295 = vector.load %arg2[%c0_57, %c0_58, %c0_59, %c0_60] : memref<1x8x16x8xf32, #tpu.memory_space<vmem>>, vector<1x8x16x8xf32>
    %296 = vector.shape_cast %295 : vector<1x8x16x8xf32> to vector<8x16x8xf32>
    %297 = arith.addf %294, %296 : vector<8x16x8xf32>
    %c0_61 = arith.constant 0 : index
    %c0_62 = arith.constant 0 : index
    %c0_63 = arith.constant 0 : index
    %c0_64 = arith.constant 0 : index
    %298 = vector.load %arg15[%c0_61, %c0_62, %c0_63, %c0_64] : memref<1x8x16x8xf32, #tpu.memory_space<vmem>>, vector<1x8x16x8xf32>
    %299 = vector.shape_cast %298 : vector<1x8x16x8xf32> to vector<8x16x8xf32>
    %300 = vector.shape_cast %297 : vector<8x16x8xf32> to vector<1x8x16x8xf32>
    tpu.vector_store %arg15[%c0_61, %c0_62, %c0_63, %c0_64], %300 {strides = array<i32>} : memref<1x8x16x8xf32, #tpu.memory_space<vmem>>, vector<1x8x16x8xf32>,
    return
  }
  func.func @transform_0(%arg0: i32, %arg1: i32) -> (i32, i32, i32, i32) {
    %c0_i32 = arith.constant 0 : i32
    %c0_i32_0 = arith.constant 0 : i32
    %c0_i32_1 = arith.constant 0 : i32
    return %arg0, %arg1, %c0_i32, %c0_i32_0 : i32, i32, i32, i32
  }
  func.func @transform_1(%arg0: i32, %arg1: i32) -> (i32, i32, i32, i32) {
    %c2_i32 = arith.constant 2 : i32
    %0 = arith.muli %arg0, %c2_i32 : i32
    %1 = arith.addi %0, %arg1 : i32
    %c0_i32 = arith.constant 0 : i32
    %c0_i32_0 = arith.constant 0 : i32
    %c0_i32_1 = arith.constant 0 : i32
    %c0_i32_2 = arith.constant 0 : i32
    return %1, %c0_i32, %c0_i32_0, %c0_i32_1 : i32, i32, i32, i32
  }
  func.func @transform_2(%arg0: i32, %arg1: i32) -> (i32, i32, i32, i32) {
    %c2_i32 = arith.constant 2 : i32
    %0 = arith.muli %arg0, %c2_i32 : i32
    %1 = arith.addi %0, %arg1 : i32
    %c0_i32 = arith.constant 0 : i32
    %c0_i32_0 = arith.constant 0 : i32
    %c0_i32_1 = arith.constant 0 : i32
    %c0_i32_2 = arith.constant 0 : i32
    return %1, %c0_i32, %c0_i32_0, %c0_i32_1 : i32, i32, i32, i32
  }
  func.func @transform_3(%arg0: i32, %arg1: i32) -> (i32, i32) {
    %c0_i32 = arith.constant 0 : i32
    %c0_i32_0 = arith.constant 0 : i32
    %c0_i32_1 = arith.constant 0 : i32
    return %c0_i32, %c0_i32_0 : i32, i32
  }
  func.func @transform_4(%arg0: i32, %arg1: i32) -> (i32, i32) {
    %c0_i32 = arith.constant 0 : i32
    %c0_i32_0 = arith.constant 0 : i32
    %c0_i32_1 = arith.constant 0 : i32
    return %c0_i32, %c0_i32_0 : i32, i32
  }
  func.func @transform_5(%arg0: i32, %arg1: i32) -> (i32, i32) {
    %c0_i32 = arith.constant 0 : i32
    %c0_i32_0 = arith.constant 0 : i32
    %c0_i32_1 = arith.constant 0 : i32
    return %c0_i32, %c0_i32_0 : i32, i32
  }
  func.func @transform_6(%arg0: i32, %arg1: i32) -> (i32, i32) {
    %c0_i32 = arith.constant 0 : i32
    %c0_i32_0 = arith.constant 0 : i32
    %c0_i32_1 = arith.constant 0 : i32
    return %c0_i32, %c0_i32_0 : i32, i32
  }
  func.func @transform_7(%arg0: i32, %arg1: i32) -> (i32, i32) {
    %c0_i32 = arith.constant 0 : i32
    %c0_i32_0 = arith.constant 0 : i32
    %c0_i32_1 = arith.constant 0 : i32
    return %c0_i32, %c0_i32_0 : i32, i32
  }
  func.func @transform_8(%arg0: i32, %arg1: i32) -> (i32, i32) {
    %c0_i32 = arith.constant 0 : i32
    %c0_i32_0 = arith.constant 0 : i32
    %c0_i32_1 = arith.constant 0 : i32
    return %c0_i32, %c0_i32_0 : i32, i32
  }
  func.func @transform_9(%arg0: i32, %arg1: i32) -> (i32, i32) {
    %c0_i32 = arith.constant 0 : i32
    %c0_i32_0 = arith.constant 0 : i32
    %c0_i32_1 = arith.constant 0 : i32
    return %c0_i32, %c0_i32_0 : i32, i32
  }
  func.func @transform_10(%arg0: i32, %arg1: i32) -> (i32, i32) {
    %c0_i32 = arith.constant 0 : i32
    %c0_i32_0 = arith.constant 0 : i32
    %c0_i32_1 = arith.constant 0 : i32
    return %c0_i32, %c0_i32_0 : i32, i32
  }
  func.func @transform_11(%arg0: i32, %arg1: i32) -> (i32, i32) {
    %c0_i32 = arith.constant 0 : i32
    %c0_i32_0 = arith.constant 0 : i32
    %c0_i32_1 = arith.constant 0 : i32
    return %c0_i32, %c0_i32_0 : i32, i32
  }
  func.func @transform_12(%arg0: i32, %arg1: i32) -> (i32, i32) {
    %c0_i32 = arith.constant 0 : i32
    %c0_i32_0 = arith.constant 0 : i32
    %c0_i32_1 = arith.constant 0 : i32
    return %c0_i32, %c0_i32_0 : i32, i32
  }
  func.func @transform_13(%arg0: i32, %arg1: i32) -> (i32, i32, i32, i32) {
    %c0_i32 = arith.constant 0 : i32
    %c0_i32_0 = arith.constant 0 : i32
    %c0_i32_1 = arith.constant 0 : i32
    return %arg0, %arg1, %c0_i32, %c0_i32_0 : i32, i32, i32, i32
  }
}

</mosaic_0001>

<bundles_post_ra>
// kernel: tpu_custom_call.1
= control target key start
LH: loop header
LB: loop body
LE: loop exit
PB: predicated region body
PF: predicated region fallthrough
CT: control target
= control target key end

     0   :  { %s6327_s25 = smov 0   ;;  %s6329_s26 = smov 0   ;;  %s12487_s0 = inlined_call_operand.vmem [shape: f32[2,16,16,8], index: 0, kind: input, shape index: {}]   ;;  %s12488_s1 = inlined_call_operand.vmem [shape: f32[4,3,16,8], index: 1, kind: input, shape index: {}]   ;;  %s12489_s2 = inlined_call_operand.vmem [shape: f32[4,3,16,8], index: 2, kind: input, shape index: {}]   ;;  %s12490_s3 = inlined_call_operand.vmem [shape: f32[9,8], index: 3, kind: input, shape index: {}]   ;;  %s12491_s4 = inlined_call_operand.vmem [shape: f32[1,8], index: 4, kind: input, shape index: {}]   ;;  %s12492_s5 = inlined_call_operand.vmem [shape: bf16[8,8], index: 5, kind: input, shape index: {}]   ;;  %s12493_s6 = inlined_call_operand.vmem [shape: f32[1,8], index: 6, kind: input, shape index: {}]   ;;  %s12494_s7 = inlined_call_operand.vmem [shape: f32[9,8], index: 7, kind: input, shape index: {}]   ;;  %s12495_s8 = inlined_call_operand.vmem [shape: f32[1,8], index: 8, kind: input, shape index: {}]   ;;  %s12496_s9 = inlined_call_operand.vmem [shape: bf16[8,8], index: 9, kind: input, shape index: {}]   ;;  %s12497_s10 = inlined_call_operand.vmem [shape: f32[1,8], index: 10, kind: input, shape index: {}]   ;;  %s12498_s11 = inlined_call_operand.vmem [shape: f32[9,8], index: 11, kind: input, shape index: {}]   ;;  %s12499_s12 = inlined_call_operand.vmem [shape: f32[1,8], index: 12, kind: input, shape index: {}]   ;;  %s12500_s13 = inlined_call_operand.vmem [shape: f32[2,16,16,8], index: 13, kind: output, shape index: {}]  }
   0x1   :  { %s6331_s27 = smov 0   ;;  %s6333_s28 = smov 0  }
   0x2   :  { %s6335_s29 = smov 0  }
   0x3 LB: > { %s32_s30 = sadd.s32 1, %s6247_s27  ;;  %s35_s14 = sadd.s32 1, %s6251_s28  ;;  %s6255_s29 = sphi %s6335_s29, %s23_s29   ;;  %s6251_s28 = sphi %s6333_s28, %s13449_s28   ;;  %s6247_s27 = sphi %s6331_s27, %s13448_s27   ;;  %s6243_s26 = sphi %s6329_s26, %s13447_s26   ;;  %s6239_s25 = sphi %s6327_s25, %s13446_s25  }
   0x4   : > { %p33_p0 = scmp.ge.s32.totalorder %s32_s30, 2  ;;  %p5491_p1 = scmp.ge.s32.totalorder %s6255_s29, 1 }
   0x5   : > { %p445_p2 = scmp.lt.s32.totalorder %s6255_s29, 5 }
   0x6   : > { %s13451_s30 = smov (%p33_p0, %s32_s30), 0  ;;  %s13453_s14 = smov (!%p33_p0, %s35_s14), %s6251_s28 }
   0x7   : > { %p446_p3 = pnand %p5491_p1, %p445_p2  ;;  %p37_p4 = scmp.ge.s32.totalorder %s13453_s14, 2 }
   0x9   : > { %s13455_s14 = smov (%p37_p4, %s13453_s14), 0  ;;  %449 = sbr.rel (%p446_p3) target bundleno = 1102 (0x44e), region = 72 }
   0xe   : > { %v1933_v0 = vld [vmem:[%s12492_s5] sm:$0xf]  ;;  %vm12564_vm0 = vcmask 1043456   ;;  %s5496_s17 = sshll.u32 %s6243_s26, 1  ;;  %v554_v1 = vlaneseq  ;;  %p514_p6 = scmp.lt.s32.totalorder %s6243_s26, 1  ;;  %vm12540_vm13 = vcmask 64512  }
   0xf   : > { %v647_v2 = vld [vmem:[%s12490_s3] sm:$0xff]  ;;  %v1994_v3 = vsel %vm12564_vm0, %v1933_v0, 0  ;;  %s525_s20 = sadd.s32 %s6239_s25, %s5496_s17  ;;  %s6374_s21 = sshll.u32 %s6239_s25, 3  ;;  %v6468_v41 = vld [vmem:[%s12490_s3 + $0x8] ss:$0 sm:$0xff] }
  0x10   : > { %v6367_v4 = vperm.slane %v647_v2, 1  ;;  %2003 = vmatpush.bf16.msra.mxu0 %v1994_v3  ;;  %5656 = vmatpush.bf16.msra.mxu2 %v1994_v3  ;;  %p526_p5 = scmp.lt.s32.totalorder %s525_s20, 3  ;;  %v6369_v5 = vshrl.u32 %v554_v1, 7  ;;  %v6372_v6 = vperm.slane %v647_v2, 0  ;;  %v6379_v8 = vperm.slane %v647_v2, 4  ;;  %s13459_s26 = smov (!%p514_p6, %s6243_s26), 1 }
  0x11   : > { %v6381_v9 = vperm.slane %v647_v2, 7  ;;  %v6386_v11 = vperm.slane %v647_v2, 3  ;;  %v6388_v12 = vperm.slane %v647_v2, 6  ;;  %v6390_v13 = vperm.slane %v647_v2, 2  ;;  %p516_p7 = scmp.lt.s32.totalorder %s6374_s21, 15  ;;  %s5494_s23 = sshll.u32 %s13459_s26, 5 }
  0x12   : > { %s13457_s20 = smov (!%p526_p5, %s525_s20), 3  ;;  %v651_v7 = vmul.f32 0.0, %v6367_v4  ;;  %v6384_v10 = vadd.s32 8, %v6369_v5  ;;  %vm12592_vm1 = vcmp.gt.s32.totalorder %v6369_v5, 0  ;;  %vm12593_vm2 = vcmp.lt.s32.totalorder %v6369_v5, 1  ;;  %s5505_s25 = sadd.s32 4294967293, %s6374_s21 }
  0x13   : > { %s5658_s22 = smul.u32 48, %s13457_s20  ;;  %v910_v14 = vmul.f32 0.0, %v6372_v6  ;;  %vm12563_vm3 = vcmp.lt.s32.totalorder %v6369_v5, 7  ;;  %v6419_v18 = vmul.f32 0.0, %v6390_v13  ;;  %v6421_v19 = vperm.slane %v647_v2, 5 }
  0x14   : > { %12665 = vst [vmem:[#allocation2_spill] sm:$0xff] %v6384_v10  ;;  %s517_s26 = scalar_select %p516_p7, %s6374_s21, 15  ;;  %vm12562_vm4 = vcmp.lt.s32.totalorder %v6384_v10, 15 }
  0x15   : > { %s6406_s15 = scalar_lea.vmem %s12488_s1, %s5658_s22  ;;  %s7225_s24 = scalar_lea.vmem %s12489_s2, %s5658_s22 }
  0x16   : > { %v6409_v15 = vld [vmem:[%s6406_s15] sm:$0xff]  ;;  %v6412_v16 = vld [vmem:[%s6406_s15 + $0x8] sm:$0xff]  ;;  %v6415_v17 = vld [vmem:[%s6406_s15 + $0x10] sm:$0xff]  ;;  %s5493_s16 = sshll.u32 %s517_s26, 1 }
  0x17   : > { %12666 = vst [vmem:[#allocation3_spill] sm:$0xff] %v6415_v17  ;;  %v6425_v20 = vld [vmem:[%s6406_s15 + $0x18] sm:$0xff]  ;;  %v706_v21 = vmul.f32 %v6379_v8, %v6409_v15  ;;  %v707_v22 = vmul.f32 %v6379_v8, %v6412_v16  ;;  %v763_v23 = vmul.f32 %v6381_v9, %v6415_v17  ;;  %v818_v24 = vrot.slane %v6409_v15, 7  ;;  %s6442_s17 = sadd.s32 %s5494_s23, %s5493_s16 }
  0x18   : > { %12667 = vst [vmem:[#allocation4_spill] sm:$0xff] %v6425_v20  ;;  %v764_v25 = vmul.f32 %v6381_v9, %v6425_v20  ;;  %v819_v26 = vrot.slane %v6415_v17, 7  ;;  %v832_v27 = vrot.slane %v6412_v16, 7  ;;  %v833_v28 = vrot.slane %v6425_v20, 7  ;;  %s5495_s18 = sshll.u32 %s6442_s17, 3 }
  0x19   : > { %v734_v29 = vadd.f32 %v706_v21, %v651_v7  ;;  %v735_v30 = vadd.f32 %v707_v22, %v651_v7  ;;  %v1080_v31 = vrot.slane %v6409_v15, 1  ;;  %v1081_v32 = vrot.slane %v6415_v17, 1  ;;  %s6475_s26 = scalar_lea.vmem %s12487_s0, %s5495_s18  ;;  %s11283_s20 = scalar_lea.vmem %s12500_s13, %s5495_s18 }
  0x1a   : > { %v6446_v33 = vsel %vm12593_vm2, %v818_v24, %v832_v27  ;;  %v6450_v34 = vsel %vm12593_vm2, %v819_v26, %v833_v28  ;;  %v861_v35 = vsel %vm12593_vm2, %v832_v27, %v818_v24  ;;  %v862_v36 = vsel %vm12593_vm2, %v833_v28, %v819_v26  ;;  %v6486_v46 = vld [vmem:[%s6475_s26 + $0x30] sm:$0xff]  ;;  %v6489_v47 = vld [vmem:[%s6475_s26 + $0x38] sm:$0xff]  ;;  %v6492_v48 = vld [vmem:[%s6475_s26 + $0x40] sm:$0xff] }
  0x1b   : > { %v790_v37 = vadd.f32 %v763_v23, %v734_v29  ;;  %v791_v38 = vadd.f32 %v764_v25, %v735_v30  ;;  %v6459_v39 = vsel %vm12592_vm1, %v861_v35, 0.0  ;;  %v6463_v40 = vsel %vm12592_vm1, %v862_v36, 0.0  ;;  %v6497_v53 = vld [vmem:[%s6475_s26 + $0x48] sm:$0xff]  ;;  %v6524_v2 = vld [vmem:[%s6475_s26 + $0x50] sm:$0xff]  ;;  %v6527_v3 = vld [vmem:[%s6475_s26 + $0x58] sm:$0xff] }
  0x1c   : > { %v967_v42 = vmul.f32 %v6386_v11, %v6459_v39  ;;  %v968_v43 = vmul.f32 %v6386_v11, %v6446_v33  ;;  %v1024_v44 = vmul.f32 %v6388_v12, %v6463_v40  ;;  %v1025_v45 = vmul.f32 %v6388_v12, %v6450_v34 }
  0x1d   : > { %v938_v49 = vadd.f32 %v910_v14, %v790_v37  ;;  %v939_v50 = vadd.f32 %v910_v14, %v791_v38  ;;  %v1094_v51 = vrot.slane %v6412_v16, 1  ;;  %v1095_v52 = vrot.slane %v6425_v20, 1 }
  0x1e   : > { %v664_v54 = vmul.f32 %v6367_v4, %v6486_v46  ;;  %v665_v55 = vmul.f32 %v6367_v4, %v6489_v47  ;;  %v720_v56 = vmul.f32 %v6379_v8, %v6492_v48  ;;  %v721_v57 = vmul.f32 %v6379_v8, %v6497_v53 }
  0x1f   : > { %v995_v58 = vadd.f32 %v967_v42, %v938_v49  ;;  %v996_v59 = vadd.f32 %v968_v43, %v939_v50  ;;  %v6509_v60 = vsel %vm12563_vm3, %v1080_v31, %v1094_v51  ;;  %v6513_v61 = vsel %vm12563_vm3, %v1081_v32, %v1095_v52 }
  0x20   : > { %v1123_v62 = vsel %vm12563_vm3, %v1094_v51, %v1080_v31  ;;  %v1124_v63 = vsel %vm12563_vm3, %v1095_v52, %v1081_v32  ;;  %v1229_v0 = vmul.f32 %v6421_v19, %v6509_v60  ;;  %v1286_v1 = vmul.f32 %v6468_v41, %v6513_v61 }
  0x21   : > { %v1052_v7 = vadd.f32 %v1024_v44, %v995_v58  ;;  %v1053_v14 = vadd.f32 %v1025_v45, %v996_v59  ;;  %v6531_v21 = vsel %vm12562_vm4, %v1123_v62, 0.0  ;;  %v6535_v22 = vsel %vm12562_vm4, %v1124_v63, 0.0 }
  0x22   : > { %v1230_v23 = vmul.f32 %v6421_v19, %v6531_v21  ;;  %v1287_v24 = vmul.f32 %v6468_v41, %v6535_v22  ;;  %v748_v25 = vadd.f32 %v720_v56, %v664_v54  ;;  %v749_v26 = vadd.f32 %v721_v57, %v665_v55 }
  0x23   : > { %v1200_v27 = vadd.f32 %v6419_v18, %v1052_v7  ;;  %v1201_v28 = vadd.f32 %v6419_v18, %v1053_v14  ;;  %v777_v29 = vmul.f32 %v6381_v9, %v6524_v2  ;;  %v778_v30 = vmul.f32 %v6381_v9, %v6527_v3  ;;  %v6554_v18 = vld [vmem:[%s12491_s4] ss:$0 sm:$0xff] }
  0x24   : > { %v824_v31 = vrot.slane %v6486_v46, 7  ;;  %v825_v32 = vrot.slane %v6492_v48, 7  ;;  %v826_v35 = vrot.slane %v6524_v2, 7  ;;  %v838_v36 = vrot.slane %v6489_v47, 7 }
  0x25   : > { %v1257_v37 = vadd.f32 %v1229_v0, %v1200_v27  ;;  %v1258_v38 = vadd.f32 %v1230_v23, %v1201_v28  ;;  %v804_v42 = vadd.f32 %v777_v29, %v748_v25  ;;  %v805_v43 = vadd.f32 %v778_v30, %v749_v26 }
  0x26   : > { %v839_v44 = vrot.slane %v6497_v53, 7  ;;  %v840_v45 = vrot.slane %v6527_v3, 7  ;;  %v6560_v49 = vsel %vm12593_vm2, %v824_v31, %v838_v36  ;;  %v867_v50 = vsel %vm12593_vm2, %v838_v36, %v824_v31 }
  0x27   : > { %12668 = vst [vmem:[#allocation5_spill] sm:$0xff] %v6560_v49  ;;  %v1314_v51 = vadd.f32 %v1286_v1, %v1257_v37  ;;  %v1315_v52 = vadd.f32 %v1287_v24, %v1258_v38  ;;  %v6566_v54 = vsel %vm12592_vm1, %v867_v50, 0.0  ;;  %v925_v55 = vmul.f32 %v6372_v6, %v6560_v49 }
  0x28   : > { %12669 = vst [vmem:[#allocation6_spill] sm:$0xff] %v6566_v54  ;;  %v6572_v56 = vsel %vm12593_vm2, %v825_v32, %v839_v44  ;;  %v6576_v57 = vsel %vm12593_vm2, %v826_v35, %v840_v45  ;;  %v868_v58 = vsel %vm12593_vm2, %v839_v44, %v825_v32  ;;  %v869_v59 = vsel %vm12593_vm2, %v840_v45, %v826_v35 }
  0x29   : > { %12670 = vst [vmem:[#allocation7_spill] sm:$0xff] %v6572_v56  ;;  %v6583_v62 = vadd.f32 %v6554_v18, %v1314_v51  ;;  %v6586_v63 = vadd.f32 %v6554_v18, %v1315_v52  ;;  %v6590_v0 = vsel %vm12592_vm1, %v868_v58, 0.0  ;;  %v6594_v1 = vsel %vm12592_vm1, %v869_v59, 0.0 }
  0x2a   : > { %12671 = vst [vmem:[#allocation8_spill] sm:$0xff] %v6590_v0  ;;  %v924_v7 = vmul.f32 %v6372_v6, %v6566_v54  ;;  %v953_v14 = vadd.f32 %v925_v55, %v805_v43  ;;  %v981_v23 = vmul.f32 %v6386_v11, %v6590_v0  ;;  %v982_v26 = vmul.f32 %v6386_v11, %v6572_v56 }
  0x2b   : > { %v5506_v24 = vmul.f32 -1.442695, %v6583_v62  ;;  %v5507_v25 = vmul.f32 -1.442695, %v6586_v63  ;;  %v1038_v27 = vmul.f32 %v6388_v12, %v6594_v1  ;;  %v1039_v29 = vmul.f32 %v6388_v12, %v6576_v57 }
  0x2c   : > { %v952_v28 = vadd.f32 %v924_v7, %v804_v42  ;;  %v1086_v30 = vrot.slane %v6486_v46, 1  ;;  %v1087_v31 = vrot.slane %v6492_v48, 1  ;;  %v1010_v32 = vadd.f32 %v982_v26, %v953_v14 }
  0x2d   : > { %5707 = vpow2.f32 %v5506_v24  ;;  %v1088_v35 = vrot.slane %v6524_v2, 1  ;;  %v1100_v36 = vrot.slane %v6489_v47, 1  ;;  %v1101_v38 = vrot.slane %v6497_v53, 1 }
  0x2e   : > { %5709 = vpow2.f32 %v5507_v25  ;;  %v1009_v37 = vadd.f32 %v981_v23, %v952_v28  ;;  %v1102_v43 = vrot.slane %v6527_v3, 1  ;;  %v1067_v42 = vadd.f32 %v1039_v29, %v1010_v32 }
  0x2f   : > { %v6616_v44 = vsel %vm12563_vm3, %v1086_v30, %v1100_v36  ;;  %v1129_v46 = vsel %vm12563_vm3, %v1100_v36, %v1086_v30  ;;  %v6622_v50 = vsel %vm12563_vm3, %v1087_v31, %v1101_v38  ;;  %v1130_v51 = vsel %vm12563_vm3, %v1101_v38, %v1087_v31 }
  0x30   : > { %12672 = vst [vmem:[#allocation9_spill] sm:$0xff] %v6616_v44  ;;  %v1066_v45 = vadd.f32 %v1038_v27, %v1009_v37  ;;  %v6626_v47 = vsel %vm12563_vm3, %v1088_v35, %v1102_v43  ;;  %v1131_v52 = vsel %vm12563_vm3, %v1102_v43, %v1088_v35  ;;  %v6634_v55 = vsel %vm12562_vm4, %v1129_v46, 0.0  ;;  %v6653_v27 = vld [vmem:[%s6406_s15 + $0x20] sm:$0xff]  ;;  %v6660_v35 = vld [vmem:[%s6406_s15 + $0x28] sm:$0xff] }
  0x31   : > { %12673 = vst [vmem:[#allocation10_spill] sm:$0xff] %v6622_v50  ;;  %v6638_v58 = vsel %vm12562_vm4, %v1130_v51, 0.0  ;;  %v1186_v59 = vmul.f32 %v6390_v13, %v6616_v44  ;;  %v1187_v7 = vmul.f32 %v6390_v13, %v6634_v55  ;;  %v1243_v14 = vmul.f32 %v6421_v19, %v6622_v50 }
  0x32   : > { %12674 = vst [vmem:[#allocation11_spill] sm:$0xff] %v6626_v47  ;;  %v6648_v24 = vsel %vm12562_vm4, %v1131_v52, 0.0  ;;  %v1244_v26 = vmul.f32 %v6421_v19, %v6638_v58  ;;  %v652_v28 = vmul.f32 %v6367_v4, %v6409_v15  ;;  %v1300_v32 = vmul.f32 %v6468_v41, %v6626_v47 }
  0x33   : > { %12675 = vst [vmem:[#allocation12_spill] sm:$0xff] %v6634_v55  ;;  %v5708_v23 = vpop.eup %5707  ;;  %v1214_v25 = vadd.f32 %v1186_v59, %v1066_v45  ;;  %v1215_v31 = vadd.f32 %v1187_v7, %v1067_v42  ;;  %v653_v36 = vmul.f32 %v6367_v4, %v6412_v16  ;;  %v708_v43 = vmul.f32 %v6379_v8, %v6415_v17 }
  0x34   : > { %12676 = vst [vmem:[#allocation13_spill] sm:$0xff] %v6638_v58  ;;  %v5710_v29 = vpop.eup %5709  ;;  %v1457_v30 = vadd.f32 1.0, %v5708_v23  ;;  %v709_v15 = vmul.f32 %v6379_v8, %v6425_v20  ;;  %v1301_v42 = vmul.f32 %v6468_v41, %v6648_v24  ;;  %v765_v45 = vmul.f32 %v6381_v9, %v6653_v27 }
  0x35   : > { %12677 = vst [vmem:[#allocation14_spill] sm:$0xff] %v6648_v24  ;;  %v6664_v37 = vadd.f32 1.0, %v5710_v29  ;;  %v1271_v38 = vadd.f32 %v1243_v14, %v1214_v25  ;;  %v766_v16 = vmul.f32 %v6381_v9, %v6660_v35  ;;  %v1272_v59 = vadd.f32 %v1244_v26, %v1215_v31 }
  0x36   : > { %12678 = vst [vmem:[#allocation15_spill] sm:$0xff] %v6653_v27  ;;  %5711 = vrcp.f32 %v1457_v30  ;;  %v1496_v46 = vand.u32 2147483648, %v1457_v30  ;;  %vm1490_vm5 = vweird.f32 %v1457_v30  ;;  %v1494_v51 = vand.u32 2147483647, %v1457_v30 }
  0x37   : > { %12679 = vst [vmem:[#allocation16_spill] sm:$0xff] %v6660_v35  ;;  %5713 = vrcp.f32 %v6664_v37  ;;  %vm1505_vm6 = vweird.f32 %v6664_v37  ;;  %v1509_v52 = vand.u32 2147483647, %v6664_v37  ;;  %v1328_v7 = vadd.f32 %v1300_v32, %v1271_v38 }
  0x38   : > { %v1497_v14 = vor.u32 1.1754944e-38, %v1496_v46  ;;  %v1511_v23 = vand.u32 2147483648, %v6664_v37  ;;  %v736_v25 = vadd.f32 %v708_v43, %v652_v28  ;;  %v737_v29 = vadd.f32 %v709_v15, %v653_v36 }
  0x39   : > { %v1329_v55 = vadd.f32 %v1301_v42, %v1272_v59  ;;  %v6681_v44 = vadd.f32 %v6554_v18, %v1328_v7  ;;  %v820_v49 = vrot.slane %v6653_v27, 7  ;;  %v834_v54 = vrot.slane %v6660_v35, 7 }
  0x3a   : > { %vm6685_vm7 = vcmp.eq.f32.partialorder %v1494_v51, 8.507059e+37  ;;  %v792_v17 = vadd.f32 %v765_v45, %v736_v25  ;;  %v793_v26 = vadd.f32 %v766_v16, %v737_v29  ;;  %v912_v31 = vmul.f32 %v6372_v6, %v6459_v39 }
  0x3b   : > { %v913_v28 = vmul.f32 %v6372_v6, %v6446_v33  ;;  %vm6693_vm8 = vcmp.eq.f32.partialorder %v1509_v52, 8.507059e+37  ;;  %v6698_v38 = vadd.f32 %v6554_v18, %v1329_v55  ;;  %v5520_v43 = vmul.f32 -1.442695, %v6681_v44 }
  0x3c   : > { %v5712_v32 = vpop.eup %5711  ;;  %v6703_v15 = vsel %vm12593_vm2, %v820_v49, %v834_v54  ;;  %v863_v39 = vsel %vm12593_vm2, %v834_v54, %v820_v49  ;;  %v940_v45 = vadd.f32 %v912_v31, %v792_v17  ;;  %v969_v59 = vmul.f32 %v6386_v11, %v6463_v40 }
  0x3d   : > { %v5714_v46 = vpop.eup %5713  ;;  %v1486_v42 = vmul.f32 %v5712_v32, %v1457_v30  ;;  %vm1491_vm9 = vweird.f32 %v5712_v32  ;;  %v6709_v33 = vsel %vm12592_vm1, %v863_v39, 0.0  ;;  %5715 = vpow2.f32 %v5520_v43 }
  0x3e   : > { %v1501_v55 = vmul.f32 %v5714_v46, %v6664_v37  ;;  %vm1506_vm10 = vweird.f32 %v5714_v46  ;;  %v5521_v51 = vmul.f32 -1.442695, %v6698_v38  ;;  %v941_v52 = vadd.f32 %v913_v28, %v793_v26  ;;  %vm6724_vm11 = vmor %vm1490_vm5, %vm1491_vm9 }
  0x3f   : > { %v1487_v16 = vsub.f32 1.0, %v1486_v42  ;;  %v970_v49 = vmul.f32 %v6386_v11, %v6450_v34  ;;  %v1026_v7 = vmul.f32 %v6388_v12, %v6709_v33  ;;  %v1027_v17 = vmul.f32 %v6388_v12, %v6703_v15  ;;  %vm6736_vm12 = vmor %vm1505_vm6, %vm1506_vm10 }
  0x40   : > { %v1502_v54 = vsub.f32 1.0, %v1501_v55  ;;  %5717 = vpow2.f32 %v5521_v51  ;;  %v997_v29 = vadd.f32 %v969_v59, %v940_v45  ;;  %v1082_v43 = vrot.slane %v6653_v27, 1  ;;  %v6773_v45 = vld [vmem:[%s6475_s26 + $0x60] sm:$0xff] }
  0x41   : > { %v1488_v25 = vmul.f32 %v5712_v32, %v1487_v16  ;;  %v998_v31 = vadd.f32 %v970_v49, %v941_v52  ;;  %v1096_v39 = vrot.slane %v6660_v35, 1  ;;  %v1174_v42 = vmul.f32 %v6390_v13, %v6509_v60 }
  0x42   : > { %v1503_v28 = vmul.f32 %v5714_v46, %v1502_v54  ;;  %v1175_v55 = vmul.f32 %v6390_v13, %v6531_v21  ;;  %v1512_v30 = vor.u32 1.1754944e-38, %v1511_v23  ;;  %v1054_v16 = vadd.f32 %v1026_v7, %v997_v29 }
  0x43   : > { %v1489_v51 = vadd.f32 %v5712_v32, %v1488_v25  ;;  %v1055_v52 = vadd.f32 %v1027_v17, %v998_v31  ;;  %v5716_v59 = vpop.eup %5715  ;;  %v6742_v54 = vsel %vm12563_vm3, %v1082_v43, %v1096_v39  ;;  %v1125_v60 = vsel %vm12563_vm3, %v1096_v39, %v1082_v43 }
  0x44   : > { %v1504_v49 = vadd.f32 %v5714_v46, %v1503_v28  ;;  %v1231_v21 = vmul.f32 %v6421_v19, %v6513_v61  ;;  %v6750_v25 = vadd.f32 1.0, %v5716_v59  ;;  %v6754_v23 = vsel %vm12562_vm4, %v1125_v60, 0.0 }
  0x45   : > { %v1493_v37 = vsel %vm6724_vm11, %v5712_v32, %v1489_v51  ;;  %v1232_v7 = vmul.f32 %v6421_v19, %v6535_v22  ;;  %v1202_v43 = vadd.f32 %v1174_v42, %v1054_v16  ;;  %v1203_v28 = vadd.f32 %v1175_v55, %v1055_v52 }
  0x46   : > { %v5718_v17 = vpop.eup %5717  ;;  %v1498_v29 = vsel %vm6685_vm7, %v1497_v14, %v1493_v37  ;;  %v1508_v31 = vsel %vm6736_vm12, %v5714_v46, %v1504_v49  ;;  %5719 = vrcp.f32 %v6750_v25  ;;  %v1704_v20 = vand.u32 2147483647, %v6750_v25 }
  0x47   : > { %v1513_v32 = vsel %vm6693_vm8, %v1512_v30, %v1508_v31  ;;  %v1905_v26 = vmul.f32 %v1498_v29, %v6583_v62  ;;  %v1472_v39 = vadd.f32 1.0, %v5718_v17  ;;  %v1706_v14 = vand.u32 2147483648, %v6750_v25  ;;  %v6776_v30 = vld [vmem:[%s6475_s26 + $0x68] sm:$0xff] }
  0x48   : > { %v1906_v51 = vmul.f32 %v1513_v32, %v6586_v63  ;;  %v1288_v46 = vmul.f32 %v6468_v41, %v6742_v54  ;;  %vm1700_vm14 = vweird.f32 %v6750_v25  ;;  %v1259_v55 = vadd.f32 %v1231_v21, %v1202_v43 }
  0x49   : > { %5721 = vrcp.f32 %v1472_v39  ;;  %v1721_v36 = vand.u32 2147483648, %v1472_v39  ;;  %vm1715_vm15 = vweird.f32 %v1472_v39  ;;  %v1719_v62 = vand.u32 2147483647, %v1472_v39 }
  0x4a   : > { %v1935_v42 = vpack.c.bf16 %v1906_v51, %v1905_v26  ;;  %v1707_v63 = vor.u32 1.1754944e-38, %v1706_v14  ;;  %v1260_v52 = vadd.f32 %v1232_v7, %v1203_v28  ;;  %v1289_v59 = vmul.f32 %v6468_v41, %v6754_v23 }
  0x4b   : > { %v6778_v16 = vor.u32 1.1754944e-38, %v1721_v36  ;;  %vm6783_vm5 = vcmp.eq.f32.partialorder %v1704_v20, 8.507059e+37  ;;  %v1316_v60 = vadd.f32 %v1288_v46, %v1259_v55  ;;  %v666_v21 = vmul.f32 %v6367_v4, %v6492_v48 }
  0x4c   : > { %5534 = vmatmul.msk.bf16.vlgmr.msra.gmra.mxu0 %vm12540_vm13, %v1935_v42  ;;  %v667_v37 = vmul.f32 %v6367_v4, %v6497_v53  ;;  %v722_v17 = vmul.f32 %v6379_v8, %v6524_v2  ;;  %v5720_v7 = vpop.eup %5719  ;;  %v1317_v29 = vadd.f32 %v1289_v59, %v1260_v52  ;;  %v723_v31 = vmul.f32 %v6379_v8, %v6527_v3 }
  0x4d   : > { %v779_v43 = vmul.f32 %v6381_v9, %v6773_v45  ;;  %v780_v28 = vmul.f32 %v6381_v9, %v6776_v30  ;;  %v1696_v32 = vmul.f32 %v5720_v7, %v6750_v25  ;;  %vm1701_vm6 = vweird.f32 %v5720_v7 }
  0x4e   : > { %vm6800_vm7 = vcmp.eq.f32.partialorder %v1719_v62, 8.507059e+37  ;;  %v6805_v53 = vadd.f32 %v6554_v18, %v1316_v60  ;;  %v750_v26 = vadd.f32 %v722_v17, %v666_v21  ;;  %v6808_v20 = vadd.f32 %v6554_v18, %v1317_v29  ;;  %vm6823_vm9 = vmor %vm1700_vm14, %vm1701_vm6 }
  0x4f   : > { %v5722_v51 = vpop.eup %5721  ;;  %v751_v14 = vadd.f32 %v723_v31, %v667_v37  ;;  %v827_v46 = vrot.slane %v6773_v45, 7  ;;  %v841_v36 = vrot.slane %v6776_v30, 7  ;;  %v1697_v42 = vsub.f32 1.0, %v1696_v32 }
  0x50   : > { %v1711_v55 = vmul.f32 %v5722_v51, %v1472_v39  ;;  %vm1716_vm8 = vweird.f32 %v5722_v51  ;;  %v5508_v62 = vmul.f32 -1.442695, %v6805_v53  ;;  %v5509_v52 = vmul.f32 -1.442695, %v6808_v20 }
  0x51   : > { %v806_v59 = vadd.f32 %v779_v43, %v750_v26  ;;  %v807_v60 = vadd.f32 %v780_v28, %v751_v14  ;;  %v6816_v21 = vsel %vm12593_vm2, %v827_v46, %v841_v36  ;;  %v1698_v17 = vmul.f32 %v5720_v7, %v1697_v42  ;;  %vm6841_vm10 = vmor %vm1715_vm15, %vm1716_vm8 }
  0x52   : > { %v1712_v29 = vsub.f32 1.0, %v1711_v55  ;;  %5723 = vpow2.f32 %v5508_v62  ;;  %v870_v37 = vsel %vm12593_vm2, %v841_v36, %v827_v46  ;;  %v926_v28 = vmul.f32 %v6372_v6, %v6590_v0 }
  0x53   : > { %5725 = vpow2.f32 %v5509_v52  ;;  %v6829_v43 = vsel %vm12592_vm1, %v870_v37, 0.0  ;;  %v927_v32 = vmul.f32 %v6372_v6, %v6572_v56  ;;  %v1699_v26 = vadd.f32 %v5720_v7, %v1698_v17 }
  0x54   : > { %v1713_v14 = vmul.f32 %v5722_v51, %v1712_v29  ;;  %v983_v25 = vmul.f32 %v6386_v11, %v6594_v1  ;;  %v984_v46 = vmul.f32 %v6386_v11, %v6576_v57  ;;  %v954_v42 = vadd.f32 %v926_v28, %v806_v59 }
  0x55   : > { %v955_v55 = vadd.f32 %v927_v32, %v807_v60  ;;  %v1040_v62 = vmul.f32 %v6388_v12, %v6829_v43  ;;  %v1041_v52 = vmul.f32 %v6388_v12, %v6816_v21  ;;  %v1703_v17 = vsel %vm6823_vm9, %v5720_v7, %v1699_v26 }
  0x56   : > { %v1714_v29 = vadd.f32 %v5722_v51, %v1713_v14  ;;  %v1089_v37 = vrot.slane %v6773_v45, 1  ;;  %v1103_v39 = vrot.slane %v6776_v30, 1  ;;  %v1708_v56 = vsel %vm6783_vm5, %v1707_v63, %v1703_v17 }
  0x57   : > { %v1011_v0 = vadd.f32 %v983_v25, %v954_v42  ;;  %v1012_v59 = vadd.f32 %v984_v46, %v955_v55  ;;  %v1919_v32 = vmul.f32 %v1708_v56, %v6681_v44  ;;  %v1188_v63 = vmul.f32 %v6390_v13, %v6622_v50 }
  0x58   : > { %v5724_v60 = vpop.eup %5723  ;;  %v1718_v28 = vsel %vm6841_vm10, %v5722_v51, %v1714_v29  ;;  %v1132_v31 = vsel %vm12563_vm3, %v1103_v39, %v1089_v37  ;;  %v1189_v56 = vmul.f32 %v6390_v13, %v6638_v58  ;;  %v1245_v17 = vmul.f32 %v6421_v19, %v6626_v47 }
  0x59   : > { %v5726_v7 = vpop.eup %5725  ;;  %v1723_v26 = vsel %vm6800_vm7, %v6778_v16, %v1718_v28  ;;  %v6863_v14 = vadd.f32 1.0, %v5724_v60  ;;  %v1068_v49 = vadd.f32 %v1040_v62, %v1011_v0  ;;  %v1069_v51 = vadd.f32 %v1041_v52, %v1012_v59 }
  0x5a   : > { %v1920_v25 = vmul.f32 %v1723_v26, %v6698_v38  ;;  %v6868_v46 = vadd.f32 1.0, %v5726_v7  ;;  %v6876_v16 = vsel %vm12563_vm3, %v1089_v37, %v1103_v39  ;;  %v6880_v0 = vsel %vm12562_vm4, %v1132_v31, 0.0  ;;  %v6894_v37 = vld [vmem:[%s6475_s26] sm:$0xff]  ;;  %v6897_v39 = vld [vmem:[%s6475_s26 + $0x8] sm:$0xff] }
  0x5b   : > { %5727 = vrcp.f32 %v6863_v14  ;;  %v1526_v44 = vand.u32 2147483648, %v6863_v14  ;;  %12696 = vst [vmem:[#allocation17_spill] sm:$0xff] %v6876_v16  ;;  %vm1520_vm11 = vweird.f32 %v6863_v14  ;;  %v1524_v48 = vand.u32 2147483647, %v6863_v14 }
  0x5c   : > { %12697 = vst [vmem:[#allocation18_spill] sm:$0xff] %v6880_v0  ;;  %v1942_v38 = vpack.c.bf16 %v1920_v25, %v1919_v32  ;;  %5729 = vrcp.f32 %v6868_v46  ;;  %vm1535_vm12 = vweird.f32 %v6868_v46  ;;  %v1539_v36 = vand.u32 2147483647, %v6868_v46  ;;  %v12700_v32 = vld [vmem:[#allocation3_spill] sm:$0xff] }
  0x5d   : > { %v1541_v42 = vand.u32 2147483648, %v6868_v46  ;;  %v1216_v55 = vadd.f32 %v1188_v63, %v1068_v49  ;;  %v1527_v62 = vor.u32 1.1754944e-38, %v1526_v44  ;;  %v1217_v52 = vadd.f32 %v1189_v56, %v1069_v51  ;;  %12698 = vst [vmem:[#allocation19_spill] sm:$0xff] %v6894_v37  ;;  %v12703_v63 = vld [vmem:[#allocation4_spill] sm:$0xff] }
  0x5e   : > { %5541 = vmatmul.msk.bf16.vlgmr.msra.gmra.mxu2 %vm12540_vm13, %v1942_v38  ;;  %v1246_v29 = vmul.f32 %v6421_v19, %v6648_v24  ;;  %12699 = vst [vmem:[#allocation20_spill] sm:$0xff] %v6897_v39  ;;  %v1302_v60 = vmul.f32 %v6468_v41, %v6876_v16  ;;  %v1303_v28 = vmul.f32 %v6468_v41, %v6880_v0  ;;  %vm6905_vm14 = vcmp.eq.f32.partialorder %v1524_v48, 8.507059e+37 }
  0x5f   : > { %v1542_v59 = vor.u32 1.1754944e-38, %v1541_v42  ;;  %v654_v31 = vmul.f32 %v6367_v4, %v12700_v32  ;;  %v1273_v26 = vadd.f32 %v1245_v17, %v1216_v55  ;;  %v655_v25 = vmul.f32 %v6367_v4, %v12703_v63 }
  0x60   : > { %v1274_v49 = vadd.f32 %v1246_v29, %v1217_v52  ;;  %v710_v51 = vmul.f32 %v6379_v8, %v6653_v27  ;;  %vm6913_vm15 = vcmp.eq.f32.partialorder %v1539_v36, 8.507059e+37  ;;  %v711_v38 = vmul.f32 %v6379_v8, %v6660_v35 }
  0x61   : > { %v5728_v56 = vpop.eup %5727  ;;  %v767_v48 = vmul.f32 %v6381_v9, %v6894_v37  ;;  %v768_v42 = vmul.f32 %v6381_v9, %v6897_v39  ;;  %v821_v55 = vrot.slane %v6894_v37, 7  ;;  %v1330_v29 = vadd.f32 %v1302_v60, %v1273_v26 }
  0x62   : > { %v5730_v52 = vpop.eup %5729  ;;  %v1516_v17 = vmul.f32 %v5728_v56, %v6863_v14  ;;  %vm1521_vm5 = vweird.f32 %v5728_v56  ;;  %v1331_v36 = vadd.f32 %v1303_v28, %v1274_v49  ;;  %v738_v63 = vadd.f32 %v710_v51, %v654_v31 }
  0x63   : > { %v1531_v32 = vmul.f32 %v5730_v52, %v6868_v46  ;;  %vm1536_vm6 = vweird.f32 %v5730_v52  ;;  %v739_v58 = vadd.f32 %v711_v38, %v655_v25  ;;  %v6927_v35 = vadd.f32 %v6554_v18, %v1330_v29  ;;  %vm6944_vm7 = vmor %vm1520_vm11, %vm1521_vm5 }
  0x64   : > { %v1517_v50 = vsub.f32 1.0, %v1516_v17  ;;  %v6930_v27 = vadd.f32 %v6554_v18, %v1331_v36  ;;  %v835_v0 = vrot.slane %v6897_v39, 7  ;;  %v794_v24 = vadd.f32 %v767_v48, %v738_v63  ;;  %vm6955_vm8 = vmor %vm1535_vm12, %vm1536_vm6 }
  0x65   : > { %v1532_v16 = vsub.f32 1.0, %v1531_v32  ;;  %v795_v47 = vadd.f32 %v768_v42, %v739_v58  ;;  %v914_v60 = vmul.f32 %v6372_v6, %v6463_v40  ;;  %v5522_v26 = vmul.f32 -1.442695, %v6927_v35 }
  0x66   : > { %v1518_v28 = vmul.f32 %v5728_v56, %v1517_v50  ;;  %v5523_v31 = vmul.f32 -1.442695, %v6930_v27  ;;  %v6939_v49 = vsel %vm12593_vm2, %v821_v55, %v835_v0  ;;  %v864_v40 = vsel %vm12593_vm2, %v835_v0, %v821_v55 }
  0x67   : > { %v1533_v58 = vmul.f32 %v5730_v52, %v1532_v16  ;;  %v915_v50 = vmul.f32 %v6372_v6, %v6450_v34  ;;  %v942_v51 = vadd.f32 %v914_v60, %v794_v24  ;;  %5731 = vpow2.f32 %v5522_v26 }
  0x68   : > { %v1519_v38 = vadd.f32 %v5728_v56, %v1518_v28  ;;  %v6961_v14 = vsel %vm12592_vm1, %v864_v40, 0.0  ;;  %v971_v16 = vmul.f32 %v6386_v11, %v6709_v33  ;;  %5733 = vpow2.f32 %v5523_v31 }
  0x69   : > { %v1534_v0 = vadd.f32 %v5730_v52, %v1533_v58  ;;  %v943_v34 = vadd.f32 %v915_v50, %v795_v47  ;;  %v972_v24 = vmul.f32 %v6386_v11, %v6703_v15  ;;  %v1028_v55 = vmul.f32 %v6388_v12, %v6961_v14 }
  0x6a   : > { %v1523_v46 = vsel %vm6944_vm7, %v5728_v56, %v1519_v38  ;;  %v999_v42 = vadd.f32 %v971_v16, %v942_v51  ;;  %v1029_v17 = vmul.f32 %v6388_v12, %v6939_v49  ;;  %v1083_v32 = vrot.slane %v6894_v37, 1 }
  0x6b   : > { %v1528_v29 = vsel %vm6905_vm14, %v1527_v62, %v1523_v46  ;;  %v1538_v36 = vsel %vm6955_vm8, %v5730_v52, %v1534_v0  ;;  %v1000_v47 = vadd.f32 %v972_v24, %v943_v34  ;;  %v1097_v28 = vrot.slane %v6897_v39, 1 }
  0x6c   : > { %v1543_v63 = vsel %vm6913_vm15, %v1542_v59, %v1538_v36  ;;  %v1907_v56 = vmul.f32 %v1528_v29, %v6805_v53  ;;  %v1056_v60 = vadd.f32 %v1028_v55, %v999_v42  ;;  %v1176_v62 = vmul.f32 %v6390_v13, %v6513_v61  ;;  %v7013_v55 = vld [vmem:[%s6475_s26 + $0x70] sm:$0xff] }
  0x6d   : > { %v1908_v26 = vmul.f32 %v1543_v63, %v6808_v20  ;;  %v1057_v31 = vadd.f32 %v1029_v17, %v1000_v47  ;;  %v1177_v7 = vmul.f32 %v6390_v13, %v6535_v22  ;;  %v5732_v52 = vpop.eup %5731  ;;  %v6989_v25 = vsel %vm12563_vm3, %v1083_v32, %v1097_v28  ;;  %v7016_v17 = vld [vmem:[%s6475_s26 + $0x78] sm:$0xff] }
  0x6e   : > { %v1126_v53 = vsel %vm12563_vm3, %v1097_v28, %v1083_v32  ;;  %v1233_v59 = vmul.f32 %v6421_v19, %v6742_v54  ;;  %v1234_v20 = vmul.f32 %v6421_v19, %v6754_v23  ;;  %v5734_v44 = vpop.eup %5733  ;;  %v1473_v61 = vadd.f32 1.0, %v5732_v52 }
  0x6f   : > { %v1936_v58 = vpack.c.bf16 %v1908_v26, %v1907_v56  ;;  %v6999_v22 = vsel %vm12562_vm4, %v1126_v53, 0.0  ;;  %v1204_v40 = vadd.f32 %v1176_v62, %v1056_v60  ;;  %v7001_v50 = vadd.f32 1.0, %v5734_v44 }
  0x70   : > { %v1205_v51 = vadd.f32 %v1177_v7, %v1057_v31  ;;  %5735 = vrcp.f32 %v1473_v61  ;;  %v1736_v38 = vand.u32 2147483648, %v1473_v61  ;;  %v1290_v48 = vmul.f32 %v6468_v41, %v6989_v25 }
  0x71   : > { %5535 = vmatmul.msk.bf16.gmra.mxu0 %vm12540_vm13, %v1936_v58  ;;  %v1291_v16 = vmul.f32 %v6468_v41, %v6999_v22  ;;  %vm1730_vm9 = vweird.f32 %v1473_v61  ;;  %v1734_v0 = vand.u32 2147483647, %v1473_v61  ;;  %5737 = vrcp.f32 %v7001_v50 }
  0x72   : > { %v1751_v34 = vand.u32 2147483648, %v7001_v50  ;;  %vm1745_vm10 = vweird.f32 %v7001_v50  ;;  %v1749_v24 = vand.u32 2147483647, %v7001_v50  ;;  %v1261_v46 = vadd.f32 %v1233_v59, %v1204_v40 }
  0x73   : > { %v1262_v42 = vadd.f32 %v1234_v20, %v1205_v51  ;;  %v1737_v29 = vor.u32 1.1754944e-38, %v1736_v38  ;;  %v668_v47 = vmul.f32 %v6367_v4, %v6524_v2  ;;  %v669_v32 = vmul.f32 %v6367_v4, %v6527_v3 }
  0x74   : > { %v7018_v36 = vor.u32 1.1754944e-38, %v1751_v34  ;;  %v1318_v63 = vadd.f32 %v1290_v48, %v1261_v46  ;;  %v724_v60 = vmul.f32 %v6379_v8, %v6773_v45  ;;  %v725_v28 = vmul.f32 %v6379_v8, %v6776_v30 }
  0x75   : > { %v1319_v56 = vadd.f32 %v1291_v16, %v1262_v42  ;;  %vm7028_vm11 = vcmp.eq.f32.partialorder %v1734_v0, 8.507059e+37  ;;  %v781_v31 = vmul.f32 %v6381_v9, %v7013_v55  ;;  %v782_v2 = vmul.f32 %v6381_v9, %v7016_v17 }
  0x76   : > { %v828_v3 = vrot.slane %v7013_v55, 7  ;;  %v842_v62 = vrot.slane %v7016_v17, 7  ;;  %v5736_v7 = vpop.eup %5735  ;;  %v7039_v52 = vadd.f32 %v6554_v18, %v1318_v63  ;;  %v752_v59 = vadd.f32 %v724_v60, %v668_v47 }
  0x77   : > { %v7042_v53 = vadd.f32 %v6554_v18, %v1319_v56  ;;  %v753_v20 = vadd.f32 %v725_v28, %v669_v32  ;;  %v5738_v44 = vpop.eup %5737  ;;  %v1726_v58 = vmul.f32 %v5736_v7, %v1473_v61  ;;  %vm1731_vm12 = vweird.f32 %v5736_v7 }
  0x78   : > { %v7046_v40 = vsel %vm12593_vm2, %v828_v3, %v842_v62  ;;  %v871_v51 = vsel %vm12593_vm2, %v842_v62, %v828_v3  ;;  %v1741_v38 = vmul.f32 %v5738_v44, %v7001_v50  ;;  %vm1746_vm14 = vweird.f32 %v5738_v44  ;;  %vm7067_vm15 = vmor %vm1730_vm9, %vm1731_vm12 }
  0x79   : > { %v5510_v48 = vmul.f32 -1.442695, %v7039_v52  ;;  %v5511_v16 = vmul.f32 -1.442695, %v7042_v53  ;;  %v1727_v0 = vsub.f32 1.0, %v1726_v58  ;;  %v808_v34 = vadd.f32 %v781_v31, %v752_v59  ;;  %vm7076_vm5 = vmor %vm1745_vm10, %vm1746_vm14 }
  0x7a   : > { %v809_v46 = vadd.f32 %v782_v2, %v753_v20  ;;  %v7055_v42 = vsel %vm12592_vm1, %v871_v51, 0.0  ;;  %v1742_v47 = vsub.f32 1.0, %v1741_v38  ;;  %v928_v32 = vmul.f32 %v6372_v6, %v6594_v1 }
  0x7b   : > { %5739 = vpow2.f32 %v5510_v48  ;;  %v929_v63 = vmul.f32 %v6372_v6, %v6576_v57  ;;  %v1728_v56 = vmul.f32 %v5736_v7, %v1727_v0  ;;  %v985_v60 = vmul.f32 %v6386_v11, %v6829_v43  ;;  %v12716_v0 = vld [vmem:[#allocation11_spill] sm:$0xff] }
  0x7c   : > { %5741 = vpow2.f32 %v5511_v16  ;;  %v986_v28 = vmul.f32 %v6386_v11, %v6816_v21  ;;  %v1743_v2 = vmul.f32 %v5738_v44, %v1742_v47  ;;  %v956_v3 = vadd.f32 %v928_v32, %v808_v34 }
  0x7d   : > { %v957_v1 = vadd.f32 %v929_v63, %v809_v46  ;;  %v1042_v57 = vmul.f32 %v6388_v12, %v7055_v42  ;;  %v1729_v62 = vadd.f32 %v5736_v7, %v1728_v56  ;;  %v1043_v61 = vmul.f32 %v6388_v12, %v7046_v40  ;;  %v12717_v46 = vld [vmem:[#allocation14_spill] sm:$0xff] }
  0x7e   : > { %v1090_v20 = vrot.slane %v7013_v55, 1  ;;  %v1104_v58 = vrot.slane %v7016_v17, 1  ;;  %v1744_v51 = vadd.f32 %v5738_v44, %v1743_v2  ;;  %vm1750_vm6 = vcmp.eq.f32.partialorder %v1749_v24, 8.507059e+37 }
  0x7f   : > { %v1013_v38 = vadd.f32 %v985_v60, %v956_v3  ;;  %v1014_v48 = vadd.f32 %v986_v28, %v957_v1  ;;  %v1733_v16 = vsel %vm7067_vm15, %v5736_v7, %v1729_v62  ;;  %v1190_v34 = vmul.f32 %v6390_v13, %v12716_v0  ;;  %v7126_v0 = vld [vmem:[%s6475_s26 + $0x18] sm:$0xff] }
  0x80   : > { %v1133_v50 = vsel %vm12563_vm3, %v1104_v58, %v1090_v20  ;;  %v1191_v47 = vmul.f32 %v6390_v13, %v12717_v46  ;;  %v1738_v63 = vsel %vm7028_vm11, %v1737_v29, %v1733_v16  ;;  %v1748_v24 = vsel %vm7076_vm5, %v5738_v44, %v1744_v51  ;;  %12722 = vst [vmem:[#allocation11_spill] sm:$0xff] %v7126_v0 }
  0x81   : > { %v5740_v32 = vpop.eup %5739  ;;  %v1070_v56 = vadd.f32 %v1042_v57, %v1013_v38  ;;  %v1071_v60 = vadd.f32 %v1043_v61, %v1014_v48  ;;  %v1753_v7 = vsel %vm1750_vm6, %v7018_v36, %v1748_v24  ;;  %v1921_v31 = vmul.f32 %v1738_v63, %v6927_v35  ;;  %v12719_v61 = vld [vmem:[#allocation17_spill] sm:$0xff]  ;;  %v12721_v38 = vld [vmem:[#allocation18_spill] sm:$0xff]  ;;  %v12724_v63 = vld [vmem:[#allocation16_spill] sm:$0xff] }
  0x82   : > { %v5742_v28 = vpop.eup %5741  ;;  %v1461_v2 = vadd.f32 1.0, %v5740_v32  ;;  %v1922_v3 = vmul.f32 %v1753_v7, %v6930_v27  ;;  %v7103_v26 = vsel %vm12563_vm3, %v1090_v20, %v1104_v58  ;;  %v7107_v29 = vsel %vm12562_vm4, %v1133_v50, 0.0  ;;  %v7116_v58 = vld [vmem:[%s6475_s26 + $0x10] sm:$0xff] }
  0x83   : > { %v7099_v1 = vadd.f32 1.0, %v5742_v28  ;;  %12718 = vst [vmem:[#allocation3_spill] sm:$0xff] %v7107_v29  ;;  %v1218_v57 = vadd.f32 %v1190_v34, %v1070_v56  ;;  %v1219_v36 = vadd.f32 %v1191_v47, %v1071_v60  ;;  %v1247_v20 = vmul.f32 %v6421_v19, %v12719_v61  ;;  %v12723_v47 = vld [vmem:[#allocation15_spill] sm:$0xff] }
  0x84   : > { %5743 = vrcp.f32 %v1461_v2  ;;  %v1556_v44 = vand.u32 2147483648, %v1461_v2  ;;  %v1943_v35 = vpack.c.bf16 %v1922_v3, %v1921_v31  ;;  %vm1550_vm7 = vweird.f32 %v1461_v2  ;;  %12720 = vst [vmem:[#allocation4_spill] sm:$0xff] %v7116_v58 }
  0x85   : > { %v1554_v62 = vand.u32 2147483647, %v1461_v2  ;;  %5745 = vrcp.f32 %v7099_v1  ;;  %vm1565_vm8 = vweird.f32 %v7099_v1  ;;  %v1569_v27 = vand.u32 2147483647, %v7099_v1 }
  0x86   : > { %v1571_v59 = vand.u32 2147483648, %v7099_v1  ;;  %5542 = vmatmul.msk.bf16.gmra.mxu2 %vm12540_vm13, %v1943_v35  ;;  %v1557_v51 = vor.u32 1.1754944e-38, %v1556_v44  ;;  %v1248_v48 = vmul.f32 %v6421_v19, %v12721_v38  ;;  %v1304_v16 = vmul.f32 %v6468_v41, %v7103_v26 }
  0x87   : > { %v1305_v50 = vmul.f32 %v6468_v41, %v7107_v29  ;;  %v1275_v46 = vadd.f32 %v1247_v20, %v1218_v57  ;;  %v656_v32 = vmul.f32 %v6367_v4, %v12723_v47  ;;  %v657_v24 = vmul.f32 %v6367_v4, %v12724_v63 }
  0x88   : > { %v1572_v34 = vor.u32 1.1754944e-38, %v1571_v59  ;;  %vm7132_vm9 = vcmp.eq.f32.partialorder %v1554_v62, 8.507059e+37  ;;  %v1276_v60 = vadd.f32 %v1248_v48, %v1219_v36  ;;  %v712_v28 = vmul.f32 %v6379_v8, %v6894_v37 }
  0x89   : > { %v713_v41 = vmul.f32 %v6379_v8, %v6897_v39  ;;  %v769_v7 = vmul.f32 %v6381_v9, %v7116_v58  ;;  %vm7142_vm10 = vcmp.eq.f32.partialorder %v1569_v27, 8.507059e+37  ;;  %v1332_v44 = vadd.f32 %v1304_v16, %v1275_v46 }
  0x8a   : > { %v5744_v31 = vpop.eup %5743  ;;  %v770_v57 = vmul.f32 %v6381_v9, %v7126_v0  ;;  %v822_v36 = vrot.slane %v7116_v58, 7  ;;  %v836_v35 = vrot.slane %v7126_v0, 7  ;;  %v1333_v20 = vadd.f32 %v1305_v50, %v1276_v60 }
  0x8b   : > { %v5746_v62 = vpop.eup %5745  ;;  %v1546_v59 = vmul.f32 %v5744_v31, %v1461_v2  ;;  %vm1551_vm11 = vweird.f32 %v5744_v31  ;;  %v740_v48 = vadd.f32 %v712_v28, %v656_v32  ;;  %v7152_v27 = vadd.f32 %v6554_v18, %v1332_v44 }
  0x8c   : > { %v1561_v47 = vmul.f32 %v5746_v62, %v7099_v1  ;;  %vm1566_vm12 = vweird.f32 %v5746_v62  ;;  %v741_v63 = vadd.f32 %v713_v41, %v657_v24  ;;  %v7155_v46 = vadd.f32 %v6554_v18, %v1333_v20  ;;  %vm7173_vm14 = vmor %vm1550_vm7, %vm1551_vm11 }
  0x8d   : > { %v1547_v16 = vsub.f32 1.0, %v1546_v59  ;;  %v796_v39 = vadd.f32 %v769_v7, %v740_v48  ;;  %v7159_v37 = vsel %vm12593_vm2, %v822_v36, %v836_v35  ;;  %v5524_v50 = vmul.f32 -1.442695, %v7152_v27  ;;  %vm7184_vm15 = vmor %vm1565_vm8, %vm1566_vm12 }
  0x8e   : > { %v1562_v29 = vsub.f32 1.0, %v1561_v47  ;;  %v797_v32 = vadd.f32 %v770_v57, %v741_v63  ;;  %v865_v60 = vsel %vm12593_vm2, %v836_v35, %v822_v36  ;;  %v5525_v44 = vmul.f32 -1.442695, %v7155_v46 }
  0x8f   : > { %v1548_v28 = vmul.f32 %v5744_v31, %v1547_v16  ;;  %v7167_v24 = vsel %vm12592_vm1, %v865_v60, 0.0  ;;  %v916_v18 = vmul.f32 %v6372_v6, %v6709_v33  ;;  %5747 = vpow2.f32 %v5524_v50 }
  0x90   : > { %v1563_v7 = vmul.f32 %v5746_v62, %v1562_v29  ;;  %v917_v57 = vmul.f32 %v6372_v6, %v6703_v15  ;;  %v973_v36 = vmul.f32 %v6386_v11, %v6961_v14  ;;  %5749 = vpow2.f32 %v5525_v44 }
  0x91   : > { %v1549_v35 = vadd.f32 %v5744_v31, %v1548_v28  ;;  %v944_v2 = vadd.f32 %v916_v18, %v796_v39  ;;  %v974_v29 = vmul.f32 %v6386_v11, %v6939_v49  ;;  %v1030_v15 = vmul.f32 %v6388_v12, %v7167_v24 }
  0x92   : > { %v1564_v59 = vadd.f32 %v5746_v62, %v1563_v7  ;;  %v945_v20 = vadd.f32 %v917_v57, %v797_v32  ;;  %v1031_v48 = vmul.f32 %v6388_v12, %v7159_v37  ;;  %v1084_v63 = vrot.slane %v7116_v58, 1 }
  0x93   : > { %v1553_v1 = vsel %vm7173_vm14, %v5744_v31, %v1549_v35  ;;  %v1001_v47 = vadd.f32 %v973_v36, %v944_v2  ;;  %v1098_v16 = vrot.slane %v7126_v0, 1  ;;  %v1178_v60 = vmul.f32 %v6390_v13, %v6742_v54 }
  0x94   : > { %v1558_v39 = vsel %vm7132_vm9, %v1557_v51, %v1553_v1  ;;  %v1568_v50 = vsel %vm7184_vm15, %v5746_v62, %v1564_v59  ;;  %v1002_v32 = vadd.f32 %v974_v29, %v945_v20  ;;  %v1179_v56 = vmul.f32 %v6390_v13, %v6754_v23  ;;  %v7248_v1 = vld [vmem:[%s7225_s24 + $0x8] sm:$0xff] }
  0x95   : > { %v1573_v28 = vsel %vm7142_vm10, %v1572_v34, %v1568_v50  ;;  %v1909_v31 = vmul.f32 %v1558_v39, %v7039_v52  ;;  %v1058_v44 = vadd.f32 %v1030_v15, %v1001_v47  ;;  %v5748_v18 = vpop.eup %5747  ;;  %v1127_v51 = vsel %vm12563_vm3, %v1098_v16, %v1084_v63 }
  0x96   : > { %v1910_v41 = vmul.f32 %v1573_v28, %v7042_v53  ;;  %v1059_v7 = vadd.f32 %v1031_v48, %v1002_v32  ;;  %v5750_v62 = vpop.eup %5749  ;;  %v7212_v57 = vadd.f32 1.0, %v5748_v18  ;;  %v1235_v34 = vmul.f32 %v6421_v19, %v6989_v25  ;;  %v7245_v48 = vld [vmem:[%s7225_s24] sm:$0xff] }
  0x97   : > { %v1206_v54 = vadd.f32 %v1178_v60, %v1058_v44  ;;  %v7216_v52 = vadd.f32 1.0, %v5750_v62  ;;  %v1236_v53 = vmul.f32 %v6421_v19, %v6999_v22  ;;  %v7231_v35 = vsel %vm12563_vm3, %v1084_v63, %v1098_v16  ;;  %v7255_v16 = vld [vmem:[%s12490_s3 + $0x8] ss:$0 sm:$0xff] }
  0x98   : > { %v1937_v3 = vpack.c.bf16 %v1910_v41, %v1909_v31  ;;  %v1207_v36 = vadd.f32 %v1179_v56, %v1059_v7  ;;  %5751 = vrcp.f32 %v7212_v57  ;;  %v1766_v23 = vand.u32 2147483648, %v7212_v57 }
  0x99   : > { %v7235_v33 = vsel %vm12562_vm4, %v1127_v51, 0.0  ;;  %vm1760_vm5 = vweird.f32 %v7212_v57  ;;  %v1764_v2 = vand.u32 2147483647, %v7212_v57  ;;  %5753 = vrcp.f32 %v7216_v52 }
  0x9a   : > { %5536 = vmatmul.msk.bf16.gmra.mxu0 %vm12540_vm13, %v1937_v3  ;;  %v1781_v29 = vand.u32 2147483648, %v7216_v52  ;;  %vm1775_vm6 = vweird.f32 %v7216_v52  ;;  %v1779_v59 = vand.u32 2147483647, %v7216_v52  ;;  %v1263_v20 = vadd.f32 %v1235_v34, %v1206_v54 }
  0x9b   : > { %v1264_v15 = vadd.f32 %v1236_v53, %v1207_v36  ;;  %v1767_v47 = vor.u32 1.1754944e-38, %v1766_v23  ;;  %v1292_v39 = vmul.f32 %v7255_v16, %v7231_v35  ;;  %v1293_v50 = vmul.f32 %v7255_v16, %v7235_v33  ;;  %v7287_v53 = vld [vmem:[%s12491_s4] ss:$0 sm:$0xff] }
  0x9c   : > { %v7250_v63 = vor.u32 1.1754944e-38, %v1781_v29  ;;  %v670_v32 = vmul.f32 %v6367_v4, %v6773_v45  ;;  %v671_v60 = vmul.f32 %v6367_v4, %v6776_v30  ;;  %v726_v28 = vmul.f32 %v6379_v8, %v7013_v55  ;;  %v12741_v30 = vld [vmem:[#allocation3_spill] sm:$0xff] }
  0x9d   : > { %v727_v31 = vmul.f32 %v6379_v8, %v7016_v17  ;;  %vm7269_vm7 = vcmp.eq.f32.partialorder %v1764_v2, 8.507059e+37  ;;  %v1320_v18 = vadd.f32 %v1292_v39, %v1263_v20  ;;  %v1321_v41 = vadd.f32 %v1293_v50, %v1264_v15 }
  0x9e   : > { %v783_v7 = vmul.f32 %v6381_v9, %v7245_v48  ;;  %v784_v45 = vmul.f32 %v6381_v9, %v7248_v1  ;;  %v5752_v51 = vpop.eup %5751  ;;  %vm7277_vm8 = vcmp.eq.f32.partialorder %v1779_v59, 8.507059e+37  ;;  %v754_v56 = vadd.f32 %v726_v28, %v670_v32 }
  0x9f   : > { %v755_v62 = vadd.f32 %v727_v31, %v671_v60  ;;  %v829_v54 = vrot.slane %v7245_v48, 7  ;;  %v843_v34 = vrot.slane %v7248_v1, 7  ;;  %v5754_v3 = vpop.eup %5753  ;;  %v1756_v36 = vmul.f32 %v5752_v51, %v7212_v57 }
  0xa0   : > { %vm1761_vm9 = vweird.f32 %v5752_v51  ;;  %v7290_v23 = vadd.f32 %v7287_v53, %v1320_v18  ;;  %v7293_v2 = vadd.f32 %v7287_v53, %v1321_v41  ;;  %v1771_v29 = vmul.f32 %v5754_v3, %v7216_v52 }
  0xa1   : > { %vm1776_vm10 = vweird.f32 %v5754_v3  ;;  %v810_v59 = vadd.f32 %v783_v7, %v754_v56  ;;  %v811_v20 = vadd.f32 %v784_v45, %v755_v62  ;;  %v1757_v15 = vsub.f32 1.0, %v1756_v36  ;;  %vm7317_vm11 = vmor %vm1760_vm5, %vm1761_vm9 }
  0xa2   : > { %v5512_v39 = vmul.f32 -1.442695, %v7290_v23  ;;  %v5513_v50 = vmul.f32 -1.442695, %v7293_v2  ;;  %v7300_v32 = vsel %vm12593_vm2, %v829_v54, %v843_v34  ;;  %v1772_v60 = vsub.f32 1.0, %v1771_v29  ;;  %vm7324_vm12 = vmor %vm1775_vm6, %vm1776_vm10 }
  0xa3   : > { %v872_v28 = vsel %vm12593_vm2, %v843_v34, %v829_v54  ;;  %v930_v31 = vmul.f32 %v6372_v6, %v6829_v43  ;;  %v931_v18 = vmul.f32 %v6372_v6, %v6816_v21  ;;  %v1758_v41 = vmul.f32 %v5752_v51, %v1757_v15 }
  0xa4   : > { %5755 = vpow2.f32 %v5512_v39  ;;  %v7310_v7 = vsel %vm12592_vm1, %v872_v28, 0.0  ;;  %v987_v45 = vmul.f32 %v6386_v11, %v7055_v42  ;;  %v1773_v43 = vmul.f32 %v5754_v3, %v1772_v60 }
  0xa5   : > { %5757 = vpow2.f32 %v5513_v50  ;;  %v958_v62 = vadd.f32 %v930_v31, %v810_v59  ;;  %v959_v21 = vadd.f32 %v931_v18, %v811_v20  ;;  %v1759_v54 = vadd.f32 %v5752_v51, %v1758_v41 }
  0xa6   : > { %v988_v36 = vmul.f32 %v6386_v11, %v7046_v40  ;;  %v1044_v57 = vmul.f32 %v6388_v12, %v7310_v7  ;;  %v1045_v29 = vmul.f32 %v6388_v12, %v7300_v32  ;;  %v1774_v15 = vadd.f32 %v5754_v3, %v1773_v43 }
  0xa7   : > { %v1015_v59 = vadd.f32 %v987_v45, %v958_v62  ;;  %v1091_v20 = vrot.slane %v7245_v48, 1  ;;  %v1105_v39 = vrot.slane %v7248_v1, 1  ;;  %v1763_v52 = vsel %vm7317_vm11, %v5752_v51, %v1759_v54 }
  0xa8   : > { %v1016_v50 = vadd.f32 %v988_v36, %v959_v21  ;;  %v1192_v60 = vmul.f32 %v6390_v13, %v12719_v61  ;;  %v1193_v28 = vmul.f32 %v6390_v13, %v12721_v38  ;;  %v1768_v31 = vsel %vm7269_vm7, %v1767_v47, %v1763_v52 }
  0xa9   : > { %v1778_v18 = vsel %vm7324_vm12, %v5754_v3, %v1774_v15  ;;  %v1072_v41 = vadd.f32 %v1044_v57, %v1015_v59  ;;  %v1923_v51 = vmul.f32 %v1768_v31, %v7152_v27  ;;  %v1134_v61 = vsel %vm12563_vm3, %v1105_v39, %v1091_v20 }
  0xaa   : > { %v5756_v45 = vpop.eup %5755  ;;  %v1783_v56 = vsel %vm7277_vm8, %v7250_v63, %v1778_v18  ;;  %v1073_v43 = vadd.f32 %v1045_v29, %v1016_v50  ;;  %v1249_v54 = vmul.f32 %v6421_v19, %v7103_v26  ;;  %v1250_v63 = vmul.f32 %v6421_v19, %v12741_v30  ;;  %v12745_v18 = vld [vmem:[#allocation19_spill] sm:$0xff] }
  0xab   : > { %v5758_v62 = vpop.eup %5757  ;;  %v1924_v38 = vmul.f32 %v1783_v56, %v7155_v46  ;;  %v1463_v44 = vadd.f32 1.0, %v5756_v45  ;;  %v1220_v47 = vadd.f32 %v1192_v60, %v1072_v41  ;;  %v7361_v34 = vsel %vm12563_vm3, %v1091_v20, %v1105_v39  ;;  %v7372_v20 = vld [vmem:[%s6475_s26 + $0x20] sm:$0xff]  ;;  %v12746_v45 = vld [vmem:[#allocation20_spill] sm:$0xff] }
  0xac   : > { %v7353_v21 = vadd.f32 1.0, %v5758_v62  ;;  %v1221_v3 = vadd.f32 %v1193_v28, %v1073_v43  ;;  %12742 = vst [vmem:[#allocation14_spill] sm:$0xff] %v7361_v34  ;;  %v7365_v46 = vsel %vm12562_vm4, %v1134_v61, 0.0  ;;  %v1306_v50 = vmul.f32 %v7255_v16, %v7361_v34  ;;  %v7380_v28 = vld [vmem:[%s6475_s26 + $0x28] sm:$0xff] }
  0xad   : > { %v1944_v27 = vpack.c.bf16 %v1924_v38, %v1923_v51  ;;  %5759 = vrcp.f32 %v1463_v44  ;;  %12743 = vst [vmem:[#allocation17_spill] sm:$0xff] %v7365_v46  ;;  %vm1580_vm14 = vweird.f32 %v1463_v44  ;;  %v1584_v36 = vand.u32 2147483647, %v1463_v44 }
  0xae   : > { %v1586_v57 = vand.u32 2147483648, %v1463_v44  ;;  %5761 = vrcp.f32 %v7353_v21  ;;  %v1599_v29 = vand.u32 2147483647, %v7353_v21  ;;  %v1601_v15 = vand.u32 2147483648, %v7353_v21  ;;  %12744 = vst [vmem:[#allocation18_spill] sm:$0xff] %v7380_v28 }
  0xaf   : > { %5543 = vmatmul.msk.bf16.gmra.mxu2 %vm12540_vm13, %v1944_v27  ;;  %v1277_v59 = vadd.f32 %v1249_v54, %v1220_v47  ;;  %v1278_v52 = vadd.f32 %v1250_v63, %v1221_v3  ;;  %vm1595_vm15 = vweird.f32 %v7353_v21  ;;  %v1307_v60 = vmul.f32 %v7255_v16, %v7365_v46 }
  0xb0   : > { %v1587_v39 = vor.u32 1.1754944e-38, %v1586_v57  ;;  %v1602_v31 = vor.u32 1.1754944e-38, %v1601_v15  ;;  %v658_v41 = vmul.f32 %v6367_v4, %v12745_v18  ;;  %v659_v56 = vmul.f32 %v6367_v4, %v12746_v45 }
  0xb1   : > { %v714_v51 = vmul.f32 %v6379_v8, %v7116_v58  ;;  %vm7388_vm5 = vcmp.eq.f32.partialorder %v1584_v36, 8.507059e+37  ;;  %v1334_v61 = vadd.f32 %v1306_v50, %v1277_v59  ;;  %v1335_v62 = vadd.f32 %v1307_v60, %v1278_v52 }
  0xb2   : > { %v715_v38 = vmul.f32 %v6379_v8, %v7126_v0  ;;  %v771_v47 = vmul.f32 %v6381_v9, %v7372_v20  ;;  %vm7396_vm6 = vcmp.eq.f32.partialorder %v1599_v29, 8.507059e+37  ;;  %v772_v27 = vmul.f32 %v6381_v9, %v7380_v28 }
  0xb3   : > { %v5760_v3 = vpop.eup %5759  ;;  %v742_v63 = vadd.f32 %v714_v51, %v658_v41  ;;  %v823_v36 = vrot.slane %v7372_v20, 7  ;;  %v837_v57 = vrot.slane %v7380_v28, 7  ;;  %v7405_v52 = vadd.f32 %v7287_v53, %v1334_v61 }
  0xb4   : > { %v5762_v15 = vpop.eup %5761  ;;  %v1576_v59 = vmul.f32 %v5760_v3, %v1463_v44  ;;  %vm1581_vm7 = vweird.f32 %v5760_v3  ;;  %v7408_v50 = vadd.f32 %v7287_v53, %v1335_v62  ;;  %v743_v60 = vadd.f32 %v715_v38, %v659_v56 }
  0xb5   : > { %v1591_v29 = vmul.f32 %v5762_v15, %v7353_v21  ;;  %vm1596_vm8 = vweird.f32 %v5762_v15  ;;  %v798_v18 = vadd.f32 %v771_v47, %v742_v63  ;;  %v5526_v45 = vmul.f32 -1.442695, %v7405_v52  ;;  %vm7429_vm9 = vmor %vm1580_vm14, %vm1581_vm7 }
  0xb6   : > { %v1577_v41 = vsub.f32 1.0, %v1576_v59  ;;  %v5527_v51 = vmul.f32 -1.442695, %v7408_v50  ;;  %v7415_v0 = vsel %vm12593_vm2, %v823_v36, %v837_v57  ;;  %v799_v61 = vadd.f32 %v772_v27, %v743_v60  ;;  %vm7438_vm10 = vmor %vm1595_vm15, %vm1596_vm8 }
  0xb7   : > { %v1592_v58 = vsub.f32 1.0, %v1591_v29  ;;  %v866_v62 = vsel %vm12593_vm2, %v837_v57, %v823_v36  ;;  %v918_v46 = vmul.f32 %v6372_v6, %v6961_v14  ;;  %5763 = vpow2.f32 %v5526_v45 }
  0xb8   : > { %v1578_v34 = vmul.f32 %v5760_v3, %v1577_v41  ;;  %v7423_v56 = vsel %vm12592_vm1, %v866_v62, 0.0  ;;  %v919_v38 = vmul.f32 %v6372_v6, %v6939_v49  ;;  %5765 = vpow2.f32 %v5527_v51 }
  0xb9   : > { %v1593_v63 = vmul.f32 %v5762_v15, %v1592_v58  ;;  %v946_v27 = vadd.f32 %v918_v46, %v798_v18  ;;  %v975_v14 = vmul.f32 %v6386_v11, %v7167_v24  ;;  %v976_v44 = vmul.f32 %v6386_v11, %v7159_v37 }
  0xba   : > { %v1579_v36 = vadd.f32 %v5760_v3, %v1578_v34  ;;  %v947_v49 = vadd.f32 %v919_v38, %v799_v61  ;;  %v1032_v58 = vmul.f32 %v6388_v12, %v7423_v56  ;;  %v1033_v29 = vmul.f32 %v6388_v12, %v7415_v0 }
  0xbb   : > { %v1594_v59 = vadd.f32 %v5762_v15, %v1593_v63  ;;  %v1003_v46 = vadd.f32 %v975_v14, %v946_v27  ;;  %v1085_v34 = vrot.slane %v7372_v20, 1  ;;  %v1099_v18 = vrot.slane %v7380_v28, 1 }
  0xbc   : > { %v1583_v21 = vsel %vm7429_vm9, %v5760_v3, %v1579_v36  ;;  %v1004_v60 = vadd.f32 %v976_v44, %v947_v49  ;;  %v1180_v41 = vmul.f32 %v6390_v13, %v6989_v25  ;;  %v1181_v62 = vmul.f32 %v6390_v13, %v6999_v22 }
  0xbd   : > { %v1588_v45 = vsel %vm7388_vm5, %v1587_v39, %v1583_v21  ;;  %v1598_v51 = vsel %vm7438_vm10, %v5762_v15, %v1594_v59  ;;  %v1060_v61 = vadd.f32 %v1032_v58, %v1003_v46  ;;  %v5764_v38 = vpop.eup %5763  ;;  %v1128_v39 = vsel %vm12563_vm3, %v1099_v18, %v1085_v34  ;;  %v7485_v46 = vld [vmem:[%s7225_s24 + $0x10] sm:$0xff] }
  0xbe   : > { %v1603_v3 = vsel %vm7396_vm6, %v1602_v31, %v1598_v51  ;;  %v1911_v47 = vmul.f32 %v1588_v45, %v7290_v23  ;;  %v1061_v63 = vadd.f32 %v1033_v29, %v1004_v60  ;;  %v5766_v27 = vpop.eup %5765  ;;  %v1477_v14 = vadd.f32 1.0, %v5764_v38  ;;  %v7493_v60 = vld [vmem:[%s7225_s24 + $0x18] sm:$0xff] }
  0xbf   : > { %v1912_v25 = vmul.f32 %v1603_v3, %v7293_v2  ;;  %v1208_v43 = vadd.f32 %v1180_v41, %v1060_v61  ;;  %v7466_v15 = vadd.f32 1.0, %v5766_v27  ;;  %v7470_v22 = vsel %vm12563_vm3, %v1085_v34, %v1099_v18 }
  0xc0   : > { %v1237_v31 = vmul.f32 %v6421_v19, %v7231_v35  ;;  %5767 = vrcp.f32 %v1477_v14  ;;  %v7476_v2 = vsel %vm12562_vm4, %v1128_v39, 0.0  ;;  %v1209_v54 = vadd.f32 %v1181_v62, %v1061_v63 }
  0xc1   : > { %v1938_v23 = vpack.c.bf16 %v1912_v25, %v1911_v47  ;;  %vm1790_vm11 = vweird.f32 %v1477_v14  ;;  %v1794_v36 = vand.u32 2147483647, %v1477_v14  ;;  %v1796_v57 = vand.u32 2147483648, %v1477_v14 }
  0xc2   : > { %5769 = vrcp.f32 %v7466_v15  ;;  %v1809_v49 = vand.u32 2147483647, %v7466_v15  ;;  %v1811_v44 = vand.u32 2147483648, %v7466_v15  ;;  %v1238_v58 = vmul.f32 %v6421_v19, %v7235_v33 }
  0xc3   : > { %5537 = vmatmul.msk.bf16.gmra.mxu0 %vm12540_vm13, %v1938_v23  ;;  %v1265_v59 = vadd.f32 %v1237_v31, %v1208_v43  ;;  %v1797_v29 = vor.u32 1.1754944e-38, %v1796_v57  ;;  %vm1805_vm12 = vweird.f32 %v7466_v15  ;;  %v1294_v34 = vmul.f32 %v7255_v16, %v7470_v22 }
  0xc4   : > { %v1295_v21 = vmul.f32 %v7255_v16, %v7476_v2  ;;  %v1812_v18 = vor.u32 1.1754944e-38, %v1811_v44  ;;  %v1266_v41 = vadd.f32 %v1238_v58, %v1209_v54  ;;  %v672_v45 = vmul.f32 %v6367_v4, %v7013_v55 }
  0xc5   : > { %v673_v51 = vmul.f32 %v6367_v4, %v7016_v17  ;;  %vm7499_vm14 = vcmp.eq.f32.partialorder %v1794_v36, 8.507059e+37  ;;  %v1322_v62 = vadd.f32 %v1294_v34, %v1265_v59  ;;  %v728_v38 = vmul.f32 %v6379_v8, %v7245_v48 }
  0xc6   : > { %v729_v3 = vmul.f32 %v6379_v8, %v7248_v1  ;;  %v785_v47 = vmul.f32 %v6381_v9, %v7485_v46  ;;  %v5768_v63 = vpop.eup %5767  ;;  %vm7509_vm15 = vcmp.eq.f32.partialorder %v1809_v49, 8.507059e+37  ;;  %v1323_v17 = vadd.f32 %v1295_v21, %v1266_v41 }
  0xc7   : > { %v786_v27 = vmul.f32 %v6381_v9, %v7493_v60  ;;  %v830_v25 = vrot.slane %v7485_v46, 7  ;;  %v844_v39 = vrot.slane %v7493_v60, 7  ;;  %v1786_v31 = vmul.f32 %v5768_v63, %v1477_v14 }
  0xc8   : > { %v5770_v43 = vpop.eup %5769  ;;  %vm1791_vm5 = vweird.f32 %v5768_v63  ;;  %v7518_v23 = vadd.f32 %v7287_v53, %v1322_v62  ;;  %v756_v54 = vadd.f32 %v728_v38, %v672_v45  ;;  %v7522_v57 = vadd.f32 %v7287_v53, %v1323_v17 }
  0xc9   : > { %v1801_v36 = vmul.f32 %v5770_v43, %v7466_v15  ;;  %vm1806_vm6 = vweird.f32 %v5770_v43  ;;  %v757_v49 = vadd.f32 %v729_v3, %v673_v51  ;;  %v1787_v44 = vsub.f32 1.0, %v1786_v31  ;;  %vm7540_vm7 = vmor %vm1790_vm11, %vm1791_vm5 }
  0xca   : > { %v5514_v58 = vmul.f32 -1.442695, %v7518_v23  ;;  %v812_v59 = vadd.f32 %v785_v47, %v756_v54  ;;  %v7527_v34 = vsel %vm12593_vm2, %v830_v25, %v844_v39  ;;  %v5515_v41 = vmul.f32 -1.442695, %v7522_v57  ;;  %vm7551_vm8 = vmor %vm1805_vm12, %vm1806_vm6 }
  0xcb   : > { %v1802_v21 = vsub.f32 1.0, %v1801_v36  ;;  %v813_v62 = vadd.f32 %v786_v27, %v757_v49  ;;  %v873_v45 = vsel %vm12593_vm2, %v844_v39, %v830_v25  ;;  %v1788_v38 = vmul.f32 %v5768_v63, %v1787_v44 }
  0xcc   : > { %5771 = vpow2.f32 %v5514_v58  ;;  %v7534_v51 = vsel %vm12592_vm1, %v873_v45, 0.0  ;;  %v932_v3 = vmul.f32 %v6372_v6, %v7055_v42  ;;  %v933_v27 = vmul.f32 %v6372_v6, %v7046_v40  ;;  %v12763_v42 = vld [vmem:[#allocation14_spill] sm:$0xff] }
  0xcd   : > { %v1803_v17 = vmul.f32 %v5770_v43, %v1802_v21  ;;  %5773 = vpow2.f32 %v5515_v41  ;;  %v989_v25 = vmul.f32 %v6386_v11, %v7310_v7  ;;  %v1789_v39 = vadd.f32 %v5768_v63, %v1788_v38 }
  0xce   : > { %v960_v14 = vadd.f32 %v932_v3, %v812_v59  ;;  %v990_v31 = vmul.f32 %v6386_v11, %v7300_v32  ;;  %v1046_v54 = vmul.f32 %v6388_v12, %v7534_v51  ;;  %v961_v40 = vadd.f32 %v933_v27, %v813_v62 }
  0xcf   : > { %v1804_v36 = vadd.f32 %v5770_v43, %v1803_v17  ;;  %v1047_v49 = vmul.f32 %v6388_v12, %v7527_v34  ;;  %v1092_v44 = vrot.slane %v7485_v46, 1  ;;  %v1793_v15 = vsel %vm7540_vm7, %v5768_v63, %v1789_v39 }
  0xd0   : > { %v1017_v58 = vadd.f32 %v989_v25, %v960_v14  ;;  %v1106_v21 = vrot.slane %v7493_v60, 1  ;;  %v1194_v59 = vmul.f32 %v6390_v13, %v7103_v26  ;;  %v1798_v41 = vsel %vm7499_vm14, %v1797_v29, %v1793_v15 }
  0xd1   : > { %v1808_v62 = vsel %vm7551_vm8, %v5770_v43, %v1804_v36  ;;  %v1018_v45 = vadd.f32 %v990_v31, %v961_v40  ;;  %v1925_v47 = vmul.f32 %v1798_v41, %v7405_v52  ;;  %v1195_v17 = vmul.f32 %v6390_v13, %v12741_v30  ;;  %v12764_v36 = vld [vmem:[#allocation17_spill] sm:$0xff] }
  0xd2   : > { %v5772_v38 = vpop.eup %5771  ;;  %v1813_v3 = vsel %vm7509_vm15, %v1812_v18, %v1808_v62  ;;  %v1074_v63 = vadd.f32 %v1046_v54, %v1017_v58  ;;  %v1135_v29 = vsel %vm12563_vm3, %v1106_v21, %v1092_v44  ;;  %v1251_v18 = vmul.f32 %v6421_v19, %v12763_v42  ;;  %v12765_v62 = vld [vmem:[#allocation4_spill] sm:$0xff] }
  0xd3   : > { %v5774_v27 = vpop.eup %5773  ;;  %v1926_v26 = vmul.f32 %v1813_v3, %v7408_v50  ;;  %v1465_v25 = vadd.f32 1.0, %v5772_v38  ;;  %v1075_v61 = vadd.f32 %v1047_v49, %v1018_v45  ;;  %v7585_v52 = vsel %vm12563_vm3, %v1092_v44, %v1106_v21 }
  0xd4   : > { %v7579_v43 = vadd.f32 1.0, %v5774_v27  ;;  %v1222_v39 = vadd.f32 %v1194_v59, %v1074_v63  ;;  %v7589_v30 = vsel %vm12562_vm4, %v1135_v29, 0.0  ;;  %v1252_v40 = vmul.f32 %v6421_v19, %v12764_v36  ;;  %v7615_v29 = vld [vmem:[%s6475_s26 + $0x30] sm:$0xff] }
  0xd5   : > { %v1945_v55 = vpack.c.bf16 %v1926_v26, %v1925_v47  ;;  %5775 = vrcp.f32 %v1465_v25  ;;  %vm1610_vm9 = vweird.f32 %v1465_v25  ;;  %v1614_v50 = vand.u32 2147483647, %v1465_v25  ;;  %v12768_v47 = vld [vmem:[#allocation11_spill] sm:$0xff]  ;;  %12769 = vst [vmem:[#allocation15_spill] sm:$0xff] %v7615_v29 }
  0xd6   : > { %v1616_v14 = vand.u32 2147483648, %v1465_v25  ;;  %5777 = vrcp.f32 %v7579_v43  ;;  %vm1625_vm10 = vweird.f32 %v7579_v43  ;;  %v1631_v31 = vand.u32 2147483648, %v7579_v43 }
  0xd7   : > { %5544 = vmatmul.msk.bf16.gmra.mxu2 %vm12540_vm13, %v1945_v55  ;;  %v1223_v54 = vadd.f32 %v1195_v17, %v1075_v61  ;;  %v1629_v44 = vand.u32 2147483647, %v7579_v43  ;;  %v1279_v15 = vadd.f32 %v1251_v18, %v1222_v39  ;;  %v1308_v58 = vmul.f32 %v7255_v16, %v7585_v52  ;;  %v7620_v18 = vld [vmem:[%s6475_s26 + $0x38] sm:$0xff] }
  0xd8   : > { %v1617_v49 = vor.u32 1.1754944e-38, %v1616_v14  ;;  %v1632_v21 = vor.u32 1.1754944e-38, %v1631_v31  ;;  %v1309_v41 = vmul.f32 %v7255_v16, %v7589_v30  ;;  %v660_v45 = vmul.f32 %v6367_v4, %v12765_v62  ;;  %12770 = vst [vmem:[#allocation16_spill] sm:$0xff] %v7620_v18 }
  0xd9   : > { %v1280_v59 = vadd.f32 %v1252_v40, %v1223_v54  ;;  %vm7604_vm11 = vcmp.eq.f32.partialorder %v1614_v50, 8.507059e+37  ;;  %v1336_v3 = vadd.f32 %v1308_v58, %v1279_v15  ;;  %v661_v63 = vmul.f32 %v6367_v4, %v12768_v47 }
  0xda   : > { %v716_v17 = vmul.f32 %v6379_v8, %v7372_v20  ;;  %v717_v27 = vmul.f32 %v6379_v8, %v7380_v28  ;;  %v773_v39 = vmul.f32 %v7615_v29, %v6381_v9  ;;  %v774_v55 = vmul.f32 %v7620_v18, %v6381_v9 }
  0xdb   : > { %v5776_v26 = vpop.eup %5775  ;;  %v1337_v61 = vadd.f32 %v1309_v41, %v1280_v59  ;;  %v920_v50 = vmul.f32 %v6372_v6, %v7167_v24  ;;  %v7627_v54 = vadd.f32 %v7287_v53, %v1336_v3  ;;  %v921_v24 = vmul.f32 %v6372_v6, %v7159_v37 }
  0xdc   : > { %v5778_v14 = vpop.eup %5777  ;;  %v1606_v31 = vmul.f32 %v5776_v26, %v1465_v25  ;;  %vm1611_vm12 = vweird.f32 %v5776_v26  ;;  %v744_v40 = vadd.f32 %v716_v17, %v660_v45  ;;  %v745_v59 = vadd.f32 %v717_v27, %v661_v63  ;;  %v12776_v25 = vld [vmem:[#allocation5_spill] sm:$0xff] }
  0xdd   : > { %v1621_v15 = vmul.f32 %v5778_v14, %v7579_v43  ;;  %vm1626_vm14 = vweird.f32 %v5778_v14  ;;  %v7631_v58 = vadd.f32 %v7287_v53, %v1337_v61  ;;  %v5528_v62 = vmul.f32 -1.442695, %v7627_v54  ;;  %vm7643_vm15 = vmor %vm1610_vm9, %vm1611_vm12 }
  0xde   : > { %v1607_v41 = vsub.f32 1.0, %v1606_v31  ;;  %v800_v47 = vadd.f32 %v773_v39, %v744_v40  ;;  %v801_v3 = vadd.f32 %v774_v55, %v745_v59  ;;  %v977_v45 = vmul.f32 %v6386_v11, %v7423_v56  ;;  %v12773_v39 = vld [vmem:[#allocation6_spill] sm:$0xff]  ;;  %vm7652_vm5 = vmor %vm1625_vm10, %vm1626_vm14 }
  0xdf   : > { %v1622_v18 = vsub.f32 1.0, %v1621_v15  ;;  %v5529_v29 = vmul.f32 -1.442695, %v7631_v58  ;;  %5779 = vpow2.f32 %v5528_v62  ;;  %v978_v63 = vmul.f32 %v6386_v11, %v7415_v0 }
  0xe0   : > { %v1608_v17 = vmul.f32 %v5776_v26, %v1607_v41  ;;  %v948_v28 = vadd.f32 %v920_v50, %v800_v47  ;;  %v949_v61 = vadd.f32 %v921_v24, %v801_v3  ;;  %v1034_v55 = vmul.f32 %v6388_v12, %v12773_v39 }
  0xe1   : > { %v1623_v37 = vmul.f32 %v5778_v14, %v1622_v18  ;;  %5781 = vpow2.f32 %v5529_v29  ;;  %v1035_v15 = vmul.f32 %v6388_v12, %v12776_v25  ;;  %v1182_v18 = vmul.f32 %v6390_v13, %v7231_v35 }
  0xe2   : > { %v1609_v31 = vadd.f32 %v5776_v26, %v1608_v17  ;;  %v1005_v40 = vadd.f32 %v977_v45, %v948_v28  ;;  %vm1630_vm6 = vcmp.eq.f32.partialorder %v1629_v44, 8.507059e+37  ;;  %v1006_v59 = vadd.f32 %v978_v63, %v949_v61  ;;  %v12777_v61 = vld [vmem:[#allocation9_spill] sm:$0xff] }
  0xe3   : > { %v1624_v29 = vadd.f32 %v5778_v14, %v1623_v37  ;;  %v1183_v41 = vmul.f32 %v6390_v13, %v7235_v33  ;;  %v1239_v47 = vmul.f32 %v6421_v19, %v7470_v22  ;;  %v1240_v33 = vmul.f32 %v6421_v19, %v7476_v2 }
  0xe4   : > { %v1613_v43 = vsel %vm7643_vm15, %v5776_v26, %v1609_v31  ;;  %v1062_v62 = vadd.f32 %v1034_v55, %v1005_v40  ;;  %v1063_v35 = vadd.f32 %v1035_v15, %v1006_v59  ;;  %v12778_v55 = vld [vmem:[#allocation12_spill] sm:$0xff]  ;;  %v730_v50 = vmul.f32 %v6379_v8, %v7485_v46 }
  0xe5   : > { %v1618_v28 = vsel %vm7604_vm11, %v1617_v49, %v1613_v43  ;;  %v1628_v24 = vsel %vm7652_vm5, %v5778_v14, %v1624_v29  ;;  %v5780_v3 = vpop.eup %5779  ;;  %v1296_v49 = vmul.f32 %v7255_v16, %v12777_v61  ;;  %v7693_v43 = vld [vmem:[%s7225_s24 + $0x20] sm:$0xff] }
  0xe6   : > { %v1633_v44 = vsel %vm1630_vm6, %v1632_v21, %v1628_v24  ;;  %v1913_v45 = vmul.f32 %v1618_v28, %v7518_v23  ;;  %v1210_v17 = vadd.f32 %v1182_v18, %v1062_v62  ;;  %v1479_v27 = vadd.f32 1.0, %v5780_v3 }
  0xe7   : > { %v5782_v26 = vpop.eup %5781  ;;  %v1914_v63 = vmul.f32 %v1633_v44, %v7522_v57  ;;  %v1211_v37 = vadd.f32 %v1183_v41, %v1063_v35  ;;  %v1297_v21 = vmul.f32 %v7255_v16, %v12778_v55  ;;  %v674_v23 = vmul.f32 %v6367_v4, %v7245_v48 }
  0xe8   : > { %v7676_v38 = vadd.f32 1.0, %v5782_v26  ;;  %v1267_v14 = vadd.f32 %v1239_v47, %v1210_v17  ;;  %5783 = vrcp.f32 %v1479_v27  ;;  %v675_v57 = vmul.f32 %v6367_v4, %v7248_v1  ;;  %v7696_v1 = vld [vmem:[%s7225_s24 + $0x28] sm:$0xff] }
  0xe9   : > { %v1939_v31 = vpack.c.bf16 %v1914_v63, %v1913_v45  ;;  %v1824_v40 = vand.u32 2147483647, %v1479_v27  ;;  %v1826_v15 = vand.u32 2147483648, %v1479_v27  ;;  %v731_v18 = vmul.f32 %v6379_v8, %v7493_v60 }
  0xea   : > { %5785 = vrcp.f32 %v7676_v38  ;;  %v1839_v29 = vand.u32 2147483647, %v7676_v38  ;;  %v1841_v48 = vand.u32 2147483648, %v7676_v38  ;;  %v1268_v59 = vadd.f32 %v1240_v33, %v1211_v37 }
  0xeb   : > { %5538 = vmatmul.msk.bf16.gmra.mxu0 %vm12540_vm13, %v1939_v31  ;;  %v1324_v41 = vadd.f32 %v1296_v49, %v1267_v14  ;;  %vm1820_vm7 = vweird.f32 %v1479_v27  ;;  %v1827_v62 = vor.u32 1.1754944e-38, %v1826_v15  ;;  %vm1835_vm8 = vweird.f32 %v7676_v38 }
  0xec   : > { %v1842_v47 = vor.u32 1.1754944e-38, %v1841_v48  ;;  %v1325_v28 = vadd.f32 %v1297_v21, %v1268_v59  ;;  %v758_v35 = vadd.f32 %v730_v50, %v674_v23  ;;  %vm7702_vm9 = vcmp.eq.f32.partialorder %v1824_v40, 8.507059e+37 }
  0xed   : > { %v7700_v24 = vadd.f32 %v7287_v53, %v1324_v41  ;;  %v759_v44 = vadd.f32 %v731_v18, %v675_v57  ;;  %v787_v45 = vmul.f32 %v6381_v9, %v7693_v43  ;;  %v788_v17 = vmul.f32 %v6381_v9, %v7696_v1 }
  0xee   : > { %v831_v33 = vrot.slane %v7693_v43, 7  ;;  %v5784_v26 = vpop.eup %5783  ;;  %vm7711_vm10 = vcmp.eq.f32.partialorder %v1839_v29, 8.507059e+37  ;;  %v7716_v37 = vadd.f32 %v7287_v53, %v1325_v28  ;;  %v845_v14 = vrot.slane %v7696_v1, 7 }
  0xef   : > { %v5516_v49 = vmul.f32 -1.442695, %v7700_v24  ;;  %v934_v21 = vmul.f32 %v6372_v6, %v7310_v7  ;;  %v1816_v31 = vmul.f32 %v5784_v26, %v1479_v27  ;;  %vm1821_vm11 = vweird.f32 %v5784_v26 }
  0xf0   : > { %v5786_v23 = vpop.eup %5785  ;;  %v814_v57 = vadd.f32 %v787_v45, %v758_v35  ;;  %v815_v50 = vadd.f32 %v788_v17, %v759_v44  ;;  %v5517_v15 = vmul.f32 -1.442695, %v7716_v37  ;;  %v7726_v29 = vsel %vm12593_vm2, %v831_v33, %v845_v14  ;;  %vm7742_vm14 = vmor %vm1820_vm7, %vm1821_vm11 }
  0xf1   : > { %v1831_v40 = vmul.f32 %v5786_v23, %v7676_v38  ;;  %vm1836_vm12 = vweird.f32 %v5786_v23  ;;  %5787 = vpow2.f32 %v5516_v49  ;;  %v1817_v18 = vsub.f32 1.0, %v1816_v31 }
  0xf2   : > { %v874_v48 = vsel %vm12593_vm2, %v845_v14, %v831_v33  ;;  %v935_v7 = vmul.f32 %v6372_v6, %v7300_v32  ;;  %5789 = vpow2.f32 %v5517_v15  ;;  %v962_v28 = vadd.f32 %v934_v21, %v814_v57  ;;  %vm7754_vm15 = vmor %vm1835_vm8, %vm1836_vm12 }
  0xf3   : > { %v1832_v59 = vsub.f32 1.0, %v1831_v40  ;;  %v7734_v41 = vsel %vm12592_vm1, %v874_v48, 0.0  ;;  %v1818_v35 = vmul.f32 %v5784_v26, %v1817_v18  ;;  %v991_v45 = vmul.f32 %v6386_v11, %v7534_v51 }
  0xf4   : > { %v963_v44 = vadd.f32 %v935_v7, %v815_v50  ;;  %v992_v17 = vmul.f32 %v6386_v11, %v7527_v34  ;;  %v1048_v49 = vmul.f32 %v6388_v12, %v7734_v41  ;;  %v1049_v14 = vmul.f32 %v6388_v12, %v7726_v29 }
  0xf5   : > { %v1833_v32 = vmul.f32 %v5786_v23, %v1832_v59  ;;  %v1093_v21 = vrot.slane %v7693_v43, 1  ;;  %v1819_v31 = vadd.f32 %v5784_v26, %v1818_v35  ;;  %v1019_v27 = vadd.f32 %v991_v45, %v962_v28 }
  0xf6   : > { %v1020_v50 = vadd.f32 %v992_v17, %v963_v44  ;;  %v1107_v40 = vrot.slane %v7696_v1, 1  ;;  %v7761_v48 = vmul.f32 %v6379_v8, %v7693_v43  ;;  %v7765_v7 = vmul.f32 %v6379_v8, %v7696_v1 }
  0xf7   : > { %v5788_v15 = vpop.eup %5787  ;;  %v1834_v18 = vadd.f32 %v5786_v23, %v1833_v32  ;;  %v1196_v38 = vmul.f32 %v6390_v13, %v12763_v42  ;;  %v1823_v59 = vsel %vm7742_vm14, %v5784_v26, %v1819_v31  ;;  %v1076_v35 = vadd.f32 %v1048_v49, %v1019_v27 }
  0xf8   : > { %v7771_v28 = vadd.f32 1.0, %v5788_v15  ;;  %v1197_v44 = vmul.f32 %v6390_v13, %v12764_v36  ;;  %v5790_v45 = vpop.eup %5789  ;;  %v1828_v43 = vsel %vm7702_vm9, %v1827_v62, %v1823_v59  ;;  %v1077_v17 = vadd.f32 %v1049_v14, %v1020_v50 }
  0xf9   : > { %v1838_v1 = vsel %vm7754_vm15, %v5786_v23, %v1834_v18  ;;  %v1136_v42 = vsel %vm12563_vm3, %v1107_v40, %v1093_v21  ;;  %v1927_v33 = vmul.f32 %v1828_v43, %v7627_v54  ;;  %v1468_v32 = vadd.f32 1.0, %v5790_v45  ;;  %v12790_v45 = vld [vmem:[#allocation15_spill] sm:$0xff] }
  0xfa   : > { %v1843_v26 = vsel %vm7711_vm10, %v1842_v47, %v1838_v1  ;;  %5791 = vrcp.f32 %v7771_v28  ;;  %v1644_v3 = vand.u32 2147483647, %v7771_v28  ;;  %v1646_v62 = vand.u32 2147483648, %v7771_v28  ;;  %v12791_v1 = vld [vmem:[#allocation16_spill] sm:$0xff] }
  0xfb   : > { %v1928_v36 = vmul.f32 %v1843_v26, %v7631_v58  ;;  %v1253_v23 = vmul.f32 %v6421_v19, %v7585_v52  ;;  %vm1640_vm5 = vweird.f32 %v7771_v28  ;;  %5793 = vrcp.f32 %v1468_v32 }
  0xfc   : > { %v1661_v49 = vand.u32 2147483648, %v1468_v32  ;;  %v7793_v47 = vsel %vm12563_vm3, %v1093_v21, %v1107_v40  ;;  %vm1655_vm6 = vweird.f32 %v1468_v32  ;;  %v1659_v63 = vand.u32 2147483647, %v1468_v32 }
  0xfd   : > { %v1946_v54 = vpack.c.bf16 %v1928_v36, %v1927_v33  ;;  %v7797_v58 = vsel %vm12562_vm4, %v1136_v42, 0.0  ;;  %v1647_v14 = vor.u32 1.1754944e-38, %v1646_v62  ;;  %v1224_v57 = vadd.f32 %v1196_v38, %v1076_v35  ;;  %v12789_v35 = vld [vmem:[#allocation18_spill] sm:$0xff] }
  0xfe   : > { %v7799_v31 = vor.u32 1.1754944e-38, %v1661_v49  ;;  %v1225_v27 = vadd.f32 %v1197_v44, %v1077_v17  ;;  %vm7802_vm7 = vcmp.eq.f32.partialorder %v1644_v3, 8.507059e+37  ;;  %v1254_v21 = vmul.f32 %v6421_v19, %v7589_v30  ;;  %v6191_v33 = vld [vmem:[%s6475_s26 + $0x40] sm:$0xff] }
  0xff   : > { %5545 = vmatmul.msk.bf16.gmra.mxu2 %vm12540_vm13, %v1946_v54  ;;  %v1310_v40 = vmul.f32 %v7255_v16, %v7793_v47  ;;  %v1311_v15 = vmul.f32 %v7255_v16, %v7797_v58  ;;  %v662_v18 = vmul.f32 %v6367_v4, %v7372_v20  ;;  %v1281_v59 = vadd.f32 %v1253_v23, %v1224_v57  ;;  %v6192_v54 = vld [vmem:[%s6475_s26 + $0x48] sm:$0xff] }
 0x100   : > { %v5792_v38 = vpop.eup %5791  ;;  %v663_v44 = vmul.f32 %v6367_v4, %v12789_v35  ;;  %v718_v43 = vmul.f32 %v12790_v45, %v6379_v8  ;;  %v719_v17 = vmul.f32 %v12791_v1, %v6379_v8  ;;  %vm7821_vm9 = vcmp.eq.f32.partialorder %v1659_v63, 8.507059e+37 }
 0x101   : > { %v1636_v42 = vmul.f32 %v5792_v38, %v7771_v28  ;;  %vm1641_vm8 = vweird.f32 %v5792_v38  ;;  %v1282_v20 = vadd.f32 %v1254_v21, %v1225_v27  ;;  %v775_v36 = vmul.f32 %v6191_v33, %v6381_v9  ;;  %v5794_v3 = vpop.eup %5793 }
 0x102   : > { %v1338_v62 = vadd.f32 %v1310_v40, %v1281_v59  ;;  %v746_v23 = vadd.f32 %v718_v43, %v662_v18  ;;  %v747_v49 = vadd.f32 %v719_v17, %v663_v44  ;;  %v776_v57 = vmul.f32 %v6192_v54, %v6381_v9  ;;  %vm7842_vm11 = vmor %vm1640_vm5, %vm1641_vm8 }
 0x103   : > { %v1637_v35 = vsub.f32 1.0, %v1636_v42  ;;  %v1651_v8 = vmul.f32 %v5794_v3, %v1468_v32  ;;  %vm1656_vm10 = vweird.f32 %v5794_v3  ;;  %v1339_v45 = vadd.f32 %v1311_v15, %v1282_v20 }
 0x104   : > { %v7830_v63 = vadd.f32 %v7287_v53, %v1338_v62  ;;  %v802_v1 = vadd.f32 %v775_v36, %v746_v23  ;;  %v803_v10 = vadd.f32 %v776_v57, %v747_v49  ;;  %v922_v27 = vmul.f32 %v6372_v6, %v7423_v56  ;;  %vm7854_vm12 = vmor %vm1655_vm6, %vm1656_vm10  ;;  %v12798_v62 = vld [vmem:[#allocation8_spill] sm:$0xff] }
 0x105   : > { %v1638_v21 = vmul.f32 %v5792_v38, %v1637_v35  ;;  %v1652_v33 = vsub.f32 1.0, %v1651_v8  ;;  %v7835_v40 = vadd.f32 %v7287_v53, %v1339_v45  ;;  %v923_v18 = vmul.f32 %v6372_v6, %v7415_v0 }
 0x106   : > { %v5530_v59 = vmul.f32 -1.442695, %v7830_v63  ;;  %v950_v44 = vadd.f32 %v922_v27, %v802_v1  ;;  %v979_v56 = vmul.f32 %v6386_v11, %v12773_v39  ;;  %v980_v43 = vmul.f32 %v6386_v11, %v12776_v25  ;;  %v12799_v39 = vld [vmem:[#allocation7_spill] sm:$0xff] }
 0x107   : > { %v1639_v17 = vadd.f32 %v5792_v38, %v1638_v21  ;;  %v1653_v42 = vmul.f32 %v5794_v3, %v1652_v33  ;;  %v5531_v0 = vmul.f32 -1.442695, %v7835_v40  ;;  %v951_v20 = vadd.f32 %v923_v18, %v803_v10  ;;  %v12800_v21 = vld [vmem:[#allocation10_spill] sm:$0xff] }
 0x108   : > { %5795 = vpow2.f32 %v5530_v59  ;;  %v1007_v36 = vadd.f32 %v979_v56, %v950_v44  ;;  %v1036_v23 = vmul.f32 %v6388_v12, %v12798_v62  ;;  %v1037_v49 = vmul.f32 %v6388_v12, %v12799_v39 }
 0x109   : > { %v1643_v25 = vsel %vm7842_vm11, %v5792_v38, %v1639_v17  ;;  %v1654_v54 = vadd.f32 %v5794_v3, %v1653_v42  ;;  %5797 = vpow2.f32 %v5531_v0  ;;  %v1008_v10 = vadd.f32 %v980_v43, %v951_v20 }
 0x10a   : > { %v1648_v32 = vsel %vm7802_vm7, %v1647_v14, %v1643_v25  ;;  %v1064_v57 = vadd.f32 %v1036_v23, %v1007_v36  ;;  %v1184_v35 = vmul.f32 %v6390_v13, %v7470_v22  ;;  %v1185_v8 = vmul.f32 %v6390_v13, %v7476_v2 }
 0x10b   : > { %v1658_v45 = vsel %vm7854_vm12, %v5794_v3, %v1654_v54  ;;  %v1915_v1 = vmul.f32 %v1648_v32, %v7700_v24  ;;  %v1065_v27 = vadd.f32 %v1037_v49, %v1008_v10  ;;  %v1241_v38 = vmul.f32 %v6421_v19, %v12777_v61  ;;  %v12801_v61 = vld [vmem:[#allocation13_spill] sm:$0xff] }
 0x10c   : > { %v1663_v14 = vsel %vm7821_vm9, %v7799_v31, %v1658_v45  ;;  %v1212_v50 = vadd.f32 %v1184_v35, %v1064_v57  ;;  %v1242_v22 = vmul.f32 %v6421_v19, %v12778_v55  ;;  %v1298_v2 = vmul.f32 %v7255_v16, %v12800_v21 }
 0x10d   : > { %v1916_v33 = vmul.f32 %v1663_v14, %v7716_v37  ;;  %v1213_v3 = vadd.f32 %v1185_v8, %v1065_v27  ;;  %v676_v24 = vmul.f32 %v6367_v4, %v7485_v46  ;;  %v1299_v59 = vmul.f32 %v7255_v16, %v12801_v61 }
 0x10e   : > { %v5796_v18 = vpop.eup %5795  ;;  %v1269_v15 = vadd.f32 %v1241_v38, %v1212_v50  ;;  %v677_v31 = vmul.f32 %v6367_v4, %v7493_v60  ;;  %v789_v43 = vmul.f32 0.0, %v6381_v9  ;;  %v936_v16 = vmul.f32 %v6372_v6, %v7534_v51 }
 0x10f   : > { %v5798_v26 = vpop.eup %5797  ;;  %v1940_v44 = vpack.c.bf16 %v1916_v33, %v1915_v1  ;;  %v1481_v55 = vadd.f32 1.0, %v5796_v18  ;;  %v1270_v56 = vadd.f32 %v1242_v22, %v1213_v3  ;;  %v760_v42 = vadd.f32 %v7761_v48, %v676_v24 }
 0x110   : > { %v1482_v17 = vadd.f32 1.0, %v5798_v26  ;;  %v1326_v37 = vadd.f32 %v1298_v2, %v1269_v15  ;;  %v761_v46 = vadd.f32 %v7765_v7, %v677_v31  ;;  %v937_v4 = vmul.f32 %v6372_v6, %v7527_v34 }
 0x111   : > { %5539 = vmatmul.msk.bf16.gmra.mxu0 %vm12540_vm13, %v1940_v44  ;;  %5799 = vrcp.f32 %v1481_v55  ;;  %v1327_v60 = vadd.f32 %v1299_v59, %v1270_v56  ;;  %vm1850_vm14 = vweird.f32 %v1481_v55  ;;  %v816_v9 = vadd.f32 %v789_v43, %v760_v42 }
 0x112   : > { %5801 = vrcp.f32 %v1482_v17  ;;  %v7898_v0 = vadd.f32 %v7287_v53, %v1326_v37  ;;  %v817_v20 = vadd.f32 %v789_v43, %v761_v46  ;;  %v993_v28 = vmul.f32 %v6386_v11, %v7734_v41  ;;  %v6194_v46 = vld [vmem:[%s12491_s4] ss:$0 sm:$0xff] }
 0x113   : > { %v7901_v48 = vadd.f32 %v7287_v53, %v1327_v60  ;;  %v994_v51 = vmul.f32 %v6386_v11, %v7726_v29  ;;  %v1854_v36 = vand.u32 2147483647, %v1481_v55  ;;  %v964_v6 = vadd.f32 %v936_v16, %v816_v9 }
 0x114   : > { %v5518_v7 = vmul.f32 -1.442695, %v7898_v0  ;;  %v965_v34 = vadd.f32 %v937_v4, %v817_v20  ;;  %v1050_v62 = vmul.f32 0.0, %v6388_v12  ;;  %v1856_v39 = vand.u32 2147483648, %v1481_v55 }
 0x115   : > { %v5519_v49 = vmul.f32 -1.442695, %v7901_v48  ;;  %v1198_v53 = vmul.f32 %v6390_v13, %v7585_v52  ;;  %v1021_v10 = vadd.f32 %v993_v28, %v964_v6  ;;  %v1199_v11 = vmul.f32 %v6390_v13, %v7589_v30  ;;  %v7950_v6 = vld [vmem:[%s12493_s6] ss:$0 sm:$0xff] }
 0x116   : > { %5803 = vpow2.f32 %v5518_v7  ;;  %v1022_v41 = vadd.f32 %v994_v51, %v965_v34  ;;  %vm1865_vm15 = vweird.f32 %v1482_v17  ;;  %v1871_v32 = vand.u32 2147483648, %v1482_v17 }
 0x117   : > { %v5800_v23 = vpop.eup %5799  ;;  %5805 = vpow2.f32 %v5519_v49  ;;  %v1078_v57 = vadd.f32 %v1050_v62, %v1021_v10  ;;  %v1869_v45 = vand.u32 2147483647, %v1482_v17  ;;  %v1255_v52 = vmul.f32 %v6421_v19, %v7793_v47 }
 0x118   : > { %v5802_v25 = vpop.eup %5801  ;;  %v1846_v54 = vmul.f32 %v5800_v23, %v1481_v55  ;;  %vm1851_vm5 = vweird.f32 %v5800_v23  ;;  %v1079_v35 = vadd.f32 %v1050_v62, %v1022_v41  ;;  %v1256_v13 = vmul.f32 %v6421_v19, %v7797_v58  ;;  %v6193_v58 = vld [vmem:[%s12490_s3 + $0x8] ss:$0 sm:$0xff] }
 0x119   : > { %v1861_v29 = vmul.f32 %v5802_v25, %v1482_v17  ;;  %vm1866_vm6 = vweird.f32 %v5802_v25  ;;  %v1226_v27 = vadd.f32 %v1198_v53, %v1078_v57  ;;  %vm7919_vm7 = vmor %vm1850_vm14, %vm1851_vm5  ;;  %v1857_v50 = vor.u32 1.1754944e-38, %v1856_v39 }
 0x11a   : > { %v1847_v12 = vsub.f32 1.0, %v1846_v54  ;;  %v1227_v38 = vadd.f32 %v1199_v11, %v1079_v35  ;;  %vm1855_vm8 = vcmp.eq.f32.partialorder %v1854_v36, 8.507059e+37  ;;  %vm7924_vm9 = vmor %vm1865_vm15, %vm1866_vm6  ;;  %v1872_v47 = vor.u32 1.1754944e-38, %v1871_v32  ;;  %v2005_v36 = vpop.f32.mrf.mxu0  ;;  %v2040_v11 = vpop.f32.mrf.mxu2 }
 0x11b   : > { %v1862_v8 = vsub.f32 1.0, %v1861_v29  ;;  %vm1870_vm10 = vcmp.eq.f32.partialorder %v1869_v45, 8.507059e+37  ;;  %v1283_v19 = vadd.f32 %v1255_v52, %v1226_v27  ;;  %v1312_v18 = vmul.f32 0.0, %v6193_v58 }
 0x11c   : > { %v1848_v1 = vmul.f32 %v5800_v23, %v1847_v12  ;;  %v5804_v30 = vpop.eup %5803  ;;  %v1284_v59 = vadd.f32 %v1256_v13, %v1227_v38  ;;  %v7953_v49 = vadd.f32 %v7950_v6, %v2005_v36  ;;  %v7959_v12 = vadd.f32 %v7950_v6, %v2040_v11 }
 0x11d   : > { %v1863_v22 = vmul.f32 %v5802_v25, %v1862_v8  ;;  %v1469_v33 = vadd.f32 1.0, %v5804_v30  ;;  %v5806_v3 = vpop.eup %5805  ;;  %v1340_v43 = vadd.f32 %v1312_v18, %v1283_v19 }
 0x11e   : > { %v1849_v21 = vadd.f32 %v5800_v23, %v1848_v1  ;;  %v1470_v61 = vadd.f32 1.0, %v5806_v3  ;;  %v1341_v17 = vadd.f32 %v1312_v18, %v1284_v59  ;;  %v5548_v41 = vmul.f32 -1.442695, %v7953_v49 }
 0x11f   : > { %v1864_v24 = vadd.f32 %v5802_v25, %v1863_v22  ;;  %5807 = vrcp.f32 %v1469_v33  ;;  %v7940_v16 = vadd.f32 %v6194_v46, %v1340_v43  ;;  %v1674_v9 = vand.u32 2147483647, %v1469_v33 }
 0x120   : > { %v1853_v15 = vsel %vm7919_vm7, %v5800_v23, %v1849_v21  ;;  %5809 = vrcp.f32 %v1470_v61  ;;  %v7942_v4 = vadd.f32 %v6194_v46, %v1341_v17  ;;  %vm1670_vm11 = vweird.f32 %v1469_v33 }
 0x121   : > { %v1858_v31 = vsel %vm1855_vm8, %v1857_v50, %v1853_v15  ;;  %v1868_v26 = vsel %vm7924_vm9, %v5802_v25, %v1864_v24  ;;  %v1676_v20 = vand.u32 2147483648, %v1469_v33  ;;  %vm1685_vm14 = vweird.f32 %v1470_v61 }
 0x122   : > { %v1873_v44 = vsel %vm1870_vm10, %v1872_v47, %v1868_v26  ;;  %v1929_v55 = vmul.f32 %v1858_v31, %v7830_v63  ;;  %v5533_v7 = vmul.f32 -1.442695, %v7942_v4  ;;  %v1689_v34 = vand.u32 2147483647, %v1470_v61  ;;  %v2007_v14 = vpop.f32.mrf.mxu0  ;;  %v2042_v43 = vpop.f32.mrf.mxu2 }
 0x123   : > { %v1930_v56 = vmul.f32 %v1873_v44, %v7835_v40  ;;  %v5532_v40 = vmul.f32 -1.442695, %v7940_v16  ;;  %v1691_v62 = vand.u32 2147483648, %v1470_v61  ;;  %v1677_v53 = vor.u32 1.1754944e-38, %v1676_v20 }
 0x124   : > { %vm1675_vm6 = vcmp.eq.f32.partialorder %v1674_v9, 8.507059e+37  ;;  %vm1690_vm8 = vcmp.eq.f32.partialorder %v1689_v34, 8.507059e+37  ;;  %v5562_v30 = vmul.f32 -1.442695, %v7959_v12  ;;  %v7965_v22 = vadd.f32 %v7950_v6, %v2007_v14 }
 0x125   : > { %v1947_v37 = vpack.c.bf16 %v1930_v56, %v1929_v55  ;;  %v5808_v42 = vpop.eup %5807  ;;  %5811 = vpow2.f32 %v5532_v40  ;;  %v1692_v10 = vor.u32 1.1754944e-38, %v1691_v62  ;;  %v7983_v46 = vadd.f32 %v7950_v6, %v2042_v43 }
 0x126   : > { %v1666_v60 = vmul.f32 %v5808_v42, %v1469_v33  ;;  %v5810_v63 = vpop.eup %5809  ;;  %vm1671_vm12 = vweird.f32 %v5808_v42  ;;  %5813 = vpow2.f32 %v5533_v7  ;;  %v5549_v2 = vmul.f32 -1.442695, %v7965_v22 }
 0x127   : > { %5546 = vmatmul.msk.bf16.gmra.mxu2 %vm12540_vm13, %v1947_v37  ;;  %v1681_v51 = vmul.f32 %v5810_v63, %v1470_v61  ;;  %vm1686_vm15 = vweird.f32 %v5810_v63  ;;  %vm1672_vm5 = vmor %vm1670_vm11, %vm1671_vm12  ;;  %5815 = vpow2.f32 %v5548_v41  ;;  %v5563_v40 = vmul.f32 -1.442695, %v7983_v46 }
 0x128   : > { %v1667_v28 = vsub.f32 1.0, %v1666_v60  ;;  %vm1687_vm7 = vmor %vm1685_vm14, %vm1686_vm15 }
 0x129   : > { %v1682_v39 = vsub.f32 1.0, %v1681_v51 }
 0x12a   : > { %v1668_v23 = vmul.f32 %v5808_v42, %v1667_v28 }
 0x12b   : > { %v1683_v54 = vmul.f32 %v5810_v63, %v1682_v39  ;;  %v5812_v57 = vpop.eup %5811 }
 0x12c   : > { %v1669_v25 = vadd.f32 %v5808_v42, %v1668_v23  ;;  %v5814_v8 = vpop.eup %5813  ;;  %v1483_v1 = vadd.f32 1.0, %v5812_v57 }
 0x12d   : > { %v1684_v32 = vadd.f32 %v5810_v63, %v1683_v54  ;;  %v1484_v38 = vadd.f32 1.0, %v5814_v8  ;;  %v5816_v21 = vpop.eup %5815  ;;  %v2010_v54 = vpop.f32.mrf.mxu0 }
 0x12e   : > { %v1673_v29 = vsel %vm1672_vm5, %v5808_v42, %v1669_v25  ;;  %5817 = vrcp.f32 %v1483_v1  ;;  %v1884_v3 = vand.u32 2147483647, %v1483_v1  ;;  %v7969_v19 = vadd.f32 1.0, %v5816_v21 }
 0x12f   : > { %v1678_v35 = vsel %vm1675_vm6, %v1677_v53, %v1673_v29  ;;  %v1688_v45 = vsel %vm1687_vm7, %v5810_v63, %v1684_v32  ;;  %5819 = vrcp.f32 %v1484_v38  ;;  %vm1880_vm9 = vweird.f32 %v1483_v1 }
 0x130   : > { %v1917_v52 = vmul.f32 %v1678_v35, %v7898_v0  ;;  %v1693_v27 = vsel %vm1690_vm8, %v1692_v10, %v1688_v45  ;;  %5821 = vpow2.f32 %v5562_v30  ;;  %v1901_v18 = vand.u32 2147483648, %v1484_v38 }
 0x131   : > { %v1918_v13 = vmul.f32 %v1693_v27, %v7901_v48  ;;  %v1886_v48 = vand.u32 2147483648, %v1483_v1  ;;  %5823 = vpow2.f32 %v5549_v2  ;;  %vm1895_vm11 = vweird.f32 %v1484_v38 }
 0x132   : > { %v1899_v59 = vand.u32 2147483647, %v1484_v38  ;;  %vm7975_vm15 = vcmp.eq.f32.partialorder %v1884_v3, 8.507059e+37  ;;  %5825 = vrcp.f32 %v7969_v19  ;;  %v1902_v37 = vor.u32 1.1754944e-38, %v1901_v18 }
 0x133   : > { %v1941_v50 = vpack.c.bf16 %v1918_v13, %v1917_v52  ;;  %v1887_v55 = vor.u32 1.1754944e-38, %v1886_v48  ;;  %v8007_v11 = vadd.f32 %v7950_v6, %v2010_v54  ;;  %v2229_v52 = vand.u32 2147483648, %v7969_v19 }
 0x134   : > { %v5818_v0 = vpop.eup %5817  ;;  %vm1900_vm6 = vcmp.eq.f32.partialorder %v1899_v59, 8.507059e+37  ;;  %vm2223_vm8 = vweird.f32 %v7969_v19  ;;  %v2227_v27 = vand.u32 2147483647, %v7969_v19  ;;  %v8025_v30 = vstv %s5505_s25 }
 0x135   : > { %5540 = vmatmul.msk.bf16.gmra.mxu0 %vm12540_vm13, %v1941_v50  ;;  %v5820_v47 = vpop.eup %5819  ;;  %v1876_v33 = vmul.f32 %v5818_v0, %v1483_v1  ;;  %vm1881_vm10 = vweird.f32 %v5818_v0  ;;  %v5550_v57 = vmul.f32 -1.442695, %v8007_v11  ;;  %v570_v59 = vadd.s32 7, %v8025_v30 }
 0x136   : > { %v1891_v24 = vmul.f32 %v5820_v47, %v1484_v38  ;;  %v5822_v15 = vpop.eup %5821  ;;  %vm1896_vm12 = vweird.f32 %v5820_v47  ;;  %vm7971_vm14 = vmor %vm1880_vm9, %vm1881_vm10  ;;  %v8132_v13 = vadd.s32 1, %v8025_v30 }
 0x137   : > { %v1877_v58 = vsub.f32 1.0, %v1876_v33  ;;  %vm1897_vm5 = vmor %vm1895_vm11, %vm1896_vm12  ;;  %v7980_v42 = vadd.f32 1.0, %v5822_v15  ;;  %v5824_v60 = vpop.eup %5823  ;;  %vm2228_vm12 = vcmp.eq.f32.partialorder %v2227_v27, 8.507059e+37 }
 0x138   : > { %v1892_v61 = vsub.f32 1.0, %v1891_v24  ;;  %v7987_v20 = vadd.f32 1.0, %v5824_v60  ;;  %v5826_v34 = vpop.eup %5825 }
 0x139   : > { %v1878_v31 = vmul.f32 %v5818_v0, %v1877_v58  ;;  %5827 = vrcp.f32 %v7980_v42  ;;  %v2219_v39 = vmul.f32 %v5826_v34, %v7969_v19  ;;  %vm2224_vm7 = vweird.f32 %v5826_v34  ;;  %v2722_v58 = vld [vmem:[%s12494_s7] sm:$0xff] }
 0x13a   : > { %v1893_v56 = vmul.f32 %v5820_v47, %v1892_v61  ;;  %5829 = vrcp.f32 %v7987_v20  ;;  %vm8019_vm9 = vmor %vm2223_vm8, %vm2224_vm7  ;;  %vm2433_vm10 = vweird.f32 %v7980_v42  ;;  %v2439_v50 = vand.u32 2147483648, %v7980_v42 }
 0x13b   : > { %v1879_v17 = vadd.f32 %v5818_v0, %v1878_v31  ;;  %5831 = vpow2.f32 %v5563_v40  ;;  %v2220_v10 = vsub.f32 1.0, %v2219_v39  ;;  %v2244_v19 = vand.u32 2147483648, %v7987_v20 }
 0x13c   : > { %v1894_v9 = vadd.f32 %v5820_v47, %v1893_v56  ;;  %v2440_v18 = vor.u32 1.1754944e-38, %v2439_v50  ;;  %vm2238_vm7 = vweird.f32 %v7987_v20  ;;  %v2242_v15 = vand.u32 2147483647, %v7987_v20 }
 0x13d   : > { %v1883_v63 = vsel %vm7971_vm14, %v5818_v0, %v1879_v17  ;;  %v2221_v32 = vmul.f32 %v5826_v34, %v2220_v10  ;;  %v2230_v0 = vor.u32 1.1754944e-38, %v2229_v52  ;;  %v8075_v60 = vperm.slane %v2722_v58, 1 }
 0x13e   : > { %v1888_v7 = vsel %vm7975_vm15, %v1887_v55, %v1883_v63  ;;  %v1898_v28 = vsel %vm1897_vm5, %v5820_v47, %v1894_v9  ;;  %v2437_v47 = vand.u32 2147483647, %v7980_v42  ;;  %vm577_vm5 = vcmp.ge.s32.totalorder %v8025_v30, 0  ;;  %v2045_v55 = vpop.f32.mrf.mxu2 }
 0x13f   : > { %v1903_v51 = vsel %vm1900_vm6, %v1902_v37, %v1898_v28  ;;  %v1931_v36 = vmul.f32 %v1888_v7, %v7940_v16  ;;  %v7998_v53 = vpop.eup %5827  ;;  %v2222_v45 = vadd.f32 %v5826_v34, %v2221_v32  ;;  %vm591_vm6 = vcmp.lt.s32.totalorder %v8025_v30, 16  ;;  %v2012_v37 = vpop.f32.mrf.mxu0 }
 0x140   : > { %v1932_v62 = vmul.f32 %v1903_v51, %v7942_v4  ;;  %v8000_v25 = vpop.eup %5829  ;;  %v2429_v41 = vmul.f32 %v7998_v53, %v7980_v42  ;;  %vm2434_vm11 = vweird.f32 %v7998_v53  ;;  %vm2438_vm8 = vcmp.eq.f32.partialorder %v2437_v47, 8.507059e+37 }
 0x141   : > { %v5832_v16 = vpop.eup %5831  ;;  %v2234_v4 = vmul.f32 %v8000_v25, %v7987_v20  ;;  %v2226_v14 = vsel %vm8019_vm9, %v5826_v34, %v2222_v45  ;;  %vm8034_vm14 = vmor %vm2433_vm10, %vm2434_vm11  ;;  %vm2239_vm15 = vweird.f32 %v8000_v25  ;;  %v8065_v17 = vadd.f32 %v7950_v6, %v2045_v55 }
 0x142   : > { %v1948_v23 = vpack.c.bf16 %v1932_v62, %v1931_v36  ;;  %v8009_v29 = vadd.f32 1.0, %v5832_v16  ;;  %v2430_v35 = vsub.f32 1.0, %v2429_v41  ;;  %v2231_v24 = vsel %vm2228_vm12, %v2230_v0, %v2226_v14  ;;  %vm8054_vm9 = vmor %vm2238_vm7, %vm2239_vm15 }
 0x143   : > { %v2235_v8 = vsub.f32 1.0, %v2234_v4  ;;  %v2638_v56 = vmul.f32 %v2231_v24, %v7953_v49  ;;  %vm8071_vm10 = vmand %vm577_vm5, %vm591_vm6  ;;  %v8077_v9 = vperm.slane %v2722_v58, 4  ;;  %v2245_v49 = vor.u32 1.1754944e-38, %v2244_v19 }
 0x144   : > { %5547 = vmatmul.msk.bf16.gmra.mxu2 %vm12540_vm13, %v1948_v23  ;;  %5833 = vrcp.f32 %v8009_v29  ;;  %v2431_v1 = vmul.f32 %v7998_v53, %v2430_v35  ;;  %vm2243_vm11 = vcmp.eq.f32.partialorder %v2242_v15, 8.507059e+37  ;;  %v5564_v40 = vmul.f32 -1.442695, %v8065_v17 }
 0x145   : > { %5835 = vpow2.f32 %v5550_v57  ;;  %v2236_v38 = vmul.f32 %v8000_v25, %v2235_v8  ;;  %vm584_vm12 = vcmp.ge.s32.totalorder %v570_v59, 0  ;;  %v8082_v28 = vadd.f32 %v7950_v6, %v2012_v37 }
 0x146   : > { %v2432_v2 = vadd.f32 %v7998_v53, %v2431_v1  ;;  %v8086_v51 = vsel %vm8071_vm10, %v2638_v56, 0.0  ;;  %v8089_v36 = vmul.f32 0.0, %v8075_v60  ;;  %v8093_v23 = vperm.slane %v2722_v58, 3  ;;  %v2047_v19 = vpop.f32.mrf.mxu2 }
 0x147   : > { %v2237_v48 = vadd.f32 %v8000_v25, %v2236_v38  ;;  %v5551_v62 = vmul.f32 -1.442695, %v8082_v28  ;;  %v8095_v39 = vperm.slane %v2722_v58, 5  ;;  %v2781_v10 = vmul.f32 %v8077_v9, %v8086_v51 }
 0x148   : > { %v2436_v31 = vsel %vm8034_vm14, %v7998_v53, %v2432_v2  ;;  %vm598_vm14 = vcmp.lt.s32.totalorder %v570_v59, 16  ;;  %12818 = vst [vmem:[#allocation3_spill] sm:$0xff] %v8093_v23  ;;  %v12820_v53 = vmov 0  ;;  %v8109_v41 = vperm.slane %v2722_v58, 0 }
 0x149   : > { %v2241_v43 = vsel %vm8054_vm9, %v8000_v25, %v2237_v48  ;;  %v2441_v63 = vsel %vm2438_vm8, %v2440_v18, %v2436_v31  ;;  %12819 = vst [vmem:[#allocation19_spill] sm:$0xff] %v8095_v39  ;;  %vm8097_vm15 = vmand %vm584_vm12, %vm598_vm14  ;;  %v8111_v4 = vperm.slane %v2722_v58, 2  ;;  %vm2448_vm5 = vweird.f32 %v8009_v29 }
 0x14a   : > { %v8030_v21 = vpop.eup %5833  ;;  %v2246_v7 = vsel %vm2243_vm11, %v2245_v49, %v2241_v43  ;;  %v2652_v34 = vmul.f32 %v2441_v63, %v7959_v12  ;;  %v12821_v53 = vsel %vm8097_vm15, 4294967295, %v12820_v53  ;;  %v8107_v12 = vperm.slane %v2722_v58, 7 }
 0x14b   : > { %v5836_v33 = vpop.eup %5835  ;;  %v2444_v61 = vmul.f32 %v8030_v21, %v8009_v29  ;;  %12822 = vst [vmem:[#allocation20_spill] sm:$0xff] %v12821_v53  ;;  %v2639_v25 = vmul.f32 %v2246_v7, %v7965_v22  ;;  %vm2449_vm6 = vweird.f32 %v8030_v21  ;;  %v8115_v32 = vperm.slane %v2722_v58, 6  ;;  %v2015_v22 = vpop.f32.mrf.mxu0 }
 0x14c   : > { %v8058_v44 = vadd.f32 1.0, %v5836_v33  ;;  %12823 = vst [vmem:[#allocation14_spill] sm:$0xff] %v8111_v4  ;;  %v8119_v57 = vsel %vm8097_vm15, %v2652_v34, 0.0  ;;  %v2454_v35 = vand.u32 2147483648, %v8009_v29  ;;  %v8125_v45 = vadd.f32 %v7950_v6, %v2015_v22  ;;  %vm8147_vm7 = vmor %vm2448_vm5, %vm2449_vm6 }
 0x14d   : > { %v2445_v20 = vsub.f32 1.0, %v2444_v61  ;;  %12824 = vst [vmem:[#allocation17_spill] sm:$0xff] %v8115_v32  ;;  %v2695_v1 = vsel %vm8071_vm10, %v2639_v25, 0.0  ;;  %v2452_v38 = vand.u32 2147483647, %v8009_v29  ;;  %v8136_v14 = vmul.f32 %v8075_v60, %v8086_v51 }
 0x14e   : > { %5837 = vrcp.f32 %v8058_v44  ;;  %v8139_v50 = vadd.f32 %v2781_v10, %v8089_v36  ;;  %v2893_v0 = vrot.slane %v8086_v51, 7  ;;  %v3148_v2 = vrot.slane %v8086_v51, 1 }
 0x14f   : > { %5839 = vpow2.f32 %v5564_v40  ;;  %v2446_v54 = vmul.f32 %v8030_v21, %v2445_v20  ;;  %v8153_v33 = vmul.f32 %v8075_v60, %v8119_v57  ;;  %v8157_v3 = vmul.f32 %v8077_v9, %v8119_v57 }
 0x150   : > { %5841 = vpow2.f32 %v5551_v62  ;;  %v2907_v18 = vrot.slane %v2695_v1, 7  ;;  %v2455_v15 = vor.u32 1.1754944e-38, %v2454_v35  ;;  %v8162_v29 = vadd.f32 %v7950_v6, %v2047_v19 }
 0x151   : > { %v2447_v27 = vadd.f32 %v8030_v21, %v2446_v54  ;;  %12827 = vst [vmem:[#allocation4_spill] sm:$0xff] %v8157_v3  ;;  %v5552_v61 = vmul.f32 -1.442695, %v8125_v45  ;;  %vm2453_vm8 = vcmp.eq.f32.partialorder %v2452_v38, 8.507059e+37  ;;  %v2782_v26 = vmul.f32 %v8077_v9, %v2695_v1 }
 0x152   : > { %v5565_v56 = vmul.f32 -1.442695, %v8162_v29  ;;  %v8176_v43 = vmul.f32 %v8107_v12, %v8119_v57  ;;  %v2900_v37 = vrot.slane %v8119_v57, 7  ;;  %v3162_v42 = vrot.slane %v2695_v1, 1 }
 0x153   : > { %v2451_v59 = vsel %vm8147_vm7, %v8030_v21, %v2447_v27  ;;  %v2017_v49 = vpop.f32.mrf.mxu0  ;;  %v2921_v63 = vsel %vm12593_vm2, %v2893_v0, %v2907_v18  ;;  %v2935_v20 = vsel %vm12593_vm2, %v2907_v18, %v2893_v0  ;;  %vm578_vm9 = vcmp.ge.s32.totalorder %v8132_v13, 0 }
 0x154   : > { %v8103_v16 = vpop.eup %5837  ;;  %12828 = vst [vmem:[#allocation11_spill] sm:$0xff] %v8176_v43  ;;  %v2456_v40 = vsel %vm2453_vm8, %v2455_v15, %v2451_v59  ;;  %vm592_vm10 = vcmp.lt.s32.totalorder %v8132_v13, 16  ;;  %v8190_v51 = vadd.f32 %v7950_v6, %v2017_v49  ;;  %v8193_v34 = vmul.f32 %v8075_v60, %v2695_v1 }
 0x155   : > { %v2249_v8 = vmul.f32 %v8103_v16, %v8058_v44  ;;  %v5840_v52 = vpop.eup %5839  ;;  %vm2254_vm11 = vweird.f32 %v8103_v16  ;;  %v8196_v62 = vadd.f32 %v2782_v26, %v8089_v36  ;;  %v2259_v25 = vand.u32 2147483648, %v8058_v44  ;;  %vm8281_vm8 = vmand %vm578_vm9, %vm592_vm10 }
 0x156   : > { %v8159_v24 = vadd.f32 1.0, %v5840_v52  ;;  %v5842_v58 = vpop.eup %5841  ;;  %v8200_v54 = vmul.f32 0.0, %v8109_v41  ;;  %v2949_v22 = vsel %vm12592_vm1, %v2935_v20, 0.0  ;;  %v3190_v35 = vsel %vm12563_vm3, %v3162_v42, %v3148_v2 }
 0x157   : > { %v2250_v48 = vsub.f32 1.0, %v2249_v8  ;;  %v8171_v55 = vadd.f32 1.0, %v5842_v58  ;;  %vm2253_vm12 = vweird.f32 %v8058_v44  ;;  %v2257_v8 = vand.u32 2147483647, %v8058_v44 }
 0x158   : > { %5843 = vrcp.f32 %v8159_v24  ;;  %v8211_v36 = vmul.f32 %v8109_v41, %v2921_v63  ;;  %v8215_v1 = vsel %vm12563_vm3, %v3148_v2, %v3162_v42  ;;  %v2653_v27 = vmul.f32 %v2456_v40, %v7983_v46  ;;  %vm8220_vm14 = vmor %vm2253_vm12, %vm2254_vm11 }
 0x159   : > { %v2251_v31 = vmul.f32 %v8103_v16, %v2250_v48  ;;  %5845 = vpow2.f32 %v5552_v61  ;;  %12829 = vst [vmem:[#allocation6_spill] sm:$0xff] %v8215_v1  ;;  %v8227_v44 = vmul.f32 %v8093_v23, %v2921_v63  ;;  %v5553_v46 = vmul.f32 -1.442695, %v8190_v51  ;;  %v2050_v63 = vpop.f32.mrf.mxu2 }
 0x15a   : > { %5847 = vrcp.f32 %v8171_v55  ;;  %v8238_v19 = vmul.f32 %v8109_v41, %v2949_v22  ;;  %v8241_v58 = vmul.f32 %v8093_v23, %v2949_v22  ;;  %v8245_v15 = vsel %vm12562_vm4, %v3190_v35, 0.0 }
 0x15b   : > { %v2252_v7 = vadd.f32 %v8103_v16, %v2251_v31  ;;  %5849 = vpow2.f32 %v5565_v56  ;;  %12833 = vst [vmem:[#allocation5_spill] sm:$0xff] %v8245_v15  ;;  %v2260_v61 = vor.u32 1.1754944e-38, %v2259_v25  ;;  %vm2258_vm5 = vcmp.eq.f32.partialorder %v2257_v8, 8.507059e+37 }
 0x15c   : > { %v8254_v56 = vsel %vm8097_vm15, %v2653_v27, 0.0  ;;  %vm2463_vm6 = vweird.f32 %v8159_v24  ;;  %v2469_v25 = vand.u32 2147483648, %v8159_v24  ;;  %v8269_v22 = vmul.f32 %v8111_v4, %v8215_v1 }
 0x15d   : > { %v2256_v47 = vsel %vm8220_vm14, %v8103_v16, %v2252_v7  ;;  %v8248_v16 = vadd.s32 8, %v8025_v30  ;;  %v8261_v7 = vadd.f32 %v7950_v6, %v2050_v63  ;;  %v8273_v35 = vmul.f32 %v8111_v4, %v8245_v15 }
 0x15e   : > { %v8202_v10 = vpop.eup %5843  ;;  %v2261_v42 = vsel %vm2258_vm5, %v2260_v61, %v2256_v47  ;;  %12834 = vst [vmem:[#allocation9_spill] sm:$0xff] %v8269_v22  ;;  %vm2268_vm10 = vweird.f32 %v8171_v55  ;;  %v8320_v21 = vmul.f32 %v8107_v12, %v8254_v56  ;;  %v3169_v53 = vrot.slane %v8254_v56, 1 }
 0x15f   : > { %v5846_v52 = vpop.eup %5845  ;;  %v2459_v0 = vmul.f32 %v8202_v10, %v8159_v24  ;;  %vm2464_vm7 = vweird.f32 %v8202_v10  ;;  %12835 = vst [vmem:[#allocation12_spill] sm:$0xff] %v8273_v35  ;;  %v2640_v8 = vmul.f32 %v2261_v42, %v8007_v11  ;;  %vm585_vm11 = vcmp.ge.s32.totalorder %v8248_v16, 0 }
 0x160   : > { %v8232_v2 = vadd.f32 1.0, %v5846_v52  ;;  %v8235_v48 = vpop.eup %5847  ;;  %vm599_vm12 = vcmp.lt.s32.totalorder %v8248_v16, 16  ;;  %v2914_v11 = vrot.slane %v8254_v56, 7  ;;  %vm8290_vm14 = vmor %vm2463_vm6, %vm2464_vm7  ;;  %12842 = vst [vmem:[#allocation16_spill] sm:$0xff] %v8320_v21 }
 0x161   : > { %v5850_v59 = vpop.eup %5849  ;;  %v2460_v31 = vsub.f32 1.0, %v2459_v0  ;;  %v2264_v26 = vmul.f32 %v8235_v48, %v8171_v55  ;;  %v2467_v0 = vand.u32 2147483647, %v8159_v24  ;;  %vm2269_vm9 = vweird.f32 %v8235_v48 }
 0x162   : > { %v8256_v49 = vadd.f32 1.0, %v5850_v59  ;;  %5851 = vrcp.f32 %v8232_v2  ;;  %v8301_v59 = vmul.f32 %v8075_v60, %v8254_v56  ;;  %v8305_v24 = vmul.f32 %v8077_v9, %v8254_v56  ;;  %vm8327_vm6 = vmor %vm2268_vm10, %vm2269_vm9 }
 0x163   : > { %v2461_v20 = vmul.f32 %v8202_v10, %v2460_v31  ;;  %v2265_v40 = vsub.f32 1.0, %v2264_v26  ;;  %5853 = vpow2.f32 %v5553_v46  ;;  %v5566_v46 = vmul.f32 -1.442695, %v8261_v7 }
 0x164   : > { %5855 = vrcp.f32 %v8256_v49  ;;  %12840 = vst [vmem:[#allocation18_spill] sm:$0xff] %v8305_v24  ;;  %v2470_v31 = vor.u32 1.1754944e-38, %v2469_v25  ;;  %v2274_v26 = vand.u32 2147483648, %v8171_v55  ;;  %v8310_v63 = vsel %vm8281_vm8, %v2640_v8, 0.0 }
 0x165   : > { %v2266_v52 = vmul.f32 %v8235_v48, %v2265_v40  ;;  %v2462_v38 = vadd.f32 %v8202_v10, %v2461_v20  ;;  %12841 = vst [vmem:[#allocation15_spill] sm:$0xff] %v8310_v63  ;;  %v2272_v20 = vand.u32 2147483647, %v8171_v55  ;;  %vm2468_vm5 = vcmp.eq.f32.partialorder %v2467_v0, 8.507059e+37 }
 0x166   : > { %5857 = vpow2.f32 %v5566_v46  ;;  %v2942_v55 = vsel %vm12593_vm2, %v2914_v11, %v2900_v37  ;;  %v2838_v0 = vmul.f32 %v8107_v12, %v8310_v63  ;;  %v2275_v46 = vor.u32 1.1754944e-38, %v2274_v26 }
 0x167   : > { %v2267_v13 = vadd.f32 %v8235_v48, %v2266_v52  ;;  %v2466_v25 = vsel %vm8290_vm14, %v8202_v10, %v2462_v38  ;;  %v8345_v38 = vsel %vm12593_vm2, %v2900_v37, %v2914_v11  ;;  %vm2273_vm7 = vcmp.eq.f32.partialorder %v2272_v20, 8.507059e+37  ;;  %vm8391_vm14 = vmand %vm585_vm11, %vm599_vm12 }
 0x168   : > { %v8297_v61 = vpop.eup %5851  ;;  %v2471_v56 = vsel %vm2468_vm5, %v2470_v31, %v2466_v25  ;;  %v8360_v11 = vadd.s32 2, %v8025_v30  ;;  %v8364_v26 = vmul.f32 %v8115_v32, %v8345_v38  ;;  %v12848_v31 = vrot.slane %v8119_v57, 1 }
 0x169   : > { %v5854_v42 = vpop.eup %5853  ;;  %v2279_v40 = vmul.f32 %v8297_v61, %v8232_v2  ;;  %v2271_v47 = vsel %vm8327_vm6, %v8235_v48, %v2267_v13  ;;  %v8353_v48 = vsel %vm12592_vm1, %v2942_v55, 0.0  ;;  %v8357_v13 = vmul.f32 %v8093_v23, %v8345_v38 }
 0x16a   : > { %v8316_v52 = vpop.eup %5855  ;;  %v8349_v21 = vadd.f32 1.0, %v5854_v42  ;;  %12845 = vst [vmem:[#allocation8_spill] sm:$0xff] %v8353_v48  ;;  %v2276_v37 = vsel %vm2273_vm7, %v2275_v46, %v2271_v47  ;;  %v8370_v42 = vsel %vm12563_vm3, %v12848_v31, %v3169_v53  ;;  %v8376_v55 = vmul.f32 %v8093_v23, %v8353_v48 }
 0x16b   : > { %v2474_v10 = vmul.f32 %v8316_v52, %v8256_v49  ;;  %v2280_v8 = vsub.f32 1.0, %v2279_v40  ;;  %12846 = vst [vmem:[#allocation7_spill] sm:$0xff] %v8357_v13  ;;  %v2865_v47 = vadd.f32 %v2838_v0, %v8139_v50  ;;  %v12851_v46 = vmov %v12848_v31 }
 0x16c   : > { %12847 = vst [vmem:[#allocation10_spill] sm:$0xff] %v8364_v26  ;;  %v5858_v25 = vpop.eup %5857  ;;  %5859 = vrcp.f32 %v8349_v21  ;;  %v8385_v31 = vsel %vm12563_vm3, %v3169_v53, %v12851_v46  ;;  %v2641_v50 = vmul.f32 %v2276_v37, %v8082_v28  ;;  %vm2478_vm9 = vweird.f32 %v8256_v49 }
 0x16d   : > { %v2475_v24 = vsub.f32 1.0, %v2474_v10  ;;  %12849 = vst [vmem:[#allocation13_spill] sm:$0xff] %v8370_v42  ;;  %v2281_v40 = vmul.f32 %v8297_v61, %v2280_v8  ;;  %v2654_v10 = vmul.f32 %v2471_v56, %v8065_v17  ;;  %vm2479_vm10 = vweird.f32 %v8316_v52 }
 0x16e   : > { %12850 = vst [vmem:[#allocation21_spill] sm:$0xff] %v8376_v55  ;;  %v2783_v17 = vmul.f32 %v8077_v9, %v8310_v63  ;;  %v2484_v53 = vand.u32 2147483648, %v8256_v49  ;;  %vm579_vm5 = vcmp.ge.s32.totalorder %v8360_v11, 0  ;;  %vm2284_vm11 = vweird.f32 %v8297_v61  ;;  %vm8414_vm12 = vmor %vm2478_vm9, %vm2479_vm10 }
 0x16f   : > { %v2476_v20 = vmul.f32 %v8316_v52, %v2475_v24  ;;  %12852 = vst [vmem:[#allocation22_spill] sm:$0xff] %v8385_v31  ;;  %v12853_v24 = vmov 0  ;;  %v2282_v57 = vadd.f32 %v8297_v61, %v2281_v40  ;;  %v2482_v0 = vand.u32 2147483647, %v8256_v49 }
 0x170   : > { %v12854_v24 = vsel %vm8391_vm14, 4294967295, %v12853_v24  ;;  %v2289_v28 = vand.u32 2147483648, %v8232_v2  ;;  %v8407_v56 = vadd.f32 1.0, %v5858_v25  ;;  %v3006_v8 = vadd.f32 %v8200_v54, %v2865_v47  ;;  %v2052_v47 = vpop.f32.mrf.mxu2 }
 0x171   : > { %12855 = vst [vmem:[#allocation23_spill] sm:$0xff] %v12854_v24  ;;  %v2477_v16 = vadd.f32 %v8316_v52, %v2476_v20  ;;  %v8412_v37 = vsel %vm8391_vm14, %v2654_v10, 0.0  ;;  %vm2283_vm6 = vweird.f32 %v8232_v2  ;;  %v2287_v20 = vand.u32 2147483647, %v8232_v2 }
 0x172   : > { %12856 = vst [vmem:[#allocation24_spill] sm:$0xff] %v8412_v37  ;;  %v8422_v49 = vmul.f32 %v8075_v60, %v8310_v63  ;;  %v8426_v40 = vsel %vm8281_vm8, %v2641_v50, 0.0  ;;  %vm593_vm7 = vcmp.lt.s32.totalorder %v8360_v11, 16  ;;  %vm8429_vm13 = vmor %vm2283_vm6, %vm2284_vm11  ;;  %5861 = vrcp.f32 %v8407_v56  ;;  %v8434_v10 = vpop.eup %5859  ;;  %v2020_v50 = vpop.f32.mrf.mxu0 }
 0x173   : > { %12859 = vst [vmem:[#allocation25_spill] sm:$0xff] %v8426_v40  ;;  %v2894_v2 = vrot.slane %v8310_v63, 7  ;;  %v2485_v13 = vor.u32 1.1754944e-38, %v2484_v53  ;;  %v2286_v27 = vsel %vm8429_vm13, %v8297_v61, %v2282_v57  ;;  %v2797_v55 = vmul.f32 %v8077_v9, %v8412_v37  ;;  %vm8496_vm9 = vmand %vm579_vm5, %vm593_vm7 }
 0x174   : > { %v2481_v42 = vsel %vm8414_vm12, %v8316_v52, %v2477_v16  ;;  %vm2483_vm8 = vcmp.eq.f32.partialorder %v2482_v0, 8.507059e+37  ;;  %v2290_v31 = vor.u32 1.1754944e-38, %v2289_v28  ;;  %v8447_v43 = vadd.f32 %v2783_v17, %v8136_v14 }
 0x175   : > { %v8450_v26 = vadd.f32 %v8241_v58, %v3006_v8  ;;  %v2839_v53 = vmul.f32 %v8107_v12, %v8426_v40  ;;  %vm2288_vm13 = vcmp.eq.f32.partialorder %v2287_v20, 8.507059e+37  ;;  %v2908_v61 = vrot.slane %v8426_v40, 7 }
 0x176   : > { %v2291_v57 = vsel %vm2288_vm13, %v2290_v31, %v2286_v27  ;;  %v8456_v25 = vadd.s32 9, %v8025_v30  ;;  %v2294_v52 = vmul.f32 %v8434_v10, %v8349_v21  ;;  %v8462_v14 = vmul.f32 %v8075_v60, %v8412_v37 }
 0x177   : > { %12862 = vst [vmem:[#allocation26_spill] sm:$0xff] %v8450_v26  ;;  %v8466_v58 = vmul.f32 %v8107_v12, %v8412_v37  ;;  %v2486_v17 = vsel %vm2483_vm8, %v2485_v13, %v2481_v42  ;;  %v8469_v16 = vadd.f32 %v7950_v6, %v2052_v47  ;;  %v8472_v31 = vadd.f32 %v2797_v55, %v8153_v33 }
 0x178   : > { %v5862_v0 = vpop.eup %5861  ;;  %v8478_v46 = vmul.f32 %v8075_v60, %v8426_v40  ;;  %v2784_v20 = vmul.f32 %v8077_v9, %v8426_v40  ;;  %v2866_v13 = vadd.f32 %v2839_v53, %v8196_v62  ;;  %v2642_v42 = vmul.f32 %v2291_v57, %v8125_v45  ;;  %v2055_v11 = vpop.f32.mrf.mxu2 }
 0x179   : > { %12863 = vst [vmem:[#allocation27_spill] sm:$0xff] %v8466_v58  ;;  %v2489_v47 = vmul.f32 %v5862_v0, %v8407_v56  ;;  %v8487_v33 = vsel %vm12593_vm2, %v2894_v2, %v2908_v61  ;;  %v2936_v55 = vsel %vm12593_vm2, %v2908_v61, %v2894_v2  ;;  %v2655_v27 = vmul.f32 %v2486_v17, %v8162_v29 }
 0x17a   : > { %v12864_v8 = vmov 0  ;;  %v2295_v45 = vsub.f32 1.0, %v2294_v52  ;;  %vm2493_vm10 = vweird.f32 %v8407_v56  ;;  %vm2494_vm11 = vweird.f32 %v5862_v0 }
 0x17b   : > { %v12865_v8 = vsel %vm8496_vm9, 4294967295, %v12864_v8  ;;  %v2490_v62 = vsub.f32 1.0, %v2489_v47  ;;  %v2497_v53 = vand.u32 2147483647, %v8407_v56  ;;  %v2499_v57 = vand.u32 2147483648, %v8407_v56  ;;  %vm8520_vm7 = vmor %vm2493_vm10, %vm2494_vm11 }
 0x17c   : > { %12866 = vst [vmem:[#allocation28_spill] sm:$0xff] %v12865_v8  ;;  %v2296_v2 = vmul.f32 %v8434_v10, %v2295_v45  ;;  %v5567_v29 = vmul.f32 -1.442695, %v8469_v16  ;;  %v8506_v61 = vadd.f32 %v7950_v6, %v2020_v50  ;;  %v8510_v17 = vsel %vm8496_vm9, %v2642_v42, 0.0  ;;  %v2022_v45 = vpop.f32.mrf.mxu0 }
 0x17d   : > { %12867 = vst [vmem:[#allocation29_spill] sm:$0xff] %v8510_v17  ;;  %vm586_vm5 = vcmp.ge.s32.totalorder %v8456_v25, 0  ;;  %vm600_vm12 = vcmp.lt.s32.totalorder %v8456_v25, 16  ;;  %v2491_v52 = vmul.f32 %v5862_v0, %v2490_v62  ;;  %vm2299_vm6 = vweird.f32 %v8434_v10 }
 0x17e   : > { %v8516_v47 = vadd.f32 %v7950_v6, %v2055_v11  ;;  %v2297_v42 = vadd.f32 %v8434_v10, %v2296_v2  ;;  %vm2298_vm8 = vweird.f32 %v8349_v21  ;;  %v2302_v28 = vand.u32 2147483647, %v8349_v21 }
 0x17f   : > { %v2304_v62 = vand.u32 2147483648, %v8349_v21  ;;  %v8530_v58 = vsel %vm8391_vm14, %v2655_v27, 0.0  ;;  %v2492_v11 = vadd.f32 %v5862_v0, %v2491_v52  ;;  %5863 = vpow2.f32 %v5567_v29  ;;  %vm8541_vm10 = vmor %vm2298_vm8, %vm2299_vm6 }
 0x180   : > { %12870 = vst [vmem:[#allocation30_spill] sm:$0xff] %v8530_v58  ;;  %v5554_v56 = vmul.f32 -1.442695, %v8506_v61  ;;  %v2840_v3 = vmul.f32 %v8107_v12, %v8510_v17  ;;  %vm8535_vm13 = vcmp.eq.f32.partialorder %v2497_v53, 8.507059e+37  ;;  %v2500_v2 = vor.u32 1.1754944e-38, %v2499_v57  ;;  %v2057_v21 = vpop.f32.mrf.mxu2  ;;  %vm8614_vm6 = vmand %vm586_vm5, %vm600_vm12 }
 0x181   : > { %v8546_v27 = vadd.f32 %v7950_v6, %v2022_v45  ;;  %v2496_v29 = vsel %vm8520_vm7, %v5862_v0, %v2492_v11  ;;  %v2301_v53 = vsel %vm8541_vm10, %v8434_v10, %v2297_v42  ;;  %v5568_v52 = vmul.f32 -1.442695, %v8516_v47 }
 0x182   : > { %5865 = vpow2.f32 %v5554_v56  ;;  %v8556_v57 = vsel %vm12592_vm1, %v2936_v55, 0.0  ;;  %v3007_v24 = vadd.f32 %v8200_v54, %v2866_v13  ;;  %v2915_v22 = vrot.slane %v8530_v58, 7 }
 0x183   : > { %v2305_v45 = vor.u32 1.1754944e-38, %v2304_v62  ;;  %v8561_v15 = vadd.f32 %v2784_v20, %v8193_v34  ;;  %v8566_v10 = vmul.f32 %v8109_v41, %v8353_v48  ;;  %vm2303_vm11 = vcmp.eq.f32.partialorder %v2302_v28, 8.507059e+37 }
 0x184   : > { %v8570_v50 = vmul.f32 %v8093_v23, %v8487_v33  ;;  %v2501_v54 = vsel %vm8535_vm13, %v2500_v2, %v2496_v29  ;;  %v5555_v55 = vmul.f32 -1.442695, %v8546_v27  ;;  %v3037_v34 = vmul.f32 %v8093_v23, %v8556_v57 }
 0x185   : > { %v2306_v13 = vsel %vm2303_vm11, %v2305_v45, %v2301_v53  ;;  %v5864_v42 = vpop.eup %5863  ;;  %v8579_v20 = vmul.f32 %v8115_v32, %v8487_v33  ;;  %v2867_v28 = vadd.f32 %v2840_v3, %v8447_v43  ;;  %5867 = vpow2.f32 %v5568_v52 }
 0x186   : > { %v8583_v62 = vadd.f32 %v8227_v44, %v3007_v24  ;;  %v8587_v35 = vmul.f32 %v8075_v60, %v8530_v58  ;;  %v2798_v11 = vmul.f32 %v8077_v9, %v8530_v58  ;;  %v12877_v56 = vrot.slane %v8412_v37, 7 }
 0x187   : > { %12875 = vst [vmem:[#allocation31_spill] sm:$0xff] %v8579_v20  ;;  %v8597_v3 = vmul.f32 %v8107_v12, %v8530_v58  ;;  %v2656_v24 = vmul.f32 %v2501_v54, %v8261_v7  ;;  %v2643_v53 = vmul.f32 %v2306_v13, %v8190_v51  ;;  %v2785_v45 = vmul.f32 %v8077_v9, %v8510_v17 }
 0x188   : > { %12876 = vst [vmem:[#allocation32_spill] sm:$0xff] %v8583_v62  ;;  %v2943_v2 = vsel %vm12593_vm2, %v2915_v22, %v12877_v56  ;;  %v5866_v29 = vpop.eup %5865  ;;  %v12879_v43 = vmov %v12877_v56  ;;  %v12880_v56 = vmov 0  ;;  %v8618_v0 = vadd.f32 1.0, %v5864_v42  ;;  %v2060_v62 = vpop.f32.mrf.mxu2 }
 0x189   : > { %12878 = vst [vmem:[#allocation33_spill] sm:$0xff] %v8597_v3  ;;  %v8603_v44 = vsel %vm12593_vm2, %v12879_v43, %v2915_v22  ;;  %v12881_v56 = vsel %vm8614_vm6, 4294967295, %v12880_v56  ;;  %5869 = vpow2.f32 %v5555_v55  ;;  %v2025_v22 = vpop.f32.mrf.mxu0  ;;  %v8622_v51 = vsel %vm12592_vm1, %v2943_v2, 0.0 }
 0x18a   : > { %12882 = vst [vmem:[#allocation34_spill] sm:$0xff] %v12881_v56  ;;  %v3008_v7 = vadd.f32 %v8238_v19, %v2867_v28  ;;  %v8625_v54 = vadd.f32 1.0, %v5866_v29  ;;  %v8628_v13 = vadd.f32 %v7950_v6, %v2057_v21  ;;  %v8631_v25 = vadd.f32 %v2798_v11, %v8301_v59 }
 0x18b   : > { %12883 = vst [vmem:[#allocation35_spill] sm:$0xff] %v8622_v51  ;;  %v8635_v42 = vmul.f32 %v8093_v23, %v8603_v44  ;;  %v8639_v55 = vmul.f32 %v8075_v60, %v8510_v17  ;;  %v2895_v2 = vrot.slane %v8510_v17, 7  ;;  %v5868_v43 = vpop.eup %5867  ;;  %v8644_v19 = vsel %vm8614_vm6, %v2656_v24, 0.0 }
 0x18c   : > { %12884 = vst [vmem:[#allocation36_spill] sm:$0xff] %v8644_v19  ;;  %v8648_v28 = vsel %vm8496_vm9, %v2643_v53, 0.0  ;;  %5871 = vrcp.f32 %v8618_v0  ;;  %v8652_v59 = vadd.f32 %v7950_v6, %v2025_v22  ;;  %v8656_v11 = vmul.f32 %v8093_v23, %v8622_v51 }
 0x18d   : > { %12885 = vst [vmem:[#allocation37_spill] sm:$0xff] %v8648_v28  ;;  %v8660_v21 = vmul.f32 %v8115_v32, %v8603_v44  ;;  %v8663_v29 = vadd.f32 %v2785_v45, %v8422_v49  ;;  %5873 = vrcp.f32 %v8625_v54  ;;  %v8666_v24 = vadd.f32 %v3037_v34, %v3008_v7 }
 0x18e   : > { %v8670_v6 = vadd.s32 3, %v8025_v30  ;;  %v5569_v22 = vmul.f32 -1.442695, %v8628_v13  ;;  %v2854_v8 = vmul.f32 %v8107_v12, %v8644_v19  ;;  %v8679_v49 = vmul.f32 %v8109_v41, %v8556_v57 }
 0x18f   : > { %12886 = vst [vmem:[#allocation38_spill] sm:$0xff] %v8660_v21  ;;  %v5870_v52 = vpop.eup %5869  ;;  %v2841_v21 = vmul.f32 %v8107_v12, %v8648_v28  ;;  %v8681_v34 = vadd.f32 1.0, %v5868_v43  ;;  %v2909_v45 = vrot.slane %v8648_v28, 7  ;;  %v8686_v7 = vmul.f32 %v8109_v41, %v8345_v38 }
 0x190   : > { %12887 = vst [vmem:[#allocation39_spill] sm:$0xff] %v8666_v24  ;;  %v8690_v53 = vmul.f32 %v8109_v41, %v8487_v33  ;;  %v5556_v48 = vmul.f32 -1.442695, %v8652_v59  ;;  %v8695_v58 = vmul.f32 %v8075_v60, %v8644_v19  ;;  %v8699_v43 = vmul.f32 %v8075_v60, %v8648_v28 }
 0x191   : > { %v2786_v37 = vmul.f32 %v8077_v9, %v8648_v28  ;;  %5875 = vrcp.f32 %v8681_v34  ;;  %v2799_v33 = vmul.f32 %v8077_v9, %v8644_v19  ;;  %v8707_v17 = vadd.f32 1.0, %v5870_v52 }
 0x192   : > { %v5872_v38 = vpop.eup %5871  ;;  %5877 = vpow2.f32 %v5569_v22  ;;  %v2881_v39 = vadd.f32 %v2854_v8, %v8472_v31  ;;  %v2868_v18 = vadd.f32 %v2841_v21, %v8561_v15  ;;  %v2937_v40 = vsel %vm12593_vm2, %v2909_v45, %v2895_v2 }
 0x193   : > { %v8709_v24 = vpop.eup %5873  ;;  %v2504_v4 = vmul.f32 %v5872_v38, %v8618_v0  ;;  %v2514_v63 = vand.u32 2147483648, %v8618_v0  ;;  %5879 = vrcp.f32 %v8707_v17  ;;  %vm2508_vm5 = vweird.f32 %v8618_v0 }
 0x194   : > { %v2309_v52 = vmul.f32 %v8709_v24, %v8625_v54  ;;  %vm2509_vm12 = vweird.f32 %v5872_v38  ;;  %v2512_v31 = vand.u32 2147483647, %v8618_v0  ;;  %v8724_v15 = vadd.f32 %v2799_v33, %v8462_v14 }
 0x195   : > { %v2505_v22 = vsub.f32 1.0, %v2504_v4  ;;  %v8727_v8 = vadd.f32 %v2786_v37, %v8478_v46  ;;  %v8731_v21 = vsel %vm12593_vm2, %v2895_v2, %v2909_v45  ;;  %v3022_v4 = vadd.f32 %v8566_v10, %v2881_v39  ;;  %vm8742_vm7 = vmor %vm2508_vm5, %vm2509_vm12 }
 0x196   : > { %v2310_v1 = vsub.f32 1.0, %v2309_v52  ;;  %v3009_v20 = vadd.f32 %v8211_v36, %v2868_v18  ;;  %v8740_v14 = vsel %vm12592_vm1, %v2937_v40, 0.0  ;;  %v2515_v46 = vor.u32 1.1754944e-38, %v2514_v63 }
 0x197   : > { %v8733_v3 = vpop.eup %5875  ;;  %v2506_v0 = vmul.f32 %v5872_v38, %v2505_v22  ;;  %12888 = vst [vmem:[#allocation40_spill] sm:$0xff] %v8740_v14  ;;  %v8751_v36 = vmul.f32 %v8093_v23, %v8731_v21  ;;  %v8755_v18 = vmul.f32 %v8115_v32, %v8731_v21  ;;  %vm2513_vm8 = vcmp.eq.f32.partialorder %v2512_v31, 8.507059e+37 }
 0x198   : > { %v5878_v26 = vpop.eup %5877  ;;  %v2311_v2 = vmul.f32 %v8709_v24, %v2310_v1  ;;  %v2519_v39 = vmul.f32 %v8733_v3, %v8681_v34  ;;  %vm580_vm13 = vcmp.ge.s32.totalorder %v8670_v6, 0  ;;  %vm594_vm10 = vcmp.lt.s32.totalorder %v8670_v6, 16 }
 0x199   : > { %12891 = vst [vmem:[#allocation41_spill] sm:$0xff] %v8755_v18  ;;  %v2507_v40 = vadd.f32 %v5872_v38, %v2506_v0  ;;  %v8757_v10 = vpop.eup %5879  ;;  %vm2314_vm11 = vweird.f32 %v8709_v24  ;;  %v8763_v45 = vadd.f32 1.0, %v5878_v26  ;;  %v2319_v52 = vand.u32 2147483648, %v8625_v54  ;;  %vm8846_vm0 = vmand %vm580_vm13, %vm594_vm10 }
 0x19a   : > { %v2312_v1 = vadd.f32 %v8709_v24, %v2311_v2  ;;  %v2520_v63 = vsub.f32 1.0, %v2519_v39  ;;  %v2324_v22 = vmul.f32 %v8757_v10, %v8707_v17  ;;  %5881 = vpow2.f32 %v5556_v48 }
 0x19b   : > { %v2511_v33 = vsel %vm8742_vm7, %v5872_v38, %v2507_v40  ;;  %vm2313_vm5 = vweird.f32 %v8625_v54  ;;  %v2317_v0 = vand.u32 2147483647, %v8625_v54  ;;  %v8775_v26 = vmul.f32 %v8093_v23, %v8740_v14 }
 0x19c   : > { %v2516_v31 = vsel %vm2513_vm8, %v2515_v46, %v2511_v33  ;;  %v2521_v2 = vmul.f32 %v8733_v3, %v2520_v63  ;;  %v8778_v38 = vadd.f32 %v8570_v50, %v3009_v20  ;;  %vm8780_vm12 = vmor %vm2313_vm5, %vm2314_vm11  ;;  %v8785_v48 = vadd.s32 10, %v8025_v30 }
 0x19d   : > { %v2325_v46 = vsub.f32 1.0, %v2324_v22  ;;  %v2316_v54 = vsel %vm8780_vm12, %v8709_v24, %v2312_v1  ;;  %vm2523_vm7 = vweird.f32 %v8681_v34  ;;  %vm2524_vm8 = vweird.f32 %v8733_v3 }
 0x19e   : > { %12892 = vst [vmem:[#allocation42_spill] sm:$0xff] %v8778_v38  ;;  %5883 = vrcp.f32 %v8763_v45  ;;  %v2657_v50 = vmul.f32 %v2516_v31, %v8469_v16  ;;  %v2320_v20 = vor.u32 1.1754944e-38, %v2319_v52  ;;  %v2529_v39 = vand.u32 2147483648, %v8681_v34  ;;  %vm8801_vm5 = vmor %vm2523_vm7, %vm2524_vm8 }
 0x19f   : > { %v2326_v40 = vmul.f32 %v8757_v10, %v2325_v46  ;;  %v8797_v63 = vadd.f32 %v8656_v11, %v3022_v4  ;;  %vm2318_vm11 = vcmp.eq.f32.partialorder %v2317_v0, 8.507059e+37  ;;  %v2522_v33 = vadd.f32 %v8733_v3, %v2521_v2  ;;  %v8810_v11 = vld [vmem:[%s12493_s6] ss:$0 sm:$0xff] }
 0x1a0   : > { %v2527_v24 = vand.u32 2147483647, %v8681_v34  ;;  %v5882_v1 = vpop.eup %5881  ;;  %v2321_v22 = vsel %vm2318_vm11, %v2320_v20, %v2316_v54  ;;  %vm2329_vm12 = vweird.f32 %v8757_v10  ;;  %v8813_v4 = vadd.f32 %v8810_v11, %v2060_v62 }
 0x1a1   : > { %12895 = vst [vmem:[#allocation43_spill] sm:$0xff] %v8797_v63  ;;  %v2327_v16 = vadd.f32 %v8757_v10, %v2326_v40  ;;  %vm587_vm4 = vcmp.ge.s32.totalorder %v8785_v48, 0  ;;  %v8818_v34 = vmul.f32 %v8109_v41, %v8622_v51  ;;  %v2332_v52 = vand.u32 2147483647, %v8707_v17 }
 0x1a2   : > { %v2334_v31 = vand.u32 2147483648, %v8707_v17  ;;  %v8824_v0 = vsel %vm8614_vm6, %v2657_v50, 0.0  ;;  %vm601_vm7 = vcmp.lt.s32.totalorder %v8785_v48, 16  ;;  %v2530_v2 = vor.u32 1.1754944e-38, %v2529_v39  ;;  %v2027_v39 = vpop.f32.mrf.mxu0 }
 0x1a3   : > { %12898 = vst [vmem:[#allocation44_spill] sm:$0xff] %v8824_v0  ;;  %vm2328_vm8 = vweird.f32 %v8707_v17  ;;  %v2644_v46 = vmul.f32 %v2321_v22, %v8506_v61  ;;  %v2526_v54 = vsel %vm8801_vm5, %v8733_v3, %v2522_v33  ;;  %vm2528_vm11 = vcmp.eq.f32.partialorder %v2527_v24, 8.507059e+37  ;;  %v2062_v22 = vpop.f32.mrf.mxu2  ;;  %vm8901_vm10 = vmand %vm587_vm4, %vm601_vm7 }
 0x1a4   : > { %v8828_v62 = vpop.eup %5883  ;;  %vm8836_vm3 = vmor %vm2328_vm8, %vm2329_vm12  ;;  %v8840_v50 = vadd.f32 1.0, %v5882_v1  ;;  %v12901_v61 = vmov 0  ;;  %v8854_v3 = vadd.s32 4, %v8025_v30  ;;  %v8858_v40 = vmul.f32 %v8109_v41, %v8740_v14 }
 0x1a5   : > { %v12902_v61 = vsel %vm8846_vm0, 4294967295, %v12901_v61  ;;  %v2331_v17 = vsel %vm8836_vm3, %v8757_v10, %v2327_v16  ;;  %v5570_v33 = vmul.f32 -1.442695, %v8813_v4  ;;  %v2855_v6 = vmul.f32 %v8107_v12, %v8824_v0 }
 0x1a6   : > { %12903 = vst [vmem:[#allocation45_spill] sm:$0xff] %v12902_v61  ;;  %vm2333_vm13 = vcmp.eq.f32.partialorder %v2332_v52, 8.507059e+37  ;;  %v2335_v24 = vor.u32 1.1754944e-38, %v2334_v31  ;;  %v8865_v1 = vmul.f32 %v8109_v41, %v8603_v44  ;;  %v2916_v10 = vrot.slane %v8824_v0, 7 }
 0x1a7   : > { %v2531_v37 = vsel %vm2528_vm11, %v2530_v2, %v2526_v54  ;;  %v2534_v16 = vmul.f32 %v8828_v62, %v8763_v45  ;;  %v8871_v20 = vadd.f32 %v8810_v11, %v2027_v39  ;;  %v8875_v56 = vsel %vm8846_vm0, %v2644_v46, 0.0 }
 0x1a8   : > { %12904 = vst [vmem:[#allocation46_spill] sm:$0xff] %v8875_v56  ;;  %v2336_v52 = vsel %vm2333_vm13, %v2335_v24, %v2331_v17  ;;  %v2542_v31 = vand.u32 2147483647, %v8763_v45  ;;  %5885 = vrcp.f32 %v8840_v50  ;;  %v2800_v44 = vmul.f32 %v8077_v9, %v8824_v0 }
 0x1a9   : > { %5887 = vpow2.f32 %v5570_v33  ;;  %v8883_v2 = vmul.f32 %v8109_v41, %v8731_v21  ;;  %v8886_v54 = vadd.f32 %v8810_v11, %v2062_v22  ;;  %v2882_v39 = vadd.f32 %v2855_v6, %v8631_v25 }
 0x1aa   : > { %v2658_v46 = vmul.f32 %v2531_v37, %v8516_v47  ;;  %v2535_v17 = vsub.f32 1.0, %v2534_v16  ;;  %vm2538_vm3 = vweird.f32 %v8763_v45  ;;  %v12905_v24 = vrot.slane %v8644_v19, 7 }
 0x1ab   : > { %v2842_v33 = vmul.f32 %v8107_v12, %v8875_v56  ;;  %v12906_v21 = vmov 0  ;;  %v2645_v47 = vmul.f32 %v2336_v52, %v8546_v27  ;;  %v2544_v25 = vand.u32 2147483648, %v8763_v45 }
 0x1ac   : > { %v2944_v63 = vsel %vm12593_vm2, %v2916_v10, %v12905_v24  ;;  %v12907_v21 = vsel %vm8901_vm10, 4294967295, %v12906_v21  ;;  %v2536_v6 = vmul.f32 %v8828_v62, %v2535_v17  ;;  %vm2539_vm5 = vweird.f32 %v8828_v62 }
 0x1ad   : > { %12908 = vst [vmem:[#allocation47_spill] sm:$0xff] %v12907_v21  ;;  %vm8909_vm12 = vcmp.eq.f32.partialorder %v2542_v31, 8.507059e+37  ;;  %v5557_v37 = vmul.f32 -1.442695, %v8871_v20  ;;  %v8916_v48 = vmul.f32 %v8075_v60, %v8824_v0  ;;  %v8919_v16 = vadd.f32 %v2800_v44, %v8587_v35  ;;  %vm8955_vm4 = vmor %vm2538_vm3, %vm2539_vm5 }
 0x1ae   : > { %v12911_v27 = vmov %v12905_v24  ;;  %v8928_v17 = vpop.eup %5885  ;;  %v8932_v24 = vsel %vm12592_vm1, %v2944_v63, 0.0  ;;  %v3023_v51 = vadd.f32 %v8686_v7, %v2882_v39  ;;  %v8937_v35 = vsel %vm8901_vm10, %v2658_v46, 0.0 }
 0x1af   : > { %v8925_v52 = vsel %vm12593_vm2, %v12911_v27, %v2916_v10  ;;  %12912 = vst [vmem:[#allocation48_spill] sm:$0xff] %v8932_v24  ;;  %v2537_v44 = vadd.f32 %v8828_v62, %v2536_v6  ;;  %v5888_v19 = vpop.eup %5887  ;;  %v2787_v27 = vmul.f32 %v8077_v9, %v8875_v56  ;;  %v2869_v31 = vadd.f32 %v2842_v33, %v8663_v29 }
 0x1b0   : > { %12913 = vst [vmem:[#allocation49_spill] sm:$0xff] %v8937_v35  ;;  %v8942_v10 = vmul.f32 %v8093_v23, %v8925_v52  ;;  %v8949_v63 = vsel %vm8846_vm0, %v2645_v47, 0.0  ;;  %v3053_v39 = vmul.f32 %v8093_v23, %v8932_v24  ;;  %v8963_v46 = vmul.f32 %v8115_v32, %v8925_v52 }
 0x1b1   : > { %12914 = vst [vmem:[#allocation50_spill] sm:$0xff] %v8949_v63  ;;  %v8967_v29 = vmul.f32 %v8075_v60, %v8875_v56  ;;  %v2339_v33 = vmul.f32 %v8928_v17, %v8840_v50  ;;  %v2896_v45 = vrot.slane %v8875_v56, 7  ;;  %v2856_v6 = vmul.f32 %v8107_v12, %v8937_v35 }
 0x1b2   : > { %12917 = vst [vmem:[#allocation51_spill] sm:$0xff] %v8963_v46  ;;  %v2545_v61 = vor.u32 1.1754944e-38, %v2544_v25  ;;  %v8976_v0 = vadd.f32 %v8635_v42, %v3023_v51  ;;  %v2843_v46 = vmul.f32 %v8107_v12, %v8949_v63  ;;  %v2541_v18 = vsel %vm8955_vm4, %v8828_v62, %v2537_v44 }
 0x1b3   : > { %v2340_v38 = vsub.f32 1.0, %v2339_v33  ;;  %v8984_v28 = vadd.f32 %v2787_v27, %v8639_v55  ;;  %v3010_v47 = vadd.f32 %v8679_v49, %v2869_v31  ;;  %v8987_v56 = vadd.f32 1.0, %v5888_v19 }
 0x1b4   : > { %12918 = vst [vmem:[#allocation52_spill] sm:$0xff] %v8976_v0  ;;  %5889 = vpow2.f32 %v5557_v37  ;;  %v8991_v51 = vmul.f32 %v8075_v60, %v8937_v35  ;;  %v2801_v42 = vmul.f32 %v8077_v9, %v8937_v35  ;;  %v2910_v25 = vrot.slane %v8949_v63, 7 }
 0x1b5   : > { %v2341_v62 = vmul.f32 %v8928_v17, %v2340_v38  ;;  %v2883_v44 = vadd.f32 %v2856_v6, %v8724_v15  ;;  %v2546_v19 = vsel %vm8909_vm12, %v2545_v61, %v2541_v18  ;;  %vm581_vm7 = vcmp.ge.s32.totalorder %v8854_v3, 0 }
 0x1b6   : > { %vm595_vm8 = vcmp.lt.s32.totalorder %v8854_v3, 16  ;;  %vm2344_vm11 = vweird.f32 %v8928_v17  ;;  %v2870_v49 = vadd.f32 %v2843_v46, %v8727_v8  ;;  %v2349_v31 = vand.u32 2147483648, %v8840_v50 }
 0x1b7   : > { %v2342_v37 = vadd.f32 %v8928_v17, %v2341_v62  ;;  %5891 = vrcp.f32 %v8987_v56  ;;  %v9009_v15 = vadd.f32 %v8775_v26, %v3010_v47  ;;  %vm2343_vm13 = vweird.f32 %v8840_v50  ;;  %v2030_v47 = vpop.f32.mrf.mxu0  ;;  %vm9092_vm4 = vmand %vm581_vm7, %vm595_vm8 }
 0x1b8   : > { %v2347_v18 = vand.u32 2147483647, %v8840_v50  ;;  %v9015_v61 = vadd.f32 %v2801_v42, %v8695_v58  ;;  %v2788_v8 = vmul.f32 %v8077_v9, %v8949_v63  ;;  %v2938_v22 = vsel %vm12593_vm2, %v2910_v25, %v2896_v45  ;;  %vm9022_vm3 = vmor %vm2343_vm13, %vm2344_vm11 }
 0x1b9   : > { %12919 = vst [vmem:[#allocation53_spill] sm:$0xff] %v9009_v15  ;;  %v2659_v27 = vmul.f32 %v2546_v19, %v8628_v13  ;;  %v3024_v46 = vadd.f32 %v8818_v34, %v2883_v44  ;;  %v9029_v50 = vmul.f32 %v8075_v60, %v8949_v63  ;;  %v2346_v33 = vsel %vm9022_vm3, %v8928_v17, %v2342_v37  ;;  %v2065_v34 = vpop.f32.mrf.mxu2 }
 0x1ba   : > { %v5890_v7 = vpop.eup %5889  ;;  %v9037_v13 = vsel %vm12593_vm2, %v2896_v45, %v2910_v25  ;;  %v3011_v6 = vadd.f32 %v8690_v53, %v2870_v49  ;;  %v2350_v42 = vor.u32 1.1754944e-38, %v2349_v31  ;;  %v9044_v44 = vsel %vm12592_vm1, %v2938_v22, 0.0 }
 0x1bb   : > { %v9040_v62 = vadd.f32 1.0, %v5890_v7  ;;  %12922 = vst [vmem:[#allocation54_spill] sm:$0xff] %v9044_v44  ;;  %vm2348_vm5 = vcmp.eq.f32.partialorder %v2347_v18, 8.507059e+37  ;;  %v9047_v19 = vadd.s32 11, %v8025_v30  ;;  %v5571_v17 = vmul.f32 -1.442695, %v8886_v54 }
 0x1bc   : > { %v9051_v45 = vadd.f32 %v2788_v8, %v8699_v43  ;;  %v9055_v53 = vsel %vm8901_vm10, %v2659_v27, 0.0  ;;  %v2351_v25 = vsel %vm2348_vm5, %v2350_v42, %v2346_v33  ;;  %v9058_v49 = vadd.f32 %v3053_v39, %v3024_v46 }
 0x1bd   : > { %v5892_v37 = vpop.eup %5891  ;;  %12923 = vst [vmem:[#allocation55_spill] sm:$0xff] %v9055_v53  ;;  %5893 = vrcp.f32 %v9040_v62  ;;  %v9062_v31 = vmul.f32 %v8093_v23, %v9037_v13  ;;  %v9066_v18 = vmul.f32 %v8115_v32, %v9037_v13  ;;  %v9069_v43 = vadd.f32 %v8810_v11, %v2030_v47 }
 0x1be   : > { %12924 = vst [vmem:[#allocation56_spill] sm:$0xff] %v9058_v49  ;;  %v9073_v8 = vmul.f32 %v8093_v23, %v9044_v44  ;;  %v9076_v22 = vadd.f32 %v8751_v36, %v3011_v6  ;;  %v2549_v39 = vmul.f32 %v5892_v37, %v8987_v56  ;;  %v9081_v27 = vmul.f32 %v8109_v41, %v8932_v24 }
 0x1bf   : > { %12925 = vst [vmem:[#allocation57_spill] sm:$0xff] %v9066_v18  ;;  %v2857_v26 = vmul.f32 %v8107_v12, %v9055_v53  ;;  %v2646_v7 = vmul.f32 %v2351_v25, %v8652_v59  ;;  %vm588_vm12 = vcmp.ge.s32.totalorder %v9047_v19, 0  ;;  %v2559_v46 = vand.u32 2147483648, %v8987_v56  ;;  %v2032_v49 = vpop.f32.mrf.mxu0 }
 0x1c0   : > { %12926 = vst [vmem:[#allocation58_spill] sm:$0xff] %v9076_v22  ;;  %5895 = vpow2.f32 %v5571_v17  ;;  %v12927_v36 = vmov 0  ;;  %v2550_v33 = vsub.f32 1.0, %v2549_v39  ;;  %vm2553_vm11 = vweird.f32 %v8987_v56 }
 0x1c1   : > { %v12928_v36 = vsel %vm9092_vm4, 4294967295, %v12927_v36  ;;  %vm2554_vm13 = vweird.f32 %v5892_v37  ;;  %v2557_v47 = vand.u32 2147483647, %v8987_v56  ;;  %v2802_v59 = vmul.f32 %v8077_v9, %v9055_v53 }
 0x1c2   : > { %12929 = vst [vmem:[#allocation59_spill] sm:$0xff] %v12928_v36  ;;  %v2917_v6 = vrot.slane %v9055_v53, 7  ;;  %vm602_vm3 = vcmp.lt.s32.totalorder %v9047_v19, 16  ;;  %v5558_v42 = vmul.f32 -1.442695, %v9069_v43  ;;  %v9107_v17 = vmul.f32 %v8075_v60, %v9055_v53  ;;  %vm9117_vm7 = vmor %vm2553_vm11, %vm2554_vm13  ;;  %v2067_v53 = vpop.f32.mrf.mxu2 }
 0x1c3   : > { %v9103_v3 = vpop.eup %5893  ;;  %v2551_v39 = vmul.f32 %v5892_v37, %v2550_v33  ;;  %v9111_v56 = vadd.f32 %v8810_v11, %v2065_v34  ;;  %v9115_v38 = vsel %vm9092_vm4, %v2646_v7, 0.0  ;;  %v2560_v55 = vor.u32 1.1754944e-38, %v2559_v46  ;;  %vm9169_vm13 = vmand %vm588_vm12, %vm602_vm3 }
 0x1c4   : > { %12930 = vst [vmem:[#allocation60_spill] sm:$0xff] %v9115_v38  ;;  %v2354_v21 = vmul.f32 %v9103_v3, %v9040_v62  ;;  %5897 = vpow2.f32 %v5558_v42  ;;  %v2884_v25 = vadd.f32 %v2857_v26, %v8919_v16  ;;  %vm2558_vm8 = vcmp.eq.f32.partialorder %v2557_v47, 8.507059e+37 }
 0x1c5   : > { %v2552_v33 = vadd.f32 %v5892_v37, %v2551_v39  ;;  %v5572_v34 = vmul.f32 -1.442695, %v9111_v56  ;;  %v9126_v7 = vadd.f32 %v2802_v59, %v8916_v48  ;;  %v12933_v24 = vrot.slane %v8937_v35, 7 }
 0x1c6   : > { %v5896_v0 = vpop.eup %5895  ;;  %v2355_v26 = vsub.f32 1.0, %v2354_v21  ;;  %v2844_v47 = vmul.f32 %v8107_v12, %v9115_v38  ;;  %v9145_v59 = vadd.f32 %v8810_v11, %v2032_v49  ;;  %v9149_v35 = vadd.f32 %v8810_v11, %v2067_v53 }
 0x1c7   : > { %v9132_v46 = vsel %vm12593_vm2, %v12933_v24, %v2917_v6  ;;  %v12934_v42 = vmov %v12933_v24  ;;  %v2556_v39 = vsel %vm9117_vm7, %v5892_v37, %v2552_v33  ;;  %v9142_v48 = vadd.f32 1.0, %v5896_v0 }
 0x1c8   : > { %v2945_v16 = vsel %vm12593_vm2, %v2917_v6, %v12934_v42  ;;  %v2561_v63 = vsel %vm2558_vm8, %v2560_v55, %v2556_v39  ;;  %v2356_v24 = vmul.f32 %v9103_v3, %v2355_v26  ;;  %5899 = vpow2.f32 %v5572_v34 }
 0x1c9   : > { %v9153_v21 = vsel %vm12592_vm1, %v2945_v16, 0.0  ;;  %v3025_v6 = vadd.f32 %v8865_v1, %v2884_v25  ;;  %vm2359_vm5 = vweird.f32 %v9103_v3  ;;  %5901 = vrcp.f32 %v9142_v48 }
 0x1ca   : > { %12935 = vst [vmem:[#allocation61_spill] sm:$0xff] %v9153_v21  ;;  %v5898_v0 = vpop.eup %5897  ;;  %v9160_v55 = vmul.f32 %v8093_v23, %v9132_v46  ;;  %v2357_v58 = vadd.f32 %v9103_v3, %v2356_v24  ;;  %vm2358_vm11 = vweird.f32 %v9040_v62  ;;  %v2364_v37 = vand.u32 2147483648, %v9040_v62 }
 0x1cb   : > { %v12936_v1 = vmov 0  ;;  %v2660_v53 = vmul.f32 %v2561_v63, %v8813_v4  ;;  %v2362_v49 = vand.u32 2147483647, %v9040_v62  ;;  %v9175_v25 = vadd.f32 1.0, %v5898_v0  ;;  %vm9189_vm12 = vmor %vm2358_vm11, %vm2359_vm5 }
 0x1cc   : > { %v12937_v1 = vsel %vm9169_vm13, 4294967295, %v12936_v1  ;;  %v5559_v33 = vmul.f32 -1.442695, %v9145_v59  ;;  %v9180_v34 = vmul.f32 %v8093_v23, %v9153_v21  ;;  %v9184_v42 = vmul.f32 %v8115_v32, %v9132_v46 }
 0x1cd   : > { %12938 = vst [vmem:[#allocation62_spill] sm:$0xff] %v12937_v1  ;;  %v2871_v19 = vadd.f32 %v2844_v47, %v8984_v28  ;;  %v5573_v63 = vmul.f32 -1.442695, %v9149_v35  ;;  %v9195_v62 = vadd.f32 %v8942_v10, %v3025_v6  ;;  %v2789_v16 = vmul.f32 %v8077_v9, %v9115_v38  ;;  %v12995_v1 = vld [vmem:[#allocation15_spill] sm:$0xff] }
 0x1ce   : > { %12939 = vst [vmem:[#allocation63_spill] sm:$0xff] %v9184_v42  ;;  %v2361_v26 = vsel %vm9189_vm12, %v9103_v3, %v2357_v58  ;;  %5903 = vrcp.f32 %v9175_v25  ;;  %v5900_v28 = vpop.eup %5899  ;;  %v9205_v47 = vmul.f32 %v8075_v60, %v9115_v38  ;;  %v2365_v24 = vor.u32 1.1754944e-38, %v2364_v37  ;;  %v2035_v58 = vpop.f32.mrf.mxu0 }
 0x1cf   : > { %12942 = vst [vmem:[#allocation64_spill] sm:$0xff] %v9195_v62  ;;  %v9209_v10 = vadd.s32 5, %v8025_v30  ;;  %v9211_v6 = vpop.eup %5901  ;;  %v9216_v3 = vsel %vm9169_vm13, %v2660_v53, 0.0  ;;  %vm2363_vm3 = vcmp.eq.f32.partialorder %v2362_v49, 8.507059e+37  ;;  %5905 = vpow2.f32 %v5559_v33 }
 0x1d0   : > { %12943 = vst [vmem:[#allocation65_spill] sm:$0xff] %v9216_v3  ;;  %v3012_v4 = vadd.f32 %v8858_v40, %v2871_v19  ;;  %v2366_v42 = vsel %vm2363_vm3, %v2365_v24, %v2361_v26  ;;  %v2564_v37 = vmul.f32 %v9211_v6, %v9142_v48  ;;  %5907 = vpow2.f32 %v5573_v63 }
 0x1d1   : > { %v9222_v39 = vadd.f32 %v2789_v16, %v8967_v29  ;;  %v2572_v62 = vand.u32 2147483647, %v9142_v48  ;;  %v9227_v0 = vmul.f32 %v8109_v41, %v8925_v52  ;;  %v9229_v53 = vadd.f32 1.0, %v5900_v28 }
 0x1d2   : > { %v2858_v49 = vmul.f32 %v8107_v12, %v9216_v3  ;;  %vm2568_vm7 = vweird.f32 %v9142_v48  ;;  %v9236_v40 = vmul.f32 %v8109_v41, %v9044_v44  ;;  %v9239_v29 = vadd.f32 %v8810_v11, %v2035_v58 }
 0x1d3   : > { %v2647_v19 = vmul.f32 %v2366_v42, %v8871_v20  ;;  %v2565_v63 = vsub.f32 1.0, %v2564_v37  ;;  %vm2569_vm8 = vweird.f32 %v9211_v6  ;;  %5909 = vrcp.f32 %v9229_v53 }
 0x1d4   : > { %12944 = vst [vmem:[#allocation66_spill] sm:$0xff] %v9239_v29  ;;  %v5904_v33 = vpop.eup %5903  ;;  %v9245_v52 = vadd.f32 %v9073_v8, %v3012_v4  ;;  %v2574_v16 = vand.u32 2147483648, %v9142_v48  ;;  %v9251_v28 = vmul.f32 %v8109_v41, %v9037_v13  ;;  %vm9254_vm5 = vcmp.eq.f32.partialorder %v2572_v62, 8.507059e+37  ;;  %vm9276_vm11 = vmor %vm2568_vm7, %vm2569_vm8 }
 0x1d5   : > { %v2369_v26 = vmul.f32 %v5904_v33, %v9175_v25  ;;  %v5906_v24 = vpop.eup %5905  ;;  %v2566_v58 = vmul.f32 %v9211_v6, %v2565_v63  ;;  %v9259_v42 = vadd.s32 12, %v8025_v30  ;;  %v9263_v8 = vmul.f32 %v8115_v32, %v8556_v57 }
 0x1d6   : > { %12945 = vst [vmem:[#allocation67_spill] sm:$0xff] %v9245_v52  ;;  %v5908_v4 = vpop.eup %5907  ;;  %v9267_v37 = vmul.f32 %v8075_v60, %v9216_v3  ;;  %v2803_v13 = vmul.f32 %v8077_v9, %v9216_v3  ;;  %v9281_v57 = vmul.f32 -1.442695, %v9239_v29  ;;  %v2885_v52 = vadd.f32 %v2858_v49, %v9015_v61 }
 0x1d7   : > { %v9286_v15 = vsel %vm9092_vm4, %v2647_v19, 0.0  ;;  %v2567_v18 = vadd.f32 %v9211_v6, %v2566_v58  ;;  %v2370_v62 = vsub.f32 1.0, %v2369_v26  ;;  %v2575_v22 = vor.u32 1.1754944e-38, %v2574_v16 }
 0x1d8   : > { %12948 = vst [vmem:[#allocation68_spill] sm:$0xff] %v9267_v37  ;;  %v2377_v48 = vand.u32 2147483647, %v9175_v25  ;;  %v2379_v44 = vand.u32 2147483648, %v9175_v25  ;;  %v9293_v37 = vadd.f32 1.0, %v5906_v24  ;;  %vm2374_vm7 = vweird.f32 %v5904_v33 }
 0x1d9   : > { %12951 = vst [vmem:[#allocation69_spill] sm:$0xff] %v9286_v15  ;;  %v9295_v29 = vpop.eup %5909  ;;  %v2571_v61 = vsel %vm9276_vm11, %v9211_v6, %v2567_v18  ;;  %v2371_v49 = vmul.f32 %v5904_v33, %v2370_v62  ;;  %v9300_v19 = vadd.f32 1.0, %v5908_v4  ;;  %v9303_v16 = vadd.f32 %v2803_v13, %v8991_v51 }
 0x1da   : > { %v2911_v58 = vrot.slane %v9286_v15, 7  ;;  %v2579_v24 = vmul.f32 %v9295_v29, %v9229_v53  ;;  %v3026_v36 = vadd.f32 %v9081_v27, %v2885_v52  ;;  %vm2373_vm8 = vweird.f32 %v9175_v25 }
 0x1db   : > { %v2372_v14 = vadd.f32 %v5904_v33, %v2371_v49  ;;  %5911 = vrcp.f32 %v9293_v37  ;;  %v2845_v18 = vmul.f32 %v8107_v12, %v9286_v15  ;;  %v2576_v51 = vsel %vm9254_vm5, %v2575_v22, %v2571_v61  ;;  %vm2375_vm11 = vmor %vm2373_vm8, %vm2374_vm7 }
 0x1dc   : > { %v2580_v6 = vsub.f32 1.0, %v2579_v24  ;;  %5913 = vrcp.f32 %v9300_v19  ;;  %v2790_v4 = vmul.f32 %v8077_v9, %v9286_v15  ;;  %vm2378_vm12 = vcmp.eq.f32.partialorder %v2377_v48, 8.507059e+37 }
 0x1dd   : > { %v2376_v13 = vsel %vm2375_vm11, %v5904_v33, %v2372_v14  ;;  %v2380_v27 = vor.u32 1.1754944e-38, %v2379_v44  ;;  %v12952_v25 = vrot.slane %v9115_v38, 7  ;;  %vm2583_vm3 = vweird.f32 %v9229_v53  ;;  %v13010_v38 = vld [vmem:[#allocation5_spill] sm:$0xff] }
 0x1de   : > { %v2587_v20 = vand.u32 2147483647, %v9229_v53  ;;  %v2589_v22 = vand.u32 2147483648, %v9229_v53  ;;  %v2661_v62 = vmul.f32 %v2576_v51, %v8886_v54  ;;  %v2581_v61 = vmul.f32 %v9295_v29, %v2580_v6 }
 0x1df   : > { %v2939_v52 = vsel %vm12593_vm2, %v2911_v58, %v12952_v25  ;;  %v2381_v63 = vsel %vm2378_vm12, %v2380_v27, %v2376_v13  ;;  %vm2584_vm5 = vweird.f32 %v9295_v29  ;;  %v9330_v14 = vadd.f32 %v9180_v34, %v3026_v36 }
 0x1e0   : > { %v2872_v44 = vadd.f32 %v2845_v18, %v9051_v45  ;;  %vm589_vm7 = vcmp.ge.s32.totalorder %v9259_v42, 0  ;;  %vm603_vm8 = vcmp.lt.s32.totalorder %v9259_v42, 16  ;;  %v9337_v48 = vmul.f32 %v8075_v60, %v9286_v15  ;;  %vm9356_vm12 = vmor %vm2583_vm3, %vm2584_vm5 }
 0x1e1   : > { %12953 = vst [vmem:[#allocation70_spill] sm:$0xff] %v9330_v14  ;;  %v5912_v33 = vpop.eup %5911  ;;  %v12954_v54 = vmov %v12952_v25  ;;  %v9347_v36 = vsel %vm12592_vm1, %v2939_v52, 0.0  ;;  %v2648_v24 = vmul.f32 %v2381_v63, %v9069_v43  ;;  %v2582_v18 = vadd.f32 %v9295_v29, %v2581_v61  ;;  %vm9406_vm5 = vmand %vm589_vm7, %vm603_vm8 }
 0x1e2   : > { %v9343_v49 = vsel %vm12593_vm2, %v12954_v54, %v2911_v58  ;;  %12955 = vst [vmem:[#allocation71_spill] sm:$0xff] %v9347_v36  ;;  %v9350_v34 = vpop.eup %5913  ;;  %v2590_v58 = vor.u32 1.1754944e-38, %v2589_v22  ;;  %v2384_v6 = vmul.f32 %v5912_v33, %v9293_v37  ;;  %v9362_v13 = vadd.f32 %v2790_v4, %v9029_v50 }
 0x1e3   : > { %v9366_v27 = vsel %vm9169_vm13, %v2661_v62, 0.0  ;;  %vm12959_vm11 = vcmp.lt.s32.totalorder %v9209_v10, 16  ;;  %vm12960_vm1 = vcmp.ge.s32.totalorder %v9209_v10, 0  ;;  %v12961_v43 = vmov 0 }
 0x1e4   : > { %12958 = vst [vmem:[#allocation72_spill] sm:$0xff] %v9366_v27  ;;  %vm9372_vm2 = vmand %vm12960_vm1, %vm12959_vm11  ;;  %vm2588_vm3 = vcmp.eq.f32.partialorder %v2587_v20, 8.507059e+37  ;;  %v2594_v53 = vmul.f32 %v9350_v34, %v9300_v19  ;;  %v3013_v25 = vadd.f32 %v8883_v2, %v2872_v44  ;;  %v9381_v50 = vmul.f32 %v8093_v23, %v9347_v36 }
 0x1e5   : > { %v12962_v43 = vsel %vm9372_vm2, 4294967295, %v12961_v43  ;;  %v9385_v4 = vmul.f32 %v8093_v23, %v9343_v49  ;;  %v9389_v10 = vmul.f32 %v8115_v32, %v9343_v49  ;;  %v2586_v52 = vsel %vm9356_vm12, %v9295_v29, %v2582_v18 }
 0x1e6   : > { %12963 = vst [vmem:[#allocation73_spill] sm:$0xff] %v12962_v43  ;;  %v2385_v20 = vsub.f32 1.0, %v2384_v6  ;;  %v2394_v2 = vand.u32 2147483648, %v9293_v37  ;;  %v2859_v22 = vmul.f32 %v8107_v12, %v9366_v27  ;;  %v9400_v62 = vsel %vm9372_vm2, %v2648_v24, 0.0 }
 0x1e7   : > { %12964 = vst [vmem:[#allocation74_spill] sm:$0xff] %v9389_v10  ;;  %v2591_v29 = vsel %vm2588_vm3, %v2590_v58, %v2586_v52  ;;  %v2595_v61 = vsub.f32 1.0, %v2594_v53  ;;  %vm2389_vm12 = vweird.f32 %v5912_v33  ;;  %v2392_v18 = vand.u32 2147483647, %v9293_v37 }
 0x1e8   : > { %12965 = vst [vmem:[#allocation75_spill] sm:$0xff] %v9400_v62  ;;  %v2662_v44 = vmul.f32 %v2591_v29, %v9111_v56  ;;  %v2386_v54 = vmul.f32 %v5912_v33, %v2385_v20  ;;  %v2918_v51 = vrot.slane %v9366_v27, 7  ;;  %vm2598_vm11 = vweird.f32 %v9300_v19 }
 0x1e9   : > { %v2596_v24 = vmul.f32 %v9350_v34, %v2595_v61  ;;  %vm2599_vm1 = vweird.f32 %v9350_v34  ;;  %v2846_v42 = vmul.f32 %v8107_v12, %v9400_v62  ;;  %v2604_v6 = vand.u32 2147483648, %v9300_v19 }
 0x1ea   : > { %v9420_v58 = vsel %vm9406_vm5, %v2662_v44, 0.0  ;;  %v2387_v56 = vadd.f32 %v5912_v33, %v2386_v54  ;;  %v2886_v53 = vadd.f32 %v2859_v22, %v9126_v7  ;;  %vm12969_vm7 = vweird.f32 %v9293_v37  ;;  %vm9434_vm13 = vmor %vm2598_vm11, %vm2599_vm1 }
 0x1eb   : > { %12968 = vst [vmem:[#allocation76_spill] sm:$0xff] %v9420_v58  ;;  %vm2390_vm8 = vmor %vm12969_vm7, %vm2389_vm12  ;;  %v2395_v52 = vor.u32 1.1754944e-38, %v2394_v2  ;;  %v2602_v20 = vand.u32 2147483647, %v9300_v19  ;;  %5915 = vpow2.f32 %v9281_v57  ;;  %v9429_v29 = vadd.f32 %v9062_v31, %v3013_v25 }
 0x1ec   : > { %v2391_v61 = vsel %vm2390_vm8, %v5912_v33, %v2387_v56  ;;  %vm2393_vm3 = vcmp.eq.f32.partialorder %v2392_v18, 8.507059e+37  ;;  %v2597_v44 = vadd.f32 %v9350_v34, %v2596_v24  ;;  %v2804_v7 = vmul.f32 %v8077_v9, %v9366_v27  ;;  %v3994_v33 = vld [vmem:[%s12496_s9] sm:$0xf] }
 0x1ed   : > { %12970 = vst [vmem:[#allocation77_spill] sm:$0xff] %v9429_v29  ;;  %v2860_v37 = vmul.f32 %v8107_v12, %v9420_v58  ;;  %v3000_v31 = vmul.f32 %v8109_v41, %v9153_v21  ;;  %v2396_v57 = vsel %vm2393_vm3, %v2395_v52, %v2391_v61  ;;  %v12973_v19 = vrot.slane %v9216_v3, 7 }
 0x1ee   : > { %vm12974_vm1 = vcmp.lt.s32.totalorder %v6369_v5, 1  ;;  %v2873_v2 = vadd.f32 %v2846_v42, %v9222_v39  ;;  %v2649_v22 = vmul.f32 %v2396_v57, %v9145_v59  ;;  %v2605_v18 = vor.u32 1.1754944e-38, %v2604_v6 }
 0x1ef   : > { %v2946_v25 = vsel %vm12974_vm1, %v2918_v51, %v12973_v19  ;;  %v12975_v24 = vmov %v12973_v19  ;;  %vm12976_vm12 = vmmov %vm12974_vm1  ;;  %v3027_v52 = vadd.f32 %v9227_v0, %v2886_v53  ;;  %v2601_v61 = vsel %vm9434_vm13, %v9350_v34, %v2597_v44 }
 0x1f0   : > { %v9457_v56 = vsel %vm12976_vm12, %v12975_v24, %v2918_v51  ;;  %vm2603_vm11 = vcmp.eq.f32.partialorder %v2602_v20, 8.507059e+37  ;;  %v9465_v19 = vmul.f32 %v8075_v60, %v9366_v27  ;;  %v2791_v39 = vmul.f32 %v8077_v9, %v9400_v62  ;;  %vm12986_vm13 = vmmov %vm12974_vm1 }
 0x1f1   : > { %12977 = vst [vmem:[#allocation78_spill] sm:$0xff] %v9457_v56  ;;  %vm12978_vm7 = vcmask 1043456   ;;  %v5916_v51 = vpop.eup %5915  ;;  %v9472_v6 = vadd.f32 %v2804_v7, %v9107_v17  ;;  %vm12979_vm8 = vcmp.gt.s32.totalorder %v6369_v5, 0  ;;  %v9480_v34 = vmul.f32 %v8093_v23, %v9457_v56  ;;  %vm12988_vm3 = vmmov %vm12974_vm1 }
 0x1f2   : > { %v4053_v42 = vsel %vm12978_vm7, %v3994_v33, 0  ;;  %v9476_v0 = vsel %vm12979_vm8, %v2946_v25, 0.0  ;;  %v2887_v53 = vadd.f32 %v2860_v37, %v9303_v16  ;;  %v9485_v20 = vmul.f32 %v8115_v32, %v9457_v56  ;;  %v2037_v33 = vpop.f32.mrf.mxu0 }
 0x1f3   : > { %12980 = vst [vmem:[#allocation79_spill] sm:$0xff] %v9476_v0  ;;  %4062 = vmatpush.bf16.msra.mxu1 %v4053_v42  ;;  %v3014_v44 = vadd.f32 %v9236_v40, %v2873_v2  ;;  %v9490_v17 = vsel %vm9372_vm2, %v2649_v22, 0.0  ;;  %v2606_v54 = vsel %vm2603_vm11, %v2605_v18, %v2601_v61  ;;  %5657 = vmatpush.bf16.msra.mxu3 %v4053_v42  ;;  %v2898_v37 = vrot.slane %v9400_v62, 7  ;;  %v2070_v61 = vpop.f32.mrf.mxu2 }
 0x1f4   : > { %12981 = vst [vmem:[#allocation80_spill] sm:$0xff] %v9485_v20  ;;  %v3057_v7 = vmul.f32 %v8093_v23, %v9476_v0  ;;  %v9495_v57 = vadd.f32 %v9160_v55, %v3027_v52  ;;  %v9499_v16 = vmul.f32 %v8075_v60, %v9400_v62  ;;  %v9503_v40 = vadd.f32 %v2791_v39, %v9205_v47  ;;  %v13009_v62 = vld [vmem:[#allocation19_spill] sm:$0xff] }
 0x1f5   : > { %12982 = vst [vmem:[#allocation81_spill] sm:$0xff] %v9490_v17  ;;  %v9508_v2 = vmul.f32 %v8109_v41, %v9132_v46  ;;  %v9510_v22 = vadd.f32 1.0, %v5916_v51  ;;  %v3028_v55 = vadd.f32 %v3000_v31, %v2887_v53  ;;  %v2912_v18 = vrot.slane %v9490_v17, 7 }
 0x1f6   : > { %12983 = vst [vmem:[#allocation82_spill] sm:$0xff] %v9495_v57  ;;  %v2663_v24 = vmul.f32 %v2606_v54, %v9149_v35  ;;  %v9515_v52 = vadd.s32 6, %v8025_v30  ;;  %v9518_v47 = vadd.f32 %v9381_v50, %v3014_v44  ;;  %v2847_v39 = vmul.f32 %v8107_v12, %v9490_v17  ;;  %v13006_v57 = vld [vmem:[#allocation2_spill] sm:$0xff] }
 0x1f7   : > { %v9523_v46 = vadd.f32 %v8810_v11, %v2070_v61  ;;  %v9526_v42 = vadd.f32 %v8810_v11, %v2037_v33  ;;  %v9530_v31 = vmul.f32 %v8075_v60, %v9420_v58  ;;  %v9534_v35 = vmul.f32 %v8077_v9, %v9420_v58 }
 0x1f8   : > { %12984 = vst [vmem:[#allocation83_spill] sm:$0xff] %v9518_v47  ;;  %v2792_v51 = vmul.f32 %v8077_v9, %v9490_v17  ;;  %5917 = vrcp.f32 %v9510_v22  ;;  %v9543_v44 = vmul.f32 %v8109_v41, %v9347_v36  ;;  %v9547_v54 = vmul.f32 %v8109_v41, %v9343_v49 }
 0x1f9   : > { %v9549_v33 = vadd.f32 %v3057_v7, %v3028_v55  ;;  %v9553_v61 = vmul.f32 %v8075_v60, %v9490_v17  ;;  %v2940_v59 = vsel %vm12986_vm13, %v2912_v18, %v2898_v37  ;;  %v9559_v53 = vsel %vm9406_vm5, %v2663_v24, 0.0  ;;  %vm12990_vm5 = vmmov %vm12979_vm8  ;;  %v13008_v17 = vld [vmem:[#allocation6_spill] sm:$0xff] }
 0x1fa   : > { %12987 = vst [vmem:[#allocation85_spill] sm:$0xff] %v9559_v53  ;;  %v2874_v26 = vadd.f32 %v2847_v39, %v9362_v13  ;;  %v5574_v49 = vmul.f32 -1.442695, %v9523_v46  ;;  %v5561_v7 = vmul.f32 -1.442695, %v9526_v42  ;;  %v9566_v55 = vadd.f32 %v2792_v51, %v9337_v48  ;;  %v12992_v48 = vld [vmem:[#allocation26_spill] sm:$0xff] }
 0x1fb   : > { %12985 = vst [vmem:[#allocation84_spill] sm:$0xff] %v9549_v33  ;;  %v2926_v45 = vsel %vm12988_vm3, %v2898_v37, %v2912_v18  ;;  %v9572_v50 = vmul.f32 %v8075_v60, %v9559_v53  ;;  %v9576_v63 = vmul.f32 %v8077_v9, %v9559_v53  ;;  %v9580_v13 = vsel %vm12990_vm5, %v2940_v59, 0.0  ;;  %v12993_v18 = vld [vmem:[#allocation32_spill] sm:$0xff]  ;;  %v12994_v51 = vld [vmem:[#allocation31_spill] sm:$0xff]  ;;  %v12997_v33 = vld [vmem:[#allocation25_spill] sm:$0xff] }
 0x1fc   : > { %12991 = vst [vmem:[#allocation87_spill] sm:$0xff] %v9580_v13  ;;  %v2861_v24 = vmul.f32 %v8107_v12, %v9559_v53  ;;  %5919 = vpow2.f32 %v5574_v49  ;;  %v3120_v39 = vadd.f32 %v9263_v8, %v12992_v48  ;;  %v2919_v37 = vrot.slane %v9559_v53, 7 }
 0x1fd   : > { %12989 = vst [vmem:[#allocation86_spill] sm:$0xff] %v9572_v50  ;;  %5921 = vpow2.f32 %v5561_v7  ;;  %v3121_v25 = vadd.f32 %v12994_v51, %v12993_v18  ;;  %v12996_v43 = vrot.slane %v12995_v1, 1  ;;  %v12998_v27 = vrot.slane %v12997_v33, 1  ;;  %v13002_v7 = vld [vmem:[#allocation14_spill] sm:$0xff]  ;;  %v9606_v18 = vld [vmem:[%s12494_s7 + $0x8] ss:$0 sm:$0xff] }
 0x1fe   : > { %vm12999_vm1 = vcmp.lt.s32.totalorder %v6369_v5, 7  ;;  %v5918_v3 = vpop.eup %5917  ;;  %v9596_v20 = vmul.f32 %v8109_v41, %v2926_v45  ;;  %v3015_v49 = vadd.f32 %v9251_v28, %v2874_v26  ;;  %v9600_v8 = vmul.f32 %v8093_v23, %v2926_v45 }
 0x1ff   : > { %v3191_v59 = vsel %vm12999_vm1, %v12998_v27, %v12996_v43  ;;  %v3233_v48 = vmul.f32 0.0, %v13002_v7  ;;  %v9610_v51 = vmul.f32 %v8109_v41, %v9580_v13  ;;  %vm583_vm12 = vcmp.ge.s32.totalorder %v9515_v52, 0  ;;  %vm13005_vm7 = vmmov %vm12999_vm1 }
 0x200   : > { %13000 = vst [vmem:[#allocation26_spill] sm:$0xff] %v9596_v20  ;;  %vm597_vm11 = vcmp.lt.s32.totalorder %v9515_v52, 16  ;;  %v2399_v28 = vmul.f32 %v5918_v3, %v9510_v22  ;;  %v13003_v26 = vmov %v12998_v27  ;;  %v13004_v27 = vmov %v12996_v43 }
 0x201   : > { %13001 = vst [vmem:[#allocation32_spill] sm:$0xff] %v9600_v8  ;;  %v9621_v43 = vsel %vm13005_vm7, %v13004_v27, %v13003_v26  ;;  %vm13007_vm8 = vcmp.lt.s32.totalorder %v13006_v57, 15  ;;  %v3261_v21 = vadd.f32 %v3233_v48, %v3120_v39  ;;  %v3262_v47 = vadd.f32 %v3233_v48, %v3121_v25  ;;  %v13011_v27 = vld [vmem:[#allocation40_spill] sm:$0xff] }
 0x202   : > { %v9625_v14 = vsel %vm13007_vm8, %v3191_v59, 0.0  ;;  %v3290_v50 = vmul.f32 %v13009_v62, %v13008_v17  ;;  %v3291_v15 = vmul.f32 %v13009_v62, %v13010_v38  ;;  %v9633_v33 = vmul.f32 %v8093_v23, %v9580_v13  ;;  %v5920_v59 = vpop.eup %5919 }
 0x203   : > { %v2400_v1 = vsub.f32 1.0, %v2399_v28  ;;  %v2409_v26 = vand.u32 2147483648, %v9510_v22  ;;  %v3094_v10 = vmul.f32 %v8115_v32, %v13011_v27  ;;  %v3347_v25 = vmul.f32 %v9606_v18, %v9621_v43  ;;  %v5922_v38 = vpop.eup %5921  ;;  %v9648_v27 = vld [vmem:[%s12495_s8] ss:$0 sm:$0xff] }
 0x204   : > { %v3318_v29 = vadd.f32 %v3290_v50, %v3261_v21  ;;  %v3319_v39 = vadd.f32 %v3291_v15, %v3262_v47  ;;  %v3348_v17 = vmul.f32 %v9606_v18, %v9625_v14  ;;  %vm2404_vm13 = vweird.f32 %v5918_v3 }
 0x205   : > { %v2401_v48 = vmul.f32 %v5918_v3, %v2400_v1  ;;  %v2407_v13 = vand.u32 2147483647, %v9510_v22  ;;  %v9643_v28 = vadd.f32 1.0, %v5920_v59  ;;  %v9651_v15 = vmul.f32 %v8115_v32, %v2926_v45  ;;  %v13013_v1 = vld [vmem:[#allocation39_spill] sm:$0xff] }
 0x206   : > { %v9653_v21 = vadd.f32 1.0, %v5922_v38  ;;  %v3375_v47 = vadd.f32 %v3347_v25, %v3318_v29  ;;  %v3376_v50 = vadd.f32 %v3348_v17, %v3319_v39  ;;  %vm2403_vm3 = vweird.f32 %v9510_v22  ;;  %v13026_v38 = vld [vmem:[#allocation9_spill] sm:$0xff] }
 0x207   : > { %13012 = vst [vmem:[#allocation31_spill] sm:$0xff] %v9651_v15  ;;  %v2402_v36 = vadd.f32 %v5918_v3, %v2401_v48  ;;  %5923 = vrcp.f32 %v9643_v28  ;;  %v3122_v59 = vadd.f32 %v3094_v10, %v13013_v1  ;;  %v9659_v56 = vadd.f32 %v9385_v4, %v3015_v49  ;;  %vm2405_vm5 = vmor %vm2403_vm3, %vm2404_vm13 }
 0x208   : > { %v2888_v8 = vadd.f32 %v2861_v24, %v9472_v6  ;;  %v2410_v20 = vor.u32 1.1754944e-38, %v2409_v26  ;;  %5925 = vrcp.f32 %v9653_v21  ;;  %v13015_v45 = vrot.slane %v9420_v58, 7  ;;  %v13018_v24 = vld [vmem:[#allocation29_spill] sm:$0xff] }
 0x209   : > { %13014 = vst [vmem:[#allocation15_spill] sm:$0xff] %v9659_v56  ;;  %vm13016_vm1 = vcmp.lt.s32.totalorder %v6369_v5, 1  ;;  %v2406_v39 = vsel %vm2405_vm5, %v5918_v3, %v2402_v36  ;;  %vm2408_vm7 = vcmp.eq.f32.partialorder %v2407_v13, 8.507059e+37  ;;  %v9668_v22 = vadd.f32 %v9648_v27, %v3375_v47  ;;  %v13020_v26 = vld [vmem:[#allocation37_spill] sm:$0xff]  ;;  %vm9701_vm5 = vmand %vm583_vm12, %vm597_vm11 }
 0x20a   : > { %v2947_v29 = vsel %vm13016_vm1, %v2919_v37, %v13015_v45  ;;  %v2411_v10 = vsel %vm2408_vm7, %v2410_v20, %v2406_v39  ;;  %v9671_v4 = vadd.s32 13, %v8025_v30  ;;  %v9674_v6 = vadd.f32 %v9648_v27, %v3376_v50  ;;  %vm13024_vm13 = vmmov %vm13016_vm1  ;;  %v13025_v20 = vld [vmem:[#allocation66_spill] sm:$0xff] }
 0x20b   : > { %v13019_v49 = vrot.slane %v13018_v24, 1  ;;  %v13021_v25 = vrot.slane %v13020_v26, 1  ;;  %vm13022_vm8 = vcmp.lt.s32.totalorder %v6369_v5, 7  ;;  %v13023_v3 = vmov %v13015_v45  ;;  %v13038_v26 = vld [vmem:[#allocation41_spill] sm:$0xff] }
 0x20c   : > { %13017 = vst [vmem:[#allocation25_spill] sm:$0xff] %v9674_v6  ;;  %v9686_v36 = vsel %vm13024_vm13, %v13023_v3, %v2919_v37  ;;  %v2650_v13 = vmul.f32 %v2411_v10, %v13025_v20  ;;  %v5576_v30 = vmul.f32 -1.442695, %v9668_v22  ;;  %v3263_v48 = vadd.f32 %v13026_v38, %v3122_v59  ;;  %vm13034_vm1 = vmmov %vm13022_vm8 }
 0x20d   : > { %v3192_v17 = vsel %vm13022_vm8, %v13021_v25, %v13019_v49  ;;  %vm13027_vm3 = vcmp.gt.s32.totalorder %v6369_v5, 0  ;;  %v3029_v50 = vadd.f32 %v9508_v2, %v2888_v8  ;;  %v13029_v37 = vmov 0  ;;  %v5924_v39 = vpop.eup %5923 }
 0x20e   : > { %v9693_v47 = vsel %vm13027_vm3, %v2947_v29, 0.0  ;;  %v13030_v37 = vsel %vm9701_vm5, 4294967295, %v13029_v37  ;;  %v13032_v45 = vmov %v13021_v25  ;;  %v13033_v59 = vmov %v13019_v49  ;;  %v5926_v10 = vpop.eup %5925  ;;  %v13037_v49 = vld [vmem:[#allocation42_spill] sm:$0xff] }
 0x20f   : > { %13028 = vst [vmem:[#allocation14_spill] sm:$0xff] %v9693_v47  ;;  %v9711_v29 = vsel %vm13034_vm1, %v13033_v59, %v13032_v45  ;;  %5927 = vpow2.f32 %v5576_v30  ;;  %v5577_v2 = vmul.f32 -1.442695, %v9674_v6  ;;  %vm13036_vm7 = vcmp.lt.s32.totalorder %v13006_v57, 15 }
 0x210   : > { %13031 = vst [vmem:[#allocation6_spill] sm:$0xff] %v13030_v37  ;;  %v9716_v8 = vsel %vm13036_vm7, %v3192_v17, 0.0  ;;  %v3292_v52 = vmul.f32 %v13009_v62, %v9621_v43  ;;  %vm2613_vm8 = vweird.f32 %v9643_v28  ;;  %v2617_v24 = vand.u32 2147483647, %v9643_v28 }
 0x211   : > { %13035 = vst [vmem:[#allocation5_spill] sm:$0xff] %v9711_v29  ;;  %v3123_v25 = vadd.f32 %v13038_v26, %v13037_v49  ;;  %v3293_v3 = vmul.f32 %v13009_v62, %v9625_v14  ;;  %v9730_v17 = vsel %vm9701_vm5, %v2650_v13, 0.0  ;;  %v2609_v20 = vmul.f32 %v5924_v39, %v9643_v28 }
 0x212   : > { %v2414_v30 = vmul.f32 %v5926_v10, %v9653_v21  ;;  %v3320_v38 = vadd.f32 %v3292_v52, %v3263_v48  ;;  %v2619_v45 = vand.u32 2147483648, %v9643_v28  ;;  %v2422_v59 = vand.u32 2147483647, %v9653_v21  ;;  %v2072_v48 = vpop.f32.mrf.mxu2  ;;  %v13039_v52 = vld [vmem:[#allocation12_spill] sm:$0xff] }
 0x213   : > { %v2424_v1 = vand.u32 2147483648, %v9653_v21  ;;  %v3349_v49 = vmul.f32 %v9606_v18, %v9711_v29  ;;  %v2610_v26 = vsub.f32 1.0, %v2609_v20  ;;  %vm2614_vm13 = vweird.f32 %v5924_v39 }
 0x214   : > { %v2415_v53 = vsub.f32 1.0, %v2414_v30  ;;  %5929 = vpow2.f32 %v5577_v2  ;;  %v2793_v13 = vmul.f32 %v8077_v9, %v9730_v17  ;;  %v2848_v58 = vmul.f32 %v8107_v12, %v9730_v17  ;;  %vm9747_vm7 = vmor %vm2613_vm8, %vm2614_vm13 }
 0x215   : > { %vm2418_vm3 = vweird.f32 %v9653_v21  ;;  %v3264_v15 = vadd.f32 %v13039_v52, %v3123_v25  ;;  %v5928_v56 = vpop.eup %5927  ;;  %v2611_v57 = vmul.f32 %v5924_v39, %v2610_v26  ;;  %vm2419_vm1 = vweird.f32 %v5926_v10  ;;  %v13052_v52 = vld [vmem:[#allocation11_spill] sm:$0xff]  ;;  %v13101_v21 = vld [vmem:[#allocation24_spill] sm:$0xff] }
 0x216   : > { %v2416_v62 = vmul.f32 %v5926_v10, %v2415_v53  ;;  %v3377_v29 = vadd.f32 %v3349_v49, %v3320_v38  ;;  %vm9751_vm12 = vcmp.eq.f32.partialorder %v2617_v24, 8.507059e+37  ;;  %v2620_v30 = vor.u32 1.1754944e-38, %v2619_v45  ;;  %vm2420_vm8 = vmor %vm2418_vm3, %vm2419_vm1 }
 0x217   : > { %v9755_v6 = vadd.f32 1.0, %v5928_v56  ;;  %v9758_v25 = vadd.f32 %v8810_v11, %v2072_v48  ;;  %v2612_v26 = vadd.f32 %v5924_v39, %v2611_v57  ;;  %vm2423_vm11 = vcmp.eq.f32.partialorder %v2422_v59, 8.507059e+37  ;;  %v13051_v59 = vld [vmem:[#allocation4_spill] sm:$0xff] }
 0x218   : > { %v2417_v53 = vadd.f32 %v5926_v10, %v2416_v62  ;;  %v2425_v38 = vor.u32 1.1754944e-38, %v2424_v1  ;;  %v2739_v28 = vmul.f32 %v8075_v60, %v9730_v17  ;;  %v2821_v49 = vadd.f32 %v2793_v13, %v9499_v16 }
 0x219   : > { %v2875_v24 = vadd.f32 %v2848_v58, %v9503_v40  ;;  %v3321_v45 = vadd.f32 %v3293_v3, %v3264_v15  ;;  %v2616_v11 = vsel %vm9747_vm7, %v5924_v39, %v2612_v26  ;;  %5931 = vrcp.f32 %v9755_v6 }
 0x21a   : > { %v5930_v56 = vpop.eup %5929  ;;  %v2421_v48 = vsel %vm2420_vm8, %v5926_v10, %v2417_v53  ;;  %v9770_v62 = vadd.f32 %v9648_v27, %v3377_v29  ;;  %v2621_v57 = vsel %vm9751_vm12, %v2620_v30, %v2616_v11  ;;  %v5575_v58 = vmul.f32 -1.442695, %v9758_v25  ;;  %v13050_v10 = vld [vmem:[#allocation68_spill] sm:$0xff] }
 0x21b   : > { %v2426_v16 = vsel %vm2423_vm11, %v2425_v38, %v2421_v48  ;;  %v9774_v1 = vadd.f32 1.0, %v5930_v56  ;;  %v9778_v40 = vadd.f32 %v9480_v34, %v3029_v50  ;;  %v9782_v15 = vmul.f32 %v8115_v32, %v9686_v36  ;;  %v13054_v56 = vld [vmem:[#allocation27_spill] sm:$0xff] }
 0x21c   : > { %vm13046_vm13 = vcmp.lt.s32.totalorder %v9671_v4, 16  ;;  %vm13047_vm3 = vcmp.ge.s32.totalorder %v9671_v4, 0  ;;  %v2664_v29 = vmul.f32 %v2621_v57, %v9523_v46  ;;  %v3350_v39 = vmul.f32 %v9606_v18, %v9716_v8 }
 0x21d   : > { %13044 = vst [vmem:[#allocation40_spill] sm:$0xff] %v9778_v40  ;;  %vm9788_vm1 = vmand %vm13047_vm3, %vm13046_vm13  ;;  %v2833_v34 = vadd.f32 %v9534_v35, %v13050_v10  ;;  %v9798_v50 = vmul.f32 0.0, %v8107_v12  ;;  %v3002_v3 = vmul.f32 %v8109_v41, %v9476_v0  ;;  %v2651_v4 = vmul.f32 %v2426_v16, %v9526_v42  ;;  %v13057_v40 = vld [vmem:[#allocation18_spill] sm:$0xff] }
 0x21e   : > { %13045 = vst [vmem:[#allocation39_spill] sm:$0xff] %v9782_v15  ;;  %v2823_v13 = vadd.f32 %v13051_v59, %v2739_v28  ;;  %v2877_v2 = vadd.f32 %v13052_v52, %v2821_v49  ;;  %5933 = vrcp.f32 %v9774_v1  ;;  %v3378_v46 = vadd.f32 %v3350_v39, %v3321_v45 }
 0x21f   : > { %v3016_v20 = vadd.f32 %v9543_v44, %v2875_v24  ;;  %v9809_v35 = vsel %vm9788_vm1, %v2664_v29, 0.0  ;;  %5935 = vpow2.f32 %v5575_v58  ;;  %v5578_v30 = vmul.f32 -1.442695, %v9770_v62  ;;  %v9812_v26 = vpop.eup %5931 }
 0x220   : > { %13053 = vst [vmem:[#allocation29_spill] sm:$0xff] %v9809_v35  ;;  %v9816_v42 = vmul.f32 %v8109_v41, %v9693_v47  ;;  %v9820_v53 = vmul.f32 %v8093_v23, %v9693_v47  ;;  %v3557_v38 = vand.u32 2147483648, %v9755_v6  ;;  %v9825_v44 = vmul.f32 %v13002_v7, %v9621_v43 }
 0x221   : > { %v2899_v28 = vrot.slane %v9730_v17, 7  ;;  %v9831_v24 = vsel %vm9701_vm5, %v2651_v4, 0.0  ;;  %v3555_v45 = vand.u32 2147483647, %v9755_v6  ;;  %v9835_v11 = vadd.f32 %v13054_v56, %v2823_v13 }
 0x222   : > { %v2807_v48 = vmul.f32 %v8077_v9, %v9809_v35  ;;  %v2862_v43 = vmul.f32 %v8107_v12, %v9809_v35  ;;  %v9842_v57 = vadd.f32 %v9648_v27, %v3378_v46  ;;  %v9845_v16 = vadd.f32 %v9610_v51, %v2877_v2 }
 0x223   : > { %v9848_v58 = vadd.f32 %v9633_v33, %v3016_v20  ;;  %v3547_v29 = vmul.f32 %v9812_v26, %v9755_v6  ;;  %5937 = vpow2.f32 %v5578_v30  ;;  %v2740_v10 = vmul.f32 %v8075_v60, %v9831_v24 }
 0x224   : > { %v5934_v39 = vpop.eup %5933  ;;  %v2794_v4 = vmul.f32 %v8077_v9, %v9831_v24  ;;  %vm3551_vm12 = vweird.f32 %v9755_v6  ;;  %v3558_v59 = vor.u32 1.1754944e-38, %v3557_v38  ;;  %v2913_v51 = vrot.slane %v9831_v24, 7 }
 0x225   : > { %v5936_v13 = vpop.eup %5935  ;;  %vm9858_vm11 = vcmp.eq.f32.partialorder %v3555_v45, 8.507059e+37  ;;  %v3570_v52 = vand.u32 2147483647, %v9774_v1  ;;  %v3572_v2 = vand.u32 2147483648, %v9774_v1  ;;  %v9867_v60 = vadd.f32 %v9576_v63, %v9465_v19 }
 0x226   : > { %v2835_v46 = vadd.f32 %v2807_v48, %v9530_v31  ;;  %v2889_v20 = vadd.f32 %v2862_v43, %v2833_v34  ;;  %v2849_v30 = vmul.f32 %v8107_v12, %v9831_v24  ;;  %v5579_v38 = vmul.f32 -1.442695, %v9842_v57 }
 0x227   : > { %v3548_v49 = vsub.f32 1.0, %v3547_v29  ;;  %v3562_v37 = vmul.f32 %v5934_v39, %v9774_v1  ;;  %v2822_v15 = vadd.f32 %v2794_v4, %v9553_v61  ;;  %v2824_v19 = vadd.f32 %v13057_v40, %v2740_v10 }
 0x228   : > { %v9879_v31 = vadd.f32 1.0, %v5936_v13  ;;  %vm13058_vm8 = vcmp.lt.s32.totalorder %v6369_v5, 1  ;;  %vm3552_vm13 = vweird.f32 %v9812_v26  ;;  %v2891_v56 = vadd.f32 %v9798_v50, %v2835_v46  ;;  %v13060_v13 = vld [vmem:[#allocation16_spill] sm:$0xff] }
 0x229   : > { %v5938_v34 = vpop.eup %5937  ;;  %v9883_v48 = vsel %vm13058_vm8, %v2899_v28, %v2913_v51  ;;  %v3549_v43 = vmul.f32 %v9812_v26, %v3548_v49  ;;  %v3563_v29 = vsub.f32 1.0, %v3562_v37  ;;  %v3030_v45 = vadd.f32 %v3002_v3, %v2889_v20  ;;  %vm3553_vm7 = vmor %vm3551_vm12, %vm3552_vm13  ;;  %v13061_v20 = vld [vmem:[#allocation33_spill] sm:$0xff] }
 0x22a   : > { %v2876_v61 = vadd.f32 %v2849_v30, %v9566_v55  ;;  %5939 = vrcp.f32 %v9879_v31  ;;  %vm3567_vm3 = vweird.f32 %v5934_v39  ;;  %v2941_v4 = vsel %vm13058_vm8, %v2913_v51, %v2899_v28  ;;  %v13059_v55 = vld [vmem:[#allocation54_spill] sm:$0xff] }
 0x22b   : > { %v3550_v40 = vadd.f32 %v9812_v26, %v3549_v43  ;;  %v3564_v10 = vmul.f32 %v5934_v39, %v3563_v29  ;;  %5941 = vpow2.f32 %v5579_v38  ;;  %v9895_v49 = vmul.f32 %v8109_v41, %v9883_v48  ;;  %v13063_v51 = vld [vmem:[#allocation58_spill] sm:$0xff] }
 0x22c   : > { %v9899_v37 = vadd.f32 1.0, %v5938_v34  ;;  %v3096_v3 = vmul.f32 %v8115_v32, %v13059_v55  ;;  %v2878_v46 = vadd.f32 %v13060_v13, %v2822_v15  ;;  %v2880_v30 = vadd.f32 %v13061_v20, %v2824_v19  ;;  %v13064_v34 = vld [vmem:[#allocation57_spill] sm:$0xff] }
 0x22d   : > { %v3554_v38 = vsel %vm3553_vm7, %v9812_v26, %v3550_v40  ;;  %v3565_v43 = vadd.f32 %v5934_v39, %v3564_v10  ;;  %vm13062_vm8 = vweird.f32 %v9774_v1  ;;  %v3573_v6 = vor.u32 1.1754944e-38, %v3572_v2  ;;  %v13066_v26 = vld [vmem:[#allocation53_spill] sm:$0xff] }
 0x22e   : > { %v3559_v28 = vsel %vm9858_vm11, %v3558_v59, %v3554_v38  ;;  %vm3568_vm10 = vmor %vm13062_vm8, %vm3567_vm3  ;;  %5943 = vrcp.f32 %v9899_v37  ;;  %v3125_v29 = vadd.f32 %v13064_v34, %v13063_v51  ;;  %vm13065_vm12 = vcmp.gt.s32.totalorder %v6369_v5, 0  ;;  %v13067_v13 = vld [vmem:[#allocation25_spill] sm:$0xff]  ;;  %v13070_v38 = vld [vmem:[#allocation50_spill] sm:$0xff] }
 0x22f   : > { %v9915_v15 = vsel %vm13065_vm12, %v2941_v4, 0.0  ;;  %v3569_v19 = vsel %vm3568_vm10, %v5934_v39, %v3565_v43  ;;  %vm3571_vm13 = vcmp.eq.f32.partialorder %v3570_v52, 8.507059e+37  ;;  %v3124_v40 = vadd.f32 %v3096_v3, %v13066_v26  ;;  %v13068_v39 = vld [vmem:[#allocation46_spill] sm:$0xff]  ;;  %v13077_v26 = vld [vmem:[#allocation19_spill] sm:$0xff] }
 0x230   : > { %v5940_v10 = vpop.eup %5939  ;;  %v3017_v59 = vadd.f32 %v9547_v54, %v2876_v61  ;;  %v3574_v33 = vsel %vm3571_vm13, %v3573_v6, %v3569_v19  ;;  %vm2628_vm11 = vweird.f32 %v9879_v31  ;;  %v3238_v1 = vmul.f32 %v13002_v7, %v9625_v14  ;;  %v13076_v19 = vld [vmem:[#allocation5_spill] sm:$0xff] }
 0x231   : > { %v5942_v2 = vpop.eup %5941  ;;  %v3966_v55 = vmul.f32 %v3559_v28, %v9668_v22  ;;  %v3967_v20 = vmul.f32 %v3574_v33, %v13067_v13  ;;  %v2624_v4 = vmul.f32 %v5940_v10, %v9879_v31  ;;  %v13069_v52 = vrot.slane %v13068_v39, 1  ;;  %v13078_v39 = vld [vmem:[#allocation2_spill] sm:$0xff] }
 0x232   : > { %v13071_v3 = vrot.slane %v13070_v38, 1  ;;  %vm13072_vm10 = vcmp.lt.s32.totalorder %v6369_v5, 7  ;;  %v9931_v61 = vadd.f32 1.0, %v5942_v2  ;;  %v3265_v28 = vadd.f32 %v9825_v44, %v3124_v40 }
 0x233   : > { %v13074_v14 = vmov %v13069_v52  ;;  %vm13075_vm7 = vmmov %vm13072_vm10  ;;  %v3266_v6 = vadd.f32 %v3238_v1, %v3125_v29  ;;  %v3996_v51 = vpack.c.bf16 %v3967_v20, %v3966_v55  ;;  %v2625_v34 = vsub.f32 1.0, %v2624_v4 }
 0x234   : > { %v3193_v54 = vsel %vm13072_vm10, %v13071_v3, %v13069_v52  ;;  %v13073_v43 = vmov %v13071_v3  ;;  %vm2629_vm3 = vweird.f32 %v5940_v10  ;;  %v3294_v33 = vmul.f32 %v13077_v26, %v13076_v19  ;;  %v9944_v13 = vpop.eup %5943 }
 0x235   : > { %v9939_v22 = vsel %vm13075_vm7, %v13074_v14, %v13073_v43  ;;  %v2634_v2 = vand.u32 2147483648, %v9879_v31  ;;  %5945 = vrcp.f32 %v9931_v61  ;;  %vm13079_vm8 = vcmp.lt.s32.totalorder %v13078_v39, 15  ;;  %vm9966_vm13 = vmor %vm2628_vm11, %vm2629_vm3 }
 0x236   : > { %v9950_v52 = vsel %vm13079_vm8, %v3193_v54, 0.0  ;;  %v3295_v44 = vmul.f32 %v13077_v26, %v9716_v8  ;;  %vm13080_vm12 = vcmask 64512   ;;  %v2626_v29 = vmul.f32 %v5940_v10, %v2625_v34 }
 0x237   : > { %5604 = vmatmul.msk.bf16.vlgmr.msra.gmra.mxu1 %vm13080_vm12, %v3996_v51  ;;  %v2632_v40 = vand.u32 2147483647, %v9879_v31  ;;  %v3577_v1 = vmul.f32 %v9944_v13, %v9899_v37  ;;  %v3322_v55 = vadd.f32 %v3294_v33, %v3265_v28  ;;  %v9959_v20 = vadd.f32 %v9816_v42, %v2891_v56 }
 0x238   : > { %v9962_v4 = vadd.f32 %v9820_v53, %v3030_v45  ;;  %v3323_v3 = vadd.f32 %v3295_v44, %v3266_v6  ;;  %v3351_v54 = vmul.f32 %v9606_v18, %v9939_v22  ;;  %v9974_v43 = vmul.f32 %v8109_v41, %v9915_v15  ;;  %v13085_v45 = vld [vmem:[#allocation26_spill] sm:$0xff] }
 0x239   : > { %13081 = vst [vmem:[#allocation37_spill] sm:$0xff] %v9959_v20  ;;  %v2627_v14 = vadd.f32 %v5940_v10, %v2626_v29  ;;  %v3578_v42 = vsub.f32 1.0, %v3577_v1  ;;  %v3352_v53 = vmul.f32 %v9606_v18, %v9950_v52  ;;  %v9979_v56 = vadd.f32 %v13085_v45, %v2878_v46  ;;  %v13086_v1 = vld [vmem:[#allocation32_spill] sm:$0xff] }
 0x23a   : > { %13082 = vst [vmem:[#allocation66_spill] sm:$0xff] %v9962_v4  ;;  %v9983_v31 = vmul.f32 %v8093_v23, %v9915_v15  ;;  %v2635_v28 = vor.u32 1.1754944e-38, %v2634_v2  ;;  %v3379_v6 = vadd.f32 %v3351_v54, %v3322_v55  ;;  %vm2633_vm11 = vcmp.eq.f32.partialorder %v2632_v40, 8.507059e+37  ;;  %v13109_v20 = vld [vmem:[#allocation60_spill] sm:$0xff] }
 0x23b   : > { %v2631_v51 = vsel %vm9966_vm13, %v5940_v10, %v2627_v14  ;;  %v3579_v34 = vmul.f32 %v9944_v13, %v3578_v42  ;;  %v3380_v33 = vadd.f32 %v3352_v53, %v3323_v3  ;;  %v5946_v44 = vpop.eup %5945  ;;  %v9989_v29 = vadd.f32 %v9895_v49, %v2880_v30  ;;  %v13087_v42 = vld [vmem:[#allocation78_spill] sm:$0xff] }
 0x23c   : > { %v9993_v46 = vmul.f32 %v8093_v23, %v9883_v48  ;;  %v9996_v45 = vadd.f32 %v13086_v1, %v3017_v59  ;;  %v9999_v2 = vadd.f32 %v9648_v27, %v3379_v6  ;;  %v10003_v10 = vmul.f32 %v8115_v32, %v9883_v48 }
 0x23d   : > { %v3585_v40 = vand.u32 2147483647, %v9899_v37  ;;  %v3587_v55 = vand.u32 2147483648, %v9899_v37  ;;  %v3592_v49 = vmul.f32 %v5946_v44, %v9931_v61  ;;  %v2636_v30 = vsel %vm2633_vm11, %v2635_v28, %v2631_v51 }
 0x23e   : > { %v3600_v38 = vand.u32 2147483647, %v9931_v61  ;;  %v10010_v3 = vadd.f32 %v9648_v27, %v3380_v33  ;;  %v5580_v59 = vmul.f32 -1.442695, %v9999_v2  ;;  %v3580_v54 = vadd.f32 %v9944_v13, %v3579_v34 }
 0x23f   : > { %vm3582_vm10 = vweird.f32 %v9944_v13  ;;  %v3593_v48 = vsub.f32 1.0, %v3592_v49  ;;  %v3602_v14 = vand.u32 2147483648, %v9931_v61  ;;  %v10018_v53 = vmul.f32 %v8109_v41, %v13087_v42  ;;  %v13100_v42 = vld [vmem:[#allocation74_spill] sm:$0xff] }
 0x240   : > { %v10022_v28 = vmul.f32 %v8109_v41, %v9686_v36  ;;  %v10026_v6 = vmul.f32 %v8093_v23, %v9686_v36  ;;  %vm3581_vm7 = vweird.f32 %v9899_v37  ;;  %v2665_v51 = vmul.f32 %v2636_v30, %v9758_v25 }
 0x241   : > { %13088 = vst [vmem:[#allocation9_spill] sm:$0xff] %v10018_v53  ;;  %v3594_v34 = vmul.f32 %v5946_v44, %v3593_v48  ;;  %5947 = vpow2.f32 %v5580_v59  ;;  %v5581_v33 = vmul.f32 -1.442695, %v10010_v3  ;;  %vm10031_vm3 = vmor %vm3581_vm7, %vm3582_vm10  ;;  %vm10035_vm8 = vcmp.eq.f32.partialorder %v3585_v40, 8.507059e+37 }
 0x242   : > { %13089 = vst [vmem:[#allocation42_spill] sm:$0xff] %v10022_v28  ;;  %v3588_v41 = vor.u32 1.1754944e-38, %v3587_v55  ;;  %vm3596_vm12 = vweird.f32 %v9931_v61  ;;  %vm10040_vm13 = vcmp.eq.f32.partialorder %v3600_v38, 8.507059e+37  ;;  %v3584_v25 = vsel %vm10031_vm3, %v9944_v13, %v3580_v54  ;;  %v13107_v61 = vld [vmem:[#allocation69_spill] sm:$0xff]  ;;  %v13142_v28 = vld [vmem:[#allocation31_spill] sm:$0xff] }
 0x243   : > { %13090 = vst [vmem:[#allocation41_spill] sm:$0xff] %v10026_v6  ;;  %vm3597_vm11 = vweird.f32 %v5946_v44  ;;  %v3603_v37 = vor.u32 1.1754944e-38, %v3602_v14  ;;  %v3239_v30 = vmul.f32 %v13002_v7, %v13076_v19  ;;  %v3240_v40 = vmul.f32 %v13002_v7, %v9716_v8  ;;  %v13098_v19 = vld [vmem:[#allocation71_spill] sm:$0xff]  ;;  %v13099_v14 = vld [vmem:[#allocation77_spill] sm:$0xff] }
 0x244   : > { %v3296_v55 = vmul.f32 %v13077_v26, %v9939_v22  ;;  %v3297_v38 = vmul.f32 %v13077_v26, %v9950_v52  ;;  %v10057_v59 = vmul.f32 %v13002_v7, %v9939_v22  ;;  %v10061_v13 = vsel %vm9788_vm1, %v2665_v51, 0.0  ;;  %vm3598_vm10 = vmor %vm3596_vm12, %vm3597_vm11 }
 0x245   : > { %13097 = vst [vmem:[#allocation12_spill] sm:$0xff] %v10061_v13  ;;  %v3595_v54 = vadd.f32 %v5946_v44, %v3594_v34  ;;  %5949 = vpow2.f32 %v5581_v33  ;;  %v3098_v48 = vmul.f32 %v8115_v32, %v13098_v19  ;;  %v3589_v8 = vsel %vm10035_vm8, %v3588_v41, %v3584_v25  ;;  %v13103_v34 = vld [vmem:[#allocation30_spill] sm:$0xff]  ;;  %v13106_v41 = vld [vmem:[#allocation67_spill] sm:$0xff] }
 0x246   : > { %v3127_v1 = vadd.f32 %v13100_v42, %v13099_v14  ;;  %v10073_v22 = vmul.f32 %v13002_v7, %v9950_v52  ;;  %v13102_v51 = vrot.slane %v13101_v21, 1  ;;  %v13104_v33 = vrot.slane %v13103_v34, 1 }
 0x247   : > { %vm13105_vm1 = vcmp.lt.s32.totalorder %v6369_v5, 7  ;;  %v5948_v63 = vpop.eup %5947  ;;  %v3599_v49 = vsel %vm3598_vm10, %v5946_v44, %v3595_v54  ;;  %v3126_v25 = vadd.f32 %v3098_v48, %v13106_v41  ;;  %v13108_v4 = vrot.slane %v13107_v61, 1 }
 0x248   : > { %v3198_v19 = vsel %vm13105_vm1, %v13104_v33, %v13102_v51  ;;  %v13110_v6 = vrot.slane %v13109_v20, 1  ;;  %vm13111_vm7 = vmmov %vm13105_vm1  ;;  %v2920_v51 = vrot.slane %v10061_v13, 7  ;;  %v3604_v44 = vsel %vm10040_vm13, %v3603_v37, %v3599_v49 }
 0x249   : > { %v13113_v42 = vmov %v13108_v4  ;;  %vm13114_vm3 = vmmov %vm13105_vm1  ;;  %v10097_v54 = vadd.f32 1.0, %v5948_v63  ;;  %vm13115_vm8 = vcmp.lt.s32.totalorder %v13078_v39, 15  ;;  %v3968_v33 = vmul.f32 %v3589_v8, %v9770_v62 }
 0x24a   : > { %v3180_v14 = vsel %vm13111_vm7, %v13110_v6, %v13108_v4  ;;  %v13112_v52 = vmov %v13110_v6  ;;  %v3969_v4 = vmul.f32 %v3604_v44, %v9842_v57  ;;  %v3267_v20 = vadd.f32 %v3239_v30, %v3126_v25  ;;  %vm13118_vm12 = vmmov %vm13105_vm1  ;;  %v13141_v44 = vld [vmem:[#allocation15_spill] sm:$0xff] }
 0x24b   : > { %v3194_v47 = vsel %vm13114_vm3, %v13113_v42, %v13112_v52  ;;  %v3268_v6 = vadd.f32 %v3240_v40, %v3127_v1  ;;  %v2808_v41 = vmul.f32 %v8077_v9, %v10061_v13  ;;  %v2863_v61 = vmul.f32 %v8107_v12, %v10061_v13  ;;  %v5950_v36 = vpop.eup %5949  ;;  %v13119_v40 = vld [vmem:[#allocation22_spill] sm:$0xff]  ;;  %vm13120_vm13 = vmmov %vm13115_vm8 }
 0x24c   : > { %v3213_v48 = vsel %vm13115_vm8, %v3194_v47, 0.0  ;;  %5951 = vrcp.f32 %v10097_v54  ;;  %v3353_v63 = vmul.f32 %v9606_v18, %v3180_v14  ;;  %v3997_v37 = vpack.c.bf16 %v3969_v4, %v3968_v33  ;;  %v13124_v52 = vld [vmem:[#allocation86_spill] sm:$0xff]  ;;  %vm13125_vm1 = vmmov %vm13115_vm8 }
 0x24d   : > { %v3324_v49 = vadd.f32 %v3296_v55, %v3267_v20  ;;  %v3325_v47 = vadd.f32 %v3297_v38, %v3268_v6  ;;  %v3354_v62 = vmul.f32 %v9606_v18, %v3213_v48  ;;  %v10110_v8 = vadd.f32 1.0, %v5950_v36 }
 0x24e   : > { %v3617_v57 = vand.u32 2147483648, %v10097_v54  ;;  %v13116_v30 = vrot.slane %v13103_v34, 1  ;;  %v13117_v9 = vrot.slane %v13101_v21, 1  ;;  %v10124_v1 = vsel %vm13120_vm13, %v13119_v40, 0.0 }
 0x24f   : > { %v13121_v55 = vrot.slane %v9809_v35, 7  ;;  %vm13122_vm11 = vcmp.lt.s32.totalorder %v6369_v5, 1  ;;  %vm13123_vm10 = vcmask 64512   ;;  %v3615_v34 = vand.u32 2147483647, %v10097_v54 }
 0x250   : > { %v10119_v12 = vsel %vm13118_vm12, %v13117_v9, %v13116_v30  ;;  %5605 = vmatmul.msk.bf16.gmra.mxu1 %vm13123_vm10, %v3997_v37  ;;  %v3381_v25 = vadd.f32 %v3353_v63, %v3324_v49  ;;  %v3382_v21 = vadd.f32 %v3354_v62, %v3325_v47  ;;  %v10133_v42 = vadd.f32 %v2808_v41, %v13124_v52  ;;  %vm13129_vm7 = vmmov %vm13122_vm11  ;;  %v13135_v62 = vld [vmem:[#allocation75_spill] sm:$0xff]  ;;  %v13137_v9 = vld [vmem:[#allocation81_spill] sm:$0xff] }
 0x251   : > { %v2948_v38 = vsel %vm13122_vm11, %v2920_v51, %v13121_v55  ;;  %5953 = vrcp.f32 %v10110_v8  ;;  %v10139_v33 = vsel %vm13125_vm1, %v3198_v19, 0.0  ;;  %v10142_v4 = vadd.f32 %v2863_v61, %v9867_v60  ;;  %vm13147_vm10 = vmmov %vm13125_vm1 }
 0x252   : > { %13126 = vst [vmem:[#allocation68_spill] sm:$0xff] %v10139_v33  ;;  %v13128_v20 = vmov %v13121_v55  ;;  %v10151_v41 = vadd.f32 %v9648_v27, %v3381_v25  ;;  %v10154_v63 = vadd.f32 %v9648_v27, %v3382_v21  ;;  %v5952_v36 = vpop.eup %5951  ;;  %vm13131_vm3 = vcmp.gt.s32.totalorder %v6369_v5, 0 }
 0x253   : > { %13127 = vst [vmem:[#allocation4_spill] sm:$0xff] %v10142_v4  ;;  %v10148_v6 = vsel %vm13129_vm7, %v13128_v20, %v2920_v51  ;;  %v10158_v19 = vsel %vm13131_vm3, %v2948_v38, 0.0  ;;  %vm3611_vm8 = vweird.f32 %v10097_v54  ;;  %v3618_v60 = vor.u32 1.1754944e-38, %v3617_v57  ;;  %v13140_v38 = vld [vmem:[#allocation87_spill] sm:$0xff] }
 0x254   : > { %13130 = vst [vmem:[#allocation11_spill] sm:$0xff] %v10148_v6  ;;  %v3298_v61 = vmul.f32 %v13077_v26, %v3180_v14  ;;  %v3607_v37 = vmul.f32 %v5952_v36, %v10097_v54  ;;  %vm10163_vm12 = vcmp.eq.f32.partialorder %v3615_v34, 8.507059e+37  ;;  %v5582_v49 = vmul.f32 -1.442695, %v10151_v41 }
 0x255   : > { %13132 = vst [vmem:[#allocation27_spill] sm:$0xff] %v10158_v19  ;;  %v5583_v47 = vmul.f32 -1.442695, %v10154_v63  ;;  %v13136_v30 = vrot.slane %v13135_v62, 1  ;;  %v13138_v40 = vrot.slane %v13137_v9, 1  ;;  %vm13139_vm13 = vcmp.lt.s32.totalorder %v6369_v5, 7 }
 0x256   : > { %v3630_v57 = vand.u32 2147483647, %v10110_v8  ;;  %v3100_v25 = vmul.f32 %v8115_v32, %v13140_v38  ;;  %v3299_v34 = vmul.f32 %v13077_v26, %v3213_v48  ;;  %v10180_v21 = vmul.f32 %v13002_v7, %v3180_v14  ;;  %vm13146_vm11 = vmmov %vm13139_vm13 }
 0x257   : > { %v3195_v55 = vsel %vm13139_vm13, %v13138_v40, %v13136_v30  ;;  %v3608_v52 = vsub.f32 1.0, %v3607_v37  ;;  %v3632_v20 = vand.u32 2147483648, %v10110_v8  ;;  %5955 = vpow2.f32 %v5582_v49  ;;  %v5954_v53 = vpop.eup %5953  ;;  %v13143_v30 = vld [vmem:[#allocation83_spill] sm:$0xff] }
 0x258   : > { %v3129_v19 = vadd.f32 %v13142_v28, %v13141_v44  ;;  %5957 = vpow2.f32 %v5583_v47  ;;  %v3128_v40 = vadd.f32 %v3100_v25, %v13143_v30  ;;  %v13144_v4 = vrot.slane %v13137_v9, 1 }
 0x259   : > { %v13145_v38 = vrot.slane %v13135_v62, 1  ;;  %v3215_v14 = vsel %vm13147_vm10, %v3195_v55, 0.0  ;;  %v3609_v37 = vmul.f32 %v5952_v36, %v3608_v52  ;;  %vm3612_vm1 = vweird.f32 %v5952_v36  ;;  %v13148_v62 = vld [vmem:[#allocation35_spill] sm:$0xff] }
 0x25a   : > { %v3622_v49 = vmul.f32 %v5954_v53, %v10110_v8  ;;  %v3270_v28 = vadd.f32 %v10073_v22, %v3129_v19  ;;  %vm3626_vm7 = vweird.f32 %v10110_v8  ;;  %v3269_v44 = vadd.f32 %v10057_v59, %v3128_v40  ;;  %vm3613_vm3 = vmor %vm3611_vm8, %vm3612_vm1  ;;  %v13153_v22 = vld [vmem:[#allocation48_spill] sm:$0xff] }
 0x25b   : > { %v3181_v13 = vsel %vm13146_vm11, %v13145_v38, %v13144_v4  ;;  %v10199_v47 = vmul.f32 %v13002_v7, %v3213_v48  ;;  %v10203_v9 = vmul.f32 %v8115_v32, %v13148_v62  ;;  %v3610_v4 = vadd.f32 %v5952_v36, %v3609_v37 }
 0x25c   : > { %v3623_v25 = vsub.f32 1.0, %v3622_v49  ;;  %v3327_v55 = vadd.f32 %v3299_v34, %v3270_v28  ;;  %v3356_v52 = vmul.f32 %v9606_v18, %v3215_v14  ;;  %vm10208_vm13 = vcmp.eq.f32.partialorder %v3630_v57, 8.507059e+37 }
 0x25d   : > { %v3633_v59 = vor.u32 1.1754944e-38, %v3632_v20  ;;  %v3326_v19 = vadd.f32 %v3298_v61, %v3269_v44  ;;  %v3355_v48 = vmul.f32 %v9606_v18, %v3181_v13  ;;  %v5956_v30 = vpop.eup %5955  ;;  %v3614_v40 = vsel %vm3613_vm3, %v5952_v36, %v3610_v4  ;;  %v13151_v36 = vld [vmem:[#allocation13_spill] sm:$0xff] }
 0x25e   : > { %v3624_v38 = vmul.f32 %v5954_v53, %v3623_v25  ;;  %vm3627_vm11 = vweird.f32 %v5954_v53  ;;  %v3384_v37 = vadd.f32 %v3356_v52, %v3327_v55  ;;  %v5958_v49 = vpop.eup %5957  ;;  %v3619_v34 = vsel %vm10163_vm12, %v3618_v60, %v3614_v40  ;;  %v13152_v55 = vld [vmem:[#allocation8_spill] sm:$0xff] }
 0x25f   : > { %v10215_v28 = vadd.f32 1.0, %v5956_v30  ;;  %v3300_v54 = vmul.f32 %v13077_v26, %v3181_v13  ;;  %v3301_v57 = vmul.f32 %v13077_v26, %v3215_v14  ;;  %v10219_v20 = vadd.f32 1.0, %v5958_v49  ;;  %vm3628_vm8 = vmor %vm3626_vm7, %vm3627_vm11 }
 0x260   : > { %v3625_v62 = vadd.f32 %v5954_v53, %v3624_v38  ;;  %v3383_v61 = vadd.f32 %v3355_v48, %v3326_v19  ;;  %v10222_v44 = vadd.f32 %v9648_v27, %v3384_v37  ;;  %v10229_v60 = vmul.f32 %v13077_v26, %v13151_v36 }
 0x261   : > { %5959 = vrcp.f32 %v10215_v28  ;;  %v10233_v51 = vmul.f32 %v13077_v26, %v10124_v1  ;;  %v10237_v4 = vmul.f32 %v9606_v18, %v10119_v12  ;;  %v10242_v8 = vmul.f32 %v9606_v18, %v10139_v33 }
 0x262   : > { %v3629_v25 = vsel %vm3628_vm8, %v5954_v53, %v3625_v62  ;;  %5961 = vrcp.f32 %v10219_v20  ;;  %v10246_v52 = vmul.f32 %v8115_v32, %v13152_v55  ;;  %v3970_v48 = vmul.f32 %v3619_v34, %v9999_v2 }
 0x263   : > { %v3634_v19 = vsel %vm10208_vm13, %v3633_v59, %v3629_v25  ;;  %v3647_v30 = vand.u32 2147483648, %v10215_v28  ;;  %v10253_v40 = vmul.f32 %v13002_v7, %v3181_v13  ;;  %v3645_v38 = vand.u32 2147483647, %v10215_v28 }
 0x264   : > { %v3971_v53 = vmul.f32 %v3634_v19, %v10010_v3  ;;  %v10258_v37 = vadd.f32 %v9648_v27, %v3383_v61  ;;  %v5585_v49 = vmul.f32 -1.442695, %v10222_v44  ;;  %v10262_v62 = vmul.f32 %v13002_v7, %v3215_v14 }
 0x265   : > { %v10266_v2 = vmul.f32 %v9606_v18, %v13151_v36  ;;  %v10270_v13 = vmul.f32 %v9606_v18, %v10124_v1  ;;  %v3108_v3 = vmul.f32 %v8115_v32, %v13153_v22  ;;  %v3660_v34 = vand.u32 2147483647, %v10219_v20 }
 0x266   : > { %v3998_v59 = vpack.c.bf16 %v3971_v53, %v3970_v48  ;;  %v5584_v61 = vmul.f32 -1.442695, %v10258_v37  ;;  %5963 = vpow2.f32 %v5585_v49  ;;  %vm3641_vm12 = vweird.f32 %v10215_v28 }
 0x267   : > { %v5960_v25 = vpop.eup %5959  ;;  %v3648_v14 = vor.u32 1.1754944e-38, %v3647_v30  ;;  %vm3656_vm10 = vweird.f32 %v10219_v20  ;;  %v3102_v55 = vmul.f32 %v8115_v32, %v9915_v15  ;;  %vm13154_vm1 = vcmask 64512  }
 0x268   : > { %v5962_v19 = vpop.eup %5961  ;;  %5606 = vmatmul.msk.bf16.gmra.mxu1 %vm13154_vm1, %v3998_v59  ;;  %v3637_v22 = vmul.f32 %v5960_v25, %v10215_v28  ;;  %vm10282_vm7 = vcmp.eq.f32.partialorder %v3645_v38, 8.507059e+37  ;;  %5965 = vpow2.f32 %v5584_v61  ;;  %v3131_v53 = vadd.f32 %v10003_v10, %v9996_v45 }
 0x269   : > { %v13157_v30 = vrot.slane %v9730_v17, 1  ;;  %v13158_v49 = vrot.slane %v9831_v24, 1  ;;  %vm13159_vm3 = vcmp.lt.s32.totalorder %v6369_v5, 7  ;;  %v3652_v35 = vmul.f32 %v5962_v19, %v10219_v20  ;;  %v13166_v24 = vld [vmem:[#allocation21_spill] sm:$0xff] }
 0x26a   : > { %v3662_v59 = vand.u32 2147483648, %v10219_v20  ;;  %v3130_v38 = vadd.f32 %v3102_v55, %v9848_v58  ;;  %v3020_v23 = vadd.f32 %v9974_v43, %v9835_v11  ;;  %v3638_v61 = vsub.f32 1.0, %v3637_v22  ;;  %vm13164_vm11 = vmmov %vm13159_vm3 }
 0x26b   : > { %v3196_v15 = vsel %vm13159_vm3, %v13158_v49, %v13157_v30  ;;  %vm10299_vm13 = vcmp.eq.f32.partialorder %v3660_v34, 8.507059e+37  ;;  %v13162_v45 = vmov %v13158_v49  ;;  %v13163_v10 = vmov %v13157_v30 }
 0x26c   : > { %v3182_v30 = vsel %vm13164_vm11, %v13163_v10, %v13162_v45  ;;  %v3272_v49 = vadd.f32 %v10199_v47, %v3131_v53  ;;  %vm3642_vm8 = vweird.f32 %v5960_v25  ;;  %v3653_v0 = vsub.f32 1.0, %v3652_v35  ;;  %v5964_v43 = vpop.eup %5963  ;;  %v13167_v47 = vld [vmem:[#allocation7_spill] sm:$0xff] }
 0x26d   : > { %vm13165_vm1 = vcmp.lt.s32.totalorder %v13078_v39, 15  ;;  %v3271_v11 = vadd.f32 %v10180_v21, %v3130_v38  ;;  %v3639_v34 = vmul.f32 %v5960_v25, %v3638_v61  ;;  %vm3657_vm3 = vweird.f32 %v5962_v19  ;;  %vm3643_vm11 = vmor %vm3641_vm12, %vm3642_vm8 }
 0x26e   : > { %v10312_v58 = vsel %vm13165_vm1, %v3196_v15, 0.0  ;;  %v3329_v55 = vadd.f32 %v3301_v57, %v3272_v49  ;;  %v3077_v22 = vadd.f32 %v13166_v24, %v3020_v23  ;;  %v3654_v17 = vmul.f32 %v5962_v19, %v3653_v0  ;;  %v5966_v35 = vpop.eup %5965  ;;  %vm3658_vm1 = vmor %vm3656_vm10, %vm3657_vm3  ;;  %v13169_v49 = vld [vmem:[#allocation38_spill] sm:$0xff] }
 0x26f   : > { %v10316_v32 = vadd.f32 1.0, %v5964_v43  ;;  %v3328_v45 = vadd.f32 %v3300_v54, %v3271_v11  ;;  %v3078_v53 = vadd.f32 %v13167_v47, %v9989_v29  ;;  %v3640_v10 = vadd.f32 %v5960_v25, %v3639_v34  ;;  %v13168_v54 = vld [vmem:[#allocation43_spill] sm:$0xff] }
 0x270   : > { %v3663_v33 = vor.u32 1.1754944e-38, %v3662_v59  ;;  %v3357_v15 = vmul.f32 %v9606_v18, %v3182_v30  ;;  %v3358_v21 = vmul.f32 %v9606_v18, %v10312_v58  ;;  %v3655_v23 = vadd.f32 %v5962_v19, %v3654_v17 }
 0x271   : > { %v10326_v0 = vadd.f32 1.0, %v5966_v35  ;;  %5967 = vrcp.f32 %v10316_v32  ;;  %v10330_v57 = vadd.f32 %v3108_v3, %v13168_v54  ;;  %v3644_v29 = vsel %vm3643_vm11, %v5960_v25, %v3640_v10  ;;  %v13173_v54 = vld [vmem:[#allocation10_spill] sm:$0xff] }
 0x272   : > { %v3385_v59 = vadd.f32 %v3357_v15, %v3328_v45  ;;  %v3386_v38 = vadd.f32 %v3358_v21, %v3329_v55  ;;  %v3134_v18 = vadd.f32 %v10203_v9, %v3077_v22  ;;  %v3649_v28 = vsel %vm10282_vm7, %v3648_v14, %v3644_v29 }
 0x273   : > { %v3659_v61 = vsel %vm3658_vm1, %v5962_v19, %v3655_v23  ;;  %5969 = vrcp.f32 %v10326_v0  ;;  %v3135_v11 = vadd.f32 %v13169_v49, %v3078_v53  ;;  %v3247_v25 = vmul.f32 %v13002_v7, %v3182_v30 }
 0x274   : > { %v3664_v3 = vsel %vm10299_vm13, %v3663_v33, %v3659_v61  ;;  %v3248_v20 = vmul.f32 %v13002_v7, %v10312_v58  ;;  %v3302_v43 = vmul.f32 %v13077_v26, %v3182_v30  ;;  %v3972_v9 = vmul.f32 %v3649_v28, %v10151_v41 }
 0x275   : > { %v3973_v48 = vmul.f32 %v3664_v3, %v10154_v63  ;;  %v3690_v14 = vand.u32 2147483647, %v10316_v32  ;;  %v10350_v19 = vadd.f32 %v9648_v27, %v3385_v59  ;;  %v3675_v34 = vand.u32 2147483647, %v10326_v0 }
 0x276   : > { %vm3686_vm12 = vweird.f32 %v10316_v32  ;;  %v3692_v33 = vand.u32 2147483648, %v10316_v32  ;;  %v10356_v6 = vadd.f32 %v9648_v27, %v3386_v38  ;;  %v3275_v55 = vadd.f32 %v3247_v25, %v3134_v18 }
 0x277   : > { %v5968_v30 = vpop.eup %5967  ;;  %v3999_v24 = vpack.c.bf16 %v3973_v48, %v3972_v9  ;;  %v5586_v41 = vmul.f32 -1.442695, %v10350_v19  ;;  %v3276_v63 = vadd.f32 %v3248_v20, %v3135_v11  ;;  %v3075_v22 = vadd.f32 %v9983_v31, %v9845_v16 }
 0x278   : > { %vm3671_vm10 = vweird.f32 %v10326_v0  ;;  %v3677_v17 = vand.u32 2147483648, %v10326_v0  ;;  %v3682_v45 = vmul.f32 %v5968_v30, %v10316_v32  ;;  %v5587_v47 = vmul.f32 -1.442695, %v10356_v6 }
 0x279   : > { %v3076_v53 = vadd.f32 %v9993_v46, %v9979_v56  ;;  %v5970_v35 = vpop.eup %5969  ;;  %5971 = vpow2.f32 %v5586_v41  ;;  %v3332_v10 = vadd.f32 %v10229_v60, %v3275_v55  ;;  %v3333_v15 = vadd.f32 %v10233_v51, %v3276_v63  ;;  %v13178_v41 = vld [vmem:[#allocation44_spill] sm:$0xff] }
 0x27a   : > { %v3132_v21 = vadd.f32 %v10246_v52, %v3075_v22  ;;  %vm13170_vm7 = vcmask 64512   ;;  %v3667_v16 = vmul.f32 %v5970_v35, %v10326_v0  ;;  %v3683_v31 = vsub.f32 1.0, %v3682_v45  ;;  %v13176_v0 = vld [vmem:[#allocation36_spill] sm:$0xff]  ;;  %v13182_v45 = vld [vmem:[#allocation51_spill] sm:$0xff] }
 0x27b   : > { %5607 = vmatmul.msk.bf16.gmra.mxu1 %vm13170_vm7, %v3999_v24  ;;  %vm10372_vm13 = vcmp.eq.f32.partialorder %v3690_v14, 8.507059e+37  ;;  %5973 = vpow2.f32 %v5587_v47  ;;  %v3389_v56 = vadd.f32 %v10237_v4, %v3332_v10  ;;  %v3390_v46 = vadd.f32 %v10242_v8, %v3333_v15 }
 0x27c   : > { %v3133_v60 = vadd.f32 %v13173_v54, %v3076_v53  ;;  %v3273_v51 = vadd.f32 %v10253_v40, %v3132_v21  ;;  %v3668_v29 = vsub.f32 1.0, %v3667_v16  ;;  %v3684_v52 = vmul.f32 %v5968_v30, %v3683_v31 }
 0x27d   : > { %vm3687_vm8 = vweird.f32 %v5968_v30  ;;  %v3303_v59 = vmul.f32 %v13077_v26, %v10312_v58  ;;  %v10383_v38 = vadd.f32 %v9648_v27, %v3389_v56  ;;  %v10386_v18 = vadd.f32 %v9648_v27, %v3390_v46 }
 0x27e   : > { %v3274_v4 = vadd.f32 %v10262_v62, %v3133_v60  ;;  %v3330_v28 = vadd.f32 %v3302_v43, %v3273_v51  ;;  %v3669_v8 = vmul.f32 %v5970_v35, %v3668_v29  ;;  %vm3672_vm3 = vweird.f32 %v5970_v35  ;;  %vm3688_vm1 = vmor %vm3686_vm12, %vm3687_vm8 }
 0x27f   : > { %v3685_v61 = vadd.f32 %v5968_v30, %v3684_v52  ;;  %v3693_v49 = vor.u32 1.1754944e-38, %v3692_v33  ;;  %v5972_v40 = vpop.eup %5971  ;;  %vm10389_vm11 = vcmp.eq.f32.partialorder %v3675_v34, 8.507059e+37  ;;  %v3678_v3 = vor.u32 1.1754944e-38, %v3677_v17  ;;  %vm3673_vm7 = vmor %vm3671_vm10, %vm3672_vm3  ;;  %v13181_v17 = vld [vmem:[#allocation52_spill] sm:$0xff] }
 0x280   : > { %v5590_v58 = vmul.f32 -1.442695, %v10383_v38  ;;  %v3331_v27 = vadd.f32 %v3303_v59, %v3274_v4  ;;  %v3670_v20 = vadd.f32 %v5970_v35, %v3669_v8  ;;  %v10396_v43 = vadd.f32 1.0, %v5972_v40 }
 0x281   : > { %v5974_v25 = vpop.eup %5973  ;;  %v3689_v62 = vsel %vm3688_vm1, %v5968_v30, %v3685_v61  ;;  %v5591_v9 = vmul.f32 -1.442695, %v10386_v18  ;;  %v3387_v32 = vadd.f32 %v10266_v2, %v3330_v28  ;;  %v13177_v24 = vrot.slane %v13176_v0, 1 }
 0x282   : > { %v3694_v48 = vsel %vm10372_vm13, %v3693_v49, %v3689_v62  ;;  %v10403_v14 = vadd.f32 1.0, %v5974_v25  ;;  %5975 = vpow2.f32 %v5590_v58  ;;  %v3674_v34 = vsel %vm3673_vm7, %v5970_v35, %v3670_v20  ;;  %v13190_v49 = vld [vmem:[#allocation68_spill] sm:$0xff] }
 0x283   : > { %v3975_v33 = vmul.f32 %v3694_v48, %v10222_v44  ;;  %5977 = vrcp.f32 %v10396_v43  ;;  %v3388_v55 = vadd.f32 %v10270_v13, %v3331_v27  ;;  %v3679_v30 = vsel %vm10389_vm11, %v3678_v3, %v3674_v34  ;;  %v10478_v27 = vld [vmem:[%s12494_s7 + $0x8] ss:$0 sm:$0xff] }
 0x284   : > { %5979 = vrcp.f32 %v10403_v14  ;;  %v13179_v63 = vrot.slane %v13178_v41, 1  ;;  %vm13180_vm12 = vcmp.lt.s32.totalorder %v6369_v5, 7  ;;  %v3249_v2 = vmul.f32 %v13002_v7, %v13151_v36 }
 0x285   : > { %v10422_v44 = vadd.f32 %v9798_v50, %v10133_v42  ;;  %v3974_v13 = vmul.f32 %v3679_v30, %v10258_v37  ;;  %v3137_v47 = vadd.f32 %v13182_v45, %v13181_v17  ;;  %v13184_v35 = vmov %v13177_v24  ;;  %vm13185_vm10 = vmmov %vm13180_vm12  ;;  %v10440_v50 = vld [vmem:[%s12495_s8] ss:$0 sm:$0xff]  ;;  %v13193_v45 = vld [vmem:[#allocation61_spill] sm:$0xff] }
 0x286   : > { %v3199_v22 = vsel %vm13180_vm12, %v13179_v63, %v13177_v24  ;;  %v13183_v53 = vmov %v13179_v63  ;;  %v3705_v15 = vand.u32 2147483647, %v10396_v43  ;;  %v3707_v36 = vand.u32 2147483648, %v10396_v43 }
 0x287   : > { %v10433_v10 = vsel %vm13185_vm10, %v13184_v35, %v13183_v53  ;;  %5981 = vpow2.f32 %v5591_v9  ;;  %v10443_v42 = vadd.f32 %v10440_v50, %v3387_v32  ;;  %v4000_v37 = vpack.c.bf16 %v3975_v33, %v3974_v13 }
 0x288   : > { %v10446_v21 = vadd.f32 %v10440_v50, %v3388_v55  ;;  %vm13186_vm13 = vcmp.lt.s32.totalorder %v13078_v39, 15  ;;  %v3250_v31 = vmul.f32 %v13002_v7, %v10124_v1  ;;  %v5976_v23 = vpop.eup %5975  ;;  %vm3701_vm8 = vweird.f32 %v10396_v43 }
 0x289   : > { %v10450_v16 = vsel %vm13186_vm13, %v3199_v22, 0.0  ;;  %v5588_v56 = vmul.f32 -1.442695, %v10443_v42  ;;  %v3277_v46 = vadd.f32 %v3249_v2, %v10330_v57  ;;  %v3306_v54 = vmul.f32 %v13077_v26, %v10119_v12  ;;  %v5978_v60 = vpop.eup %5977 }
 0x28a   : > { %vm3716_vm3 = vweird.f32 %v10403_v14  ;;  %v3720_v51 = vand.u32 2147483647, %v10403_v14  ;;  %v3722_v29 = vand.u32 2147483648, %v10403_v14  ;;  %v10462_v52 = vadd.f32 1.0, %v5976_v23  ;;  %v5980_v59 = vpop.eup %5979 }
 0x28b   : > { %v5589_v1 = vmul.f32 -1.442695, %v10446_v21  ;;  %v3697_v4 = vmul.f32 %v5978_v60, %v10396_v43  ;;  %vm10466_vm11 = vcmp.eq.f32.partialorder %v3705_v15, 8.507059e+37  ;;  %v3708_v57 = vor.u32 1.1754944e-38, %v3707_v36 }
 0x28c   : > { %5983 = vpow2.f32 %v5588_v56  ;;  %vm13189_vm1 = vcmask 64512   ;;  %v3712_v8 = vmul.f32 %v5980_v59, %v10403_v14  ;;  %v3278_v61 = vadd.f32 %v3250_v31, %v3137_v47  ;;  %v13194_v47 = vld [vmem:[#allocation17_spill] sm:$0xff] }
 0x28d   : > { %5608 = vmatmul.msk.bf16.gmra.mxu1 %vm13189_vm1, %v4000_v37  ;;  %5985 = vrcp.f32 %v10462_v52  ;;  %v3307_v40 = vmul.f32 %v13077_v26, %v13190_v49  ;;  %v5982_v11 = vpop.eup %5981  ;;  %v3698_v3 = vsub.f32 1.0, %v3697_v4  ;;  %v3334_v58 = vadd.f32 %v3306_v54, %v3277_v46 }
 0x28e   : > { %5987 = vpow2.f32 %v5589_v1  ;;  %v3363_v25 = vmul.f32 %v10478_v27, %v10433_v10  ;;  %v3713_v20 = vsub.f32 1.0, %v3712_v8  ;;  %vm10482_vm7 = vcmp.eq.f32.partialorder %v3720_v51, 8.507059e+37 }
 0x28f   : > { %v10486_v9 = vadd.f32 1.0, %v5982_v11  ;;  %v3767_v48 = vand.u32 2147483648, %v10462_v52  ;;  %v3699_v32 = vmul.f32 %v5978_v60, %v3698_v3  ;;  %vm3702_vm12 = vweird.f32 %v5978_v60 }
 0x290   : > { %v3723_v34 = vor.u32 1.1754944e-38, %v3722_v29  ;;  %v3765_v33 = vand.u32 2147483647, %v10462_v52  ;;  %v3714_v55 = vmul.f32 %v5980_v59, %v3713_v20  ;;  %vm3717_vm10 = vweird.f32 %v5980_v59  ;;  %vm3703_vm1 = vmor %vm3701_vm8, %vm3702_vm12 }
 0x291   : > { %5989 = vrcp.f32 %v10486_v9  ;;  %v3364_v30 = vmul.f32 %v10478_v27, %v10450_v16  ;;  %v3700_v24 = vadd.f32 %v5978_v60, %v3699_v32  ;;  %v3335_v41 = vadd.f32 %v3307_v40, %v3278_v61  ;;  %vm3718_vm6 = vmor %vm3716_vm3, %vm3717_vm10 }
 0x292   : > { %v5984_v0 = vpop.eup %5983  ;;  %v3391_v63 = vadd.f32 %v3363_v25, %v3334_v58  ;;  %v3715_v2 = vadd.f32 %v5980_v59, %v3714_v55  ;;  %v3768_v13 = vor.u32 1.1754944e-38, %v3767_v48  ;;  %v3110_v53 = vmul.f32 %v13194_v47, %v13193_v45  ;;  %v13202_v55 = vld [vmem:[#allocation63_spill] sm:$0xff]  ;;  %v13207_v45 = vld [vmem:[#allocation49_spill] sm:$0xff] }
 0x293   : > { %v5986_v22 = vpop.eup %5985  ;;  %v10496_v17 = vadd.f32 1.0, %v5984_v0  ;;  %v3704_v15 = vsel %vm3703_vm1, %v5978_v60, %v3700_v24  ;;  %vm10504_vm13 = vcmp.eq.f32.partialorder %v3765_v33, 8.507059e+37  ;;  %v3780_v43 = vand.u32 2147483647, %v10486_v9  ;;  %v13201_v33 = vld [vmem:[#allocation64_spill] sm:$0xff] }
 0x294   : > { %v5988_v35 = vpop.eup %5987  ;;  %v3757_v36 = vmul.f32 %v5986_v22, %v10462_v52  ;;  %v3782_v31 = vand.u32 2147483648, %v10486_v9  ;;  %v3709_v23 = vsel %vm10466_vm11, %v3708_v57, %v3704_v15  ;;  %v3719_v56 = vsel %vm3718_vm6, %v5980_v59, %v3715_v2 }
 0x295   : > { %v10512_v46 = vadd.f32 1.0, %v5988_v35  ;;  %5991 = vrcp.f32 %v10496_v17  ;;  %v3724_v14 = vsel %vm10482_vm7, %v3723_v34, %v3719_v56  ;;  %vm3776_vm8 = vweird.f32 %v10486_v9 }
 0x296   : > { %v3758_v54 = vsub.f32 1.0, %v3757_v36  ;;  %v3392_v60 = vadd.f32 %v3364_v30, %v3335_v41  ;;  %v10519_v51 = vadd.f32 %v10440_v50, %v3391_v63  ;;  %v3976_v1 = vmul.f32 %v3709_v23, %v10350_v19  ;;  %v13199_v19 = vld [vmem:[#allocation56_spill] sm:$0xff]  ;;  %v13223_v63 = vld [vmem:[#allocation3_spill] sm:$0xff] }
 0x297   : > { %v5990_v29 = vpop.eup %5989  ;;  %v3977_v4 = vmul.f32 %v3724_v14, %v10356_v6  ;;  %v3737_v59 = vand.u32 2147483648, %v10496_v17  ;;  %5993 = vrcp.f32 %v10512_v46  ;;  %vm3762_vm6 = vweird.f32 %v5986_v22 }
 0x298   : > { %v3759_v28 = vmul.f32 %v5986_v22, %v3758_v54  ;;  %v3772_v57 = vmul.f32 %v5990_v29, %v10486_v9  ;;  %vm10526_vm3 = vcmp.eq.f32.partialorder %v3780_v43, 8.507059e+37  ;;  %v3735_v61 = vand.u32 2147483647, %v10496_v17 }
 0x299   : > { %v4001_v40 = vpack.c.bf16 %v3977_v4, %v3976_v1  ;;  %vm3777_vm11 = vweird.f32 %v5990_v29  ;;  %v3783_v11 = vor.u32 1.1754944e-38, %v3782_v31  ;;  %v3138_v3 = vadd.f32 %v3110_v53, %v13199_v19 }
 0x29a   : > { %v3760_v6 = vadd.f32 %v5986_v22, %v3759_v28  ;;  %v3773_v58 = vsub.f32 1.0, %v3772_v57  ;;  %v3750_v25 = vand.u32 2147483647, %v10512_v46  ;;  %v10535_v20 = vadd.f32 %v10440_v50, %v3392_v60 }
 0x29b   : > { %v5992_v62 = vpop.eup %5991  ;;  %vm13200_vm12 = vweird.f32 %v10462_v52  ;;  %v3738_v48 = vor.u32 1.1754944e-38, %v3737_v59  ;;  %v3752_v32 = vand.u32 2147483648, %v10512_v46  ;;  %v5592_v34 = vmul.f32 -1.442695, %v10519_v51  ;;  %v13205_v52 = vld [vmem:[#allocation55_spill] sm:$0xff] }
 0x29c   : > { %vm3763_vm10 = vmor %vm13200_vm12, %vm3762_vm6  ;;  %v3139_v30 = vadd.f32 %v13202_v55, %v13201_v33  ;;  %v3774_v24 = vmul.f32 %v5990_v29, %v3773_v58  ;;  %v3727_v41 = vmul.f32 %v5992_v62, %v10496_v17  ;;  %vm10544_vm1 = vcmp.eq.f32.partialorder %v3735_v61, 8.507059e+37 }
 0x29d   : > { %v3764_v0 = vsel %vm3763_vm10, %v5986_v22, %v3760_v6  ;;  %v13206_v2 = vrot.slane %v13205_v52, 1  ;;  %v13208_v53 = vrot.slane %v13207_v45, 1  ;;  %vm13209_vm6 = vcmp.lt.s32.totalorder %v6369_v5, 7  ;;  %v5994_v15 = vpop.eup %5993 }
 0x29e   : > { %vm13210_vm12 = vcmask 64512   ;;  %v3769_v22 = vsel %vm10504_vm13, %v3768_v13, %v3764_v0  ;;  %5995 = vpow2.f32 %v5592_v34  ;;  %v5593_v36 = vmul.f32 -1.442695, %v10535_v20 }
 0x29f   : > { %v10555_v35 = vsel %vm13209_vm6, %v13208_v53, %v13206_v2  ;;  %5609 = vmatmul.msk.bf16.gmra.mxu1 %vm13210_vm12, %v4001_v40  ;;  %v3775_v43 = vadd.f32 %v5990_v29, %v3774_v24  ;;  %v3980_v31 = vmul.f32 %v3769_v22, %v10383_v38  ;;  %v3728_v23 = vsub.f32 1.0, %v3727_v41  ;;  %vm3778_vm6 = vmor %vm3776_vm8, %vm3777_vm11  ;;  %v13221_v24 = vld [vmem:[#allocation79_spill] sm:$0xff] }
 0x2a0   : > { %v3742_v56 = vmul.f32 %v5994_v15, %v10512_v46  ;;  %vm10563_vm7 = vcmp.eq.f32.partialorder %v3750_v25, 8.507059e+37  ;;  %vm3747_vm12 = vweird.f32 %v5994_v15  ;;  %5997 = vpow2.f32 %v5593_v36 }
 0x2a1   : > { %v13213_v13 = vmov %v13208_v53  ;;  %v13214_v37 = vmov %v13206_v2  ;;  %vm13215_vm13 = vcmp.lt.s32.totalorder %v6369_v5, 7  ;;  %v3251_v54 = vmul.f32 %v13002_v7, %v10119_v12  ;;  %v13224_v2 = vld [vmem:[#allocation29_spill] sm:$0xff]  ;;  %v13226_v53 = vld [vmem:[#allocation12_spill] sm:$0xff] }
 0x2a2   : > { %v3200_v38 = vsel %vm13215_vm13, %v13214_v37, %v13213_v13  ;;  %v3779_v60 = vsel %vm3778_vm6, %v5990_v29, %v3775_v43  ;;  %v3729_v1 = vmul.f32 %v5992_v62, %v3728_v23  ;;  %v3743_v4 = vsub.f32 1.0, %v3742_v56  ;;  %v13229_v43 = vld [vmem:[#allocation4_spill] sm:$0xff]  ;;  %v13231_v56 = vld [vmem:[#allocation27_spill] sm:$0xff] }
 0x2a3   : > { %vm13216_vm10 = vcmp.lt.s32.totalorder %v13078_v39, 15  ;;  %v3784_v9 = vsel %vm10526_vm3, %v3783_v11, %v3779_v60  ;;  %v3252_v28 = vmul.f32 %v13002_v7, %v13190_v49  ;;  %v3279_v57 = vadd.f32 %v3251_v54, %v3138_v3 }
 0x2a4   : > { %v10580_v59 = vsel %vm13216_vm10, %v3200_v38, 0.0  ;;  %v3308_v61 = vmul.f32 %v13077_v26, %v10433_v10  ;;  %v3981_v40 = vmul.f32 %v3784_v9, %v10386_v18  ;;  %v3730_v12 = vadd.f32 %v5992_v62, %v3729_v1  ;;  %v5996_v6 = vpop.eup %5995  ;;  %v13232_v38 = vld [vmem:[#allocation42_spill] sm:$0xff] }
 0x2a5   : > { %v3744_v29 = vmul.f32 %v5994_v15, %v3743_v4  ;;  %v3309_v19 = vmul.f32 %v13077_v26, %v10450_v16  ;;  %vm13217_vm8 = vweird.f32 %v5992_v62  ;;  %vm13218_vm11 = vweird.f32 %v10496_v17 }
 0x2a6   : > { %vm3733_vm10 = vmor %vm13218_vm11, %vm13217_vm8  ;;  %v3753_v8 = vor.u32 1.1754944e-38, %v3752_v32  ;;  %v3280_v11 = vadd.f32 %v3252_v28, %v3139_v30  ;;  %v3336_v58 = vadd.f32 %v3308_v61, %v3279_v57  ;;  %v3365_v49 = vmul.f32 %v10478_v27, %v10555_v35  ;;  %v5998_v33 = vpop.eup %5997 }
 0x2a7   : > { %v4003_v3 = vpack.c.bf16 %v3981_v40, %v3980_v31  ;;  %v3734_v25 = vsel %vm3733_vm10, %v5992_v62, %v3730_v12  ;;  %v3745_v34 = vadd.f32 %v5994_v15, %v3744_v29  ;;  %v10596_v18 = vadd.f32 1.0, %v5996_v6  ;;  %v13230_v31 = vld [vmem:[#allocation9_spill] sm:$0xff]  ;;  %v13234_v12 = vld [vmem:[#allocation82_spill] sm:$0xff] }
 0x2a8   : > { %v3739_v55 = vsel %vm10544_vm1, %v3738_v48, %v3734_v25  ;;  %vm13219_vm3 = vweird.f32 %v10512_v46  ;;  %v3337_v17 = vadd.f32 %v3309_v19, %v3280_v11  ;;  %v3366_v32 = vmul.f32 %v10478_v27, %v10580_v59  ;;  %v13222_v48 = vld [vmem:[#allocation11_spill] sm:$0xff] }
 0x2a9   : > { %vm3748_vm6 = vmor %vm13219_vm3, %vm3747_vm12  ;;  %v3393_v30 = vadd.f32 %v3365_v49, %v3336_v58  ;;  %vm13220_vm13 = vcmask 64512   ;;  %v10606_v62 = vadd.f32 1.0, %v5998_v33  ;;  %5999 = vrcp.f32 %v10596_v18  ;;  %v13238_v58 = vld [vmem:[#allocation72_spill] sm:$0xff] }
 0x2aa   : > { %5611 = vmatmul.msk.bf16.vlgmr.msra.gmra.mxu3 %vm13220_vm13, %v4003_v3  ;;  %v3749_v0 = vsel %vm3748_vm6, %v5994_v15, %v3745_v34  ;;  %v3112_v41 = vmul.f32 %v13194_v47, %v13221_v24  ;;  %v10613_v52 = vmul.f32 %v13223_v63, %v13222_v48  ;;  %v10617_v46 = vmul.f32 %v13194_v47, %v13222_v48  ;;  %vm13241_vm8 = vmmov %vm13220_vm13 }
 0x2ab   : > { %v13225_v45 = vrot.slane %v13224_v2, 1  ;;  %v13227_v22 = vrot.slane %v13226_v53, 1  ;;  %vm13228_vm1 = vcmp.lt.s32.totalorder %v6369_v5, 7  ;;  %v3754_v36 = vsel %vm10563_vm7, %v3753_v8, %v3749_v0  ;;  %v13236_v8 = vld [vmem:[#allocation65_spill] sm:$0xff] }
 0x2ac   : > { %v10631_v23 = vadd.f32 %v13230_v31, %v13229_v43  ;;  %v10635_v13 = vmul.f32 %v13223_v63, %v13231_v56  ;;  %v3979_v37 = vmul.f32 %v3754_v36, %v10446_v21  ;;  %6001 = vrcp.f32 %v10606_v62  ;;  %v13233_v21 = vld [vmem:[#allocation70_spill] sm:$0xff]  ;;  %vm13240_vm12 = vmmov %vm13228_vm1 }
 0x2ad   : > { %v10625_v15 = vsel %vm13228_vm1, %v13227_v22, %v13225_v45  ;;  %v10641_v54 = vadd.f32 %v13232_v38, %v10422_v44  ;;  %v10645_v14 = vmul.f32 %v13194_v47, %v13231_v56  ;;  %v3978_v60 = vmul.f32 %v3739_v55, %v10443_v42  ;;  %v13235_v42 = vld [vmem:[#allocation80_spill] sm:$0xff]  ;;  %vm13244_vm11 = vmmov %vm13228_vm1  ;;  %v13262_v38 = vld [vmem:[#allocation41_spill] sm:$0xff] }
 0x2ae   : > { %v3394_v1 = vadd.f32 %v3366_v32, %v3337_v17  ;;  %v3795_v4 = vand.u32 2147483647, %v10596_v18  ;;  %v3797_v9 = vand.u32 2147483648, %v10596_v18  ;;  %v10651_v28 = vadd.f32 %v10440_v50, %v3393_v30 }
 0x2af   : > { %v3140_v57 = vadd.f32 %v3112_v41, %v13233_v21  ;;  %v4002_v61 = vpack.c.bf16 %v3979_v37, %v3978_v60  ;;  %vm3791_vm7 = vweird.f32 %v10596_v18  ;;  %v3810_v44 = vand.u32 2147483647, %v10606_v62  ;;  %v6000_v19 = vpop.eup %5999 }
 0x2b0   : > { %v10657_v40 = vadd.f32 %v10440_v50, %v3394_v1  ;;  %v3141_v29 = vadd.f32 %v13235_v42, %v13234_v12  ;;  %v5594_v6 = vmul.f32 -1.442695, %v10651_v28  ;;  %v13237_v11 = vrot.slane %v13236_v8, 1  ;;  %v13248_v12 = vld [vmem:[#allocation14_spill] sm:$0xff] }
 0x2b1   : > { %v13239_v49 = vrot.slane %v13238_v58, 1  ;;  %v3253_v25 = vmul.f32 %v13002_v7, %v10433_v10  ;;  %v3254_v34 = vmul.f32 %v13002_v7, %v10450_v16  ;;  %5610 = vmatmul.msk.bf16.gmra.mxu1 %vm13241_vm8, %v4002_v61  ;;  %v3787_v33 = vmul.f32 %v6000_v19, %v10596_v18 }
 0x2b2   : > { %v5595_v55 = vmul.f32 -1.442695, %v10657_v40  ;;  %v13243_v32 = vmov %v13237_v11  ;;  %vm13245_vm10 = vcmp.lt.s32.totalorder %v13078_v39, 15  ;;  %v6002_v0 = vpop.eup %6001  ;;  %6003 = vpow2.f32 %v5594_v6 }
 0x2b3   : > { %v3201_v3 = vsel %vm13240_vm12, %v13239_v49, %v13237_v11  ;;  %v13242_v17 = vmov %v13239_v49  ;;  %v3281_v16 = vadd.f32 %v3253_v25, %v3140_v57  ;;  %v3282_v24 = vadd.f32 %v3254_v34, %v3141_v29  ;;  %v13251_v25 = vld [vmem:[#allocation76_spill] sm:$0xff] }
 0x2b4   : > { %v10681_v30 = vsel %vm13244_vm11, %v13243_v32, %v13242_v17  ;;  %v10685_v10 = vsel %vm13245_vm10, %v3201_v3, 0.0  ;;  %v3310_v41 = vmul.f32 %v13077_v26, %v10555_v35  ;;  %v3788_v48 = vsub.f32 1.0, %v3787_v33  ;;  %v13253_v33 = vld [vmem:[#allocation85_spill] sm:$0xff] }
 0x2b5   : > { %v3802_v63 = vmul.f32 %v6002_v0, %v10606_v62  ;;  %v3812_v45 = vand.u32 2147483648, %v10606_v62  ;;  %6005 = vpow2.f32 %v5595_v55  ;;  %v3311_v22 = vmul.f32 %v13077_v26, %v10580_v59 }
 0x2b6   : > { %v3338_v36 = vadd.f32 %v3310_v41, %v3281_v16  ;;  %v3367_v43 = vmul.f32 %v10478_v27, %v10681_v30  ;;  %v3368_v31 = vmul.f32 %v10478_v27, %v10685_v10  ;;  %v3789_v56 = vmul.f32 %v6000_v19, %v3788_v48 }
 0x2b7   : > { %vm3792_vm3 = vweird.f32 %v6000_v19  ;;  %v3803_v37 = vsub.f32 1.0, %v3802_v63  ;;  %vm3806_vm6 = vweird.f32 %v10606_v62  ;;  %vm10698_vm13 = vcmp.eq.f32.partialorder %v3795_v4, 8.507059e+37  ;;  %v13257_v62 = vld [vmem:[#allocation40_spill] sm:$0xff] }
 0x2b8   : > { %v3798_v60 = vor.u32 1.1754944e-38, %v3797_v9  ;;  %v3339_v1 = vadd.f32 %v3311_v22, %v3282_v24  ;;  %v3395_v21 = vadd.f32 %v3367_v43, %v3338_v36  ;;  %v3790_v57 = vadd.f32 %v6000_v19, %v3789_v56  ;;  %v6004_v29 = vpop.eup %6003  ;;  %vm3793_vm12 = vmor %vm3791_vm7, %vm3792_vm3  ;;  %v13256_v24 = vld [vmem:[#allocation84_spill] sm:$0xff] }
 0x2b9   : > { %v3804_v61 = vmul.f32 %v6002_v0, %v3803_v37  ;;  %vm3807_vm1 = vweird.f32 %v6002_v0  ;;  %v3114_v42 = vmul.f32 %v13194_v47, %v13248_v12  ;;  %vm10706_vm8 = vcmp.eq.f32.partialorder %v3810_v44, 8.507059e+37  ;;  %vm13255_vm7 = vmmov %vm13244_vm11 }
 0x2ba   : > { %v3813_v4 = vor.u32 1.1754944e-38, %v3812_v45  ;;  %v3396_v8 = vadd.f32 %v3368_v31, %v3339_v1  ;;  %v10711_v9 = vadd.f32 %v10440_v50, %v3395_v21  ;;  %v3794_v58 = vsel %vm3793_vm12, %v6000_v19, %v3790_v57  ;;  %vm3808_vm11 = vmor %vm3806_vm6, %vm3807_vm1  ;;  %v13258_v45 = vld [vmem:[#allocation39_spill] sm:$0xff] }
 0x2bb   : > { %v6006_v11 = vpop.eup %6005  ;;  %v3805_v49 = vadd.f32 %v6002_v0, %v3804_v61  ;;  %v10713_v3 = vadd.f32 1.0, %v6004_v29  ;;  %v13252_v34 = vrot.slane %v13251_v25, 1  ;;  %v13254_v55 = vrot.slane %v13253_v33, 1  ;;  %vm13261_vm10 = vmmov %vm13255_vm7  ;;  %v13264_v29 = vld [vmem:[#allocation37_spill] sm:$0xff]  ;;  %v4064_v25 = vpop.f32.mrf.mxu1 }
 0x2bc   : > { %v3799_v44 = vsel %vm10698_vm13, %v3798_v60, %v3794_v58  ;;  %v10725_v17 = vadd.f32 1.0, %v6006_v11  ;;  %v10728_v19 = vadd.f32 %v10440_v50, %v3396_v8  ;;  %v5596_v32 = vmul.f32 -1.442695, %v10711_v9 }
 0x2bd   : > { %v3202_v18 = vsel %vm13255_vm7, %v13254_v55, %v13252_v34  ;;  %v3809_v16 = vsel %vm3808_vm11, %v6002_v0, %v3805_v49  ;;  %6007 = vrcp.f32 %v10713_v3  ;;  %v3142_v41 = vadd.f32 %v3114_v42, %v13256_v24 }
 0x2be   : > { %v3255_v48 = vmul.f32 %v13002_v7, %v10555_v35  ;;  %v3814_v63 = vsel %vm10706_vm8, %v3813_v4, %v3809_v16  ;;  %6009 = vrcp.f32 %v10725_v17  ;;  %v3143_v22 = vadd.f32 %v13258_v45, %v13257_v62 }
 0x2bf   : > { %v3256_v36 = vmul.f32 %v13002_v7, %v10580_v59  ;;  %v3982_v0 = vmul.f32 %v3799_v44, %v10519_v51  ;;  %v3983_v43 = vmul.f32 %v3814_v63, %v10535_v20  ;;  %v13259_v31 = vmov %v13254_v55 }
 0x2c0   : > { %v13260_v56 = vmov %v13252_v34  ;;  %v3312_v37 = vmul.f32 %v13077_v26, %v10681_v30  ;;  %v3088_v60 = vadd.f32 %v13262_v38, %v10631_v23  ;;  %6011 = vpow2.f32 %v5596_v32 }
 0x2c1   : > { %v10750_v35 = vsel %vm13261_vm10, %v13260_v56, %v13259_v31  ;;  %v5597_v59 = vmul.f32 -1.442695, %v10728_v19  ;;  %vm13263_vm3 = vcmp.lt.s32.totalorder %v13078_v39, 15  ;;  %v4004_v20 = vpack.c.bf16 %v3983_v43, %v3982_v0 }
 0x2c2   : > { %v10759_v51 = vsel %vm13263_vm3, %v3202_v18, 0.0  ;;  %v3825_v1 = vand.u32 2147483647, %v10713_v3  ;;  %v3827_v21 = vand.u32 2147483648, %v10713_v3  ;;  %v3283_v57 = vadd.f32 %v3255_v48, %v3142_v41  ;;  %v13268_v41 = vld [vmem:[#allocation66_spill] sm:$0xff] }
 0x2c3   : > { %6013 = vpow2.f32 %v5597_v59  ;;  %v3284_v61 = vadd.f32 %v3256_v36, %v3143_v22  ;;  %v3313_v12 = vmul.f32 %v13077_v26, %v10685_v10  ;;  %v3369_v23 = vmul.f32 %v10478_v27, %v10750_v35  ;;  %v6008_v42 = vpop.eup %6007 }
 0x2c4   : > { %v10769_v6 = vadd.f32 %v10635_v13, %v13264_v29  ;;  %vm13265_vm6 = vcmask 64512   ;;  %vm3821_vm13 = vweird.f32 %v10713_v3  ;;  %v3340_v4 = vadd.f32 %v3312_v37, %v3283_v57  ;;  %v6010_v11 = vpop.eup %6009 }
 0x2c5   : > { %5612 = vmatmul.msk.bf16.gmra.mxu3 %vm13265_vm6, %v4004_v20  ;;  %v3370_v8 = vmul.f32 %v10478_v27, %v10759_v51  ;;  %v3817_v58 = vmul.f32 %v6008_v42, %v10713_v3  ;;  %vm3836_vm1 = vweird.f32 %v10725_v17  ;;  %v3840_v49 = vand.u32 2147483647, %v10725_v17 }
 0x2c6   : > { %v3341_v34 = vadd.f32 %v3313_v12, %v3284_v61  ;;  %vm10778_vm12 = vcmp.eq.f32.partialorder %v3825_v1, 8.507059e+37  ;;  %v3832_v33 = vmul.f32 %v6010_v11, %v10725_v17  ;;  %v3842_v55 = vand.u32 2147483648, %v10725_v17  ;;  %v6012_v44 = vpop.eup %6011 }
 0x2c7   : > { %v3397_v18 = vadd.f32 %v3369_v23, %v3340_v4  ;;  %v3818_v32 = vsub.f32 1.0, %v3817_v58  ;;  %v3828_v16 = vor.u32 1.1754944e-38, %v3827_v21  ;;  %v3144_v48 = vadd.f32 %v10645_v14, %v13268_v41  ;;  %v4065_v21 = vpop.f32.mrf.mxu1 }
 0x2c8   : > { %v3398_v24 = vadd.f32 %v3370_v8, %v3341_v34  ;;  %v3833_v63 = vsub.f32 1.0, %v3832_v33  ;;  %v10786_v62 = vadd.f32 1.0, %v6012_v44  ;;  %v3257_v22 = vmul.f32 %v13002_v7, %v10681_v30 }
 0x2c9   : > { %v10789_v45 = vadd.f32 %v10440_v50, %v3397_v18  ;;  %v6014_v36 = vpop.eup %6013  ;;  %v3819_v0 = vmul.f32 %v6008_v42, %v3818_v32  ;;  %vm3822_vm8 = vweird.f32 %v6008_v42  ;;  %vm3837_vm7 = vweird.f32 %v6010_v11 }
 0x2ca   : > { %v3145_v43 = vadd.f32 %v10617_v46, %v3088_v60  ;;  %v3834_v31 = vmul.f32 %v6010_v11, %v3833_v63  ;;  %v10794_v56 = vadd.f32 1.0, %v6014_v36  ;;  %6015 = vrcp.f32 %v10786_v62  ;;  %vm3823_vm10 = vmor %vm3821_vm13, %vm3822_vm8 }
 0x2cb   : > { %v3258_v14 = vmul.f32 %v13002_v7, %v10685_v10  ;;  %v3820_v37 = vadd.f32 %v6008_v42, %v3819_v0  ;;  %vm10799_vm11 = vcmp.eq.f32.partialorder %v3840_v49, 8.507059e+37  ;;  %v10804_v30 = vadd.f32 %v10440_v50, %v3398_v24  ;;  %vm3838_vm3 = vmor %vm3836_vm1, %vm3837_vm7 }
 0x2cc   : > { %v5598_v59 = vmul.f32 -1.442695, %v10789_v45  ;;  %v3835_v46 = vadd.f32 %v6010_v11, %v3834_v31  ;;  %6017 = vrcp.f32 %v10794_v56  ;;  %v3285_v60 = vadd.f32 %v3257_v22, %v3144_v48 }
 0x2cd   : > { %v3314_v10 = vmul.f32 %v13077_v26, %v10750_v35  ;;  %v3824_v20 = vsel %vm3823_vm10, %v6008_v42, %v3820_v37  ;;  %v3843_v1 = vor.u32 1.1754944e-38, %v3842_v55  ;;  %v13271_v57 = vrot.slane %v13226_v53, 1 }
 0x2ce   : > { %v13272_v61 = vrot.slane %v13224_v2, 1  ;;  %vm13273_vm6 = vcmp.lt.s32.totalorder %v6369_v5, 7  ;;  %vm13274_vm13 = vcmp.lt.s32.totalorder %v13078_v39, 15  ;;  %v3829_v23 = vsel %vm10778_vm12, %v3828_v16, %v3824_v20 }
 0x2cf   : > { %v10824_v12 = vsel %vm13274_vm13, %v10625_v15, 0.0  ;;  %v3839_v42 = vsel %vm3838_vm3, %v6010_v11, %v3835_v46  ;;  %6019 = vpow2.f32 %v5598_v59  ;;  %v3286_v17 = vadd.f32 %v3258_v14, %v3145_v43 }
 0x2d0   : > { %v3189_v3 = vsel %vm13273_vm6, %v13272_v61, %v13271_v57  ;;  %v3090_v29 = vadd.f32 %v10613_v52, %v10641_v54  ;;  %v3844_v2 = vsel %vm10799_vm11, %v3843_v1, %v3839_v42  ;;  %v3984_v53 = vmul.f32 %v3829_v23, %v10651_v28  ;;  %v10834_v8 = vpop.eup %6015  ;;  %v4067_v57 = vpop.f32.mrf.mxu1 }
 0x2d1   : > { %v5599_v4 = vmul.f32 -1.442695, %v10804_v30  ;;  %v3985_v15 = vmul.f32 %v3844_v2, %v10657_v40  ;;  %vm3851_vm1 = vweird.f32 %v10786_v62  ;;  %v3315_v11 = vmul.f32 %v13077_v26, %v10759_v51 }
 0x2d2   : > { %v3342_v58 = vadd.f32 %v3314_v10, %v3285_v60  ;;  %v3371_v49 = vmul.f32 %v10478_v27, %v3189_v3  ;;  %v3847_v52 = vmul.f32 %v10834_v8, %v10786_v62  ;;  %v3857_v54 = vand.u32 2147483648, %v10786_v62  ;;  %v6018_v25 = vpop.eup %6017 }
 0x2d3   : > { %6021 = vpow2.f32 %v5599_v4  ;;  %v3372_v28 = vmul.f32 %v10478_v27, %v10824_v12  ;;  %v4005_v34 = vpack.c.bf16 %v3985_v15, %v3984_v53  ;;  %v3343_v40 = vadd.f32 %v3315_v11, %v3286_v17 }
 0x2d4   : > { %v3399_v13 = vadd.f32 %v3371_v49, %v3342_v58  ;;  %v3118_v33 = vmul.f32 0.0, %v13194_v47  ;;  %v3848_v55 = vsub.f32 1.0, %v3847_v52  ;;  %v3862_v18 = vmul.f32 %v6018_v25, %v10794_v56 }
 0x2d5   : > { %v3870_v44 = vand.u32 2147483647, %v10794_v56  ;;  %v3872_v32 = vand.u32 2147483648, %v10794_v56  ;;  %v6020_v16 = vpop.eup %6019  ;;  %vm13275_vm12 = vcmask 64512   ;;  %vm3852_vm8 = vweird.f32 %v10834_v8 }
 0x2d6   : > { %5613 = vmatmul.msk.bf16.gmra.mxu3 %vm13275_vm12, %v4005_v34  ;;  %v3400_v24 = vadd.f32 %v3372_v28, %v3343_v40  ;;  %v10853_v41 = vadd.f32 %v10440_v50, %v3399_v13  ;;  %v3259_v48 = vmul.f32 %v13002_v7, %v10750_v35  ;;  %v3849_v47 = vmul.f32 %v10834_v8, %v3848_v55  ;;  %vm10877_vm10 = vmor %vm3851_vm1, %vm3852_vm8 }
 0x2d7   : > { %v3863_v63 = vsub.f32 1.0, %v3862_v18  ;;  %v10858_v22 = vadd.f32 1.0, %v6020_v16  ;;  %v3146_v36 = vadd.f32 %v3118_v33, %v10769_v6  ;;  %v3147_v31 = vadd.f32 %v3118_v33, %v3090_v29  ;;  %vm13278_vm1 = vmmov %vm13275_vm12 }
 0x2d8   : > { %v10862_v0 = vadd.f32 %v10440_v50, %v3400_v24  ;;  %v5600_v43 = vmul.f32 -1.442695, %v10853_v41  ;;  %v3260_v14 = vmul.f32 %v13002_v7, %v10759_v51  ;;  %v3850_v38 = vadd.f32 %v10834_v8, %v3849_v47  ;;  %v4068_v34 = vpop.f32.mrf.mxu1 }
 0x2d9   : > { %v6022_v37 = vpop.eup %6021  ;;  %v3864_v35 = vmul.f32 %v6018_v25, %v3863_v63  ;;  %vm3867_vm7 = vweird.f32 %v6018_v25  ;;  %6023 = vrcp.f32 %v10858_v22  ;;  %v3855_v59 = vand.u32 2147483647, %v10786_v62 }
 0x2da   : > { %vm3866_vm11 = vweird.f32 %v10794_v56  ;;  %v10871_v6 = vadd.f32 1.0, %v6022_v37  ;;  %6025 = vpow2.f32 %v5600_v43  ;;  %v5601_v46 = vmul.f32 -1.442695, %v10862_v0 }
 0x2db   : > { %v3865_v51 = vadd.f32 %v6018_v25, %v3864_v35  ;;  %v3287_v60 = vadd.f32 %v3259_v48, %v3146_v36  ;;  %v3316_v10 = vmul.f32 %v13077_v26, %v3189_v3  ;;  %v3854_v56 = vsel %vm10877_vm10, %v10834_v8, %v3850_v38  ;;  %vm3868_vm3 = vmor %vm3866_vm11, %vm3867_vm7 }
 0x2dc   : > { %v3873_v20 = vor.u32 1.1754944e-38, %v3872_v32  ;;  %6027 = vrcp.f32 %v10871_v6  ;;  %v3288_v1 = vadd.f32 %v3260_v14, %v3147_v31  ;;  %v3858_v62 = vor.u32 1.1754944e-38, %v3857_v54 }
 0x2dd   : > { %v3869_v21 = vsel %vm3868_vm3, %v6018_v25, %v3865_v51  ;;  %vm3871_vm6 = vcmp.eq.f32.partialorder %v3870_v44, 8.507059e+37  ;;  %vm3856_vm13 = vcmp.eq.f32.partialorder %v3855_v59, 8.507059e+37  ;;  %6029 = vpow2.f32 %v5601_v46 }
 0x2de   : > { %v3874_v61 = vsel %vm3871_vm6, %v3873_v20, %v3869_v21  ;;  %v3317_v23 = vmul.f32 %v13077_v26, %v10824_v12  ;;  %v3859_v42 = vsel %vm3856_vm13, %v3858_v62, %v3854_v56  ;;  %v3344_v17 = vadd.f32 %v3316_v10, %v3287_v60 }
 0x2df   : > { %v6024_v3 = vpop.eup %6023  ;;  %v3373_v29 = vmul.f32 0.0, %v10478_v27  ;;  %v3987_v53 = vmul.f32 %v3874_v61, %v10728_v19  ;;  %v3986_v49 = vmul.f32 %v3859_v42, %v10711_v9  ;;  %v3900_v9 = vand.u32 2147483647, %v10871_v6 }
 0x2e0   : > { %v6026_v2 = vpop.eup %6025  ;;  %v3877_v4 = vmul.f32 %v6024_v3, %v10858_v22  ;;  %v3345_v8 = vadd.f32 %v3317_v23, %v3288_v1  ;;  %v3902_v18 = vand.u32 2147483648, %v10871_v6  ;;  %vm3882_vm8 = vweird.f32 %v6024_v3 }
 0x2e1   : > { %v10892_v15 = vadd.f32 1.0, %v6026_v2  ;;  %v3401_v11 = vadd.f32 %v3373_v29, %v3344_v17  ;;  %v4006_v27 = vpack.c.bf16 %v3987_v53, %v3986_v49  ;;  %vm3896_vm7 = vweird.f32 %v10871_v6 }
 0x2e2   : > { %v6028_v58 = vpop.eup %6027  ;;  %v3878_v52 = vsub.f32 1.0, %v3877_v4  ;;  %v3402_v54 = vadd.f32 %v3373_v29, %v3345_v8  ;;  %vm3881_vm11 = vweird.f32 %v10858_v22  ;;  %v3885_v48 = vand.u32 2147483647, %v10858_v22  ;;  %v10943_v29 = vld [vmem:[%s12497_s10] ss:$0 sm:$0xff] }
 0x2e3   : > { %v3892_v26 = vmul.f32 %v6028_v58, %v10871_v6  ;;  %6031 = vrcp.f32 %v10892_v15  ;;  %v6030_v12 = vpop.eup %6029  ;;  %v10898_v19 = vadd.f32 %v10440_v50, %v3401_v11  ;;  %vm3897_vm12 = vweird.f32 %v6028_v58  ;;  %vm3883_vm3 = vmor %vm3881_vm11, %vm3882_vm8 }
 0x2e4   : > { %v3879_v28 = vmul.f32 %v6024_v3, %v3878_v52  ;;  %v10900_v40 = vadd.f32 1.0, %v6030_v12  ;;  %v10903_v13 = vadd.f32 %v10440_v50, %v3402_v54  ;;  %v3887_v50 = vand.u32 2147483648, %v10858_v22  ;;  %vm3898_vm10 = vmor %vm3896_vm7, %vm3897_vm12 }
 0x2e5   : > { %v3893_v25 = vsub.f32 1.0, %v3892_v26  ;;  %v5602_v33 = vmul.f32 -1.442695, %v10898_v19  ;;  %v3903_v63 = vor.u32 1.1754944e-38, %v3902_v18  ;;  %vm3901_vm6 = vcmp.eq.f32.partialorder %v3900_v9, 8.507059e+37  ;;  %v4070_v20 = vpop.f32.mrf.mxu1 }
 0x2e6   : > { %5614 = vmatmul.msk.bf16.gmra.mxu3 %vm13278_vm1, %v4006_v27  ;;  %6033 = vrcp.f32 %v10900_v40  ;;  %v3880_v44 = vadd.f32 %v6024_v3, %v3879_v28  ;;  %v5603_v32 = vmul.f32 -1.442695, %v10903_v13  ;;  %v3888_v14 = vor.u32 1.1754944e-38, %v3887_v50 }
 0x2e7   : > { %v3894_v55 = vmul.f32 %v6028_v58, %v3893_v25  ;;  %6035 = vpow2.f32 %v5602_v33  ;;  %vm3886_vm13 = vcmp.eq.f32.partialorder %v3885_v48, 8.507059e+37  ;;  %vm3926_vm7 = vweird.f32 %v10900_v40 }
 0x2e8   : > { %6037 = vpow2.f32 %v5603_v32  ;;  %v3884_v36 = vsel %vm3883_vm3, %v6024_v3, %v3880_v44  ;;  %v3917_v23 = vand.u32 2147483648, %v10892_v15  ;;  %v3915_v42 = vand.u32 2147483647, %v10892_v15 }
 0x2e9   : > { %v10911_v16 = vpop.eup %6031  ;;  %v3895_v24 = vadd.f32 %v6028_v58, %v3894_v55  ;;  %v3889_v59 = vsel %vm3886_vm13, %v3888_v14, %v3884_v36  ;;  %v10950_v52 = vadd.f32 %v10943_v29, %v4070_v20 }
 0x2ea   : > { %v3907_v43 = vmul.f32 %v10911_v16, %v10892_v15  ;;  %v3988_v60 = vmul.f32 %v3889_v59, %v10789_v45  ;;  %vm3912_vm8 = vweird.f32 %v10911_v16  ;;  %v3930_v45 = vand.u32 2147483647, %v10900_v40 }
 0x2eb   : > { %v3899_v47 = vsel %vm3898_vm10, %v6028_v58, %v3895_v24  ;;  %vm3911_vm10 = vweird.f32 %v10892_v15  ;;  %v3918_v58 = vor.u32 1.1754944e-38, %v3917_v23  ;;  %vm3916_vm13 = vcmp.eq.f32.partialorder %v3915_v42, 8.507059e+37 }
 0x2ec   : > { %v6034_v31 = vpop.eup %6033  ;;  %v3904_v37 = vsel %vm3901_vm6, %v3903_v63, %v3899_v47  ;;  %v3908_v7 = vsub.f32 1.0, %v3907_v43  ;;  %vm3913_vm3 = vmor %vm3911_vm10, %vm3912_vm8  ;;  %vm3931_vm6 = vcmp.eq.f32.partialorder %v3930_v45, 8.507059e+37  ;;  %v5618_v34 = vmul.f32 -1.442695, %v10950_v52 }
 0x2ed   : > { %v6036_v38 = vpop.eup %6035  ;;  %v3922_v35 = vmul.f32 %v6034_v31, %v10900_v40  ;;  %v3989_v22 = vmul.f32 %v3904_v37, %v10804_v30  ;;  %vm3927_vm12 = vweird.f32 %v6034_v31  ;;  %v3932_v30 = vand.u32 2147483648, %v10900_v40  ;;  %v4072_v53 = vpop.f32.mrf.mxu1 }
 0x2ee   : > { %v10920_v6 = vadd.f32 1.0, %v6036_v38  ;;  %v6038_v46 = vpop.eup %6037  ;;  %v3909_v62 = vmul.f32 %v10911_v16, %v3908_v7  ;;  %vm3928_vm11 = vmor %vm3926_vm7, %vm3927_vm12  ;;  %v10954_v27 = vadd.f32 %v10943_v29, %v4072_v53  ;;  %vm13279_vm8 = vcmask 64512  }
 0x2ef   : > { %v3923_v51 = vsub.f32 1.0, %v3922_v35  ;;  %v10924_v56 = vadd.f32 1.0, %v6038_v46  ;;  %v4007_v1 = vpack.c.bf16 %v3989_v22, %v3988_v60  ;;  %v3933_v2 = vor.u32 1.1754944e-38, %v3932_v30 }
 0x2f0   : > { %6039 = vrcp.f32 %v10920_v6  ;;  %v3910_v57 = vadd.f32 %v10911_v16, %v3909_v62  ;;  %vm3941_vm7 = vweird.f32 %v10920_v6  ;;  %v3945_v48 = vand.u32 2147483647, %v10920_v6 }
 0x2f1   : > { %v3924_v10 = vmul.f32 %v6034_v31, %v3923_v51  ;;  %6041 = vrcp.f32 %v10924_v56  ;;  %v3962_v18 = vand.u32 2147483648, %v10924_v56  ;;  %v3960_v44 = vand.u32 2147483647, %v10924_v56 }
 0x2f2   : > { %v3914_v8 = vsel %vm3913_vm3, %v10911_v16, %v3910_v57  ;;  %v3947_v16 = vand.u32 2147483648, %v10920_v6  ;;  %6043 = vpow2.f32 %v5618_v34 }
 0x2f3   : > { %v3925_v21 = vadd.f32 %v6034_v31, %v3924_v10  ;;  %v3919_v54 = vsel %vm3916_vm13, %v3918_v58, %v3914_v8  ;;  %v3963_v47 = vor.u32 1.1754944e-38, %v3962_v18  ;;  %vm3946_vm13 = vcmp.eq.f32.partialorder %v3945_v48, 8.507059e+37 }
 0x2f4   : > { %v3990_v28 = vmul.f32 %v3919_v54, %v10853_v41  ;;  %v3948_v36 = vor.u32 1.1754944e-38, %v3947_v16 }
 0x2f5   : > { %v3929_v17 = vsel %vm3928_vm11, %v6034_v31, %v3925_v21 }
 0x2f6   : > { %5615 = vmatmul.msk.bf16.gmra.mxu3 %vm13278_vm1, %v4007_v1  ;;  %v10935_v61 = vpop.eup %6039  ;;  %v3934_v49 = vsel %vm3931_vm6, %v3933_v2, %v3929_v17  ;;  %vm3956_vm1 = vweird.f32 %v10924_v56  ;;  %vm3961_vm6 = vcmp.eq.f32.partialorder %v3960_v44, 8.507059e+37 }
 0x2f7   : > { %v6042_v3 = vpop.eup %6041  ;;  %v3937_v11 = vmul.f32 %v10935_v61, %v10920_v6  ;;  %v3991_v26 = vmul.f32 %v3934_v49, %v10862_v0  ;;  %v5619_v0 = vmul.f32 -1.442695, %v10954_v27  ;;  %vm3942_vm11 = vweird.f32 %v10935_v61 }
 0x2f8   : > { %v3952_v4 = vmul.f32 %v6042_v3, %v10924_v56  ;;  %v4075_v40 = vpop.f32.mrf.mxu1  ;;  %vm3957_vm12 = vweird.f32 %v6042_v3  ;;  %vm3943_vm3 = vmor %vm3941_vm7, %vm3942_vm11  ;;  %v6044_v38 = vpop.eup %6043 }
 0x2f9   : > { %v3938_v12 = vsub.f32 1.0, %v3937_v11  ;;  %v4008_v9 = vpack.c.bf16 %v3991_v26, %v3990_v28  ;;  %v10960_v33 = vadd.f32 %v10943_v29, %v4075_v40  ;;  %vm10971_vm10 = vmor %vm3956_vm1, %vm3957_vm12  ;;  %6045 = vpow2.f32 %v5619_v0 }
 0x2fa   : > { %v3953_v15 = vsub.f32 1.0, %v3952_v4  ;;  %v4209_v51 = vadd.f32 1.0, %v6044_v38  ;;  %vm13282_vm1 = vmmov %vm13279_vm8 }
 0x2fb   : > { %v3939_v55 = vmul.f32 %v10935_v61, %v3938_v12  ;;  %v5620_v32 = vmul.f32 -1.442695, %v10960_v33 }
 0x2fc   : > { %v3954_v25 = vmul.f32 %v6042_v3, %v3953_v15  ;;  %v4238_v12 = vand.u32 2147483647, %v4209_v51  ;;  %v4240_v28 = vand.u32 2147483648, %v4209_v51  ;;  %vm4234_vm12 = vweird.f32 %v4209_v51 }
 0x2fd   : > { %v3940_v24 = vadd.f32 %v10935_v61, %v3939_v55  ;;  %6047 = vpow2.f32 %v5620_v32 }
 0x2fe   : > { %v3955_v41 = vadd.f32 %v6042_v3, %v3954_v25  ;;  %vm11027_vm11 = vcmp.eq.f32.partialorder %v4238_v12, 8.507059e+37  ;;  %v4241_v32 = vor.u32 1.1754944e-38, %v4240_v28 }
 0x2ff   : > { %v3944_v31 = vsel %vm3943_vm3, %v10935_v61, %v3940_v24  ;;  %v6046_v59 = vpop.eup %6045 }
 0x300   : > { %v3959_v63 = vsel %vm10971_vm10, %v6042_v3, %v3955_v41  ;;  %v4077_v43 = vpop.f32.mrf.mxu1  ;;  %v3949_v6 = vsel %vm3946_vm13, %v3948_v36, %v3944_v31  ;;  %v4210_v46 = vadd.f32 1.0, %v6046_v59 }
 0x301   : > { %v10981_v14 = vadd.f32 %v10943_v29, %v4077_v43  ;;  %v3964_v37 = vsel %vm3961_vm6, %v3963_v47, %v3959_v63  ;;  %v3992_v60 = vmul.f32 %v3949_v6, %v10898_v19 }
 0x302   : > { %v3993_v22 = vmul.f32 %v3964_v37, %v10903_v13  ;;  %v4253_v25 = vand.u32 2147483647, %v4210_v46  ;;  %v4255_v34 = vand.u32 2147483648, %v4210_v46  ;;  %vm4249_vm10 = vweird.f32 %v4210_v46 }
 0x303   : > { %v5621_v35 = vmul.f32 -1.442695, %v10981_v14  ;;  %v6048_v7 = vpop.eup %6047 }
 0x304   : > { %v10986_v56 = vadd.f32 1.0, %v6048_v7  ;;  %v4009_v20 = vpack.c.bf16 %v3993_v22, %v3992_v60  ;;  %vm11031_vm3 = vcmp.eq.f32.partialorder %v4253_v25, 8.507059e+37  ;;  %v4256_v48 = vor.u32 1.1754944e-38, %v4255_v34 }
 0x305   : > { %6049 = vpow2.f32 %v5621_v35 }
 0x306   : > { %5616 = vmatmul.msk.bf16.gmra.mxu3 %vm13279_vm8, %v4008_v9  ;;  %6051 = vrcp.f32 %v4209_v51  ;;  %vm4264_vm14 = vweird.f32 %v10986_v56  ;;  %v4268_v31 = vand.u32 2147483647, %v10986_v56  ;;  %v4270_v37 = vand.u32 2147483648, %v10986_v56 }
 0x307   : > { %6053 = vrcp.f32 %v4210_v46 }
 0x308   : > { %6055 = vrcp.f32 %v10986_v56 }
 0x30a   : > { %v4080_v10 = vpop.f32.mrf.mxu1 }
 0x30b   : > { %v10989_v1 = vadd.f32 %v10943_v29, %v4080_v10  ;;  %v6050_v62 = vpop.eup %6049 }
 0x30c   : > { %v10993_v21 = vadd.f32 1.0, %v6050_v62  ;;  %v10997_v19 = vpop.eup %6051  ;;  %v4271_v62 = vor.u32 1.1754944e-38, %v4270_v37 }
 0x30d   : > { %v5622_v13 = vmul.f32 -1.442695, %v10989_v1  ;;  %v10999_v30 = vpop.eup %6053  ;;  %v4230_v45 = vmul.f32 %v10997_v19, %v4209_v51  ;;  %vm4235_vm8 = vweird.f32 %v10997_v19 }
 0x30e   : > { %v11001_v57 = vpop.eup %6055  ;;  %v4245_v23 = vmul.f32 %v10999_v30, %v4210_v46  ;;  %vm4250_vm7 = vweird.f32 %v10999_v30  ;;  %vm11035_vm6 = vmor %vm4234_vm12, %vm4235_vm8  ;;  %v4285_v22 = vand.u32 2147483648, %v10993_v21  ;;  %v4283_v60 = vand.u32 2147483647, %v10993_v21 }
 0x30f   : > { %6057 = vpow2.f32 %v5622_v13  ;;  %v4260_v17 = vmul.f32 %v11001_v57, %v10986_v56  ;;  %v4231_v2 = vsub.f32 1.0, %v4230_v45  ;;  %vm4265_vm13 = vweird.f32 %v11001_v57 }
 0x310   : > { %6059 = vrcp.f32 %v10993_v21  ;;  %v4246_v8 = vsub.f32 1.0, %v4245_v23  ;;  %vm11056_vm8 = vmor %vm4264_vm14, %vm4265_vm13 }
 0x311   : > { %v4261_v58 = vsub.f32 1.0, %v4260_v17  ;;  %v4232_v15 = vmul.f32 %v10997_v19, %v4231_v2  ;;  %v4569_v2 = vld [vmem:[%s12498_s11] sm:$0xff] }
 0x312   : > { %v4082_v42 = vpop.f32.mrf.mxu1  ;;  %v4247_v54 = vmul.f32 %v10999_v30, %v4246_v8  ;;  %v11098_v28 = vperm.slane %v4569_v2, 7  ;;  %v11120_v24 = vperm.slane %v4569_v2, 2 }
 0x313   : > { %v11012_v4 = vadd.f32 %v10943_v29, %v4082_v42  ;;  %v4262_v40 = vmul.f32 %v11001_v57, %v4261_v58  ;;  %v4233_v55 = vadd.f32 %v10997_v19, %v4232_v15 }
 0x314   : > { %v4248_v0 = vadd.f32 %v10999_v30, %v4247_v54  ;;  %13299 = vst [vmem:[#allocation16_spill] sm:$0xff] %v11120_v24 }
 0x315   : > { %v6058_v61 = vpop.eup %6057  ;;  %v5623_v49 = vmul.f32 -1.442695, %v11012_v4  ;;  %v4263_v47 = vadd.f32 %v11001_v57, %v4262_v40  ;;  %v4237_v36 = vsel %vm11035_vm6, %v10997_v19, %v4233_v55  ;;  %vm4269_vm6 = vcmp.eq.f32.partialorder %v4268_v31, 8.507059e+37 }
 0x316   : > { %5617 = vmatmul.msk.bf16.gmra.mxu3 %vm13282_vm1, %v4009_v20  ;;  %v11005_v3 = vpop.eup %6059  ;;  %v11009_v53 = vadd.f32 1.0, %v6058_v61  ;;  %vm11044_vm1 = vmor %vm4249_vm10, %vm4250_vm7  ;;  %vm4279_vm7 = vweird.f32 %v10993_v21  ;;  %v4242_v56 = vsel %vm11027_vm11, %v4241_v32, %v4237_v36  ;;  %vm4284_vm11 = vcmp.eq.f32.partialorder %v4283_v60, 8.507059e+37 }
 0x317   : > { %v4275_v11 = vmul.f32 %v11005_v3, %v10993_v21  ;;  %v4252_v38 = vsel %vm11044_vm1, %v10999_v30, %v4248_v0  ;;  %vm4280_vm12 = vweird.f32 %v11005_v3  ;;  %v4267_v46 = vsel %vm11056_vm8, %v11001_v57, %v4263_v47 }
 0x318   : > { %6061 = vrcp.f32 %v11009_v53  ;;  %v4300_v7 = vand.u32 2147483648, %v11009_v53  ;;  %v4298_v10 = vand.u32 2147483647, %v11009_v53  ;;  %v4257_v20 = vsel %vm11031_vm3, %v4256_v48, %v4252_v38  ;;  %vm4281_vm14 = vmor %vm4279_vm7, %vm4280_vm12 }
 0x319   : > { %v4276_v26 = vsub.f32 1.0, %v4275_v11  ;;  %6063 = vpow2.f32 %v5623_v49  ;;  %vm4294_vm13 = vweird.f32 %v11009_v53  ;;  %v4272_v30 = vsel %vm4269_vm6, %v4271_v62, %v4267_v46 }
 0x31a   : > { %v4286_v57 = vor.u32 1.1754944e-38, %v4285_v22  ;;  %v4301_v21 = vor.u32 1.1754944e-38, %v4300_v7  ;;  %v4530_v45 = vmul.f32 %v4257_v20, %v10954_v27  ;;  %vm4299_vm8 = vcmp.eq.f32.partialorder %v4298_v10, 8.507059e+37 }
 0x31b   : > { %v4277_v18 = vmul.f32 %v11005_v3, %v4276_v26  ;;  %v4529_v17 = vmul.f32 %v4242_v56, %v10950_v52  ;;  %v11087_v49 = vperm.slane %v4569_v2, 4  ;;  %v11096_v26 = vperm.slane %v4569_v2, 1 }
 0x31c   : > { %v4550_v8 = vsel %vm8496_vm9, %v4530_v45, 0.0  ;;  %v11124_v36 = vperm.slane %v4569_v2, 3  ;;  %vm13301_vm7 = vcmp.gt.s32.totalorder %v6369_v5, 0  ;;  %v11140_v62 = vperm.slane %v4569_v2, 6 }
 0x31d   : > { %v4278_v35 = vadd.f32 %v11005_v3, %v4277_v18  ;;  %v4549_v15 = vsel %vm8496_vm9, %v4529_v17, 0.0  ;;  %13295 = vst [vmem:[#allocation18_spill] sm:$0xff] %v11096_v26  ;;  %v4681_v12 = vrot.slane %v4550_v8, 7  ;;  %v4840_v46 = vrot.slane %v4550_v8, 1 }
 0x31e   : > { %v6062_v9 = vpop.eup %6061  ;;  %v4671_v40 = vrot.slane %v4549_v15, 7  ;;  %13300 = vst [vmem:[#allocation33_spill] sm:$0xff] %v11124_v36  ;;  %v4830_v7 = vrot.slane %v4549_v15, 1 }
 0x31f   : > { %v4290_v41 = vmul.f32 %v6062_v9, %v11009_v53  ;;  %v6064_v50 = vpop.eup %6063  ;;  %vm4295_vm10 = vweird.f32 %v6062_v9  ;;  %v4282_v13 = vsel %vm4281_vm14, %v11005_v3, %v4278_v35  ;;  %v4531_v3 = vmul.f32 %v4272_v30, %v10960_v33 }
 0x320   : > { %v11063_v51 = vadd.f32 1.0, %v6064_v50  ;;  %vm4296_vm1 = vmor %vm4294_vm13, %vm4295_vm10  ;;  %v4287_v23 = vsel %vm4284_vm11, %v4286_v57, %v4282_v13  ;;  %v11118_v50 = vperm.slane %v4569_v2, 0  ;;  %vm13307_vm11 = vcmp.lt.s32.totalorder %v6369_v5, 7 }
 0x321   : > { %v4291_v63 = vsub.f32 1.0, %v4290_v41  ;;  %v4532_v11 = vmul.f32 %v4287_v23, %v10981_v14  ;;  %v11093_v33 = vsel %vm8846_vm0, %v4531_v3, 0.0  ;;  %v4573_v41 = vmul.f32 %v11096_v26, %v4549_v15 }
 0x322   : > { %6065 = vrcp.f32 %v11063_v51  ;;  %v4315_v55 = vand.u32 2147483648, %v11063_v51  ;;  %v4313_v18 = vand.u32 2147483647, %v11063_v51  ;;  %13298 = vst [vmem:[#allocation54_spill] sm:$0xff] %v11118_v50  ;;  %vm4309_vm3 = vweird.f32 %v11063_v51 }
 0x323   : > { %v4292_v59 = vmul.f32 %v6062_v9, %v4291_v63  ;;  %v11102_v14 = vsel %vm8846_vm0, %v4532_v11, 0.0  ;;  %vm13297_vm0 = vcmp.lt.s32.totalorder %v6369_v5, 1  ;;  %v4672_v63 = vrot.slane %v11093_v33, 7 }
 0x324   : > { %v4701_v44 = vsel %vm13297_vm0, %v4681_v12, %v4671_v40  ;;  %v4682_v32 = vrot.slane %v11102_v14, 7  ;;  %v4316_v43 = vor.u32 1.1754944e-38, %v4315_v55  ;;  %v4607_v37 = vmul.f32 %v11087_v49, %v11102_v14  ;;  %vm13302_vm14 = vmmov %vm13297_vm0 }
 0x325   : > { %v4293_v19 = vadd.f32 %v6062_v9, %v4292_v59  ;;  %v4711_v31 = vsel %vm13301_vm7, %v4701_v44, 0.0  ;;  %vm4314_vm10 = vcmp.eq.f32.partialorder %v4313_v18, 8.507059e+37  ;;  %v11132_v59 = vperm.slane %v4569_v2, 5  ;;  %vm13304_vm6 = vmmov %vm13297_vm0 }
 0x326   : > { %v4702_v35 = vsel %vm13302_vm14, %v4682_v32, %v4672_v63  ;;  %v4691_v10 = vsel %vm13304_vm6, %v4671_v40, %v4681_v12  ;;  %v4732_v56 = vmul.f32 %v11118_v50, %v4711_v31  ;;  %v4841_v20 = vrot.slane %v11102_v14, 1  ;;  %vm13305_vm13 = vmmov %vm13297_vm0 }
 0x327   : > { %v4297_v61 = vsel %vm4296_vm1, %v6062_v9, %v4293_v19  ;;  %v4606_v9 = vmul.f32 %v11087_v49, %v11093_v33  ;;  %13303 = vst [vmem:[#allocation58_spill] sm:$0xff] %v11132_v59  ;;  %v11144_v19 = vsel %vm13305_vm13, %v4672_v63, %v4682_v32  ;;  %vm13306_vm1 = vmmov %vm13301_vm7  ;;  %v4733_v23 = vmul.f32 %v11118_v50, %v4691_v10  ;;  %v11198_v32 = vld [vmem:[%s12498_s11 + $0x8] ss:$0 sm:$0xff] }
 0x328   : > { %v4302_v42 = vsel %vm4299_vm8, %v4301_v21, %v4297_v61  ;;  %v6066_v58 = vpop.eup %6065  ;;  %v11148_v30 = vsel %vm13306_vm1, %v4702_v35, 0.0  ;;  %vm13308_vm8 = vmmov %vm13307_vm11  ;;  %v4831_v3 = vrot.slane %v11093_v33, 1 }
 0x329   : > { %v4533_v27 = vmul.f32 %v4302_v42, %v10989_v1  ;;  %v4305_v54 = vmul.f32 %v6066_v58, %v11063_v51  ;;  %vm4310_vm9 = vweird.f32 %v6066_v58  ;;  %v4622_v47 = vadd.f32 %v4606_v9, %v4573_v41  ;;  %vm13313_vm7 = vmmov %vm13308_vm8 }
 0x32a   : > { %vm4311_vm12 = vmor %vm4309_vm3, %vm4310_vm9  ;;  %v4574_v51 = vmul.f32 %v11096_v26, %v4550_v8  ;;  %v4850_v42 = vsel %vm13307_vm11, %v4830_v7, %v4840_v46  ;;  %v4860_v17 = vsel %vm13308_vm8, %v4840_v46, %v4830_v7  ;;  %v4765_v2 = vmul.f32 %v11124_v36, %v11148_v30  ;;  %v11222_v7 = vld [vmem:[%s12499_s12] ss:$0 sm:$0xff] }
 0x32b   : > { %v11106_v25 = vsel %vm9092_vm4, %v4533_v27, 0.0  ;;  %v4306_v34 = vsub.f32 1.0, %v4305_v54  ;;  %v4766_v27 = vmul.f32 %v11124_v36, %v11144_v19  ;;  %vm13310_vm9 = vmmov %vm13308_vm8  ;;  %v4891_v9 = vmul.f32 %v11120_v24, %v4850_v42  ;;  %13318 = vst [vmem:[#allocation57_spill] sm:$0xff] %v11222_v7 }
 0x32c   : > { %v4639_v16 = vmul.f32 %v11098_v28, %v11106_v25  ;;  %v4623_v13 = vadd.f32 %v4607_v37, %v4574_v51  ;;  %v4673_v57 = vrot.slane %v11106_v25, 7  ;;  %vm13311_vm3 = vmmov %vm13306_vm1  ;;  %v4832_v12 = vrot.slane %v11106_v25, 1 }
 0x32d   : > { %v4307_v0 = vmul.f32 %v6066_v58, %v4306_v34  ;;  %v11189_v55 = vsel %vm13313_vm7, %v4831_v3, %v4841_v20  ;;  %vm13316_vm6 = vmmov %vm13313_vm7 }
 0x32e   : > { %v4655_v6 = vadd.f32 %v4639_v16, %v4622_v47  ;;  %v4924_v63 = vmul.f32 %v11132_v59, %v11189_v55 }
 0x32f   : > { %v4308_v48 = vadd.f32 %v6066_v58, %v4307_v0 }
 0x330   : > { %v4748_v21 = vadd.f32 %v4732_v56, %v4655_v6 }
 0x331   : > { %v4312_v38 = vsel %vm4311_vm12, %v6066_v58, %v4308_v48  ;;  %v4861_v58 = vsel %vm13310_vm9, %v4841_v20, %v4831_v3  ;;  %vm13312_vm12 = vcmp.lt.s32.totalorder %v13078_v39, 15 }
 0x332   : > { %v4317_v22 = vsel %vm4314_vm10, %v4316_v43, %v4312_v38  ;;  %v4781_v54 = vadd.f32 %v4765_v2, %v4748_v21  ;;  %v4871_v40 = vsel %vm13312_vm12, %v4860_v17, 0.0  ;;  %vm13314_vm10 = vmmov %vm13313_vm7  ;;  %v4085_v21 = vpop.f32.mrf.mxu1 }
 0x333   : > { %v4534_v60 = vmul.f32 %v4317_v22, %v11012_v4  ;;  %vm13315_vm14 = vmmov %vm13312_vm12  ;;  %v4892_v47 = vmul.f32 %v11120_v24, %v4871_v40 }
 0x334   : > { %v11202_v16 = vsel %vm13315_vm14, %v4861_v58, 0.0  ;;  %vm13317_vm13 = vmmov %vm13312_vm12  ;;  %v4095_v58 = vpop.f32.mrf.mxu3 }
 0x335   : > { %v11152_v4 = vsel %vm9092_vm4, %v4534_v60, 0.0  ;;  %vm13309_vm4 = vmmov %vm13297_vm0  ;;  %v4925_v38 = vmul.f32 %v11132_v59, %v11202_v16 }
 0x336   : > { %v4640_v45 = vmul.f32 %v11098_v28, %v11152_v4  ;;  %v4683_v61 = vrot.slane %v11152_v4, 7  ;;  %v4842_v11 = vrot.slane %v11152_v4, 1 }
 0x338   : > { %v4656_v53 = vadd.f32 %v4640_v45, %v4623_v13  ;;  %v4703_v8 = vsel %vm13309_vm4, %v4683_v61, %v4673_v57  ;;  %v11175_v15 = vsel %vm13297_vm0, %v4673_v57, %v4683_v61  ;;  %v4862_v44 = vsel %vm13314_vm10, %v4842_v11, %v4832_v12 }
 0x339   : > { %v11179_v52 = vsel %vm13311_vm3, %v4703_v8, 0.0  ;;  %v4799_v18 = vmul.f32 %v11140_v62, %v11175_v15  ;;  %v11206_v48 = vsel %vm13316_vm6, %v4832_v12, %v4842_v11  ;;  %v11213_v37 = vsel %vm13317_vm13, %v4862_v44, 0.0 }
 0x33a   : > { %v4749_v1 = vadd.f32 %v4733_v23, %v4656_v53  ;;  %v4798_v34 = vmul.f32 %v11140_v62, %v11179_v52  ;;  %v4957_v22 = vmul.f32 %v11198_v32, %v11206_v48  ;;  %v4958_v46 = vmul.f32 %v11198_v32, %v11213_v37  ;;  %v4087_v3 = vpop.f32.mrf.mxu1 }
 0x33b   : > { %v11235_v45 = vadd.f32 %v10943_v29, %v4085_v21  ;;  %v11239_v53 = vadd.f32 %v10943_v29, %v4087_v3  ;;  %v11246_v12 = vadd.f32 %v10943_v29, %v4095_v58  ;;  %vm13323_vm13 = vcmask 64512  }
 0x33c   : > { %v4782_v0 = vadd.f32 %v4766_v27, %v4749_v1  ;;  %v4814_v41 = vadd.f32 %v4798_v34, %v4781_v54  ;;  %v4608_v21 = vmul.f32 %v11087_v49, %v11106_v25 }
 0x33d   : > { %v5624_v61 = vmul.f32 -1.442695, %v11235_v45  ;;  %v5625_v27 = vmul.f32 -1.442695, %v11239_v53 }
 0x33e   : > { %v4815_v43 = vadd.f32 %v4799_v18, %v4782_v0  ;;  %v4907_v31 = vadd.f32 %v4891_v9, %v4814_v41  ;;  %v5628_v0 = vmul.f32 -1.442695, %v11246_v12 }
 0x340   : > { %v4908_v35 = vadd.f32 %v4892_v47, %v4815_v43  ;;  %v4940_v6 = vadd.f32 %v4924_v63, %v4907_v31 }
 0x342   : > { %v4941_v51 = vadd.f32 %v4925_v38, %v4908_v35  ;;  %v4973_v60 = vadd.f32 %v4957_v22, %v4940_v6 }
 0x344   : > { %v4974_v10 = vadd.f32 %v4958_v46, %v4941_v51  ;;  %v11227_v56 = vadd.f32 %v11222_v7, %v4973_v60  ;;  %v4090_v51 = vpop.f32.mrf.mxu1 }
 0x346   : > { %v11230_v20 = vadd.f32 %v11222_v7, %v4974_v10  ;;  %v5638_v13 = vmul.f32 -1.442695, %v11227_v56 }
 0x348   : > { %6067 = vpow2.f32 %v5638_v13  ;;  %v5639_v57 = vmul.f32 -1.442695, %v11230_v20  ;;  %v11257_v13 = vadd.f32 %v10943_v29, %v4090_v51 }
 0x34a   : > { %6069 = vpow2.f32 %v5639_v57  ;;  %v4097_v57 = vpop.f32.mrf.mxu3 }
 0x34b   : > { %6071 = vpow2.f32 %v5624_v61 }
 0x34e   : > { %v6068_v23 = vpop.eup %6067 }
 0x34f   : > { %v5056_v42 = vadd.f32 1.0, %v6068_v23 }
 0x350   : > { %v6070_v17 = vpop.eup %6069 }
 0x351   : > { %v5057_v2 = vadd.f32 1.0, %v6070_v17  ;;  %6073 = vrcp.f32 %v5056_v42  ;;  %v6072_v8 = vpop.eup %6071  ;;  %v5081_v34 = vand.u32 2147483647, %v5056_v42  ;;  %v5083_v9 = vand.u32 2147483648, %v5056_v42 }
 0x352   : > { %v11241_v11 = vadd.f32 1.0, %v6072_v8  ;;  %vm5077_vm1 = vweird.f32 %v5056_v42 }
 0x353   : > { %6075 = vrcp.f32 %v5057_v2  ;;  %v5096_v44 = vand.u32 2147483647, %v5057_v2  ;;  %v5098_v47 = vand.u32 2147483648, %v5057_v2  ;;  %vm11249_vm8 = vcmp.eq.f32.partialorder %v5081_v34, 8.507059e+37 }
 0x354   : > { %6077 = vrcp.f32 %v11241_v11  ;;  %v5084_v6 = vor.u32 1.1754944e-38, %v5083_v9  ;;  %vm5092_vm4 = vweird.f32 %v5057_v2  ;;  %v4328_v17 = vand.u32 2147483647, %v11241_v11 }
 0x355   : > { %6079 = vpow2.f32 %v5625_v27  ;;  %vm11260_vm3 = vcmp.eq.f32.partialorder %v5096_v44, 8.507059e+37  ;;  %v5099_v61 = vor.u32 1.1754944e-38, %v5098_v47  ;;  %v4330_v27 = vand.u32 2147483648, %v11241_v11 }
 0x356   : > { %6081 = vpow2.f32 %v5628_v0  ;;  %v11272_v34 = vadd.f32 %v10943_v29, %v4097_v57  ;;  %vm4324_vm10 = vweird.f32 %v11241_v11  ;;  %vm4329_vm6 = vcmp.eq.f32.partialorder %v4328_v17, 8.507059e+37 }
 0x357   : > { %v6074_v54 = vpop.eup %6073  ;;  %v4331_v47 = vor.u32 1.1754944e-38, %v4330_v27  ;;  %v4576_v57 = vmul.f32 %v11096_v26, %v11102_v14  ;;  %v4609_v14 = vmul.f32 %v11087_v49, %v11152_v4 }
 0x358   : > { %v5073_v1 = vmul.f32 %v6074_v54, %v5056_v42  ;;  %vm5078_vm11 = vweird.f32 %v6074_v54 }
 0x359   : > { %v6076_v40 = vpop.eup %6075  ;;  %vm5079_vm0 = vmor %vm5077_vm1, %vm5078_vm11 }
 0x35a   : > { %v5074_v18 = vsub.f32 1.0, %v5073_v1  ;;  %v5088_v41 = vmul.f32 %v6076_v40, %v5057_v2  ;;  %v6078_v63 = vpop.eup %6077  ;;  %vm5093_vm9 = vweird.f32 %v6076_v40  ;;  %vm13324_vm1 = vmmov %vm13323_vm13 }
 0x35b   : > { %v6080_v35 = vpop.eup %6079  ;;  %v4320_v22 = vmul.f32 %v6078_v63, %v11241_v11  ;;  %vm5094_vm12 = vmor %vm5092_vm4, %vm5093_vm9  ;;  %vm4325_vm7 = vweird.f32 %v6078_v63  ;;  %v5629_v11 = vmul.f32 -1.442695, %v11272_v34 }
 0x35c   : > { %v5075_v43 = vmul.f32 %v6074_v54, %v5074_v18  ;;  %v5089_v38 = vsub.f32 1.0, %v5088_v41  ;;  %v11254_v10 = vadd.f32 1.0, %v6080_v35  ;;  %v6082_v58 = vpop.eup %6081  ;;  %v5626_v18 = vmul.f32 -1.442695, %v11257_v13  ;;  %vm4326_vm14 = vmor %vm4324_vm10, %vm4325_vm7 }
 0x35d   : > { %v4321_v23 = vsub.f32 1.0, %v4320_v22  ;;  %v11275_v0 = vadd.f32 1.0, %v6082_v58 }
 0x35e   : > { %v5076_v46 = vadd.f32 %v6074_v54, %v5075_v43  ;;  %v5090_v60 = vmul.f32 %v6076_v40, %v5089_v38  ;;  %6083 = vrcp.f32 %v11254_v10  ;;  %v6199_v38 = vld [vmem:[%s6475_s26 + $0x8] sm:$0xff] }
 0x35f   : > { %v4322_v1 = vmul.f32 %v6078_v63, %v4321_v23  ;;  %6085 = vpow2.f32 %v5626_v18  ;;  %v4735_v23 = vmul.f32 %v11118_v50, %v11144_v19  ;;  %v11325_v19 = vmul.f32 %v11120_v24, %v11189_v55 }
 0x360   : > { %v5080_v3 = vsel %vm5079_vm0, %v6074_v54, %v5076_v46  ;;  %v5091_v8 = vadd.f32 %v6076_v40, %v5090_v60  ;;  %6087 = vrcp.f32 %v11275_v0  ;;  %v4575_v60 = vmul.f32 %v11096_v26, %v11093_v33 }
 0x361   : > { %v5085_v42 = vsel %vm11249_vm8, %v5084_v6, %v5080_v3  ;;  %v4323_v41 = vadd.f32 %v6078_v63, %v4322_v1  ;;  %6089 = vpow2.f32 %v5629_v11  ;;  %v4343_v3 = vand.u32 2147483647, %v11254_v10 }
 0x362   : > { %v5095_v9 = vsel %vm5094_vm12, %v6076_v40, %v5091_v8  ;;  %v5312_v54 = vmul.f32 %v5085_v42, %v11227_v56  ;;  %v6198_v40 = vld [vmem:[%s6475_s26] sm:$0xff]  ;;  %v4734_v33 = vmul.f32 %v11118_v50, %v11148_v30  ;;  %v4092_v42 = vpop.f32.mrf.mxu1  ;;  %v11329_v1 = vmul.f32 %v11120_v24, %v11202_v16 }
 0x363   : > { %v5100_v2 = vsel %vm11260_vm3, %v5099_v61, %v5095_v9  ;;  %v4327_v43 = vsel %vm4326_vm14, %v6078_v63, %v4323_v41  ;;  %vm4339_vm8 = vweird.f32 %v11254_v10  ;;  %v11334_v30 = vmul.f32 %v11096_v26, %v11106_v25 }
 0x364   : > { %v5313_v56 = vmul.f32 %v5100_v2, %v11230_v20  ;;  %v5328_v44 = vadd.f32 %v6198_v40, %v5312_v54  ;;  %v6084_v31 = vpop.eup %6083  ;;  %v4332_v6 = vsel %vm4329_vm6, %v4331_v47, %v4327_v43  ;;  %v4624_v54 = vadd.f32 %v4608_v21, %v4575_v60  ;;  %v4100_v2 = vpop.f32.mrf.mxu3 }
 0x365   : > { %v4535_v20 = vmul.f32 %v4332_v6, %v11235_v45  ;;  %v4335_v22 = vmul.f32 %v6084_v31, %v11254_v10  ;;  %v4345_v45 = vand.u32 2147483648, %v11254_v10  ;;  %v6086_v61 = vpop.eup %6085  ;;  %vm4340_vm11 = vweird.f32 %v6084_v31 }
 0x366   : > { %v5329_v35 = vadd.f32 %v6199_v38, %v5313_v56  ;;  %5344 = vst.msk [vmem:[%s11283_s20] sm:$0xff] %vm13323_vm13, %v5328_v44  ;;  %v11313_v8 = vpop.eup %6087  ;;  %v11321_v58 = vadd.f32 1.0, %v6086_v61  ;;  %vm4341_vm4 = vmor %vm4339_vm8, %vm4340_vm11  ;;  %vm4344_vm9 = vcmp.eq.f32.partialorder %v4343_v3, 8.507059e+37  ;;  %v11340_v56 = vadd.f32 %v10943_v29, %v4092_v42 }
 0x367   : > { %v11301_v63 = vsel %vm9372_vm2, %v4535_v20, 0.0  ;;  %v4336_v46 = vsub.f32 1.0, %v4335_v22  ;;  %v4346_v18 = vor.u32 1.1754944e-38, %v4345_v45  ;;  %v6090_v41 = vpop.eup %6089  ;;  %v4380_v16 = vmul.f32 %v11313_v8, %v11275_v0 }
 0x368   : > { %5345 = vst.msk [vmem:[%s11283_s20 + $0x8] sm:$0xff] %vm13324_vm1, %v5329_v35  ;;  %v4641_v27 = vmul.f32 %v11098_v28, %v11301_v63  ;;  %6091 = vrcp.f32 %v11321_v58  ;;  %v11344_v10 = vmul.f32 %v11096_v26, %v11152_v4  ;;  %v4625_v25 = vadd.f32 %v4609_v14, %v4576_v57 }
 0x369   : > { %v4337_v17 = vmul.f32 %v6084_v31, %v4336_v46  ;;  %v4767_v47 = vmul.f32 %v11124_v36, %v11179_v52  ;;  %v4768_v43 = vmul.f32 %v11124_v36, %v11175_v15  ;;  %v11352_v38 = vadd.f32 %v10943_v29, %v4100_v2 }
 0x36a   : > { %v4657_v40 = vadd.f32 %v4641_v27, %v4624_v54  ;;  %v11356_v35 = vmul.f32 %v11120_v24, %v11206_v48  ;;  %v11360_v4 = vmul.f32 %v11120_v24, %v11213_v37  ;;  %v4926_v6 = vmul.f32 %v11132_v59, %v11206_v48 }
 0x36b   : > { %v4338_v9 = vadd.f32 %v6084_v31, %v4337_v17  ;;  %v11364_v11 = vadd.f32 1.0, %v6090_v41  ;;  %v4927_v20 = vmul.f32 %v11132_v59, %v11213_v37  ;;  %v5627_v22 = vmul.f32 -1.442695, %v11340_v56 }
 0x36c   : > { %v4674_v60 = vrot.slane %v11301_v63, 7  ;;  %v4750_v57 = vadd.f32 %v4734_v33, %v4657_v40  ;;  %v4833_v45 = vrot.slane %v11301_v63, 1  ;;  %v4388_v51 = vand.u32 2147483647, %v11275_v0 }
 0x36d   : > { %v4342_v55 = vsel %vm4341_vm4, %v6084_v31, %v4338_v9  ;;  %v5630_v61 = vmul.f32 -1.442695, %v11352_v38  ;;  %6093 = vrcp.f32 %v11364_v11  ;;  %vm13328_vm3 = vcmp.gt.s32.totalorder %v6369_v5, 0 }
 0x36e   : > { %v4347_v44 = vsel %vm4344_vm9, %v4346_v18, %v4342_v55  ;;  %v11373_v46 = vpop.eup %6091  ;;  %6095 = vpow2.f32 %v5627_v22  ;;  %v4783_v9 = vadd.f32 %v4767_v47, %v4750_v57  ;;  %v4390_v2 = vand.u32 2147483648, %v11275_v0 }
 0x36f   : > { %v4536_v31 = vmul.f32 %v4347_v44, %v11239_v53  ;;  %v4381_v53 = vsub.f32 1.0, %v4380_v16  ;;  %v4350_v33 = vmul.f32 %v11373_v46, %v11321_v58  ;;  %vm13329_vm12 = vcmp.lt.s32.totalorder %v6369_v5, 7 }
 0x370   : > { %vm4384_vm7 = vweird.f32 %v11275_v0  ;;  %vm11403_vm10 = vcmp.eq.f32.partialorder %v4388_v51, 8.507059e+37  ;;  %6097 = vpow2.f32 %v5630_v61  ;;  %vm13332_vm14 = vmmov %vm13329_vm12  ;;  %vm4385_vm6 = vweird.f32 %v11313_v8 }
 0x371   : > { %v11370_v29 = vsel %vm9372_vm2, %v4536_v31, 0.0  ;;  %vm13326_vm2 = vcmp.lt.s32.totalorder %v6369_v5, 1  ;;  %v4382_v42 = vmul.f32 %v11313_v8, %v4381_v53  ;;  %v4351_v40 = vsub.f32 1.0, %v4350_v33  ;;  %vm11433_vm8 = vmor %vm4384_vm7, %vm4385_vm6 }
 0x372   : > { %v4642_v48 = vmul.f32 %v11098_v28, %v11370_v29  ;;  %v4684_v21 = vrot.slane %v11370_v29, 7  ;;  %v4843_v37 = vrot.slane %v11370_v29, 1  ;;  %vm13327_vm0 = vmmov %vm13326_vm2  ;;  %v4358_v31 = vand.u32 2147483647, %v11321_v58 }
 0x373   : > { %v4383_v47 = vadd.f32 %v11313_v8, %v4382_v42  ;;  %v6094_v53 = vpop.eup %6093  ;;  %vm13333_vm13 = vcmp.lt.s32.totalorder %v13078_v39, 15  ;;  %v4391_v57 = vor.u32 1.1754944e-38, %v4390_v2  ;;  %vm4354_vm1 = vweird.f32 %v11321_v58 }
 0x374   : > { %v4658_v17 = vadd.f32 %v4642_v48, %v4625_v25  ;;  %v4704_v3 = vsel %vm13326_vm2, %v4684_v21, %v4674_v60  ;;  %v11390_v14 = vsel %vm13327_vm0, %v4674_v60, %v4684_v21  ;;  %v4863_v41 = vsel %vm13329_vm12, %v4843_v37, %v4833_v45  ;;  %v6096_v48 = vpop.eup %6095 }
 0x375   : > { %v11394_v27 = vsel %vm13328_vm3, %v4704_v3, 0.0  ;;  %v4801_v25 = vmul.f32 %v11140_v62, %v11390_v14  ;;  %v11411_v44 = vsel %vm13332_vm14, %v4833_v45, %v4843_v37  ;;  %v4610_v21 = vmul.f32 %v11087_v49, %v11301_v63 }
 0x376   : > { %v4751_v54 = vadd.f32 %v4735_v23, %v4658_v17  ;;  %v4800_v18 = vmul.f32 %v11140_v62, %v11394_v27  ;;  %vm4355_vm11 = vweird.f32 %v11373_v46  ;;  %v4360_v45 = vand.u32 2147483648, %v11321_v58  ;;  %v6098_v3 = vpop.eup %6097 }
 0x377   : > { %v4959_v61 = vmul.f32 %v11198_v32, %v11411_v44  ;;  %v4352_v17 = vmul.f32 %v11373_v46, %v4351_v40  ;;  %vm4359_vm4 = vcmp.eq.f32.partialorder %v4358_v31, 8.507059e+37  ;;  %vm4356_vm9 = vmor %vm4354_vm1, %vm4355_vm11  ;;  %vm4400_vm2 = vweird.f32 %v6094_v53 }
 0x378   : > { %v4784_v16 = vadd.f32 %v4768_v43, %v4751_v54  ;;  %v4816_v23 = vadd.f32 %v4800_v18, %v4783_v9  ;;  %v11418_v43 = vsel %vm13333_vm13, %v4863_v41, 0.0  ;;  %v11445_v54 = vadd.f32 1.0, %v6096_v48 }
 0x379   : > { %v4960_v33 = vmul.f32 %v11198_v32, %v11418_v43  ;;  %v4353_v0 = vadd.f32 %v11373_v46, %v4352_v17  ;;  %v4361_v18 = vor.u32 1.1754944e-38, %v4360_v45  ;;  %v4403_v41 = vand.u32 2147483647, %v11364_v11 }
 0x37a   : > { %v4817_v22 = vadd.f32 %v4801_v25, %v4784_v16  ;;  %v4909_v60 = vadd.f32 %v11325_v19, %v4816_v23  ;;  %v11459_v58 = vadd.f32 1.0, %v6098_v3  ;;  %6099 = vrcp.f32 %v11445_v54 }
 0x37b   : > { %v4357_v23 = vsel %vm4356_vm9, %v11373_v46, %v4353_v0  ;;  %v4579_v55 = vmul.f32 %v11096_v26, %v11301_v63  ;;  %vm4399_vm0 = vweird.f32 %v11364_v11  ;;  %v4611_v48 = vmul.f32 %v11087_v49, %v11370_v29 }
 0x37c   : > { %v4910_v37 = vadd.f32 %v11329_v1, %v4817_v22  ;;  %v4942_v51 = vadd.f32 %v4926_v6, %v4909_v60  ;;  %v4387_v1 = vsel %vm11433_vm8, %v11313_v8, %v4383_v47  ;;  %v4395_v6 = vmul.f32 %v6094_v53, %v11364_v11  ;;  %vm4401_vm3 = vmor %vm4399_vm0, %vm4400_vm2 }
 0x37d   : > { %v4405_v8 = vand.u32 2147483648, %v11364_v11  ;;  %v4362_v40 = vsel %vm4359_vm4, %v4361_v18, %v4357_v23  ;;  %vm4404_vm12 = vcmp.eq.f32.partialorder %v4403_v41, 8.507059e+37  ;;  %v4736_v19 = vmul.f32 %v11118_v50, %v11179_v52  ;;  %v4102_v41 = vpop.f32.mrf.mxu3 }
 0x37e   : > { %v4943_v42 = vadd.f32 %v4927_v20, %v4910_v37  ;;  %v4975_v9 = vadd.f32 %v4959_v61, %v4942_v51  ;;  %v4396_v2 = vsub.f32 1.0, %v4395_v6  ;;  %v4392_v20 = vsel %vm11403_vm10, %v4391_v57, %v4387_v1 }
 0x37f   : > { %v4537_v60 = vmul.f32 %v4362_v40, %v11257_v13  ;;  %v4626_v57 = vadd.f32 %v4610_v21, %v11334_v30  ;;  %v4539_v13 = vmul.f32 %v4392_v20, %v11246_v12  ;;  %v4406_v30 = vor.u32 1.1754944e-38, %v4405_v8 }
 0x380   : > { %v4976_v16 = vadd.f32 %v4960_v33, %v4943_v42  ;;  %v11454_v25 = vadd.f32 %v11222_v7, %v4975_v9  ;;  %v4397_v47 = vmul.f32 %v6094_v53, %v4396_v2  ;;  %v11489_v12 = vmul.f32 %v11118_v50, %v11175_v15  ;;  %v11491_v3 = vpop.eup %6099 }
 0x381   : > { %v11476_v51 = vsel %vm9701_vm5, %v4537_v60, 0.0  ;;  %v11495_v33 = vmul.f32 %v11096_v26, %v11370_v29  ;;  %v11498_v1 = vadd.f32 %v4611_v48, %v11344_v10  ;;  %v4738_v6 = vmul.f32 %v11118_v50, %v11394_v27 }
 0x382   : > { %v11462_v31 = vadd.f32 %v11222_v7, %v4976_v16  ;;  %v5640_v22 = vmul.f32 -1.442695, %v11454_v25  ;;  %v4398_v46 = vadd.f32 %v6094_v53, %v4397_v47  ;;  %v4643_v63 = vmul.f32 %v11098_v28, %v11476_v51 }
 0x383   : > { %v4612_v11 = vmul.f32 %v11087_v49, %v11476_v51  ;;  %v11509_v15 = vmul.f32 %v11124_v36, %v11390_v14  ;;  %v11513_v29 = vsel %vm8097_vm15, %v4539_v13, 0.0  ;;  %v4769_v0 = vmul.f32 %v11124_v36, %v11394_v27 }
 0x384   : > { %6101 = vpow2.f32 %v5640_v22  ;;  %v5641_v45 = vmul.f32 -1.442695, %v11462_v31  ;;  %v4402_v21 = vsel %vm4401_vm3, %v6094_v53, %v4398_v46  ;;  %v4659_v61 = vadd.f32 %v4643_v63, %v4626_v57 }
 0x385   : > { %6103 = vrcp.f32 %v11459_v58  ;;  %v4407_v17 = vsel %vm4404_vm12, %v4406_v30, %v4402_v21  ;;  %v11502_v53 = vmul.f32 %v11118_v50, %v11390_v14  ;;  %v11519_v18 = vmul.f32 %v11120_v24, %v11411_v44 }
 0x386   : > { %6105 = vpow2.f32 %v5641_v45  ;;  %v4540_v52 = vmul.f32 %v4407_v17, %v11272_v34  ;;  %v4752_v9 = vadd.f32 %v4736_v19, %v4659_v61  ;;  %v4628_v34 = vadd.f32 %v4612_v11, %v4579_v55 }
 0x387   : > { %v4375_v2 = vand.u32 2147483648, %v11445_v54  ;;  %v11526_v14 = vmul.f32 %v11120_v24, %v11418_v43  ;;  %v4365_v20 = vmul.f32 %v11491_v3, %v11445_v54  ;;  %v4373_v27 = vand.u32 2147483647, %v11445_v54 }
 0x388   : > { %v11535_v40 = vmul.f32 %v11132_v59, %v11411_v44  ;;  %v4645_v47 = vmul.f32 %v11098_v28, %v11513_v29  ;;  %v4676_v22 = vrot.slane %v11513_v29, 7  ;;  %v11542_v60 = vsel %vm8097_vm15, %v4540_v52, 0.0  ;;  %v11551_v44 = vld [vmem:[%s12497_s10] ss:$0 sm:$0xff] }
 0x389   : > { %13338 = vst [vmem:[#allocation53_spill] sm:$0xff] %v11542_v60  ;;  %v12652_v57 = vrot.slane %v11513_v29, 1  ;;  %v11554_v46 = vadd.f32 %v11551_v44, %v4102_v41  ;;  %vm4369_vm15 = vweird.f32 %v11445_v54  ;;  %v4376_v13 = vor.u32 1.1754944e-38, %v4375_v2 }
 0x38a   : > { %v6102_v10 = vpop.eup %6101  ;;  %v4661_v48 = vadd.f32 %v4645_v47, %v4628_v34  ;;  %v4686_v63 = vrot.slane %v11542_v60, 7  ;;  %v4366_v30 = vsub.f32 1.0, %v4365_v20  ;;  %vm11560_vm7 = vcmp.eq.f32.partialorder %v4373_v27, 8.507059e+37 }
 0x38b   : > { %v11522_v8 = vpop.eup %6103  ;;  %v11528_v16 = vadd.f32 1.0, %v6102_v10  ;;  %13339 = vst [vmem:[#allocation25_spill] sm:$0xff] %v11554_v46  ;;  %v4845_v17 = vrot.slane %v11542_v60, 1  ;;  %vm4414_vm10 = vweird.f32 %v11459_v58  ;;  %v4418_v52 = vand.u32 2147483647, %v11459_v58 }
 0x38c   : > { %v6106_v23 = vpop.eup %6105  ;;  %v4410_v21 = vmul.f32 %v11522_v8, %v11459_v58  ;;  %vm4370_vm14 = vweird.f32 %v11491_v3  ;;  %vm4415_vm6 = vweird.f32 %v11522_v8  ;;  %v4420_v42 = vand.u32 2147483648, %v11459_v58 }
 0x38d   : > { %v11544_v55 = vadd.f32 1.0, %v6106_v23  ;;  %6107 = vrcp.f32 %v11528_v16  ;;  %v5111_v61 = vand.u32 2147483647, %v11528_v16  ;;  %v5631_v10 = vmul.f32 -1.442695, %v11554_v46  ;;  %vm4371_vm3 = vmor %vm4369_vm15, %vm4370_vm14 }
 0x38e   : > { %vm5107_vm13 = vweird.f32 %v11528_v16  ;;  %v11576_v34 = vadd.f32 %v4738_v6, %v4661_v48  ;;  %v11578_v2 = vadd.f32 %v4769_v0, %v4752_v9  ;;  %v11582_v41 = vmul.f32 %v11098_v28, %v11542_v60  ;;  %vm11639_vm15 = vmor %vm4414_vm10, %vm4415_vm6 }
 0x38f   : > { %6109 = vrcp.f32 %v11544_v55  ;;  %v5113_v27 = vand.u32 2147483648, %v11528_v16  ;;  %vm13342_vm1 = vcmp.lt.s32.totalorder %v6369_v5, 1  ;;  %v4367_v47 = vmul.f32 %v11491_v3, %v4366_v30 }
 0x390   : > { %v4706_v23 = vsel %vm13342_vm1, %v4686_v63, %v4676_v22  ;;  %v4411_v19 = vsub.f32 1.0, %v4410_v21  ;;  %vm11589_vm11 = vcmp.eq.f32.partialorder %v5111_v61, 8.507059e+37  ;;  %vm13345_vm8 = vmmov %vm13342_vm1  ;;  %vm13347_vm4 = vcmp.lt.s32.totalorder %v6369_v5, 7 }
 0x391   : > { %v11595_v9 = vsel %vm13345_vm8, %v4676_v22, %v4686_v63  ;;  %v11601_v0 = vsel %vm13347_vm4, %v12652_v57, %v4845_v17  ;;  %vm11603_vm9 = vcmp.eq.f32.partialorder %v4418_v52, 8.507059e+37  ;;  %v5126_v21 = vand.u32 2147483647, %v11544_v55  ;;  %v4105_v63 = vpop.f32.mrf.mxu3  ;;  %vm13356_vm8 = vmmov %vm13347_vm4 }
 0x392   : > { %13346 = vst [vmem:[#allocation46_spill] sm:$0xff] %v11595_v9  ;;  %v5128_v61 = vand.u32 2147483648, %v11544_v55  ;;  %v4368_v46 = vadd.f32 %v11491_v3, %v4367_v47  ;;  %v4412_v22 = vmul.f32 %v11522_v8, %v4411_v19  ;;  %vm5122_vm2 = vweird.f32 %v11544_v55 }
 0x393   : > { %v6108_v20 = vpop.eup %6107  ;;  %vm13350_vm0 = vcmp.gt.s32.totalorder %v6369_v5, 0  ;;  %v5114_v57 = vor.u32 1.1754944e-38, %v5113_v27  ;;  %v11626_v26 = vadd.f32 %v11551_v44, %v4105_v63  ;;  %vm11628_vm1 = vcmp.eq.f32.partialorder %v5126_v21, 8.507059e+37 }
 0x394   : > { %v5103_v45 = vmul.f32 %v6108_v20, %v11528_v16  ;;  %v11615_v52 = vsel %vm13350_vm0, %v4706_v23, 0.0  ;;  %vm5108_vm12 = vweird.f32 %v6108_v20  ;;  %v4372_v47 = vsel %vm4371_vm3, %v11491_v3, %v4368_v46 }
 0x395   : > { %v6110_v30 = vpop.eup %6109  ;;  %v4413_v19 = vadd.f32 %v11522_v8, %v4412_v22  ;;  %v4377_v7 = vsel %vm11560_vm7, %v4376_v13, %v4372_v47  ;;  %v5129_v54 = vor.u32 1.1754944e-38, %v5128_v61  ;;  %v4804_v27 = vmul.f32 %v11140_v62, %v11615_v52  ;;  %vm5109_vm14 = vmor %vm5107_vm13, %vm5108_vm12  ;;  %v6201_v47 = vld [vmem:[%s6475_s26 + $0x10] sm:$0xff] }
 0x396   : > { %v5104_v24 = vsub.f32 1.0, %v5103_v45  ;;  %v5118_v60 = vmul.f32 %v6110_v30, %v11544_v55  ;;  %v4538_v3 = vmul.f32 %v4377_v7, %v11340_v56  ;;  %vm5123_vm7 = vweird.f32 %v6110_v30  ;;  %vm13361_vm13 = vmmov %vm13350_vm0 }
 0x397   : > { %v4417_v13 = vsel %vm11639_vm15, %v11522_v8, %v4413_v19  ;;  %v13355_v7 = vrot.slane %v11513_v29, 1  ;;  %v4421_v11 = vor.u32 1.1754944e-38, %v4420_v42  ;;  %6111 = vpow2.f32 %v5631_v10  ;;  %vm5124_vm10 = vmor %vm5122_vm2, %vm5123_vm7 }
 0x398   : > { %v5105_v45 = vmul.f32 %v6108_v20, %v5104_v24  ;;  %v5119_v50 = vsub.f32 1.0, %v5118_v60  ;;  %v11655_v58 = vsel %vm9701_vm5, %v4538_v3, 0.0  ;;  %v5632_v16 = vmul.f32 -1.442695, %v11626_v26 }
 0x399   : > { %v4865_v56 = vsel %vm13356_vm8, %v4845_v17, %v13355_v7  ;;  %v4613_v8 = vmul.f32 %v11087_v49, %v11655_v58  ;;  %v4644_v37 = vmul.f32 %v11098_v28, %v11655_v58  ;;  %v4685_v17 = vrot.slane %v11655_v58, 7 }
 0x39a   : > { %v5106_v60 = vadd.f32 %v6108_v20, %v5105_v45  ;;  %v5120_v46 = vmul.f32 %v6110_v30, %v5119_v50  ;;  %v4422_v42 = vsel %vm11603_vm9, %v4421_v11, %v4417_v13  ;;  %v4844_v6 = vrot.slane %v11655_v58, 1  ;;  %vm13365_vm9 = vmmov %vm13347_vm4 }
 0x39b   : > { %v4629_v22 = vadd.f32 %v4613_v8, %v11495_v33  ;;  %v13357_v63 = vrot.slane %v11476_v51, 7  ;;  %vm13358_vm5 = vcmp.lt.s32.totalorder %v6369_v5, 1  ;;  %6113 = vpow2.f32 %v5632_v16 }
 0x39c   : > { %v5110_v50 = vsel %vm5109_vm14, %v6108_v20, %v5106_v60  ;;  %v5121_v21 = vadd.f32 %v6110_v30, %v5120_v46  ;;  %vm13360_vm6 = vmmov %vm13358_vm5  ;;  %v6202_v60 = vld [vmem:[%s6475_s26 + $0x18] sm:$0xff]  ;;  %vm13367_vm0 = vcmp.lt.s32.totalorder %v13078_v39, 15 }
 0x39d   : > { %v5115_v61 = vsel %vm11589_vm11, %v5114_v57, %v5110_v50  ;;  %v4660_v57 = vadd.f32 %v4644_v37, %v11498_v1  ;;  %v11679_v48 = vsel %vm13358_vm5, %v13357_v63, %v4685_v17  ;;  %v4662_v45 = vadd.f32 %v11582_v41, %v4629_v22  ;;  %v6112_v23 = vpop.eup %6111  ;;  %vm13368_vm3 = vmmov %vm13367_vm0 }
 0x39e   : > { %v5125_v10 = vsel %vm5124_vm10, %v6110_v30, %v5121_v21  ;;  %v5314_v20 = vmul.f32 %v5115_v61, %v11454_v25  ;;  %v13359_v30 = vmov %v13357_v63  ;;  %v4772_v24 = vmul.f32 %v11124_v36, %v11679_v48 }
 0x39f   : > { %v5130_v55 = vsel %vm11628_vm1, %v5129_v54, %v5125_v10  ;;  %v4705_v25 = vsel %vm13360_vm6, %v4685_v17, %v13359_v30  ;;  %v4753_v54 = vadd.f32 %v11489_v12, %v4660_v57  ;;  %vm13362_vm11 = vcmask 64512  }
 0x3a0   : > { %v5315_v33 = vmul.f32 %v5130_v55, %v11462_v31  ;;  %v5330_v19 = vadd.f32 %v6201_v47, %v5314_v20  ;;  %v11690_v1 = vsel %vm13361_vm13, %v4705_v25, 0.0  ;;  %v4755_v41 = vadd.f32 %v11502_v53, %v4662_v45  ;;  %vm13366_vm2 = vmmov %vm13362_vm11 }
 0x3a1   : > { %v4771_v3 = vmul.f32 %v11124_v36, %v11690_v1  ;;  %v4802_v31 = vmul.f32 %v11140_v62, %v11690_v1  ;;  %v4803_v13 = vmul.f32 %v11140_v62, %v11679_v48  ;;  %v13363_v12 = vrot.slane %v11476_v51, 1  ;;  %v6114_v25 = vpop.eup %6113 }
 0x3a2   : > { %v5331_v46 = vadd.f32 %v6202_v60, %v5315_v33  ;;  %5346 = vst.msk [vmem:[%s11283_s20 + $0x10] sm:$0xff] %vm13362_vm11, %v5330_v19  ;;  %v4786_v11 = vadd.f32 %v11509_v15, %v4753_v54  ;;  %v4805_v61 = vmul.f32 %v11140_v62, %v11595_v9  ;;  %v4788_v37 = vadd.f32 %v4772_v24, %v4755_v41  ;;  %v13371_v33 = vld [vmem:[#allocation18_spill] sm:$0xff] }
 0x3a3   : > { %v11709_v7 = vsel %vm13347_vm4, %v13363_v12, %v4844_v6  ;;  %v4787_v50 = vadd.f32 %v4771_v3, %v11576_v34  ;;  %v4818_v21 = vadd.f32 %v4802_v31, %v11578_v2  ;;  %v13364_v8 = vmov %v13363_v12  ;;  %v13372_v3 = vld [vmem:[#allocation57_spill] sm:$0xff] }
 0x3a4   : > { %v4864_v53 = vsel %vm13365_vm9, %v4844_v6, %v13364_v8  ;;  %5347 = vst.msk [vmem:[%s11283_s20 + $0x18] sm:$0xff] %vm13366_vm2, %v5331_v46  ;;  %v4541_v17 = vmul.f32 %v4422_v42, %v11352_v38  ;;  %v4819_v10 = vadd.f32 %v4803_v13, %v4786_v11  ;;  %v4929_v20 = vmul.f32 %v11132_v59, %v11418_v43  ;;  %v4107_v13 = vpop.f32.mrf.mxu3 }
 0x3a5   : > { %v4820_v15 = vadd.f32 %v4804_v27, %v4787_v50  ;;  %v11725_v34 = vsel %vm13367_vm0, %v4864_v53, 0.0  ;;  %v4911_v2 = vadd.f32 %v11356_v35, %v4818_v21  ;;  %v11732_v22 = vsel %vm13368_vm3, %v4865_v56, 0.0  ;;  %v13373_v53 = vld [vmem:[#allocation54_spill] sm:$0xff] }
 0x3a6   : > { %v4821_v6 = vadd.f32 %v4805_v61, %v4788_v37  ;;  %v4930_v38 = vmul.f32 %v11132_v59, %v11709_v7  ;;  %v4912_v16 = vadd.f32 %v11360_v4, %v4819_v10  ;;  %v4961_v35 = vmul.f32 %v11198_v32, %v11709_v7 }
 0x3a7   : > { %v4913_v27 = vadd.f32 %v11519_v18, %v4820_v15  ;;  %v4944_v42 = vadd.f32 %v11535_v40, %v4911_v2  ;;  %v4963_v43 = vmul.f32 %v11198_v32, %v11601_v0  ;;  %v4931_v56 = vmul.f32 %v11132_v59, %v11725_v34  ;;  %v13369_v18 = vld [vmem:[#allocation23_spill] sm:$0xff]  ;;  %v13374_v2 = vld [vmem:[#allocation53_spill] sm:$0xff] }
 0x3a8   : > { %v4914_v55 = vadd.f32 %v11526_v14, %v4821_v6  ;;  %v4962_v57 = vmul.f32 %v11198_v32, %v11725_v34  ;;  %v4945_v63 = vadd.f32 %v4929_v20, %v4912_v16  ;;  %vm13370_vm12 = vnez %v13369_v18 }
 0x3a9   : > { %v4946_v4 = vadd.f32 %v4930_v38, %v4913_v27  ;;  %v4977_v30 = vadd.f32 %v4961_v35, %v4944_v42  ;;  %v11750_v40 = vsel %vm13370_vm12, %v4541_v17, 0.0  ;;  %v4581_v47 = vmul.f32 %v13371_v33, %v11476_v51 }
 0x3aa   : > { %v4964_v14 = vmul.f32 %v11198_v32, %v11732_v22  ;;  %v4947_v19 = vadd.f32 %v4931_v56, %v4914_v55  ;;  %v4978_v45 = vadd.f32 %v4962_v57, %v4945_v63  ;;  %v4614_v31 = vmul.f32 %v11087_v49, %v11513_v29  ;;  %v13375_v55 = vld [vmem:[#allocation16_spill] sm:$0xff] }
 0x3ab   : > { %v4979_v54 = vadd.f32 %v4963_v43, %v4946_v4  ;;  %v11757_v24 = vadd.f32 %v13372_v3, %v4977_v30  ;;  %v4647_v46 = vmul.f32 %v11098_v28, %v11750_v40  ;;  %v11763_v41 = vadd.f32 1.0, %v6112_v23 }
 0x3ac   : > { %v4980_v60 = vadd.f32 %v4964_v14, %v4947_v19  ;;  %v11766_v51 = vadd.f32 %v13372_v3, %v4978_v45  ;;  %v11772_v11 = vadd.f32 1.0, %v6114_v25  ;;  %v4630_v50 = vadd.f32 %v4614_v31, %v4581_v47  ;;  %v4110_v30 = vpop.f32.mrf.mxu3 }
 0x3ad   : > { %v11769_v32 = vadd.f32 %v13372_v3, %v4979_v54  ;;  %v5642_v12 = vmul.f32 -1.442695, %v11757_v24  ;;  %6115 = vrcp.f32 %v11763_v41  ;;  %v4740_v61 = vmul.f32 %v13373_v53, %v11690_v1 }
 0x3ae   : > { %v11775_v21 = vadd.f32 %v13372_v3, %v4980_v60  ;;  %v5643_v23 = vmul.f32 -1.442695, %v11766_v51  ;;  %v4582_v17 = vmul.f32 %v13371_v33, %v11655_v58  ;;  %v4663_v10 = vadd.f32 %v4647_v46, %v4630_v50 }
 0x3af   : > { %6117 = vpow2.f32 %v5642_v12  ;;  %v5644_v8 = vmul.f32 -1.442695, %v11769_v32  ;;  %v11787_v15 = vadd.f32 %v11551_v44, %v4107_v13  ;;  %v4615_v20 = vmul.f32 %v11087_v49, %v13374_v2 }
 0x3b0   : > { %v5645_v37 = vmul.f32 -1.442695, %v11775_v21  ;;  %6119 = vrcp.f32 %v11772_v11  ;;  %v4756_v6 = vadd.f32 %v4740_v61, %v4663_v10  ;;  %v11795_v1 = vmul.f32 %v11124_v36, %v11595_v9 }
 0x3b1   : > { %6121 = vpow2.f32 %v5643_v23  ;;  %v4773_v58 = vmul.f32 %v11124_v36, %v11615_v52  ;;  %v11799_v27 = vadd.f32 %v4615_v20, %v4582_v17  ;;  %v5633_v35 = vmul.f32 -1.442695, %v11787_v15 }
 0x3b2   : > { %6123 = vpow2.f32 %v5644_v8  ;;  %v11808_v56 = vmul.f32 %v13375_v55, %v11709_v7  ;;  %v4433_v4 = vand.u32 2147483647, %v11763_v41  ;;  %v11819_v45 = vmul.f32 %v13373_v53, %v11679_v48 }
 0x3b3   : > { %6125 = vpow2.f32 %v5645_v37  ;;  %v11791_v38 = vpop.eup %6115  ;;  %v11814_v47 = vadd.f32 %v4773_v58, %v4756_v6  ;;  %vm4429_vm1 = vweird.f32 %v11763_v41  ;;  %v4435_v3 = vand.u32 2147483648, %v11763_v41 }
 0x3b4   : > { %v4425_v42 = vmul.f32 %v11791_v38, %v11763_v41  ;;  %v11831_v13 = vadd.f32 %v11551_v44, %v4110_v30  ;;  %vm11837_vm15 = vcmp.eq.f32.partialorder %v4433_v4, 8.507059e+37  ;;  %vm4430_vm7 = vweird.f32 %v11791_v38 }
 0x3b5   : > { %v6118_v16 = vpop.eup %6117  ;;  %v4436_v20 = vor.u32 1.1754944e-38, %v4435_v3  ;;  %vm4431_vm5 = vmor %vm4429_vm1, %vm4430_vm7 }
 0x3b6   : > { %v11804_v43 = vpop.eup %6119  ;;  %v11810_v57 = vadd.f32 1.0, %v6118_v16  ;;  %v4426_v19 = vsub.f32 1.0, %v4425_v42  ;;  %13376 = vst [vmem:[#allocation50_spill] sm:$0xff] %v11831_v13  ;;  %v11851_v16 = vmul.f32 -1.442695, %v11831_v13 }
 0x3b7   : > { %v6122_v25 = vpop.eup %6121  ;;  %v4440_v46 = vmul.f32 %v11804_v43, %v11772_v11  ;;  %vm4445_vm2 = vweird.f32 %v11804_v43 }
 0x3b8   : > { %v6124_v54 = vpop.eup %6123  ;;  %v11821_v7 = vadd.f32 1.0, %v6122_v25  ;;  %6127 = vrcp.f32 %v11810_v57  ;;  %v4427_v12 = vmul.f32 %v11791_v38, %v4426_v19  ;;  %v5141_v23 = vand.u32 2147483647, %v11810_v57 }
 0x3b9   : > { %v6126_v31 = vpop.eup %6125  ;;  %v11826_v60 = vadd.f32 1.0, %v6124_v54  ;;  %6129 = vpow2.f32 %v5633_v35  ;;  %v5143_v8 = vand.u32 2147483648, %v11810_v57  ;;  %v4441_v6 = vsub.f32 1.0, %v4440_v46 }
 0x3ba   : > { %v11833_v48 = vadd.f32 1.0, %v6126_v31  ;;  %6131 = vrcp.f32 %v11821_v7  ;;  %v5158_v37 = vand.u32 2147483648, %v11821_v7  ;;  %v5156_v10 = vand.u32 2147483647, %v11821_v7 }
 0x3bb   : > { %6133 = vrcp.f32 %v11826_v60  ;;  %v5173_v17 = vand.u32 2147483648, %v11826_v60  ;;  %vm5137_vm14 = vweird.f32 %v11810_v57  ;;  %v5171_v42 = vand.u32 2147483647, %v11826_v60 }
 0x3bc   : > { %6135 = vrcp.f32 %v11833_v48  ;;  %v5188_v35 = vand.u32 2147483648, %v11833_v48  ;;  %v4428_v4 = vadd.f32 %v11791_v38, %v4427_v12  ;;  %vm11858_vm8 = vcmp.eq.f32.partialorder %v5141_v23, 8.507059e+37 }
 0x3bd   : > { %v5144_v54 = vor.u32 1.1754944e-38, %v5143_v8  ;;  %vm5152_vm10 = vweird.f32 %v11821_v7  ;;  %v5186_v3 = vand.u32 2147483647, %v11833_v48  ;;  %v5159_v46 = vor.u32 1.1754944e-38, %v5158_v37 }
 0x3be   : > { %v6128_v58 = vpop.eup %6127  ;;  %vm5167_vm6 = vweird.f32 %v11826_v60  ;;  %v5174_v12 = vor.u32 1.1754944e-38, %v5173_v17  ;;  %v4432_v23 = vsel %vm4431_vm5, %v11791_v38, %v4428_v4  ;;  %vm11871_vm13 = vcmp.eq.f32.partialorder %v5156_v10, 8.507059e+37  ;;  %v13385_v10 = vld [vmem:[#allocation25_spill] sm:$0xff] }
 0x3bf   : > { %v6130_v30 = vpop.eup %6129  ;;  %v5133_v25 = vmul.f32 %v6128_v58, %v11810_v57  ;;  %vm5182_vm11 = vweird.f32 %v11833_v48  ;;  %v4437_v41 = vsel %vm11837_vm15, %v4436_v20, %v4432_v23  ;;  %v4442_v37 = vmul.f32 %v11804_v43, %v4441_v6  ;;  %v6205_v20 = vld [vmem:[%s6475_s26 + $0x30] sm:$0xff] }
 0x3c0   : > { %v6132_v31 = vpop.eup %6131  ;;  %vm5138_vm4 = vweird.f32 %v6128_v58  ;;  %vm11880_vm9 = vcmp.eq.f32.partialorder %v5171_v42, 8.507059e+37  ;;  %v5189_v4 = vor.u32 1.1754944e-38, %v5188_v35  ;;  %vm11887_vm0 = vcmp.eq.f32.partialorder %v5186_v3, 8.507059e+37 }
 0x3c1   : > { %v6134_v61 = vpop.eup %6133  ;;  %v5134_v14 = vsub.f32 1.0, %v5133_v25  ;;  %v5148_v8 = vmul.f32 %v6132_v31, %v11821_v7  ;;  %v4542_v25 = vmul.f32 %v4437_v41, %v13385_v10  ;;  %v11891_v6 = vadd.f32 1.0, %v6130_v30  ;;  %vm5139_vm7 = vmor %vm5137_vm14, %vm5138_vm4 }
 0x3c2   : > { %v6136_v13 = vpop.eup %6135  ;;  %v5163_v17 = vmul.f32 %v6134_v61, %v11826_v60  ;;  %vm5153_vm3 = vweird.f32 %v6132_v31  ;;  %vm5168_vm1 = vweird.f32 %v6134_v61  ;;  %vm4444_vm15 = vweird.f32 %v11772_v11 }
 0x3c3   : > { %v5135_v36 = vmul.f32 %v6128_v58, %v5134_v14  ;;  %v5149_v9 = vsub.f32 1.0, %v5148_v8  ;;  %v5178_v50 = vmul.f32 %v6136_v13, %v11833_v48  ;;  %v11895_v35 = vsel %vm13370_vm12, %v4542_v25, 0.0  ;;  %vm5154_vm12 = vmor %vm5152_vm10, %vm5153_vm3 }
 0x3c4   : > { %v5164_v42 = vsub.f32 1.0, %v5163_v17  ;;  %v11899_v41 = vadd.f32 %v11804_v43, %v4442_v37  ;;  %vm5183_vm5 = vweird.f32 %v6136_v13  ;;  %v4648_v3 = vmul.f32 %v11098_v28, %v11895_v35  ;;  %vm5169_vm14 = vmor %vm5167_vm6, %vm5168_vm1 }
 0x3c5   : > { %v5136_v23 = vadd.f32 %v6128_v58, %v5135_v36  ;;  %v5150_v14 = vmul.f32 %v6132_v31, %v5149_v9  ;;  %v5179_v8 = vsub.f32 1.0, %v5178_v50  ;;  %v4687_v18 = vrot.slane %v11895_v35, 7  ;;  %v11908_v36 = vpop.f32.mrf.mxu3  ;;  %vm5184_vm10 = vmor %vm5182_vm11, %vm5183_vm5 }
 0x3c6   : > { %v5165_v30 = vmul.f32 %v6134_v61, %v5164_v42  ;;  %6137 = vrcp.f32 %v11891_v6  ;;  %v4664_v37 = vadd.f32 %v4648_v3, %v11799_v27  ;;  %v4846_v50 = vrot.slane %v11895_v35, 1  ;;  %vm11960_vm4 = vmor %vm4444_vm15, %vm4445_vm2 }
 0x3c7   : > { %v5140_v17 = vsel %vm5139_vm7, %v6128_v58, %v5136_v23  ;;  %v5151_v10 = vadd.f32 %v6132_v31, %v5150_v14  ;;  %v5180_v25 = vmul.f32 %v6136_v13, %v5179_v8  ;;  %v13388_v19 = vrot.slane %v11750_v40, 7 }
 0x3c8   : > { %v5145_v9 = vsel %vm11858_vm8, %v5144_v54, %v5140_v17  ;;  %v5166_v57 = vadd.f32 %v6134_v61, %v5165_v30  ;;  %vm13389_vm8 = vcmp.lt.s32.totalorder %v6369_v5, 1  ;;  %vm13393_vm11 = vcmask 64512  }
 0x3c9   : > { %v5155_v58 = vsel %vm5154_vm12, %v6132_v31, %v5151_v10  ;;  %v5181_v42 = vadd.f32 %v6136_v13, %v5180_v25  ;;  %v5316_v23 = vmul.f32 %v5145_v9, %v11757_v24  ;;  %v11925_v7 = vsel %vm13389_vm8, %v13388_v19, %v4687_v18  ;;  %vm13391_vm6 = vmmov %vm13389_vm8  ;;  %v6206_v25 = vld [vmem:[%s6475_s26 + $0x38] sm:$0xff] }
 0x3ca   : > { %v5160_v54 = vsel %vm11871_vm13, %v5159_v46, %v5155_v58  ;;  %v5170_v27 = vsel %vm5169_vm14, %v6134_v61, %v5166_v57  ;;  %v13390_v60 = vmov %v13388_v19  ;;  %v4757_v31 = vadd.f32 %v11819_v45, %v4664_v37  ;;  %v6203_v61 = vld [vmem:[%s6475_s26 + $0x20] sm:$0xff] }
 0x3cb   : > { %v4707_v24 = vsel %vm13391_vm6, %v4687_v18, %v13390_v60  ;;  %v5175_v14 = vsel %vm11880_vm9, %v5174_v12, %v5170_v27  ;;  %v5185_v8 = vsel %vm5184_vm10, %v6136_v13, %v5181_v42  ;;  %v5317_v63 = vmul.f32 %v5160_v54, %v11766_v51  ;;  %v6204_v51 = vld [vmem:[%s6475_s26 + $0x28] sm:$0xff]  ;;  %vm13396_vm9 = vmmov %vm13393_vm11 }
 0x3cc   : > { %v5332_v46 = vadd.f32 %v6203_v61, %v5316_v23  ;;  %v5190_v48 = vsel %vm11887_vm0, %v5189_v4, %v5185_v8  ;;  %v5318_v30 = vmul.f32 %v5175_v14, %v11769_v32  ;;  %vm13392_vm13 = vcmp.gt.s32.totalorder %v6369_v5, 0  ;;  %v11949_v38 = vpop.eup %6137  ;;  %vm13400_vm0 = vmmov %vm13396_vm9  ;;  %v12013_v14 = vld [vmem:[%s12498_s11 + $0x8] ss:$0 sm:$0xff] }
 0x3cd   : > { %v11946_v3 = vsel %vm13392_vm13, %v4707_v24, 0.0  ;;  %v4448_v45 = vand.u32 2147483647, %v11772_v11  ;;  %v5319_v13 = vmul.f32 %v5190_v48, %v11775_v21  ;;  %v5333_v12 = vadd.f32 %v6204_v51, %v5317_v63  ;;  %vm13403_vm15 = vmmov %vm13400_vm0  ;;  %v12004_v54 = vpop.f32.mrf.mxu3 }
 0x3ce   : > { %5348 = vst.msk [vmem:[%s11283_s20 + $0x20] sm:$0xff] %vm13393_vm11, %v5332_v46  ;;  %v4790_v4 = vadd.f32 %v11795_v1, %v4757_v31  ;;  %6139 = vpow2.f32 %v11851_v16  ;;  %v5334_v18 = vadd.f32 %v6205_v20, %v5318_v30  ;;  %v4806_v21 = vmul.f32 %v11140_v62, %v11946_v3  ;;  %vm13409_vm11 = vmmov %vm13391_vm6 }
 0x3cf   : > { %v4807_v17 = vmul.f32 %v11140_v62, %v11925_v7  ;;  %v4447_v1 = vsel %vm11960_vm4, %v11804_v43, %v11899_v41  ;;  %v4900_v10 = vmul.f32 %v13375_v55, %v11725_v34  ;;  %v5335_v9 = vadd.f32 %v6206_v25, %v5319_v13  ;;  %5349 = vst.msk [vmem:[%s11283_s20 + $0x28] sm:$0xff] %vm13396_vm9, %v5333_v12  ;;  %v13405_v13 = vld [vmem:[#allocation34_spill] sm:$0xff] }
 0x3d0   : > { %v13397_v16 = vrot.slane %v11750_v40, 1  ;;  %vm13398_vm2 = vcmp.lt.s32.totalorder %v6369_v5, 7  ;;  %v13399_v37 = vand.u32 2147483648, %v11772_v11  ;;  %5350 = vst.msk [vmem:[%s11283_s20 + $0x30] sm:$0xff] %vm13400_vm0, %v5334_v18  ;;  %v4822_v42 = vadd.f32 %v4806_v21, %v11814_v47  ;;  %v12036_v18 = vld [vmem:[%s12499_s12] ss:$0 sm:$0xff] }
 0x3d1   : > { %v4823_v43 = vadd.f32 %v4807_v17, %v4790_v4  ;;  %vm13402_vm3 = vmmov %vm13398_vm2  ;;  %vm4449_vm1 = vcmp.eq.f32.partialorder %v4448_v45, 8.507059e+37  ;;  %v4932_v23 = vmul.f32 %v11132_v59, %v11601_v0  ;;  %v4933_v19 = vmul.f32 %v11132_v59, %v11732_v22  ;;  %5351 = vst.msk [vmem:[%s11283_s20 + $0x38] sm:$0xff] %vm13403_vm15, %v5335_v9 }
 0x3d2   : > { %v4866_v57 = vsel %vm13398_vm2, %v4846_v50, %v13397_v16  ;;  %v4451_v58 = vor.u32 1.1754944e-38, %v13399_v37  ;;  %v13401_v41 = vmov %v13397_v16  ;;  %vm13404_vm7 = vcmp.lt.s32.totalorder %v13078_v39, 15  ;;  %vm13410_vm4 = vmmov %vm13398_vm2 }
 0x3d3   : > { %v11992_v34 = vsel %vm13402_vm3, %v13401_v41, %v4846_v50  ;;  %v12002_v11 = vsel %vm13404_vm7, %v4866_v57, 0.0  ;;  %v4915_v27 = vadd.f32 %v11808_v56, %v4822_v42  ;;  %v4916_v50 = vadd.f32 %v4900_v10, %v4823_v43 }
 0x3d4   : > { %v4452_v47 = vsel %vm4449_vm1, %v4451_v58, %v4447_v1  ;;  %v4455_v24 = vmul.f32 %v11949_v38, %v11891_v6  ;;  %v6140_v31 = vpop.eup %6139  ;;  %v4965_v8 = vmul.f32 %v12013_v14, %v11992_v34  ;;  %v4966_v56 = vmul.f32 %v12013_v14, %v12002_v11  ;;  %vm13413_vm1 = vmmov %vm13404_vm7 }
 0x3d5   : > { %v4543_v60 = vmul.f32 %v4452_v47, %v11626_v26  ;;  %v4948_v63 = vadd.f32 %v4932_v23, %v4915_v27  ;;  %v4949_v61 = vadd.f32 %v4933_v19, %v4916_v50  ;;  %vm4460_vm5 = vweird.f32 %v11949_v38  ;;  %v4117_v58 = vpop.f32.mrf.mxu3  ;;  %v13407_v47 = vld [vmem:[#allocation46_spill] sm:$0xff] }
 0x3d6   : > { %v4456_v46 = vsub.f32 1.0, %v4455_v24  ;;  %v4463_v26 = vand.u32 2147483647, %v11891_v6  ;;  %v4465_v48 = vand.u32 2147483648, %v11891_v6  ;;  %vm13406_vm12 = vnez %v13405_v13 }
 0x3d7   : > { %v4981_v30 = vadd.f32 %v4965_v8, %v4948_v63  ;;  %v4982_v45 = vadd.f32 %v4966_v56, %v4949_v61  ;;  %v12024_v51 = vsel %vm13406_vm12, %v4543_v60, 0.0  ;;  %v4583_v4 = vmul.f32 %v13371_v33, %v11513_v29 }
 0x3d8   : > { %v4457_v12 = vmul.f32 %v11949_v38, %v4456_v46  ;;  %v4616_v32 = vmul.f32 %v11087_v49, %v11750_v40  ;;  %v12031_v20 = vadd.f32 1.0, %v6140_v31  ;;  %vm4459_vm14 = vweird.f32 %v11891_v6 }
 0x3d9   : > { %v12039_v21 = vadd.f32 %v12036_v18, %v4981_v30  ;;  %v12042_v17 = vadd.f32 %v12036_v18, %v4982_v45  ;;  %v4584_v29 = vmul.f32 %v13371_v33, %v13374_v2  ;;  %v12050_v10 = vmul.f32 %v13375_v55, %v11601_v0  ;;  %vm4461_vm8 = vmor %vm4459_vm14, %vm4460_vm5 }
 0x3da   : > { %v4458_v1 = vadd.f32 %v11949_v38, %v4457_v12  ;;  %v4649_v25 = vmul.f32 %v11098_v28, %v12024_v51  ;;  %v4466_v9 = vor.u32 1.1754944e-38, %v4465_v48  ;;  %vm4464_vm10 = vcmp.eq.f32.partialorder %v4463_v26, 8.507059e+37 }
 0x3db   : > { %v5646_v16 = vmul.f32 -1.442695, %v12039_v21  ;;  %v5647_v57 = vmul.f32 -1.442695, %v12042_v17  ;;  %v4632_v37 = vadd.f32 %v4616_v32, %v4583_v4  ;;  %v4617_v2 = vmul.f32 %v11087_v49, %v11895_v35 }
 0x3dc   : > { %v4462_v6 = vsel %vm4461_vm8, %v11949_v38, %v4458_v1  ;;  %6141 = vrcp.f32 %v12031_v20  ;;  %v12064_v42 = vmul.f32 %v13375_v55, %v11732_v22  ;;  %v12069_v41 = vadd.f32 %v11551_v44, %v11908_v36 }
 0x3dd   : > { %v4467_v0 = vsel %vm4464_vm10, %v4466_v9, %v4462_v6  ;;  %6143 = vpow2.f32 %v5646_v16  ;;  %v12073_v38 = vmul.f32 %v13371_v33, %v11750_v40  ;;  %v4665_v23 = vadd.f32 %v4649_v25, %v4632_v37  ;;  %v4120_v25 = vpop.f32.mrf.mxu3 }
 0x3de   : > { %v4544_v43 = vmul.f32 %v4467_v0, %v11787_v15  ;;  %6145 = vpow2.f32 %v5647_v57  ;;  %v4742_v19 = vmul.f32 %v13373_v53, %v11615_v52  ;;  %v12079_v22 = vmul.f32 %v13371_v33, %v11895_v35  ;;  %v13408_v35 = vld [vmem:[#allocation33_spill] sm:$0xff] }
 0x3df   : > { %v4743_v36 = vmul.f32 %v13373_v53, %v13407_v47  ;;  %v5635_v27 = vmul.f32 -1.442695, %v12069_v41  ;;  %v4633_v40 = vadd.f32 %v4617_v2, %v4584_v29  ;;  %v4678_v50 = vrot.slane %v12024_v51, 7 }
 0x3e0   : > { %v12083_v15 = vsel %vm13406_vm12, %v4544_v43, 0.0  ;;  %v4775_v24 = vmul.f32 %v13408_v35, %v11946_v3  ;;  %v4776_v31 = vmul.f32 %v13408_v35, %v11925_v7  ;;  %v12098_v8 = vmul.f32 %v13375_v55, %v11992_v34 }
 0x3e1   : > { %v4650_v60 = vmul.f32 %v11098_v28, %v12083_v15  ;;  %v4688_v52 = vrot.slane %v12083_v15, 7  ;;  %v4934_v63 = vmul.f32 %v11132_v59, %v11992_v34  ;;  %v4758_v56 = vadd.f32 %v4742_v19, %v4665_v23 }
 0x3e2   : > { %v12102_v61 = vpop.eup %6141  ;;  %6147 = vpow2.f32 %v5635_v27  ;;  %v12108_v30 = vmul.f32 %v13375_v55, %v12002_v11  ;;  %v4935_v45 = vmul.f32 %v11132_v59, %v12002_v11  ;;  %v4847_v34 = vrot.slane %v12083_v15, 1 }
 0x3e3   : > { %v4666_v46 = vadd.f32 %v4650_v60, %v4633_v40  ;;  %v4708_v26 = vsel %vm13391_vm6, %v4688_v52, %v4678_v50  ;;  %v6144_v48 = vpop.eup %6143  ;;  %v4837_v32 = vrot.slane %v12024_v51, 1  ;;  %v12126_v11 = vsel %vm13409_vm11, %v4678_v50, %v4688_v52 }
 0x3e4   : > { %v12114_v13 = vsel %vm13392_vm13, %v4708_v26, 0.0  ;;  %v6146_v12 = vpop.eup %6145  ;;  %v12117_v4 = vadd.f32 1.0, %v6144_v48  ;;  %v4478_v16 = vand.u32 2147483647, %v12031_v20  ;;  %v4480_v57 = vand.u32 2147483648, %v12031_v20 }
 0x3e5   : > { %v4759_v1 = vadd.f32 %v4743_v36, %v4666_v46  ;;  %v4808_v29 = vmul.f32 %v11140_v62, %v12114_v13  ;;  %v12122_v9 = vadd.f32 1.0, %v6146_v12  ;;  %v12133_v6 = vmul.f32 %v11087_v49, %v12024_v51 }
 0x3e6   : > { %6149 = vrcp.f32 %v12117_v4  ;;  %v4791_v37 = vadd.f32 %v4775_v24, %v4758_v56  ;;  %v4470_v2 = vmul.f32 %v12102_v61, %v12031_v20  ;;  %v4867_v0 = vsel %vm13410_vm4, %v4847_v34, %v4837_v32 }
 0x3e7   : > { %6151 = vrcp.f32 %v12122_v9  ;;  %vm4474_vm9 = vweird.f32 %v12031_v20  ;;  %v12143_v43 = vadd.f32 %v11551_v44, %v12004_v54  ;;  %v4792_v19 = vadd.f32 %v4776_v31, %v4759_v1 }
 0x3e8   : > { %v6148_v23 = vpop.eup %6147  ;;  %v4809_v47 = vmul.f32 %v11140_v62, %v12126_v11  ;;  %v4824_v36 = vadd.f32 %v4808_v29, %v4791_v37  ;;  %v12149_v27 = vsel %vm13398_vm2, %v4837_v32, %v4847_v34  ;;  %vm4475_vm0 = vweird.f32 %v12102_v61  ;;  %v4121_v32 = vpop.f32.mrf.mxu3 }
 0x3e9   : > { %vm12152_vm3 = vcmp.eq.f32.partialorder %v4478_v16, 8.507059e+37  ;;  %v4481_v50 = vor.u32 1.1754944e-38, %v4480_v57  ;;  %v12157_v54 = vadd.f32 %v11551_v44, %v4117_v58  ;;  %v12161_v52 = vsel %vm13413_vm1, %v4867_v0, 0.0  ;;  %vm4476_vm5 = vmor %vm4474_vm9, %vm4475_vm0  ;;  %v13414_v32 = vld [vmem:[#allocation50_spill] sm:$0xff] }
 0x3ea   : > { %v4825_v60 = vadd.f32 %v4809_v47, %v4792_v19  ;;  %v4917_v24 = vadd.f32 %v12050_v10, %v4824_v36  ;;  %v4471_v31 = vsub.f32 1.0, %v4470_v2  ;;  %vm5197_vm15 = vweird.f32 %v12117_v4 }
 0x3eb   : > { %v5201_v56 = vand.u32 2147483647, %v12117_v4  ;;  %v5203_v46 = vand.u32 2147483648, %v12117_v4  ;;  %v4967_v26 = vmul.f32 %v12013_v14, %v12149_v27  ;;  %v12169_v48 = vadd.f32 1.0, %v6148_v23 }
 0x3ec   : > { %v6150_v44 = vpop.eup %6149  ;;  %v4918_v58 = vadd.f32 %v12064_v42, %v4825_v60  ;;  %v4950_v34 = vadd.f32 %v4934_v63, %v4917_v24  ;;  %v4472_v12 = vmul.f32 %v12102_v61, %v4471_v31  ;;  %v5636_v10 = vmul.f32 -1.442695, %v12143_v43 }
 0x3ed   : > { %v6152_v1 = vpop.eup %6151  ;;  %v5193_v29 = vmul.f32 %v6150_v44, %v12117_v4  ;;  %vm5212_vm7 = vweird.f32 %v12122_v9  ;;  %v5216_v25 = vand.u32 2147483647, %v12122_v9  ;;  %6153 = vrcp.f32 %v12169_v48 }
 0x3ee   : > { %v5208_v16 = vmul.f32 %v6152_v1, %v12122_v9  ;;  %v4951_v57 = vadd.f32 %v4935_v45, %v4918_v58  ;;  %v4968_v42 = vmul.f32 %v12013_v14, %v12161_v52  ;;  %v4983_v63 = vadd.f32 %v4967_v26, %v4950_v34 }
 0x3ef   : > { %v5194_v37 = vsub.f32 1.0, %v5193_v29  ;;  %v5218_v2 = vand.u32 2147483648, %v12122_v9  ;;  %v4473_v0 = vadd.f32 %v12102_v61, %v4472_v12  ;;  %v5637_v23 = vmul.f32 -1.442695, %v12157_v54 }
 0x3f0   : > { %v5209_v19 = vsub.f32 1.0, %v5208_v16  ;;  %v4984_v47 = vadd.f32 %v4968_v42, %v4951_v57  ;;  %v12185_v36 = vadd.f32 %v12036_v18, %v4983_v63  ;;  %6155 = vpow2.f32 %v5636_v10  ;;  %v4123_v57 = vpop.f32.mrf.mxu3 }
 0x3f1   : > { %v5195_v45 = vmul.f32 %v6150_v44, %v5194_v37  ;;  %vm5198_vm12 = vweird.f32 %v6150_v44  ;;  %vm5213_vm14 = vweird.f32 %v6152_v1  ;;  %v4477_v60 = vsel %vm4476_vm5, %v12102_v61, %v4473_v0 }
 0x3f2   : > { %v5210_v24 = vmul.f32 %v6152_v1, %v5209_v19  ;;  %v12193_v31 = vadd.f32 %v12036_v18, %v4984_v47  ;;  %v5648_v26 = vmul.f32 -1.442695, %v12185_v36  ;;  %v4482_v58 = vsel %vm12152_vm3, %v4481_v50, %v4477_v60  ;;  %vm5199_vm8 = vmor %vm5197_vm15, %vm5198_vm12  ;;  %v6209_v47 = vld [vmem:[%s6475_s26 + $0x40] sm:$0xff] }
 0x3f3   : > { %v12198_v34 = vpop.eup %6153  ;;  %v5196_v12 = vadd.f32 %v6150_v44, %v5195_v45  ;;  %v5204_v20 = vor.u32 1.1754944e-38, %v5203_v46  ;;  %v4545_v10 = vmul.f32 %v4482_v58, %v13414_v32  ;;  %6157 = vpow2.f32 %v5637_v23  ;;  %vm5214_vm6 = vmor %vm5212_vm7, %vm5213_vm14  ;;  %v13415_v46 = vld [vmem:[#allocation47_spill] sm:$0xff] }
 0x3f4   : > { %v5211_v61 = vadd.f32 %v6152_v1, %v5210_v24  ;;  %6159 = vpow2.f32 %v5648_v26  ;;  %v5649_v29 = vmul.f32 -1.442695, %v12193_v31  ;;  %v4485_v16 = vmul.f32 %v12198_v34, %v12169_v48 }
 0x3f5   : > { %v5200_v40 = vsel %vm5199_vm8, %v6150_v44, %v5196_v12  ;;  %vm5202_vm10 = vcmp.eq.f32.partialorder %v5201_v56, 8.507059e+37  ;;  %v5219_v50 = vor.u32 1.1754944e-38, %v5218_v2  ;;  %vm13416_vm13 = vnez %v13415_v46 }
 0x3f6   : > { %v12211_v4 = vsel %vm13416_vm13, %v4545_v10, 0.0  ;;  %v6156_v42 = vpop.eup %6155  ;;  %v5205_v63 = vsel %vm5202_vm10, %v5204_v20, %v5200_v40  ;;  %v5215_v37 = vsel %vm5214_vm6, %v6152_v1, %v5211_v61  ;;  %vm5217_vm11 = vcmp.eq.f32.partialorder %v5216_v25, 8.507059e+37 }
 0x3f7   : > { %6161 = vpow2.f32 %v5649_v29  ;;  %v5220_v0 = vsel %vm5217_vm11, %v5219_v50, %v5215_v37  ;;  %v5320_v44 = vmul.f32 %v5205_v63, %v12039_v21  ;;  %v4634_v56 = vadd.f32 %v12133_v6, %v12073_v38 }
 0x3f8   : > { %v4651_v9 = vmul.f32 %v11098_v28, %v12211_v4  ;;  %v5321_v2 = vmul.f32 %v5220_v0, %v12042_v17  ;;  %v4619_v23 = vmul.f32 %v11087_v49, %v12083_v15  ;;  %v4744_v1 = vmul.f32 %v13373_v53, %v11946_v3  ;;  %v6210_v17 = vld [vmem:[%s6475_s26 + $0x48] sm:$0xff]  ;;  %v4124_v29 = vpop.f32.mrf.mxu3 }
 0x3f9   : > { %v4486_v25 = vsub.f32 1.0, %v4485_v16  ;;  %v6158_v19 = vpop.eup %6157  ;;  %v5336_v45 = vadd.f32 %v6209_v47, %v5320_v44  ;;  %vm4490_vm4 = vweird.f32 %v12198_v34  ;;  %v4495_v21 = vand.u32 2147483648, %v12169_v48 }
 0x3fa   : > { %v12226_v38 = vadd.f32 1.0, %v6156_v42  ;;  %v6160_v6 = vpop.eup %6159  ;;  %v5337_v60 = vadd.f32 %v6210_v17, %v5321_v2  ;;  %v4667_v24 = vadd.f32 %v4651_v9, %v4634_v56  ;;  %v12230_v58 = vadd.f32 1.0, %v6158_v19 }
 0x3fb   : > { %v4487_v26 = vmul.f32 %v12198_v34, %v4486_v25  ;;  %vm13417_vm9 = vcmask 64512   ;;  %v12234_v3 = vadd.f32 1.0, %v6160_v6  ;;  %v4493_v12 = vand.u32 2147483647, %v12169_v48 }
 0x3fc   : > { %5352 = vst.msk [vmem:[%s11283_s20 + $0x40] sm:$0xff] %vm13417_vm9, %v5336_v45  ;;  %v12239_v20 = vmul.f32 %v13373_v53, %v11925_v7  ;;  %6163 = vrcp.f32 %v12226_v38  ;;  %vm13418_vm2 = vmmov %vm13417_vm9  ;;  %vm4489_vm0 = vweird.f32 %v12169_v48  ;;  %v4635_v61 = vadd.f32 %v4619_v23, %v12079_v22 }
 0x3fd   : > { %v6162_v32 = vpop.eup %6161  ;;  %5353 = vst.msk [vmem:[%s11283_s20 + $0x48] sm:$0xff] %vm13418_vm2, %v5337_v60  ;;  %v4488_v10 = vadd.f32 %v12198_v34, %v4487_v26  ;;  %6165 = vrcp.f32 %v12230_v58  ;;  %v12250_v16 = vmul.f32 %v11132_v59, %v12149_v27  ;;  %v12254_v7 = vmul.f32 %v11132_v59, %v12161_v52  ;;  %vm4491_vm3 = vmor %vm4489_vm0, %vm4490_vm4 }
 0x3fe   : > { %v12256_v57 = vadd.f32 1.0, %v6162_v32  ;;  %6167 = vrcp.f32 %v12234_v3  ;;  %v4760_v48 = vadd.f32 %v4744_v1, %v4667_v24  ;;  %v4777_v22 = vmul.f32 %v13408_v35, %v12114_v13 }
 0x3ff   : > { %v4492_v40 = vsel %vm4491_vm3, %v12198_v34, %v4488_v10  ;;  %v4496_v50 = vor.u32 1.1754944e-38, %v4495_v21  ;;  %v5233_v42 = vand.u32 2147483648, %v12234_v3  ;;  %vm4494_vm1 = vcmp.eq.f32.partialorder %v4493_v12, 8.507059e+37 }
 0x400   : > { %6169 = vrcp.f32 %v12256_v57  ;;  %v4510_v63 = vand.u32 2147483648, %v12226_v38  ;;  %v5231_v37 = vand.u32 2147483647, %v12234_v3  ;;  %v5248_v0 = vand.u32 2147483648, %v12256_v57 }
 0x401   : > { %v4497_v44 = vsel %vm4494_vm1, %v4496_v50, %v4492_v40  ;;  %v4778_v56 = vmul.f32 %v13408_v35, %v12126_v11  ;;  %v12275_v34 = vmul.f32 %v11087_v49, %v12211_v4  ;;  %v4679_v2 = vrot.slane %v12211_v4, 7 }
 0x402   : > { %v12271_v9 = vpop.eup %6163  ;;  %v4838_v23 = vrot.slane %v12211_v4, 1  ;;  %v4546_v1 = vmul.f32 %v4497_v44, %v12069_v41  ;;  %vm5227_vm15 = vweird.f32 %v12234_v3  ;;  %v5246_v19 = vand.u32 2147483647, %v12256_v57 }
 0x403   : > { %v12280_v25 = vpop.eup %6165  ;;  %v4793_v47 = vadd.f32 %v4777_v22, %v4760_v48  ;;  %v4508_v45 = vand.u32 2147483647, %v12226_v38  ;;  %v5234_v6 = vor.u32 1.1754944e-38, %v5233_v42  ;;  %v4500_v4 = vmul.f32 %v12271_v9, %v12226_v38 }
 0x404   : > { %v6168_v21 = vpop.eup %6167  ;;  %v12287_v17 = vsel %vm13416_vm13, %v4546_v1, 0.0  ;;  %v12291_v60 = vor.u32 1.1754944e-38, %v4510_v63  ;;  %vm12294_vm7 = vcmp.eq.f32.partialorder %v5231_v37, 8.507059e+37  ;;  %vm5242_vm5 = vweird.f32 %v12256_v57 }
 0x405   : > { %v5223_v41 = vmul.f32 %v6168_v21, %v12234_v3  ;;  %v5249_v26 = vor.u32 1.1754944e-38, %v5248_v0  ;;  %v4652_v12 = vmul.f32 %v11098_v28, %v12287_v17  ;;  %v4523_v46 = vand.u32 2147483647, %v12230_v58 }
 0x406   : > { %v6170_v32 = vpop.eup %6169  ;;  %v4689_v10 = vrot.slane %v12287_v17, 7  ;;  %v4848_v29 = vrot.slane %v12287_v17, 1  ;;  %vm4505_vm12 = vweird.f32 %v12271_v9  ;;  %v4515_v48 = vmul.f32 %v12280_v25, %v12230_v58 }
 0x407   : > { %v5224_v22 = vsub.f32 1.0, %v5223_v41  ;;  %v5238_v40 = vmul.f32 %v6170_v32, %v12256_v57  ;;  %vm12308_vm14 = vcmp.eq.f32.partialorder %v5246_v19, 8.507059e+37  ;;  %vm4504_vm8 = vweird.f32 %v12226_v38  ;;  %v6212_v38 = vld [vmem:[%s6475_s26 + $0x58] sm:$0xff] }
 0x408   : > { %vm4520_vm10 = vweird.f32 %v12280_v25  ;;  %v4525_v42 = vand.u32 2147483648, %v12230_v58  ;;  %vm5228_vm6 = vweird.f32 %v6168_v21  ;;  %v4668_v63 = vadd.f32 %v4652_v12, %v4635_v61 }
 0x409   : > { %vm13423_vm13 = vcmp.lt.s32.totalorder %v6369_v5, 1  ;;  %v4501_v0 = vsub.f32 1.0, %v4500_v4  ;;  %v5225_v44 = vmul.f32 %v6168_v21, %v5224_v22  ;;  %v5239_v1 = vsub.f32 1.0, %v5238_v40 }
 0x40a   : > { %v4709_v37 = vsel %vm13423_vm13, %v4689_v10, %v4679_v2  ;;  %vm13424_vm11 = vmmov %vm13423_vm13  ;;  %vm13425_vm4 = vcmp.gt.s32.totalorder %v6369_v5, 0  ;;  %vm12325_vm9 = vcmp.eq.f32.partialorder %v4508_v45, 8.507059e+37  ;;  %vm4519_vm2 = vweird.f32 %v12230_v58 }
 0x40b   : > { %v12319_v19 = vsel %vm13424_vm11, %v4679_v2, %v4689_v10  ;;  %v12323_v41 = vsel %vm13425_vm4, %v4709_v37, 0.0  ;;  %v4761_v61 = vadd.f32 %v12239_v20, %v4668_v63  ;;  %vm13428_vm0 = vcmp.lt.s32.totalorder %v6369_v5, 7  ;;  %vm5229_vm13 = vmor %vm5227_vm15, %vm5228_vm6 }
 0x40c   : > { %v4810_v4 = vmul.f32 %v11140_v62, %v12323_v41  ;;  %v4868_v12 = vsel %vm13428_vm0, %v4848_v29, %v4838_v23  ;;  %v4516_v2 = vsub.f32 1.0, %v4515_v48  ;;  %v5226_v10 = vadd.f32 %v6168_v21, %v5225_v44  ;;  %vm13429_vm1 = vmmov %vm13428_vm0 }
 0x40d   : > { %v5240_v22 = vmul.f32 %v6170_v32, %v5239_v1  ;;  %vm5243_vm3 = vweird.f32 %v6170_v32  ;;  %v12337_v45 = vsel %vm13429_vm1, %v4838_v23, %v4848_v29  ;;  %v4794_v40 = vadd.f32 %v4778_v56, %v4761_v61 }
 0x40e   : > { %v4811_v20 = vmul.f32 %v11140_v62, %v12319_v19  ;;  %v4826_v63 = vadd.f32 %v4810_v4, %v4793_v47  ;;  %vm12344_vm11 = vcmp.eq.f32.partialorder %v4523_v46, 8.507059e+37  ;;  %v5230_v48 = vsel %vm5229_vm13, %v6168_v21, %v5226_v10  ;;  %vm5244_vm15 = vmor %vm5242_vm5, %vm5243_vm3 }
 0x40f   : > { %v5241_v44 = vadd.f32 %v6170_v32, %v5240_v22  ;;  %vm13432_vm4 = vcmp.lt.s32.totalorder %v13078_v39, 15  ;;  %v4502_v23 = vmul.f32 %v12271_v9, %v4501_v0  ;;  %v5235_v3 = vsel %vm12294_vm7, %v5234_v6, %v5230_v48  ;;  %vm4506_vm7 = vmor %vm4504_vm8, %vm4505_vm12 }
 0x410   : > { %v12350_v1 = vsel %vm13432_vm4, %v4868_v12, 0.0  ;;  %v4827_v56 = vadd.f32 %v4811_v20, %v4794_v40  ;;  %v4919_v47 = vadd.f32 %v12098_v8, %v4826_v63  ;;  %v4969_v21 = vmul.f32 %v12013_v14, %v12337_v45  ;;  %vm4521_vm5 = vmor %vm4519_vm2, %vm4520_vm10 }
 0x411   : > { %v5245_v46 = vsel %vm5244_vm15, %v6170_v32, %v5241_v44  ;;  %v5322_v29 = vmul.f32 %v5235_v3, %v12185_v36  ;;  %v4503_v61 = vadd.f32 %v12271_v9, %v4502_v23  ;;  %v4517_v0 = vmul.f32 %v12280_v25, %v4516_v2  ;;  %v6211_v32 = vld [vmem:[%s6475_s26 + $0x50] sm:$0xff]  ;;  %vm13440_vm2 = vmmov %vm13428_vm0 }
 0x412   : > { %v5250_v6 = vsel %vm12308_vm14, %v5249_v26, %v5245_v46  ;;  %v4920_v57 = vadd.f32 %v12108_v30, %v4827_v56  ;;  %v4952_v24 = vadd.f32 %v12250_v16, %v4919_v47  ;;  %v4970_v8 = vmul.f32 %v12013_v14, %v12350_v1  ;;  %vm13441_vm3 = vmmov %vm13432_vm4 }
 0x413   : > { %v5323_v36 = vmul.f32 %v5250_v6, %v12193_v31  ;;  %v5338_v4 = vadd.f32 %v6211_v32, %v5322_v29  ;;  %v4507_v50 = vsel %vm4506_vm7, %v12271_v9, %v4503_v61  ;;  %v4518_v26 = vadd.f32 %v12280_v25, %v4517_v0 }
 0x414   : > { %v4953_v30 = vadd.f32 %v12254_v7, %v4920_v57  ;;  %v4985_v16 = vadd.f32 %v4969_v21, %v4952_v24  ;;  %v4512_v12 = vsel %vm12325_vm9, %v12291_v60, %v4507_v50  ;;  %v4526_v31 = vor.u32 1.1754944e-38, %v4525_v42 }
 0x415   : > { %v5339_v2 = vadd.f32 %v6212_v38, %v5323_v36  ;;  %vm13433_vm12 = vcmask 64512   ;;  %v4621_v9 = vmul.f32 %v11087_v49, %v12287_v17  ;;  %v4547_v7 = vmul.f32 %v4512_v12, %v12143_v43  ;;  %v13435_v49 = vld [vmem:[#allocation62_spill] sm:$0xff] }
 0x416   : > { %5354 = vst.msk [vmem:[%s11283_s20 + $0x50] sm:$0xff] %vm13433_vm12, %v5338_v4  ;;  %v4522_v10 = vsel %vm4521_vm5, %v12280_v25, %v4518_v26  ;;  %v4587_v59 = vmul.f32 %v13371_v33, %v12024_v51  ;;  %v4986_v60 = vadd.f32 %v4970_v8, %v4953_v30  ;;  %v12395_v22 = vadd.f32 %v12036_v18, %v4985_v16  ;;  %vm13434_vm14 = vmmov %vm13433_vm12  ;;  %v13442_v30 = vld [vmem:[#allocation58_spill] sm:$0xff] }
 0x417   : > { %v4527_v58 = vsel %vm12344_vm11, %v4526_v31, %v4522_v10  ;;  %v4588_v42 = vmul.f32 %v13371_v33, %v12083_v15  ;;  %5355 = vst.msk [vmem:[%s11283_s20 + $0x58] sm:$0xff] %vm13434_vm14, %v5339_v2  ;;  %vm13436_vm8 = vnez %v13435_v49  ;;  %v4746_v33 = vmul.f32 %v13373_v53, %v12114_v13 }
 0x418   : > { %v4567_v43 = vsel %vm13436_vm8, %v4547_v7, 0.0  ;;  %v4548_v25 = vmul.f32 %v4527_v58, %v12157_v54  ;;  %v4636_v17 = vadd.f32 %v12275_v34, %v4587_v59  ;;  %v12408_v51 = vadd.f32 %v12036_v18, %v4986_v60 }
 0x419   : > { %v5650_v40 = vmul.f32 -1.442695, %v12395_v22  ;;  %v4653_v20 = vmul.f32 %v11098_v28, %v4567_v43  ;;  %v4637_v63 = vadd.f32 %v4621_v9, %v4588_v42  ;;  %v4680_v48 = vrot.slane %v4567_v43, 7 }
 0x41a   : > { %v4568_v15 = vsel %vm13436_vm8, %v4548_v25, 0.0  ;;  %v5651_v37 = vmul.f32 -1.442695, %v12408_v51  ;;  %v4747_v23 = vmul.f32 %v13373_v53, %v12126_v11  ;;  %v4779_v13 = vmul.f32 %v13408_v35, %v12323_v41  ;;  %vm13443_vm8 = vmmov %vm13434_vm14 }
 0x41b   : > { %6171 = vpow2.f32 %v5650_v40  ;;  %v4669_v54 = vadd.f32 %v4653_v20, %v4636_v17  ;;  %v4654_v34 = vmul.f32 %v11098_v28, %v4568_v15  ;;  %v4690_v44 = vrot.slane %v4568_v15, 7 }
 0x41c   : > { %6173 = vpow2.f32 %v5651_v37  ;;  %v4849_v47 = vrot.slane %v4568_v15, 1  ;;  %vm13437_vm10 = vcmp.lt.s32.totalorder %v6369_v5, 1  ;;  %v4780_v28 = vmul.f32 %v13408_v35, %v12319_v19 }
 0x41d   : > { %v4762_v3 = vadd.f32 %v4746_v33, %v4669_v54  ;;  %v4670_v56 = vadd.f32 %v4654_v34, %v4637_v63  ;;  %v4700_v21 = vsel %vm13437_vm10, %v4680_v48, %v4690_v44  ;;  %vm13438_vm6 = vmmov %vm13437_vm10  ;;  %v4839_v29 = vrot.slane %v4567_v43, 1 }
 0x41e   : > { %v4710_v46 = vsel %vm13438_vm6, %v4690_v44, %v4680_v48  ;;  %vm13439_vm9 = vcmp.gt.s32.totalorder %v6369_v5, 0  ;;  %v4813_v41 = vmul.f32 %v11140_v62, %v4700_v21  ;;  %v4905_v35 = vmul.f32 %v13375_v55, %v12149_v27 }
 0x41f   : > { %v4729_v53 = vsel %vm13439_vm9, %v4710_v46, 0.0  ;;  %v4763_v11 = vadd.f32 %v4747_v23, %v4670_v56  ;;  %v4795_v61 = vadd.f32 %v4779_v13, %v4762_v3  ;;  %v4869_v24 = vsel %vm13440_vm2, %v4849_v47, %v4839_v29  ;;  %v6213_v13 = vld [vmem:[%s6475_s26 + $0x60] sm:$0xff] }
 0x420   : > { %v4812_v0 = vmul.f32 %v11140_v62, %v4729_v53  ;;  %v4906_v4 = vmul.f32 %v13375_v55, %v12161_v52  ;;  %v4859_v26 = vsel %vm13428_vm0, %v4839_v29, %v4849_v47  ;;  %v4889_v62 = vsel %vm13441_vm3, %v4869_v24, 0.0 }
 0x421   : > { %v6172_v6 = vpop.eup %6171  ;;  %v4796_v57 = vadd.f32 %v4780_v28, %v4763_v11  ;;  %v4938_v16 = vmul.f32 %v13442_v30, %v12337_v45  ;;  %v4939_v12 = vmul.f32 %v13442_v30, %v12350_v1  ;;  %v4971_v55 = vmul.f32 %v12013_v14, %v4859_v26  ;;  %v6214_v28 = vld [vmem:[%s6475_s26 + $0x68] sm:$0xff] }
 0x422   : > { %v5068_v8 = vadd.f32 1.0, %v6172_v6  ;;  %v4828_v36 = vadd.f32 %v4812_v0, %v4795_v61  ;;  %v6174_v32 = vpop.eup %6173  ;;  %v4972_v52 = vmul.f32 %v12013_v14, %v4889_v62 }
 0x423   : > { %v4829_v19 = vadd.f32 %v4813_v41, %v4796_v57  ;;  %v5069_v50 = vadd.f32 1.0, %v6174_v32 }
 0x424   : > { %6175 = vrcp.f32 %v5068_v8  ;;  %v4921_v31 = vadd.f32 %v4905_v35, %v4828_v36  ;;  %v5261_v42 = vand.u32 2147483647, %v5068_v8  ;;  %v5263_v49 = vand.u32 2147483648, %v5068_v8 }
 0x425   : > { %v4922_v27 = vadd.f32 %v4906_v4, %v4829_v19  ;;  %6177 = vrcp.f32 %v5069_v50  ;;  %vm5257_vm13 = vweird.f32 %v5068_v8  ;;  %v5278_v17 = vand.u32 2147483648, %v5069_v50 }
 0x426   : > { %v4954_v38 = vadd.f32 %v4938_v16, %v4921_v31  ;;  %v5264_v63 = vor.u32 1.1754944e-38, %v5263_v49  ;;  %vm5262_vm15 = vcmp.eq.f32.partialorder %v5261_v42, 8.507059e+37  ;;  %vm5272_vm7 = vweird.f32 %v5069_v50  ;;  %v6215_v31 = vld [vmem:[%s6475_s26 + $0x70] sm:$0xff] }
 0x427   : > { %v4955_v2 = vadd.f32 %v4939_v12, %v4922_v27  ;;  %v5279_v54 = vor.u32 1.1754944e-38, %v5278_v17 }
 0x428   : > { %v4987_v5 = vadd.f32 %v4971_v55, %v4954_v38  ;;  %v6216_v38 = vld [vmem:[%s6475_s26 + $0x78] sm:$0xff] }
 0x429   : > { %v4988_v9 = vadd.f32 %v4972_v52, %v4955_v2 }
 0x42a   : > { %v6176_v7 = vpop.eup %6175  ;;  %v12449_v10 = vadd.f32 %v12036_v18, %v4987_v5 }
 0x42b   : > { %v5253_v39 = vmul.f32 %v6176_v7, %v5068_v8  ;;  %v12452_v45 = vadd.f32 %v12036_v18, %v4988_v9  ;;  %v6178_v1 = vpop.eup %6177  ;;  %vm5258_vm1 = vweird.f32 %v6176_v7  ;;  %v5276_v18 = vand.u32 2147483647, %v5069_v50 }
 0x42c   : > { %v5268_v60 = vmul.f32 %v6178_v1, %v5069_v50  ;;  %v5652_v58 = vmul.f32 -1.442695, %v12449_v10  ;;  %vm5273_vm11 = vweird.f32 %v6178_v1  ;;  %vm5259_vm4 = vmor %vm5257_vm13, %vm5258_vm1 }
 0x42d   : > { %v5254_v59 = vsub.f32 1.0, %v5253_v39  ;;  %v5653_v43 = vmul.f32 -1.442695, %v12452_v45  ;;  %vm5274_vm5 = vmor %vm5272_vm7, %vm5273_vm11  ;;  %vm5277_vm12 = vcmp.eq.f32.partialorder %v5276_v18, 8.507059e+37 }
 0x42e   : > { %v5269_v25 = vsub.f32 1.0, %v5268_v60  ;;  %6179 = vpow2.f32 %v5652_v58  ;;  %vm13444_vm11 = vmmov %vm13443_vm8 }
 0x42f   : > { %v5255_v14 = vmul.f32 %v6176_v7, %v5254_v59  ;;  %6181 = vpow2.f32 %v5653_v43 }
 0x430   : > { %v5270_v20 = vmul.f32 %v6178_v1, %v5269_v25 }
 0x431   : > { %v5256_v40 = vadd.f32 %v6176_v7, %v5255_v14 }
 0x432   : > { %v5271_v15 = vadd.f32 %v6178_v1, %v5270_v20 }
 0x433   : > { %v5260_v33 = vsel %vm5259_vm4, %v6176_v7, %v5256_v40  ;;  %vm13445_vm4 = vmmov %vm13443_vm8 }
 0x434   : > { %v5265_v37 = vsel %vm5262_vm15, %v5264_v63, %v5260_v33  ;;  %v6180_v34 = vpop.eup %6179  ;;  %v5275_v48 = vsel %vm5274_vm5, %v6178_v1, %v5271_v15 }
 0x435   : > { %v5324_v44 = vmul.f32 %v5265_v37, %v12395_v22  ;;  %v6182_v23 = vpop.eup %6181  ;;  %v5280_v3 = vsel %vm5277_vm12, %v5279_v54, %v5275_v48  ;;  %v5070_v56 = vadd.f32 1.0, %v6180_v34 }
 0x436   : > { %v5325_v47 = vmul.f32 %v5280_v3, %v12408_v51  ;;  %v5071_v46 = vadd.f32 1.0, %v6182_v23 }
 0x437   : > { %v5340_v21 = vadd.f32 %v6213_v13, %v5324_v44  ;;  %6183 = vrcp.f32 %v5070_v56  ;;  %v5293_v6 = vand.u32 2147483648, %v5070_v56  ;;  %v5291_v51 = vand.u32 2147483647, %v5070_v56 }
 0x438   : > { %v5341_v29 = vadd.f32 %v6214_v28, %v5325_v47  ;;  %6185 = vrcp.f32 %v5071_v46  ;;  %v5308_v24 = vand.u32 2147483648, %v5071_v46  ;;  %v5306_v36 = vand.u32 2147483647, %v5071_v46 }
 0x439   : > { %5356 = vst.msk [vmem:[%s11283_s20 + $0x60] sm:$0xff] %vm13434_vm14, %v5340_v21  ;;  %vm5287_vm9 = vweird.f32 %v5070_v56  ;;  %v5294_v35 = vor.u32 1.1754944e-38, %v5293_v6  ;;  %vm5302_vm0 = vweird.f32 %v5071_v46  ;;  %vm5292_vm3 = vcmp.eq.f32.partialorder %v5291_v51, 8.507059e+37 }
 0x43a   : > { %5357 = vst.msk [vmem:[%s11283_s20 + $0x68] sm:$0xff] %vm13443_vm8, %v5341_v29  ;;  %v5309_v50 = vor.u32 1.1754944e-38, %v5308_v24  ;;  %vm5307_vm13 = vcmp.eq.f32.partialorder %v5306_v36, 8.507059e+37 }
 0x43d   : > { %v6184_v53 = vpop.eup %6183 }
 0x43e   : > { %v6186_v11 = vpop.eup %6185  ;;  %v5283_v61 = vmul.f32 %v6184_v53, %v5070_v56  ;;  %vm5288_vm10 = vweird.f32 %v6184_v53 }
 0x43f   : > { %v5298_v22 = vmul.f32 %v6186_v11, %v5071_v46  ;;  %vm5303_vm6 = vweird.f32 %v6186_v11  ;;  %vm5289_vm2 = vmor %vm5287_vm9, %vm5288_vm10 }
 0x440   : > { %v5284_v0 = vsub.f32 1.0, %v5283_v61  ;;  %vm5304_vm1 = vmor %vm5302_vm0, %vm5303_vm6 }
 0x441   : > { %v5299_v57 = vsub.f32 1.0, %v5298_v22 }
 0x442   : > { %v5285_v41 = vmul.f32 %v6184_v53, %v5284_v0 }
 0x443   : > { %v5300_v8 = vmul.f32 %v6186_v11, %v5299_v57 }
 0x444   : > { %v5286_v32 = vadd.f32 %v6184_v53, %v5285_v41 }
 0x445   : > { %v5301_v19 = vadd.f32 %v6186_v11, %v5300_v8 }
 0x446   : > { %v5290_v4 = vsel %vm5289_vm2, %v6184_v53, %v5286_v32 }
 0x447   : > { %v5295_v26 = vsel %vm5292_vm3, %v5294_v35, %v5290_v4  ;;  %v5305_v62 = vsel %vm5304_vm1, %v6186_v11, %v5301_v19 }
 0x448   : > { %v5310_v30 = vsel %vm5307_vm13, %v5309_v50, %v5305_v62  ;;  %v5326_v16 = vmul.f32 %v5295_v26, %v12449_v10 }
 0x449   : > { %v5327_v12 = vmul.f32 %v5310_v30, %v12452_v45 }
 0x44a   : > { %v5342_v27 = vadd.f32 %v6215_v31, %v5326_v16 }
 0x44b   : > { %v5343_v2 = vadd.f32 %v6216_v38, %v5327_v12 }
 0x44c   : > { %5358 = vst.msk [vmem:[%s11283_s20 + $0x70] sm:$0xff] %vm13444_vm11, %v5342_v27 }
 0x44d   : > { %5359 = vst.msk [vmem:[%s11283_s20 + $0x78] sm:$0xff] %vm13445_vm4, %v5343_v2 }
 0x44e PF: > { %s23_s29 = sadd.s32 1, %s6255_s29   ;;  %s13446_s25 = smov %s6247_s27 }
 0x44f   : > { %p20_p8 = scmp.ge.s32.totalorder %s23_s29, 6   ;;  %s13447_s26 = smov %s6251_s28 }
 0x450   : > { %s13448_s27 = smov %s13451_s30  ;;  %s13449_s28 = smov %s13455_s14 }
 0x451   :  { %22 = sbr.rel (!%p20_p8) target bundleno = 3 (0x3), region = 108 }

</bundles_post_ra>
